<compile_context>
chip_gen: v7x
topology: tpu7x:2x2x1
jax: 0.10.0
libtpu: 0.0.40
codegen_flags: <defaults>
</compile_context>

<pallas_src>
import math

import jax
import jax.numpy as jnp
from jax import lax
from jax.experimental import pallas as pl
from jax.experimental.pallas import tpu as pltpu


_CONV1_ROWS = 680      # 26*26 = 676 valid conv1 rows per image, padded to 680
_POOL_ROWS = 144       # 12*12 pooled positions per image
_OUT_ROWS = 72         # pooled rows packed two-per-row -> 128 lane-dense channels


# ----------------------------- Pallas kernels ------------------------------ #

def _features_kernel(p1_ref, w1_ref, b1_ref, w2_ref, b2_ref, o_ref,
                     h1_ref, y_ref, pool_ref):
    """conv1 + relu + conv2 + relu + 2x2 maxpool for a block of N images.

    p1_ref : (N*680, 9)   bf16  conv1 im2col rows (per image: row = i*26 + j)
    w1_ref : (9, 32)      bf16
    b1_ref : (1, 32)      f32
    w2_ref : (288, 64)    bf16  conv2 weight, row = (di*3+dj)*32 + c_in
    b2_ref : (1, 64)      f32
    o_ref  : (N*72, 128)  bf16  pooled activations, lane-dense fc1 order
    h1_ref : (N*680, 32)  bf16  scratch: conv1 activations (26-stride grid)
    y_ref  : (N*680-56,64)f32   scratch: conv2 activations (written once)
    pool_ref:(N*144, 64)  f32   scratch: pooled rows before lane packing
    """
    n_img = h1_ref.shape[0] // _CONV1_ROWS
    L = y_ref.shape[0]                      # = N*680 - 56 conv2 rows

    # conv1: one im2col GEMM over the whole batch block, bias + relu.
    h1 = jnp.dot(p1_ref[...], w1_ref[...], preferred_element_type=jnp.float32)
    h1_ref[...] = jnp.maximum(h1 + b1_ref[...], 0.0).astype(h1_ref.dtype)

    # conv2 as a single K=288 GEMM: 9 shifted views of h1, hoisted once and
    # concatenated along lanes (value accumulation happens inside the MXU --
    # no per-tap VMEM read-modify-write).  Valid output rows of image n only
    # read rows n*680 .. n*680+675, so views never mix images.
    shifts = [26 * di + dj for di in range(3) for dj in range(3)]
    lhs = jnp.concatenate([h1_ref[s:s + L, :] for s in shifts], axis=1)
    y = jnp.dot(lhs, w2_ref[...], preferred_element_type=jnp.float32)
    y_ref[...] = jnp.maximum(y + b2_ref[...], 0.0)          # single store

    # 2x2 max pool, stride 2.  Width pooling via strided sublane reads of the
    # conv2 scratch (rows 2k vs 2k+1); height pooling pairs rows 13 apart on
    # the compacted 13-stride grid.  Pooled (pi, pj) of image n sits at row
    # n*340 + 26*pi + pj of `wmax`-max.
    half = L // 2
    wmax = jnp.maximum(y_ref[pl.ds(0, half, 2), :],
                       y_ref[pl.ds(1, half, 2), :])          # (N*340-28, 64)
    chunks = []
    for n in range(n_img):
        wn = wmax[n * 340:n * 340 + 312, :]
        hn = jnp.maximum(wn[0:299, :], wn[13:312, :])        # (299, 64)
        for pi in range(12):
            chunks.append(hn[26 * pi:26 * pi + 12, :])       # (12, 64)
    pool_ref[...] = jnp.concatenate(chunks, axis=0)          # (N*144, 64), one store

    # Lane-dense packing: pooled rows (2m, 2m+1) share one 128-lane output row,
    # preserving the (i, j, c) flatten order.  Single full-block store.
    evens = pool_ref[pl.ds(0, n_img * _OUT_ROWS, 2), :]
    odds = pool_ref[pl.ds(1, n_img * _OUT_ROWS, 2), :]
    o_ref[...] = jnp.concatenate([evens, odds], axis=-1).astype(o_ref.dtype)


def _head_kernel(x_ref, w1_ref, b1_ref, w2_ref, b2_ref, o_ref):
    """fc1 + relu + fc2 + log_softmax in a single grid step (K = 9216).

    x_ref  : (NB, 9216)  bf16
    w1_ref : (9216, 128) bf16
    b1_ref : (1, 128)    f32
    w2_ref : (128, 10)   bf16
    b2_ref : (1, 10)     f32
    o_ref  : (NB, 10)    f32
    """
    h = jnp.dot(x_ref[...], w1_ref[...], preferred_element_type=jnp.float32)
    h = jnp.maximum(h + b1_ref[...], 0.0)
    y = jnp.dot(h.astype(w2_ref.dtype), w2_ref[...],
                preferred_element_type=jnp.float32) + b2_ref[...]
    m = jnp.max(y, axis=-1, keepdims=True)
    lse = m + jnp.log(jnp.sum(jnp.exp(y - m), axis=-1, keepdims=True))
    o_ref[...] = (y - lse).astype(o_ref.dtype)


# ------------------------------ kernel wrappers ----------------------------- #

def _features_block(batch):
    """Largest per-step image count that divides the batch, caps VMEM growth,
    and leaves >= 2 parallel grid steps (both v7x TensorCores) when batch >= 2."""
    best = 1
    for n in range(1, min(4, batch) + 1):
        if batch % n == 0 and (batch // n >= 2 or batch == 1):
            best = n
    return best


def conv_features(p1, w1m, b1, w2r, b2, *, batch):
    n = _features_block(batch)
    grid = batch // n
    rows_in = n * _CONV1_ROWS
    rows_out = n * _OUT_ROWS
    l_rows = n * _CONV1_ROWS - 56
    return pl.pallas_call(
        _features_kernel,
        out_shape=jax.ShapeDtypeStruct((batch * _OUT_ROWS, 128), jnp.bfloat16),
        grid_spec=pltpu.PrefetchScalarGridSpec(
            num_scalar_prefetch=0,
            grid=(grid,),
            in_specs=[
                pl.BlockSpec((rows_in, 9), lambda g: (g, 0)),
                pl.BlockSpec((9, 32), lambda g: (0, 0)),
                pl.BlockSpec((1, 32), lambda g: (0, 0)),
                pl.BlockSpec((288, 64), lambda g: (0, 0)),
                pl.BlockSpec((1, 64), lambda g: (0, 0)),
            ],
            out_specs=pl.BlockSpec((rows_out, 128), lambda g: (g, 0)),
            scratch_shapes=[
                pltpu.VMEM((rows_in, 32), jnp.bfloat16),     # conv1 activations
                pltpu.VMEM((l_rows, 64), jnp.float32),       # conv2 activations
                pltpu.VMEM((n * _POOL_ROWS, 64), jnp.float32),  # pooled rows
            ],
        ),
        compiler_params=pltpu.CompilerParams(
            dimension_semantics=("parallel",)),
    )(p1, w1m, b1, w2r, b2)


def mlp_head(flat, wf1m, bf1, wf2m, bf2):
    B, K = flat.shape
    assert K == 9216
    # Head is weight-DMA bound; a single K step avoids accumulator RMW and the
    # per-step overhead.  Only split the batch (2 parallel steps, v7x) when the
    # per-step row count stays sublane-tile aligned.
    nb = B // 2 if (B % 16 == 0) else B
    grid = B // nb
    return pl.pallas_call(
        _head_kernel,
        out_shape=jax.ShapeDtypeStruct((B, 10), jnp.float32),
        grid_spec=pltpu.PrefetchScalarGridSpec(
            num_scalar_prefetch=0,
            grid=(grid,),
            in_specs=[
                pl.BlockSpec((nb, K), lambda g: (g, 0)),
                pl.BlockSpec((K, 128), lambda g: (0, 0)),
                pl.BlockSpec((1, 128), lambda g: (0, 0)),
                pl.BlockSpec((128, 10), lambda g: (0, 0)),
                pl.BlockSpec((1, 10), lambda g: (0, 0)),
            ],
            out_specs=pl.BlockSpec((nb, 10), lambda g: (g, 0)),
        ),
        compiler_params=pltpu.CompilerParams(
            dimension_semantics=("parallel",)),
    )(flat, wf1m, bf1, wf2m, bf2)


# ------------------------------ plain-JAX glue ------------------------------ #

def _conv1_patch_rows(x):
    """(B, 28, 28) -> (B*680, 9): per image, row r = i*26 + j, col t = di*3 + dj.

    Rows 676..679 of each image's block are zero padding; they only ever feed
    discarded "junk" rows of the in-kernel conv2 output.
    """
    B = x.shape[0]
    cols = [x[:, di:di + 26, dj:dj + 26].reshape(B, 676, 1)
            for di in range(3) for dj in range(3)]
    p1 = jnp.concatenate(cols, axis=-1)                      # (B, 676, 9)
    p1 = jnp.pad(p1, ((0, 0), (0, 4), (0, 0)))               # (B, 680, 9)
    return p1.reshape(B * _CONV1_ROWS, 9)


def init_params(key):
    """Deterministic synthetic init; shapes match torch Net.__init__."""
    ks = jax.random.split(key, 8)

    def u(k, shape, fan_in):
        bound = 1.0 / math.sqrt(fan_in)
        return jax.random.uniform(k, shape, jnp.float32, -bound, bound)

    w1 = u(ks[0], (32, 1, 3, 3), 9)
    b1 = u(ks[1], (32,), 9)
    w2 = u(ks[2], (64, 32, 3, 3), 9 * 32)
    b2 = u(ks[3], (64,), 9 * 32)
    wf1 = u(ks[4], (128, 9216), 9216)
    bf1 = u(ks[5], (128,), 9216)
    wf2 = u(ks[6], (10, 128), 128)
    bf2 = u(ks[7], (10,), 128)
    return (w1, b1, w2, b2, wf1, bf1, wf2, bf2)


def prepare_params(params):
    """One-time weight re-layout + bf16 cast (done once, not per forward call)."""
    w1, b1, w2, b2, wf1, bf1, wf2, bf2 = params
    w1m = jnp.transpose(w1, (2, 3, 1, 0)).reshape(9, 32).astype(jnp.bfloat16)
    w2r = jnp.transpose(w2, (2, 3, 1, 0)).reshape(288, 64).astype(jnp.bfloat16)
    # torch flattens (C, H, W); our pooled layout is (H, W, C) -> permute fc1 columns.
    wf1m = (jnp.transpose(wf1.reshape(128, 64, 12, 12), (2, 3, 1, 0))
            .reshape(9216, 128).astype(jnp.bfloat16))
    wf2m = jnp.transpose(wf2).astype(jnp.bfloat16)           # (128, 10)
    return (w1m, b1.reshape(1, 32), w2r, b2.reshape(1, 64),
            wf1m, bf1.reshape(1, 128), wf2m, bf2.reshape(1, 10))


def net_forward(prepared, x_nchw):
    """Forward pass matching torch Net.forward (eval mode). x_nchw: (B,1,28,28) f32."""
    # TODO(synk): Dropout layers are identity here (eval/inference); train-mode RNG
    # masking is not implemented.
    w1m, b1, w2r, b2, wf1m, bf1, wf2m, bf2 = prepared
    B = x_nchw.shape[0]
    x = x_nchw.reshape(B, 28, 28)                            # single input channel
    p1 = _conv1_patch_rows(x).astype(jnp.bfloat16)           # (B*680, 9)
    feats = conv_features(p1, w1m, b1, w2r, b2, batch=B)     # (B*72, 128) bf16
    flat = feats.reshape(B, 9216)                            # free HBM reshape, (i,j,c) order
    return mlp_head(flat, wf1m, bf1, wf2m, bf2)              # (B, 10) f32


def reference_forward(params, x_nchw):
    """Pure-JAX f32 reference of torch Net.forward (eval mode)."""
    w1, b1, w2, b2, wf1, bf1, wf2, bf2 = params
    dn = ("NCHW", "OIHW", "NCHW")
    y = lax.conv_general_dilated(x_nchw, w1, (1, 1), "VALID", dimension_numbers=dn)
    y = jax.nn.relu(y + b1.reshape(1, -1, 1, 1))
    y = lax.conv_general_dilated(y, w2, (1, 1), "VALID", dimension_numbers=dn)
    y = jax.nn.relu(y + b2.reshape(1, -1, 1, 1))
    y = lax.reduce_window(y, -jnp.inf, lax.max, (1, 1, 2, 2), (1, 1, 2, 2), "VALID")
    y = y.reshape(y.shape[0], -1)                            # torch (C,H,W) flatten
    y = jax.nn.relu(y @ wf1.T + bf1)
    y = y @ wf2.T + bf2
    return jax.nn.log_softmax(y, axis=-1)


# ----------------------------------- main ----------------------------------- #

if __name__ == "__main__":
    key = jax.random.PRNGKey(0)
    k_params, k_x = jax.random.split(key)

    params = init_params(k_params)
    prepared = prepare_params(params)      # weight re-layout done once, not per call
    # MNIST-shaped input: fc1's 9216 = 64*12*12 implies 28x28 single-channel images.
    x = jax.random.normal(k_x, (2, 1, 28, 28), jnp.float32)

    out = jax.jit(net_forward)(prepared, x)
    out = jax.block_until_ready(out)

    assert out.shape == (2, 10), out.shape
    assert out.dtype == jnp.float32
    # log_softmax rows must exponentiate-sum to ~1
    rowsum = jnp.sum(jnp.exp(out), axis=1)
    assert bool(jnp.all(jnp.abs(rowsum - 1.0) < 1e-3)), rowsum
    # bf16 matmul operands with f32 accumulation -> loose tolerance vs f32 reference.
    ref = reference_forward(params, x)
    max_err = jnp.max(jnp.abs(out - ref))
    assert bool(max_err < 7.5e-2), max_err

    print("KERNEL_OK")
</pallas_src>

<mosaic_0001>
module attributes {stable_mosaic.version = 11 : i64} {
  func.func @_features_kernel(%arg0: i32, %arg1: memref<680x9xbf16, #tpu.memory_space<vmem>>, %arg2: memref<9x32xbf16, #tpu.memory_space<vmem>>, %arg3: memref<1x32xf32, #tpu.memory_space<vmem>>, %arg4: memref<288x64xbf16, #tpu.memory_space<vmem>>, %arg5: memref<1x64xf32, #tpu.memory_space<vmem>>, %arg6: memref<72x128xbf16, #tpu.memory_space<vmem>>, %arg7: memref<680x32xbf16, #tpu.memory_space<vmem>>, %arg8: memref<624x64xf32, #tpu.memory_space<vmem>>, %arg9: memref<144x64xf32, #tpu.memory_space<vmem>>) attributes {dimension_semantics = [#tpu.dimension_semantics<parallel>], iteration_bounds = array<i64: 2>, scalar_prefetch = 0 : i64, scratch_operands = 3 : i64, tpu.core_type = #tpu.core_type<tc>, window_params = [{transform_indices = @transform_0, window_bounds = array<i64: 680, 9>}, {pipeline_mode = #tpu.pipeline_mode<synchronous>, transform_indices = @transform_1, window_bounds = array<i64: 9, 32>}, {pipeline_mode = #tpu.pipeline_mode<synchronous>, transform_indices = @transform_2, window_bounds = array<i64: 1, 32>}, {pipeline_mode = #tpu.pipeline_mode<synchronous>, transform_indices = @transform_3, window_bounds = array<i64: 288, 64>}, {pipeline_mode = #tpu.pipeline_mode<synchronous>, transform_indices = @transform_4, window_bounds = array<i64: 1, 64>}, {transform_indices = @transform_5, window_bounds = array<i64: 72, 128>}]} {
    %c0 = arith.constant 0 : index
    %c0_0 = arith.constant 0 : index
    %0 = vector.load %arg1[%c0, %c0_0] : memref<680x9xbf16, #tpu.memory_space<vmem>>, vector<680x9xbf16>
    %c0_1 = arith.constant 0 : index
    %c0_2 = arith.constant 0 : index
    %1 = vector.load %arg2[%c0_1, %c0_2] : memref<9x32xbf16, #tpu.memory_space<vmem>>, vector<9x32xbf16>
    %cst = arith.constant dense<0.000000e+00> : vector<680x32xf32>
    %2 = tpu.matmul %0, %1, %cst {dimension_numbers = #tpu.dot_dimension_numbers<[1], [0], [0], [1], [0, 0, 1, 1], [], []>} : vector<680x9xbf16>, vector<9x32xbf16>, vector<680x32xf32> -> vector<680x32xf32>
    %c0_3 = arith.constant 0 : index
    %c0_4 = arith.constant 0 : index
    %3 = vector.load %arg3[%c0_3, %c0_4] : memref<1x32xf32, #tpu.memory_space<vmem>>, vector<1x32xf32>
    %4 = vector.broadcast %3 : vector<1x32xf32> to vector<680x32xf32>
    %5 = arith.addf %2, %4 : vector<680x32xf32>
    %cst_5 = arith.constant 0.000000e+00 : f32
    %6 = vector.broadcast %cst_5 : f32 to vector<680x32xf32>
    %7 = arith.maximumf %5, %6 : vector<680x32xf32>
    %8 = arith.truncf %7 : vector<680x32xf32> to vector<680x32xbf16>
    %c0_6 = arith.constant 0 : index
    %c0_7 = arith.constant 0 : index
    %9 = vector.load %arg7[%c0_6, %c0_7] : memref<680x32xbf16, #tpu.memory_space<vmem>>, vector<680x32xbf16>
    tpu.vector_store %arg7[%c0_6, %c0_7], %8 {strides = array<i32>} : memref<680x32xbf16, #tpu.memory_space<vmem>>, vector<680x32xbf16>,
    %c0_8 = arith.constant 0 : index
    %c0_9 = arith.constant 0 : index
    %10 = vector.load %arg7[%c0_8, %c0_9] : memref<680x32xbf16, #tpu.memory_space<vmem>>, vector<624x32xbf16>
    %c1 = arith.constant 1 : index
    %c0_10 = arith.constant 0 : index
    %11 = vector.load %arg7[%c1, %c0_10] : memref<680x32xbf16, #tpu.memory_space<vmem>>, vector<624x32xbf16>
    %c2 = arith.constant 2 : index
    %c0_11 = arith.constant 0 : index
    %12 = vector.load %arg7[%c2, %c0_11] : memref<680x32xbf16, #tpu.memory_space<vmem>>, vector<624x32xbf16>
    %c26 = arith.constant 26 : index
    %c0_12 = arith.constant 0 : index
    %13 = vector.load %arg7[%c26, %c0_12] : memref<680x32xbf16, #tpu.memory_space<vmem>>, vector<624x32xbf16>
    %c27 = arith.constant 27 : index
    %c0_13 = arith.constant 0 : index
    %14 = vector.load %arg7[%c27, %c0_13] : memref<680x32xbf16, #tpu.memory_space<vmem>>, vector<624x32xbf16>
    %c28 = arith.constant 28 : index
    %c0_14 = arith.constant 0 : index
    %15 = vector.load %arg7[%c28, %c0_14] : memref<680x32xbf16, #tpu.memory_space<vmem>>, vector<624x32xbf16>
    %c52 = arith.constant 52 : index
    %c0_15 = arith.constant 0 : index
    %16 = vector.load %arg7[%c52, %c0_15] : memref<680x32xbf16, #tpu.memory_space<vmem>>, vector<624x32xbf16>
    %c53 = arith.constant 53 : index
    %c0_16 = arith.constant 0 : index
    %17 = vector.load %arg7[%c53, %c0_16] : memref<680x32xbf16, #tpu.memory_space<vmem>>, vector<624x32xbf16>
    %c54 = arith.constant 54 : index
    %c0_17 = arith.constant 0 : index
    %18 = vector.load %arg7[%c54, %c0_17] : memref<680x32xbf16, #tpu.memory_space<vmem>>, vector<624x32xbf16>
    %19 = tpu.concatenate %10, %11, %12, %13, %14, %15, %16, %17, %18 in 1 : vector<624x32xbf16>, vector<624x32xbf16>, vector<624x32xbf16>, vector<624x32xbf16>, vector<624x32xbf16>, vector<624x32xbf16>, vector<624x32xbf16>, vector<624x32xbf16>, vector<624x32xbf16> -> vector<624x288xbf16>
    %c0_18 = arith.constant 0 : index
    %c0_19 = arith.constant 0 : index
    %20 = vector.load %arg4[%c0_18, %c0_19] : memref<288x64xbf16, #tpu.memory_space<vmem>>, vector<288x64xbf16>
    %cst_20 = arith.constant dense<0.000000e+00> : vector<624x64xf32>
    %21 = tpu.matmul %19, %20, %cst_20 {dimension_numbers = #tpu.dot_dimension_numbers<[1], [0], [0], [1], [0, 0, 1, 1], [], []>} : vector<624x288xbf16>, vector<288x64xbf16>, vector<624x64xf32> -> vector<624x64xf32>
    %c0_21 = arith.constant 0 : index
    %c0_22 = arith.constant 0 : index
    %22 = vector.load %arg5[%c0_21, %c0_22] : memref<1x64xf32, #tpu.memory_space<vmem>>, vector<1x64xf32>
    %23 = vector.broadcast %22 : vector<1x64xf32> to vector<624x64xf32>
    %24 = arith.addf %21, %23 : vector<624x64xf32>
    %cst_23 = arith.constant 0.000000e+00 : f32
    %25 = vector.broadcast %cst_23 : f32 to vector<624x64xf32>
    %26 = arith.maximumf %24, %25 : vector<624x64xf32>
    %c0_24 = arith.constant 0 : index
    %c0_25 = arith.constant 0 : index
    %27 = vector.load %arg8[%c0_24, %c0_25] : memref<624x64xf32, #tpu.memory_space<vmem>>, vector<624x64xf32>
    tpu.vector_store %arg8[%c0_24, %c0_25], %26 {strides = array<i32>} : memref<624x64xf32, #tpu.memory_space<vmem>>, vector<624x64xf32>,
    %c0_26 = arith.constant 0 : index
    %c0_27 = arith.constant 0 : index
    %28 = tpu.strided_load %arg8[%c0_26, %c0_27] {strides = array<i32: 2, 1>} : memref<624x64xf32, #tpu.memory_space<vmem>>, vector<312x64xf32>
    %c1_28 = arith.constant 1 : index
    %c0_29 = arith.constant 0 : index
    %29 = tpu.strided_load %arg8[%c1_28, %c0_29] {strides = array<i32: 2, 1>} : memref<624x64xf32, #tpu.memory_space<vmem>>, vector<312x64xf32>
    %30 = arith.maximumf %28, %29 : vector<312x64xf32>
    %31 = vector.extract_strided_slice %30 {offsets = [0, 0], sizes = [299, 64], strides = [1, 1]} : vector<312x64xf32> to vector<299x64xf32>
    %32 = vector.extract_strided_slice %30 {offsets = [13, 0], sizes = [299, 64], strides = [1, 1]} : vector<312x64xf32> to vector<299x64xf32>
    %33 = arith.maximumf %31, %32 : vector<299x64xf32>
    %34 = vector.extract_strided_slice %33 {offsets = [0, 0], sizes = [12, 64], strides = [1, 1]} : vector<299x64xf32> to vector<12x64xf32>
    %35 = vector.extract_strided_slice %33 {offsets = [26, 0], sizes = [12, 64], strides = [1, 1]} : vector<299x64xf32> to vector<12x64xf32>
    %36 = vector.extract_strided_slice %33 {offsets = [52, 0], sizes = [12, 64], strides = [1, 1]} : vector<299x64xf32> to vector<12x64xf32>
    %37 = vector.extract_strided_slice %33 {offsets = [78, 0], sizes = [12, 64], strides = [1, 1]} : vector<299x64xf32> to vector<12x64xf32>
    %38 = vector.extract_strided_slice %33 {offsets = [104, 0], sizes = [12, 64], strides = [1, 1]} : vector<299x64xf32> to vector<12x64xf32>
    %39 = vector.extract_strided_slice %33 {offsets = [130, 0], sizes = [12, 64], strides = [1, 1]} : vector<299x64xf32> to vector<12x64xf32>
    %40 = vector.extract_strided_slice %33 {offsets = [156, 0], sizes = [12, 64], strides = [1, 1]} : vector<299x64xf32> to vector<12x64xf32>
    %41 = vector.extract_strided_slice %33 {offsets = [182, 0], sizes = [12, 64], strides = [1, 1]} : vector<299x64xf32> to vector<12x64xf32>
    %42 = vector.extract_strided_slice %33 {offsets = [208, 0], sizes = [12, 64], strides = [1, 1]} : vector<299x64xf32> to vector<12x64xf32>
    %43 = vector.extract_strided_slice %33 {offsets = [234, 0], sizes = [12, 64], strides = [1, 1]} : vector<299x64xf32> to vector<12x64xf32>
    %44 = vector.extract_strided_slice %33 {offsets = [260, 0], sizes = [12, 64], strides = [1, 1]} : vector<299x64xf32> to vector<12x64xf32>
    %45 = vector.extract_strided_slice %33 {offsets = [286, 0], sizes = [12, 64], strides = [1, 1]} : vector<299x64xf32> to vector<12x64xf32>
    %46 = tpu.concatenate %34, %35, %36, %37, %38, %39, %40, %41, %42, %43, %44, %45 in 0 : vector<12x64xf32>, vector<12x64xf32>, vector<12x64xf32>, vector<12x64xf32>, vector<12x64xf32>, vector<12x64xf32>, vector<12x64xf32>, vector<12x64xf32>, vector<12x64xf32>, vector<12x64xf32>, vector<12x64xf32>, vector<12x64xf32> -> vector<144x64xf32>
    %c0_30 = arith.constant 0 : index
    %c0_31 = arith.constant 0 : index
    %47 = vector.load %arg9[%c0_30, %c0_31] : memref<144x64xf32, #tpu.memory_space<vmem>>, vector<144x64xf32>
    tpu.vector_store %arg9[%c0_30, %c0_31], %46 {strides = array<i32>} : memref<144x64xf32, #tpu.memory_space<vmem>>, vector<144x64xf32>,
    %c0_32 = arith.constant 0 : index
    %c0_33 = arith.constant 0 : index
    %48 = tpu.strided_load %arg9[%c0_32, %c0_33] {strides = array<i32: 2, 1>} : memref<144x64xf32, #tpu.memory_space<vmem>>, vector<72x64xf32>
    %c1_34 = arith.constant 1 : index
    %c0_35 = arith.constant 0 : index
    %49 = tpu.strided_load %arg9[%c1_34, %c0_35] {strides = array<i32: 2, 1>} : memref<144x64xf32, #tpu.memory_space<vmem>>, vector<72x64xf32>
    %50 = tpu.concatenate %48, %49 in 1 : vector<72x64xf32>, vector<72x64xf32> -> vector<72x128xf32>
    %51 = arith.truncf %50 : vector<72x128xf32> to vector<72x128xbf16>
    %c0_36 = arith.constant 0 : index
    %c0_37 = arith.constant 0 : index
    %52 = vector.load %arg6[%c0_36, %c0_37] : memref<72x128xbf16, #tpu.memory_space<vmem>>, vector<72x128xbf16>
    tpu.vector_store %arg6[%c0_36, %c0_37], %51 {strides = array<i32>} : memref<72x128xbf16, #tpu.memory_space<vmem>>, vector<72x128xbf16>,
    return
  }
  func.func @transform_0(%arg0: i32) -> (i32, i32) {
    %c0_i32 = arith.constant 0 : i32
    %c0_i32_0 = arith.constant 0 : i32
    return %arg0, %c0_i32 : i32, i32
  }
  func.func @transform_1(%arg0: i32) -> (i32, i32) {
    %c0_i32 = arith.constant 0 : i32
    %c0_i32_0 = arith.constant 0 : i32
    %c0_i32_1 = arith.constant 0 : i32
    return %c0_i32, %c0_i32_0 : i32, i32
  }
  func.func @transform_2(%arg0: i32) -> (i32, i32) {
    %c0_i32 = arith.constant 0 : i32
    %c0_i32_0 = arith.constant 0 : i32
    %c0_i32_1 = arith.constant 0 : i32
    return %c0_i32, %c0_i32_0 : i32, i32
  }
  func.func @transform_3(%arg0: i32) -> (i32, i32) {
    %c0_i32 = arith.constant 0 : i32
    %c0_i32_0 = arith.constant 0 : i32
    %c0_i32_1 = arith.constant 0 : i32
    return %c0_i32, %c0_i32_0 : i32, i32
  }
  func.func @transform_4(%arg0: i32) -> (i32, i32) {
    %c0_i32 = arith.constant 0 : i32
    %c0_i32_0 = arith.constant 0 : i32
    %c0_i32_1 = arith.constant 0 : i32
    return %c0_i32, %c0_i32_0 : i32, i32
  }
  func.func @transform_5(%arg0: i32) -> (i32, i32) {
    %c0_i32 = arith.constant 0 : i32
    %c0_i32_0 = arith.constant 0 : i32
    return %arg0, %c0_i32 : i32, i32
  }
}

module attributes {stable_mosaic.version = 11 : i64} {
  func.func @_head_kernel(%arg0: i32, %arg1: memref<2x9216xbf16, #tpu.memory_space<vmem>>, %arg2: memref<9216x128xbf16, #tpu.memory_space<vmem>>, %arg3: memref<1x128xf32, #tpu.memory_space<vmem>>, %arg4: memref<128x10xbf16, #tpu.memory_space<vmem>>, %arg5: memref<1x10xf32, #tpu.memory_space<vmem>>, %arg6: memref<2x10xf32, #tpu.memory_space<vmem>>) attributes {dimension_semantics = [#tpu.dimension_semantics<parallel>], iteration_bounds = array<i64: 1>, scalar_prefetch = 0 : i64, scratch_operands = 0 : i64, tpu.core_type = #tpu.core_type<tc>, window_params = [{transform_indices = @transform_0, window_bounds = array<i64: 2, 9216>}, {pipeline_mode = #tpu.pipeline_mode<synchronous>, transform_indices = @transform_1, window_bounds = array<i64: 9216, 128>}, {pipeline_mode = #tpu.pipeline_mode<synchronous>, transform_indices = @transform_2, window_bounds = array<i64: 1, 128>}, {pipeline_mode = #tpu.pipeline_mode<synchronous>, transform_indices = @transform_3, window_bounds = array<i64: 128, 10>}, {pipeline_mode = #tpu.pipeline_mode<synchronous>, transform_indices = @transform_4, window_bounds = array<i64: 1, 10>}, {transform_indices = @transform_5, window_bounds = array<i64: 2, 10>}]} {
    %c0 = arith.constant 0 : index
    %c0_0 = arith.constant 0 : index
    %0 = vector.load %arg1[%c0, %c0_0] : memref<2x9216xbf16, #tpu.memory_space<vmem>>, vector<2x9216xbf16>
    %c0_1 = arith.constant 0 : index
    %c0_2 = arith.constant 0 : index
    %1 = vector.load %arg2[%c0_1, %c0_2] : memref<9216x128xbf16, #tpu.memory_space<vmem>>, vector<9216x128xbf16>
    %cst = arith.constant dense<0.000000e+00> : vector<2x128xf32>
    %2 = tpu.matmul %0, %1, %cst {dimension_numbers = #tpu.dot_dimension_numbers<[1], [0], [0], [1], [0, 0, 1, 1], [], []>} : vector<2x9216xbf16>, vector<9216x128xbf16>, vector<2x128xf32> -> vector<2x128xf32>
    %c0_3 = arith.constant 0 : index
    %c0_4 = arith.constant 0 : index
    %3 = vector.load %arg3[%c0_3, %c0_4] : memref<1x128xf32, #tpu.memory_space<vmem>>, vector<1x128xf32>
    %4 = vector.broadcast %3 : vector<1x128xf32> to vector<2x128xf32>
    %5 = arith.addf %2, %4 : vector<2x128xf32>
    %cst_5 = arith.constant 0.000000e+00 : f32
    %6 = vector.broadcast %cst_5 : f32 to vector<2x128xf32>
    %7 = arith.maximumf %5, %6 : vector<2x128xf32>
    %8 = arith.truncf %7 : vector<2x128xf32> to vector<2x128xbf16>
    %c0_6 = arith.constant 0 : index
    %c0_7 = arith.constant 0 : index
    %9 = vector.load %arg4[%c0_6, %c0_7] : memref<128x10xbf16, #tpu.memory_space<vmem>>, vector<128x10xbf16>
    %cst_8 = arith.constant dense<0.000000e+00> : vector<2x10xf32>
    %10 = tpu.matmul %8, %9, %cst_8 {dimension_numbers = #tpu.dot_dimension_numbers<[1], [0], [0], [1], [0, 0, 1, 1], [], []>} : vector<2x128xbf16>, vector<128x10xbf16>, vector<2x10xf32> -> vector<2x10xf32>
    %c0_9 = arith.constant 0 : index
    %c0_10 = arith.constant 0 : index
    %11 = vector.load %arg5[%c0_9, %c0_10] : memref<1x10xf32, #tpu.memory_space<vmem>>, vector<1x10xf32>
    %12 = vector.broadcast %11 : vector<1x10xf32> to vector<2x10xf32>
    %13 = arith.addf %10, %12 : vector<2x10xf32>
    %cst_11 = arith.constant dense<0xFF800000> : vector<2xf32>
    %14 = vector.multi_reduction <maximumf>, %13, %cst_11 [1] : vector<2x10xf32> to vector<2xf32>
    %15 = vector.shape_cast %14 : vector<2xf32> to vector<2x1xf32>
    %16 = vector.broadcast %15 : vector<2x1xf32> to vector<2x10xf32>
    %17 = arith.subf %13, %16 : vector<2x10xf32>
    %18 = math.exp %17 : vector<2x10xf32>
    %cst_12 = arith.constant dense<0.000000e+00> : vector<2xf32>
    %19 = vector.multi_reduction <add>, %18, %cst_12 [1] : vector<2x10xf32> to vector<2xf32>
    %20 = vector.shape_cast %19 : vector<2xf32> to vector<2x1xf32>
    %21 = math.log %20 : vector<2x1xf32>
    %22 = arith.addf %15, %21 : vector<2x1xf32>
    %23 = vector.broadcast %22 : vector<2x1xf32> to vector<2x10xf32>
    %24 = arith.subf %13, %23 : vector<2x10xf32>
    %c0_13 = arith.constant 0 : index
    %c0_14 = arith.constant 0 : index
    %25 = vector.load %arg6[%c0_13, %c0_14] : memref<2x10xf32, #tpu.memory_space<vmem>>, vector<2x10xf32>
    tpu.vector_store %arg6[%c0_13, %c0_14], %24 {strides = array<i32>} : memref<2x10xf32, #tpu.memory_space<vmem>>, vector<2x10xf32>,
    return
  }
  func.func @transform_0(%arg0: i32) -> (i32, i32) {
    %c0_i32 = arith.constant 0 : i32
    %c0_i32_0 = arith.constant 0 : i32
    return %arg0, %c0_i32 : i32, i32
  }
  func.func @transform_1(%arg0: i32) -> (i32, i32) {
    %c0_i32 = arith.constant 0 : i32
    %c0_i32_0 = arith.constant 0 : i32
    %c0_i32_1 = arith.constant 0 : i32
    return %c0_i32, %c0_i32_0 : i32, i32
  }
  func.func @transform_2(%arg0: i32) -> (i32, i32) {
    %c0_i32 = arith.constant 0 : i32
    %c0_i32_0 = arith.constant 0 : i32
    %c0_i32_1 = arith.constant 0 : i32
    return %c0_i32, %c0_i32_0 : i32, i32
  }
  func.func @transform_3(%arg0: i32) -> (i32, i32) {
    %c0_i32 = arith.constant 0 : i32
    %c0_i32_0 = arith.constant 0 : i32
    %c0_i32_1 = arith.constant 0 : i32
    return %c0_i32, %c0_i32_0 : i32, i32
  }
  func.func @transform_4(%arg0: i32) -> (i32, i32) {
    %c0_i32 = arith.constant 0 : i32
    %c0_i32_0 = arith.constant 0 : i32
    %c0_i32_1 = arith.constant 0 : i32
    return %c0_i32, %c0_i32_0 : i32, i32
  }
  func.func @transform_5(%arg0: i32) -> (i32, i32) {
    %c0_i32 = arith.constant 0 : i32
    %c0_i32_0 = arith.constant 0 : i32
    return %arg0, %c0_i32 : i32, i32
  }
}

</mosaic_0001>

<bundles_post_ra>
// kernel: net_forward.3
= control target key start
LH: loop header
LB: loop body
LE: loop exit
PB: predicated region body
PF: predicated region fallthrough
CT: control target
= control target key end

     0   :  { %v1203_v28 = vlaneseq  ;;  %v8782_v36 = vmov 1966171168   ;;  %s10747_s0 = inlined_call_operand.vmem [shape: bf16[2,9216], index: 0, kind: input, shape index: {}]   ;;  %s10748_s1 = inlined_call_operand.vmem [shape: bf16[9216,128], index: 1, kind: input, shape index: {}]   ;;  %s10749_s2 = inlined_call_operand.vmem [shape: f32[1,128], index: 2, kind: input, shape index: {}]   ;;  %s10750_s3 = inlined_call_operand.vmem [shape: bf16[128,10], index: 3, kind: input, shape index: {}]   ;;  %s10751_s4 = inlined_call_operand.vmem [shape: f32[1,10], index: 4, kind: input, shape index: {}]   ;;  %s10752_s5 = inlined_call_operand.hbm [shape: f32[2,10], index: 5, kind: output, shape index: {}]  }
   0x1   :  { %v8161_v0 = vld [vmem:[%s10748_s1 + $0x40] sm:$0xff]   ;;  %v8165_v4 = vld [vmem:[%s10748_s1 + $0x48] sm:$0xff]   ;;  %v8169_v8 = vld [vmem:[%s10748_s1 + $0x50] sm:$0xff]   ;;  %v1201_v37 = vunpack.c.l.s4 %v8782_v36 }
   0x2   :  { %v8162_v1 = vld [vmem:[%s10748_s1 + $0xc0] sm:$0xff]   ;;  %7336 = vmatprep.subr.bf16.mxu0 %v8161_v0  ;;  %v8166_v5 = vld [vmem:[%s10748_s1 + $0xc8] sm:$0xff]   ;;  %v8170_v9 = vld [vmem:[%s10748_s1 + $0xd0] sm:$0xff]   ;;  %v1204_v33 = vshrl.u32 %v1203_v28, 7 }
   0x3   :  { %v8163_v2 = vld [vmem:[%s10748_s1] sm:$0xff]   ;;  %7358 = vmatprep.subr.bf16.mxu1 %v8162_v1  ;;  %v8167_v6 = vld [vmem:[%s10748_s1 + $0x8] sm:$0xff]   ;;  %v8171_v10 = vld [vmem:[%s10748_s1 + $0x10] sm:$0xff]   ;;  %v1202_v40 = vunpack.c.0.s8 %v1201_v37 }
   0x4   :  { %v8164_v3 = vld [vmem:[%s10748_s1 + $0x80] sm:$0xff]   ;;  %7337 = vmatpush3.bf16.msra.mxu0 %v8163_v2  ;;  %v8168_v7 = vld [vmem:[%s10748_s1 + $0x88] sm:$0xff]   ;;  %v8172_v11 = vld [vmem:[%s10748_s1 + $0x90] sm:$0xff]  }
   0x5   :  { %7359 = vmatpush3.bf16.msra.mxu1 %v8164_v3  ;;  %7338 = vmatprep.subr.bf16.mxu0 %v8165_v4  ;;  %v8173_v12 = vld [vmem:[%s10748_s1 + $0x58] sm:$0xff]   ;;  %v8177_v16 = vld [vmem:[%s10748_s1 + $0x60] sm:$0xff]   ;;  %v8181_v20 = vld [vmem:[%s10748_s1 + $0x68] sm:$0xff]   ;;  %v8921_v41 = vsub.s32 %v1202_v40, %v1204_v33 }
   0x6   :  { %7360 = vmatprep.subr.bf16.mxu1 %v8166_v5  ;;  %v8174_v13 = vld [vmem:[%s10748_s1 + $0xd8] sm:$0xff]   ;;  %v8178_v17 = vld [vmem:[%s10748_s1 + $0xe0] sm:$0xff]   ;;  %v8182_v21 = vld [vmem:[%s10748_s1 + $0xe8] sm:$0xff]  }
   0x7   :  { %v8175_v14 = vld [vmem:[%s10748_s1 + $0x18] sm:$0xff]   ;;  %v8179_v18 = vld [vmem:[%s10748_s1 + $0x20] sm:$0xff]   ;;  %v8183_v22 = vld [vmem:[%s10748_s1 + $0x28] sm:$0xff]  }
   0x8   :  { %7339 = vmatpush3.bf16.msra.mxu0 %v8167_v6  ;;  %v8176_v15 = vld [vmem:[%s10748_s1 + $0x98] sm:$0xff]   ;;  %v8180_v19 = vld [vmem:[%s10748_s1 + $0xa0] sm:$0xff]   ;;  %v8184_v23 = vld [vmem:[%s10748_s1 + $0xa8] sm:$0xff]  }
   0x9   :  { %7361 = vmatpush3.bf16.msra.mxu1 %v8168_v7  ;;  %7340 = vmatprep.subr.bf16.mxu0 %v8169_v8  ;;  %v8185_v24 = vld [vmem:[%s10748_s1 + $0x70] sm:$0xff]   ;;  %v8189_v29 = vld [vmem:[%s10748_s1 + $0x78] sm:$0xff]   ;;  %v22_v34 = vld [vmem:[%s10747_s0] sm:$0xff] }
   0xa   :  { %7362 = vmatprep.subr.bf16.mxu1 %v8170_v9  ;;  %v8186_v25 = vld [vmem:[%s10748_s1 + $0xf0] sm:$0xff]   ;;  %v8190_v30 = vld [vmem:[%s10748_s1 + $0xf8] sm:$0xff]   ;;  %v8194_v35 = vld [vmem:[%s10748_s1 + $0x140] sm:$0xff]   ;;  %v1199_v39 = vcombine.high %v22_v34, %v22_v34  ;;  %v1206_v42 = vrot.slane %v22_v34, %v8921_v41 }
   0xb   :  { %v8187_v26 = vld [vmem:[%s10748_s1 + $0x30] sm:$0xff]   ;;  %v8191_v31 = vld [vmem:[%s10748_s1 + $0x38] sm:$0xff]   ;;  %v8195_v38 = vld [vmem:[%s10748_s1 + $0x1c0] sm:$0xff]  }
   0xc   :  { %7341 = vmatpush3.bf16.msra.mxu0 %v8171_v10  ;;  %v8188_v27 = vld [vmem:[%s10748_s1 + $0xb0] sm:$0xff]   ;;  %v8192_v32 = vld [vmem:[%s10748_s1 + $0xb8] sm:$0xff]   ;;  %v8925_v43 = vrot.slane %v1199_v39, %v8921_v41  ;;  %v1214_v44 = vcombine.high %v1206_v42, %v1206_v42  ;;  %v1222_v45 = vrot.slane %v1206_v42, %v8921_v41  ;;  %v8196_v47 = vld [vmem:[%s10748_s1 + $0x100] sm:$0xff]  }
   0xd   :  { %7363 = vmatpush3.bf16.msra.mxu1 %v8172_v11  ;;  %7342 = vmatprep.subr.bf16.mxu0 %v8173_v12  ;;  %v8197_v49 = vld [vmem:[%s10748_s1 + $0x180] sm:$0xff]   ;;  %v8198_v52 = vld [vmem:[%s10748_s1 + $0x148] sm:$0xff]   ;;  %v8202_v58 = vld [vmem:[%s10748_s1 + $0x150] sm:$0xff]  }
   0xe   :  { %7364 = vmatprep.subr.bf16.mxu1 %v8174_v13  ;;  %v1215_v46 = vcombine.high %v8925_v43, %v8925_v43  ;;  %v1236_v48 = vrot.slane %v1214_v44, %v8921_v41  ;;  %v1244_v51 = vcombine.high %v1222_v45, %v1222_v45  ;;  %v8199_v54 = vld [vmem:[%s10748_s1 + $0x1c8] sm:$0xff]   ;;  %v8203_v59 = vld [vmem:[%s10748_s1 + $0x1d0] sm:$0xff]   ;;  %v8206_v62 = vld [vmem:[%s10748_s1 + $0x158] sm:$0xff]  }
   0xf   :  { %v8200_v55 = vld [vmem:[%s10748_s1 + $0x108] sm:$0xff]   ;;  %v8204_v60 = vld [vmem:[%s10748_s1 + $0x110] sm:$0xff]   ;;  %v8207_v63 = vld [vmem:[%s10748_s1 + $0x1d8] sm:$0xff]  }
  0x10   :  { %7343 = vmatpush3.bf16.msra.mxu0 %v8175_v14  ;;  %v1243_v50 = vrot.slane %v1215_v46, %v8921_v41  ;;  %5200 = vmatprep.mubr.bf16.mxu0 %v1236_v48  ;;  %v1246_v53 = vcombine.high %v1236_v48, %v1236_v48  ;;  %v8201_v57 = vld [vmem:[%s10748_s1 + $0x188] sm:$0xff]   ;;  %v8205_v61 = vld [vmem:[%s10748_s1 + $0x190] sm:$0xff]   ;;  %v8208_v0 = vld [vmem:[%s10748_s1 + $0x118] sm:$0xff]  }
  0x11   :  { %7365 = vmatpush3.bf16.msra.mxu1 %v8176_v15  ;;  %7344 = vmatprep.subr.bf16.mxu0 %v8177_v16  ;;  %v8209_v1 = vld [vmem:[%s10748_s1 + $0x198] sm:$0xff]   ;;  %v8210_v2 = vld [vmem:[%s10748_s1 + $0x160] sm:$0xff]   ;;  %v8214_v6 = vld [vmem:[%s10748_s1 + $0x168] sm:$0xff]  }
  0x12   :  { %7366 = vmatprep.subr.bf16.mxu1 %v8178_v17  ;;  %v1247_v56 = vcombine.high %v1243_v50, %v1243_v50  ;;  %5240 = vmatprep.mubr.bf16.mxu1 %v1246_v53  ;;  %v8211_v3 = vld [vmem:[%s10748_s1 + $0x1e0] sm:$0xff]   ;;  %v8215_v7 = vld [vmem:[%s10748_s1 + $0x1e8] sm:$0xff]   ;;  %v8218_v10 = vld [vmem:[%s10748_s1 + $0x170] sm:$0xff]  }
  0x13   :  { %v8212_v4 = vld [vmem:[%s10748_s1 + $0x120] sm:$0xff]   ;;  %v8216_v8 = vld [vmem:[%s10748_s1 + $0x128] sm:$0xff]   ;;  %v8219_v11 = vld [vmem:[%s10748_s1 + $0x1f0] sm:$0xff]  }
  0x14   :  { %7345 = vmatpush3.bf16.msra.mxu0 %v8179_v18  ;;  %v8213_v5 = vld [vmem:[%s10748_s1 + $0x1a0] sm:$0xff]   ;;  %v8217_v9 = vld [vmem:[%s10748_s1 + $0x1a8] sm:$0xff]   ;;  %v8220_v12 = vld [vmem:[%s10748_s1 + $0x130] sm:$0xff]   ;;  %v1229_v18 = vrot.slane %v8925_v43, %v8921_v41 }
  0x15   :  { %7367 = vmatpush3.bf16.msra.mxu1 %v8180_v19  ;;  %7346 = vmatprep.subr.bf16.mxu0 %v8181_v20  ;;  %v8221_v13 = vld [vmem:[%s10748_s1 + $0x1b0] sm:$0xff]   ;;  %v8222_v14 = vld [vmem:[%s10748_s1 + $0x178] sm:$0xff]   ;;  %v8226_v19 = vld [vmem:[%s10748_s1 + $0x240] sm:$0xff]  }
  0x16   :  { %7368 = vmatprep.subr.bf16.mxu1 %v8182_v21  ;;  %v8223_v15 = vld [vmem:[%s10748_s1 + $0x1f8] sm:$0xff]   ;;  %v8227_v20 = vld [vmem:[%s10748_s1 + $0x2c0] sm:$0xff]   ;;  %v8234_v28 = vld [vmem:[%s10748_s1 + $0x250] sm:$0xff]  }
  0x17   :  { %v8224_v16 = vld [vmem:[%s10748_s1 + $0x138] sm:$0xff]   ;;  %v8228_v21 = vld [vmem:[%s10748_s1 + $0x200] sm:$0xff]   ;;  %v8246_v40 = vld [vmem:[%s10748_s1 + $0x268] sm:$0xff]  }
  0x18   :  { %7347 = vmatpush3.bf16.msra.mxu0 %v8183_v22  ;;  %v8225_v17 = vld [vmem:[%s10748_s1 + $0x1b8] sm:$0xff]   ;;  %v8229_v22 = vld [vmem:[%s10748_s1 + $0x280] sm:$0xff]   ;;  %v8247_v42 = vld [vmem:[%s10748_s1 + $0x2e8] sm:$0xff]  }
  0x19   :  { %7369 = vmatpush3.bf16.msra.mxu1 %v8184_v23  ;;  %7348 = vmatprep.subr.bf16.mxu0 %v8185_v24  ;;  %v1245_v23 = vcombine.high %v1229_v18, %v1229_v18  ;;  %v8230_v24 = vld [vmem:[%s10748_s1 + $0x248] sm:$0xff]   ;;  %v8239_v33 = vld [vmem:[%s10748_s1 + $0x2d8] sm:$0xff]   ;;  %v8242_v36 = vld [vmem:[%s10748_s1 + $0x260] sm:$0xff]  }
  0x1a   :  { %7370 = vmatprep.subr.bf16.mxu1 %v8186_v25  ;;  %v8231_v25 = vld [vmem:[%s10748_s1 + $0x2c8] sm:$0xff]   ;;  %v8240_v34 = vld [vmem:[%s10748_s1 + $0x218] sm:$0xff]   ;;  %v8243_v37 = vld [vmem:[%s10748_s1 + $0x2e0] sm:$0xff]  }
  0x1b   :  { %v8245_v39 = vld [vmem:[%s10748_s1 + $0x2a0] sm:$0xff]   ;;  %v8248_v43 = vld [vmem:[%s10748_s1 + $0x228] sm:$0xff]  }
  0x1c   :  { %7349 = vmatpush3.bf16.msra.mxu0 %v8187_v26  ;;  %v8232_v26 = vld [vmem:[%s10748_s1 + $0x208] sm:$0xff]  }
  0x1d   :  { %7371 = vmatpush3.bf16.msra.mxu1 %v8188_v27  ;;  %7350 = vmatprep.subr.bf16.mxu0 %v8189_v29  ;;  %v8233_v27 = vld [vmem:[%s10748_s1 + $0x288] sm:$0xff]   ;;  %v8235_v29 = vld [vmem:[%s10748_s1 + $0x2d0] sm:$0xff]  }
  0x1e   :  { %7372 = vmatprep.subr.bf16.mxu1 %v8190_v30  ;;  %v8236_v30 = vld [vmem:[%s10748_s1 + $0x210] sm:$0xff]   ;;  %v8249_v44 = vld [vmem:[%s10748_s1 + $0x2a8] sm:$0xff]  }
  0x1f   :  { %v23_v46 = vld [vmem:[%s10747_s0 + $0x8] sm:$0xff] }
  0x20   :  { %7351 = vmatpush3.bf16.msra.mxu0 %v8191_v31  ;;  %v8237_v31 = vld [vmem:[%s10748_s1 + $0x290] sm:$0xff]   ;;  %v1255_v48 = vrot.slane %v23_v46, %v8921_v41 }
  0x21   :  { %7373 = vmatpush3.bf16.msra.mxu1 %v8192_v32  ;;  %7380 = vmatprep.subr.bf16.mxu0 %v8194_v35  ;;  %v8238_v32 = vld [vmem:[%s10748_s1 + $0x258] sm:$0xff]  }
  0x22   :  { %7402 = vmatprep.subr.bf16.mxu1 %v8195_v38  ;;  %v8241_v35 = vld [vmem:[%s10748_s1 + $0x298] sm:$0xff]   ;;  %v8244_v38 = vld [vmem:[%s10748_s1 + $0x220] sm:$0xff]  }
  0x23   :  { %5201 = vmatmul.mubr.bf16.vlgmr.msra.gmra.mrb[0].mxu0 %v1222_v45  ;;  %v8250_v45 = vld [vmem:[%s10748_s1 + $0x270] sm:$0xff]  }
  0x24   :  { %7381 = vmatpush3.bf16.msra.mxu0 %v8196_v47  ;;  %5241 = vmatmul.mubr.bf16.vlgmr.msra.gmra.mrb[0].mxu1 %v1244_v51  ;;  %v8251_v47 = vld [vmem:[%s10748_s1 + $0x2f0] sm:$0xff]  }
  0x25   :  { %7382 = vmatprep.subr.bf16.mxu0 %v8198_v52  ;;  %7403 = vmatpush3.bf16.msra.mxu1 %v8197_v49  ;;  %v1248_v49 = vcombine.high %v23_v46, %v23_v46  ;;  %v8253_v51 = vld [vmem:[%s10748_s1 + $0x2b0] sm:$0xff]   ;;  %v1263_v52 = vcombine.high %v1255_v48, %v1255_v48 }
  0x26   :  { %5280 = vmatprep.mubr.bf16.mxu0 %v1243_v50  ;;  %7404 = vmatprep.subr.bf16.mxu1 %v8199_v54  ;;  %v8252_v50 = vld [vmem:[%s10748_s1 + $0x230] sm:$0xff]   ;;  %v8254_v54 = vld [vmem:[%s10748_s1 + $0x278] sm:$0xff]  }
  0x27   :  { %5320 = vmatprep.mubr.bf16.mxu1 %v1247_v56  ;;  %v9113_v53 = vrot.slane %v1248_v49, %v8921_v41  ;;  %v1285_v56 = vrot.slane %v1263_v52, %v8921_v41  ;;  %v8301_v46 = vld [vmem:[%s10748_s1 + $0x410] sm:$0xff]   ;;  %v8304_v49 = vld [vmem:[%s10748_s1 + $0x4d8] sm:$0xff]   ;;  %v8307_v52 = vld [vmem:[%s10748_s1 + $0x460] sm:$0xff]  }
  0x28   :  { %7383 = vmatpush3.bf16.msra.mxu0 %v8200_v55  ;;  %v8255_v55 = vld [vmem:[%s10748_s1 + $0x2f8] sm:$0xff]  }
  0x29   :  { %7384 = vmatprep.subr.bf16.mxu0 %v8202_v58  ;;  %7405 = vmatpush3.bf16.msra.mxu1 %v8201_v57  ;;  %v1264_v57 = vcombine.high %v9113_v53, %v9113_v53  ;;  %v8256_v58 = vld [vmem:[%s10748_s1 + $0x238] sm:$0xff]  }
  0x2a   :  { %7406 = vmatprep.subr.bf16.mxu1 %v8203_v59  ;;  %v8257_v59 = vld [vmem:[%s10748_s1 + $0x2b8] sm:$0xff]  }
  0x2c   :  { %7385 = vmatpush3.bf16.msra.mxu0 %v8204_v60  ;;  %v1295_v60 = vcombine.high %v1285_v56, %v1285_v56 }
  0x2d   :  { %7386 = vmatprep.subr.bf16.mxu0 %v8206_v62  ;;  %7407 = vmatpush3.bf16.msra.mxu1 %v8205_v61  ;;  %v1271_v61 = vrot.slane %v1255_v48, %v8921_v41  ;;  %v8258_v62 = vld [vmem:[%s10748_s1 + $0x340] sm:$0xff]   ;;  %v8303_v48 = vld [vmem:[%s10748_s1 + $0x458] sm:$0xff]  }
  0x2e   :  { %7408 = vmatprep.subr.bf16.mxu1 %v8207_v63  ;;  %v8259_v63 = vld [vmem:[%s10748_s1 + $0x3c0] sm:$0xff]  }
  0x30   :  { %7387 = vmatpush3.bf16.msra.mxu0 %v8208_v0  ;;  %v1292_v0 = vrot.slane %v1264_v57, %v8921_v41  ;;  %v8312_v57 = vld [vmem:[%s10748_s1 + $0x4e8] sm:$0xff]  }
  0x31   :  { %7388 = vmatprep.subr.bf16.mxu0 %v8210_v2  ;;  %7409 = vmatpush3.bf16.msra.mxu1 %v8209_v1  ;;  %v8260_v1 = vld [vmem:[%s10748_s1 + $0x300] sm:$0xff]  }
  0x32   :  { %7410 = vmatprep.subr.bf16.mxu1 %v8211_v3  ;;  %v8261_v2 = vld [vmem:[%s10748_s1 + $0x380] sm:$0xff]   ;;  %v1293_v3 = vcombine.high %v1271_v61, %v1271_v61 }
  0x34   :  { %7389 = vmatpush3.bf16.msra.mxu0 %v8212_v4  ;;  %v8262_v4 = vld [vmem:[%s10748_s1 + $0x348] sm:$0xff]  }
  0x35   :  { %7390 = vmatprep.subr.bf16.mxu0 %v8214_v6  ;;  %7411 = vmatpush3.bf16.msra.mxu1 %v8213_v5  ;;  %v8263_v5 = vld [vmem:[%s10748_s1 + $0x3c8] sm:$0xff]   ;;  %v1296_v6 = vcombine.high %v1292_v0, %v1292_v0 }
  0x36   :  { %7412 = vmatprep.subr.bf16.mxu1 %v8215_v7  ;;  %v8264_v7 = vld [vmem:[%s10748_s1 + $0x308] sm:$0xff]  }
  0x38   :  { %7391 = vmatpush3.bf16.msra.mxu0 %v8216_v8  ;;  %v8265_v8 = vld [vmem:[%s10748_s1 + $0x388] sm:$0xff]  }
  0x39   :  { %7392 = vmatprep.subr.bf16.mxu0 %v8218_v10  ;;  %7413 = vmatpush3.bf16.msra.mxu1 %v8217_v9  ;;  %v8266_v9 = vld [vmem:[%s10748_s1 + $0x350] sm:$0xff]  }
  0x3a   :  { %7414 = vmatprep.subr.bf16.mxu1 %v8219_v11  ;;  %v8267_v10 = vld [vmem:[%s10748_s1 + $0x3d0] sm:$0xff]  }
  0x3b   :  { %v8268_v11 = vld [vmem:[%s10748_s1 + $0x310] sm:$0xff]  }
  0x3c   :  { %7393 = vmatpush3.bf16.msra.mxu0 %v8220_v12  ;;  %v8269_v12 = vld [vmem:[%s10748_s1 + $0x390] sm:$0xff]  }
  0x3d   :  { %7394 = vmatprep.subr.bf16.mxu0 %v8222_v14  ;;  %7415 = vmatpush3.bf16.msra.mxu1 %v8221_v13  ;;  %v8270_v13 = vld [vmem:[%s10748_s1 + $0x358] sm:$0xff]  }
  0x3e   :  { %7416 = vmatprep.subr.bf16.mxu1 %v8223_v15  ;;  %v8271_v14 = vld [vmem:[%s10748_s1 + $0x3d8] sm:$0xff]  }
  0x3f   :  { %v8272_v15 = vld [vmem:[%s10748_s1 + $0x318] sm:$0xff]  }
  0x40   :  { %7395 = vmatpush3.bf16.msra.mxu0 %v8224_v16  ;;  %v8273_v16 = vld [vmem:[%s10748_s1 + $0x398] sm:$0xff]  }
  0x41   :  { %7424 = vmatprep.subr.bf16.mxu0 %v8226_v19  ;;  %7417 = vmatpush3.bf16.msra.mxu1 %v8225_v17  ;;  %v8274_v17 = vld [vmem:[%s10748_s1 + $0x360] sm:$0xff]  }
  0x42   :  { %7446 = vmatprep.subr.bf16.mxu1 %v8227_v20  ;;  %v8276_v19 = vld [vmem:[%s10748_s1 + $0x320] sm:$0xff]  }
  0x43   :  { %5281 = vmatmul.mubr.bf16.vlgmr.msra.gmra.mrb[4].mxu0 %v1229_v18  ;;  %v8275_v18 = vld [vmem:[%s10748_s1 + $0x3e0] sm:$0xff]  }
  0x44   :  { %7425 = vmatpush3.bf16.msra.mxu0 %v8228_v21  ;;  %5321 = vmatmul.mubr.bf16.vlgmr.msra.gmra.mrb[4].mxu1 %v1245_v23  ;;  %v8277_v20 = vld [vmem:[%s10748_s1 + $0x3a0] sm:$0xff]   ;;  %v8278_v21 = vld [vmem:[%s10748_s1 + $0x368] sm:$0xff]  }
  0x45   :  { %7426 = vmatprep.subr.bf16.mxu0 %v8230_v24  ;;  %7447 = vmatpush3.bf16.msra.mxu1 %v8229_v22  ;;  %v8279_v22 = vld [vmem:[%s10748_s1 + $0x3e8] sm:$0xff]  }
  0x46   :  { %7448 = vmatprep.subr.bf16.mxu1 %v8231_v25  ;;  %5360 = vmatprep.mubr.bf16.mxu0 %v1285_v56  ;;  %v8280_v23 = vld [vmem:[%s10748_s1 + $0x328] sm:$0xff]   ;;  %v8282_v25 = vld [vmem:[%s10748_s1 + $0x370] sm:$0xff]  }
  0x47   :  { %5400 = vmatprep.mubr.bf16.mxu1 %v1295_v60  ;;  %v8281_v24 = vld [vmem:[%s10748_s1 + $0x3a8] sm:$0xff]   ;;  %v8315_v60 = vld [vmem:[%s10748_s1 + $0x470] sm:$0xff]  }
  0x48   :  { %7427 = vmatpush3.bf16.msra.mxu0 %v8232_v26  ;;  %v8283_v26 = vld [vmem:[%s10748_s1 + $0x3f0] sm:$0xff]   ;;  %v8311_v56 = vld [vmem:[%s10748_s1 + $0x468] sm:$0xff]  }
  0x49   :  { %7428 = vmatprep.subr.bf16.mxu0 %v8234_v28  ;;  %7449 = vmatpush3.bf16.msra.mxu1 %v8233_v27  ;;  %v8284_v27 = vld [vmem:[%s10748_s1 + $0x330] sm:$0xff]  }
  0x4a   :  { %7450 = vmatprep.subr.bf16.mxu1 %v8235_v29  ;;  %v8285_v28 = vld [vmem:[%s10748_s1 + $0x3b0] sm:$0xff]   ;;  %v8286_v29 = vld [vmem:[%s10748_s1 + $0x378] sm:$0xff]  }
  0x4c   :  { %7429 = vmatpush3.bf16.msra.mxu0 %v8236_v30  ;;  %v8287_v30 = vld [vmem:[%s10748_s1 + $0x3f8] sm:$0xff]  }
  0x4d   :  { %7430 = vmatprep.subr.bf16.mxu0 %v8238_v32  ;;  %7451 = vmatpush3.bf16.msra.mxu1 %v8237_v31  ;;  %v8288_v31 = vld [vmem:[%s10748_s1 + $0x338] sm:$0xff]  }
  0x4e   :  { %7452 = vmatprep.subr.bf16.mxu1 %v8239_v33  ;;  %v8289_v32 = vld [vmem:[%s10748_s1 + $0x3b8] sm:$0xff]   ;;  %v1278_v33 = vrot.slane %v9113_v53, %v8921_v41  ;;  %v8308_v53 = vld [vmem:[%s10748_s1 + $0x4e0] sm:$0xff]  }
  0x50   :  { %7431 = vmatpush3.bf16.msra.mxu0 %v8240_v34  ;;  %v8291_v34 = vld [vmem:[%s10748_s1 + $0x440] sm:$0xff]  }
  0x51   :  { %7432 = vmatprep.subr.bf16.mxu0 %v8242_v36  ;;  %7453 = vmatpush3.bf16.msra.mxu1 %v8241_v35  ;;  %v8292_v35 = vld [vmem:[%s10748_s1 + $0x4c0] sm:$0xff]  }
  0x52   :  { %7454 = vmatprep.subr.bf16.mxu1 %v8243_v37  ;;  %v8293_v36 = vld [vmem:[%s10748_s1 + $0x400] sm:$0xff]  }
  0x53   :  { %v8294_v37 = vld [vmem:[%s10748_s1 + $0x480] sm:$0xff]  }
  0x54   :  { %7433 = vmatpush3.bf16.msra.mxu0 %v8244_v38  ;;  %v1294_v38 = vcombine.high %v1278_v33, %v1278_v33 }
  0x55   :  { %7434 = vmatprep.subr.bf16.mxu0 %v8246_v40  ;;  %7455 = vmatpush3.bf16.msra.mxu1 %v8245_v39  ;;  %v8295_v39 = vld [vmem:[%s10748_s1 + $0x448] sm:$0xff]  }
  0x56   :  { %7456 = vmatprep.subr.bf16.mxu1 %v8247_v42  ;;  %v8296_v40 = vld [vmem:[%s10748_s1 + $0x4c8] sm:$0xff]  }
  0x57   :  { %v8297_v42 = vld [vmem:[%s10748_s1 + $0x408] sm:$0xff]  }
  0x58   :  { %7435 = vmatpush3.bf16.msra.mxu0 %v8248_v43  ;;  %v8298_v43 = vld [vmem:[%s10748_s1 + $0x488] sm:$0xff]  }
  0x59   :  { %7436 = vmatprep.subr.bf16.mxu0 %v8250_v45  ;;  %7457 = vmatpush3.bf16.msra.mxu1 %v8249_v44  ;;  %v8299_v44 = vld [vmem:[%s10748_s1 + $0x450] sm:$0xff]  }
  0x5a   :  { %7458 = vmatprep.subr.bf16.mxu1 %v8251_v47  ;;  %v8300_v45 = vld [vmem:[%s10748_s1 + $0x4d0] sm:$0xff]  }
  0x5b   :  { %v8302_v47 = vld [vmem:[%s10748_s1 + $0x490] sm:$0xff]  }
  0x5c   :  { %7437 = vmatpush3.bf16.msra.mxu0 %v8252_v50  ;;  %v8305_v50 = vld [vmem:[%s10748_s1 + $0x418] sm:$0xff]  }
  0x5d   :  { %7438 = vmatprep.subr.bf16.mxu0 %v8254_v54  ;;  %7459 = vmatpush3.bf16.msra.mxu1 %v8253_v51  ;;  %v8306_v51 = vld [vmem:[%s10748_s1 + $0x498] sm:$0xff]   ;;  %v8309_v54 = vld [vmem:[%s10748_s1 + $0x420] sm:$0xff]  }
  0x5e   :  { %7460 = vmatprep.subr.bf16.mxu1 %v8255_v55  ;;  %v8310_v55 = vld [vmem:[%s10748_s1 + $0x4a0] sm:$0xff]  }
  0x60   :  { %7439 = vmatpush3.bf16.msra.mxu0 %v8256_v58  ;;  %v8313_v58 = vld [vmem:[%s10748_s1 + $0x428] sm:$0xff]  }
  0x61   :  { %7468 = vmatprep.subr.bf16.mxu0 %v8258_v62  ;;  %7461 = vmatpush3.bf16.msra.mxu1 %v8257_v59  ;;  %v8314_v59 = vld [vmem:[%s10748_s1 + $0x4a8] sm:$0xff]   ;;  %v8316_v62 = vld [vmem:[%s10748_s1 + $0x4f0] sm:$0xff]  }
  0x62   :  { %7490 = vmatprep.subr.bf16.mxu1 %v8259_v63 }
  0x63   :  { %5361 = vmatmul.mubr.bf16.vlgmr.msra.gmra.mrb[8].mxu0 %v1271_v61  ;;  %v24_v61 = vld [vmem:[%s10747_s0 + $0x10] sm:$0xff] }
  0x64   :  { %7469 = vmatpush3.bf16.msra.mxu0 %v8260_v1  ;;  %5440 = vmatprep.mubr.bf16.mxu0 %v1292_v0  ;;  %v1304_v63 = vrot.slane %v24_v61, %v8921_v41  ;;  %v1297_v0 = vcombine.high %v24_v61, %v24_v61  ;;  %v8317_v1 = vld [vmem:[%s10748_s1 + $0x430] sm:$0xff]  }
  0x65   :  { %5401 = vmatmul.mubr.bf16.vlgmr.msra.gmra.mrb[8].mxu1 %v1293_v3  ;;  %7470 = vmatprep.subr.bf16.mxu0 %v8262_v4  ;;  %v8366_v61 = vld [vmem:[%s10748_s1 + $0x610] sm:$0xff]  }
  0x66   :  { %7491 = vmatpush3.bf16.msra.mxu1 %v8261_v2  ;;  %5480 = vmatprep.mubr.bf16.mxu1 %v1296_v6  ;;  %v8318_v2 = vld [vmem:[%s10748_s1 + $0x4b0] sm:$0xff]   ;;  %v1312_v3 = vcombine.high %v1304_v63, %v1304_v63  ;;  %v9319_v4 = vrot.slane %v1297_v0, %v8921_v41  ;;  %v8320_v6 = vld [vmem:[%s10748_s1 + $0x4f8] sm:$0xff]  }
  0x67   :  { %7492 = vmatprep.subr.bf16.mxu1 %v8263_v5  ;;  %v8319_v5 = vld [vmem:[%s10748_s1 + $0x478] sm:$0xff]  }
  0x68   :  { %7471 = vmatpush3.bf16.msra.mxu0 %v8264_v7  ;;  %v1334_v7 = vrot.slane %v1312_v3, %v8921_v41  ;;  %v8369_v0 = vld [vmem:[%s10748_s1 + $0x6d8] sm:$0xff]   ;;  %v8372_v3 = vld [vmem:[%s10748_s1 + $0x660] sm:$0xff]  }
  0x69   :  { %7472 = vmatprep.subr.bf16.mxu0 %v8266_v9  ;;  %v8321_v9 = vld [vmem:[%s10748_s1 + $0x438] sm:$0xff]  }
  0x6a   :  { %7493 = vmatpush3.bf16.msra.mxu1 %v8265_v8  ;;  %v1313_v8 = vcombine.high %v9319_v4, %v9319_v4 }
  0x6b   :  { %7494 = vmatprep.subr.bf16.mxu1 %v8267_v10  ;;  %v8322_v10 = vld [vmem:[%s10748_s1 + $0x4b8] sm:$0xff]  }
  0x6c   :  { %7473 = vmatpush3.bf16.msra.mxu0 %v8268_v11  ;;  %v1344_v11 = vcombine.high %v1334_v7, %v1334_v7 }
  0x6d   :  { %7474 = vmatprep.subr.bf16.mxu0 %v8270_v13  ;;  %v8323_v13 = vld [vmem:[%s10748_s1 + $0x540] sm:$0xff]  }
  0x6e   :  { %7495 = vmatpush3.bf16.msra.mxu1 %v8269_v12  ;;  %v1320_v12 = vrot.slane %v1304_v63, %v8921_v41  ;;  %v8368_v63 = vld [vmem:[%s10748_s1 + $0x658] sm:$0xff]  }
  0x6f   :  { %7496 = vmatprep.subr.bf16.mxu1 %v8271_v14  ;;  %v8324_v14 = vld [vmem:[%s10748_s1 + $0x5c0] sm:$0xff]  }
  0x70   :  { %7475 = vmatpush3.bf16.msra.mxu0 %v8272_v15  ;;  %v1341_v15 = vrot.slane %v1313_v8, %v8921_v41  ;;  %v8377_v8 = vld [vmem:[%s10748_s1 + $0x6e8] sm:$0xff]  }
  0x71   :  { %7476 = vmatprep.subr.bf16.mxu0 %v8274_v17  ;;  %v8326_v17 = vld [vmem:[%s10748_s1 + $0x580] sm:$0xff]  }
  0x72   :  { %7497 = vmatpush3.bf16.msra.mxu1 %v8273_v16  ;;  %v8325_v16 = vld [vmem:[%s10748_s1 + $0x500] sm:$0xff]  }
  0x73   :  { %7498 = vmatprep.subr.bf16.mxu1 %v8275_v18  ;;  %v1342_v18 = vcombine.high %v1320_v12, %v1320_v12 }
  0x74   :  { %7477 = vmatpush3.bf16.msra.mxu0 %v8276_v19  ;;  %v8327_v19 = vld [vmem:[%s10748_s1 + $0x548] sm:$0xff]  }
  0x75   :  { %7478 = vmatprep.subr.bf16.mxu0 %v8278_v21  ;;  %v1345_v21 = vcombine.high %v1341_v15, %v1341_v15 }
  0x76   :  { %7499 = vmatpush3.bf16.msra.mxu1 %v8277_v20  ;;  %v8328_v20 = vld [vmem:[%s10748_s1 + $0x5c8] sm:$0xff]  }
  0x77   :  { %7500 = vmatprep.subr.bf16.mxu1 %v8279_v22  ;;  %v8329_v22 = vld [vmem:[%s10748_s1 + $0x508] sm:$0xff]  }
  0x78   :  { %7479 = vmatpush3.bf16.msra.mxu0 %v8280_v23  ;;  %v8330_v23 = vld [vmem:[%s10748_s1 + $0x588] sm:$0xff]  }
  0x79   :  { %7480 = vmatprep.subr.bf16.mxu0 %v8282_v25  ;;  %v8332_v25 = vld [vmem:[%s10748_s1 + $0x5d0] sm:$0xff]  }
  0x7a   :  { %7501 = vmatpush3.bf16.msra.mxu1 %v8281_v24  ;;  %v8331_v24 = vld [vmem:[%s10748_s1 + $0x550] sm:$0xff]  }
  0x7b   :  { %7502 = vmatprep.subr.bf16.mxu1 %v8283_v26  ;;  %v8333_v26 = vld [vmem:[%s10748_s1 + $0x510] sm:$0xff]  }
  0x7c   :  { %7481 = vmatpush3.bf16.msra.mxu0 %v8284_v27  ;;  %v8334_v27 = vld [vmem:[%s10748_s1 + $0x590] sm:$0xff]  }
  0x7d   :  { %7482 = vmatprep.subr.bf16.mxu0 %v8286_v29  ;;  %v8336_v29 = vld [vmem:[%s10748_s1 + $0x5d8] sm:$0xff]  }
  0x7e   :  { %7503 = vmatpush3.bf16.msra.mxu1 %v8285_v28  ;;  %v8335_v28 = vld [vmem:[%s10748_s1 + $0x558] sm:$0xff]  }
  0x7f   :  { %7504 = vmatprep.subr.bf16.mxu1 %v8287_v30  ;;  %v8337_v30 = vld [vmem:[%s10748_s1 + $0x518] sm:$0xff]  }
  0x80   :  { %7483 = vmatpush3.bf16.msra.mxu0 %v8288_v31  ;;  %v8338_v31 = vld [vmem:[%s10748_s1 + $0x598] sm:$0xff]  }
  0x81   :  { %7512 = vmatprep.subr.bf16.mxu0 %v8291_v34  ;;  %v8341_v34 = vld [vmem:[%s10748_s1 + $0x520] sm:$0xff]  }
  0x82   :  { %7505 = vmatpush3.bf16.msra.mxu1 %v8289_v32  ;;  %v8339_v32 = vld [vmem:[%s10748_s1 + $0x560] sm:$0xff]  }
  0x83   :  { %5441 = vmatmul.mubr.bf16.vlgmr.msra.gmra.mrb[12].mxu0 %v1278_v33  ;;  %7534 = vmatprep.subr.bf16.mxu1 %v8292_v35  ;;  %v8340_v33 = vld [vmem:[%s10748_s1 + $0x5e0] sm:$0xff]  }
  0x84   :  { %7513 = vmatpush3.bf16.msra.mxu0 %v8293_v36  ;;  %5520 = vmatprep.mubr.bf16.mxu0 %v1334_v7  ;;  %v8342_v35 = vld [vmem:[%s10748_s1 + $0x5a0] sm:$0xff]   ;;  %v8343_v36 = vld [vmem:[%s10748_s1 + $0x568] sm:$0xff]  }
  0x85   :  { %5481 = vmatmul.mubr.bf16.vlgmr.msra.gmra.mrb[12].mxu1 %v1294_v38  ;;  %7514 = vmatprep.subr.bf16.mxu0 %v8295_v39  ;;  %v8345_v38 = vld [vmem:[%s10748_s1 + $0x528] sm:$0xff]  }
  0x86   :  { %7535 = vmatpush3.bf16.msra.mxu1 %v8294_v37  ;;  %5560 = vmatprep.mubr.bf16.mxu1 %v1344_v11  ;;  %v8344_v37 = vld [vmem:[%s10748_s1 + $0x5e8] sm:$0xff]   ;;  %v8380_v11 = vld [vmem:[%s10748_s1 + $0x670] sm:$0xff]  }
  0x87   :  { %7536 = vmatprep.subr.bf16.mxu1 %v8296_v40  ;;  %v8346_v39 = vld [vmem:[%s10748_s1 + $0x5a8] sm:$0xff]   ;;  %v8347_v40 = vld [vmem:[%s10748_s1 + $0x570] sm:$0xff]  }
  0x88   :  { %7515 = vmatpush3.bf16.msra.mxu0 %v8297_v42  ;;  %v8348_v42 = vld [vmem:[%s10748_s1 + $0x5f0] sm:$0xff]   ;;  %v8376_v7 = vld [vmem:[%s10748_s1 + $0x668] sm:$0xff]  }
  0x89   :  { %7516 = vmatprep.subr.bf16.mxu0 %v8299_v44  ;;  %v8350_v44 = vld [vmem:[%s10748_s1 + $0x5b0] sm:$0xff]  }
  0x8a   :  { %7537 = vmatpush3.bf16.msra.mxu1 %v8298_v43  ;;  %v8349_v43 = vld [vmem:[%s10748_s1 + $0x530] sm:$0xff]  }
  0x8b   :  { %7538 = vmatprep.subr.bf16.mxu1 %v8300_v45  ;;  %v8351_v45 = vld [vmem:[%s10748_s1 + $0x578] sm:$0xff]  }
  0x8c   :  { %7517 = vmatpush3.bf16.msra.mxu0 %v8301_v46  ;;  %v8352_v46 = vld [vmem:[%s10748_s1 + $0x5f8] sm:$0xff]  }
  0x8d   :  { %7518 = vmatprep.subr.bf16.mxu0 %v8303_v48  ;;  %v8354_v48 = vld [vmem:[%s10748_s1 + $0x5b8] sm:$0xff]  }
  0x8e   :  { %7539 = vmatpush3.bf16.msra.mxu1 %v8302_v47  ;;  %v8353_v47 = vld [vmem:[%s10748_s1 + $0x538] sm:$0xff]  }
  0x8f   :  { %7540 = vmatprep.subr.bf16.mxu1 %v8304_v49  ;;  %v1327_v49 = vrot.slane %v9319_v4, %v8921_v41  ;;  %v8373_v4 = vld [vmem:[%s10748_s1 + $0x6e0] sm:$0xff]  }
  0x90   :  { %7519 = vmatpush3.bf16.msra.mxu0 %v8305_v50  ;;  %v8356_v50 = vld [vmem:[%s10748_s1 + $0x640] sm:$0xff]  }
  0x91   :  { %7520 = vmatprep.subr.bf16.mxu0 %v8307_v52  ;;  %v8358_v52 = vld [vmem:[%s10748_s1 + $0x600] sm:$0xff]  }
  0x92   :  { %7541 = vmatpush3.bf16.msra.mxu1 %v8306_v51  ;;  %v8357_v51 = vld [vmem:[%s10748_s1 + $0x6c0] sm:$0xff]  }
  0x93   :  { %7542 = vmatprep.subr.bf16.mxu1 %v8308_v53  ;;  %v8359_v53 = vld [vmem:[%s10748_s1 + $0x680] sm:$0xff]  }
  0x94   :  { %7521 = vmatpush3.bf16.msra.mxu0 %v8309_v54  ;;  %v1343_v54 = vcombine.high %v1327_v49, %v1327_v49 }
  0x95   :  { %7522 = vmatprep.subr.bf16.mxu0 %v8311_v56  ;;  %v8361_v56 = vld [vmem:[%s10748_s1 + $0x6c8] sm:$0xff]  }
  0x96   :  { %7543 = vmatpush3.bf16.msra.mxu1 %v8310_v55  ;;  %v8360_v55 = vld [vmem:[%s10748_s1 + $0x648] sm:$0xff]  }
  0x97   :  { %7544 = vmatprep.subr.bf16.mxu1 %v8312_v57  ;;  %v8362_v57 = vld [vmem:[%s10748_s1 + $0x608] sm:$0xff]  }
  0x98   :  { %7523 = vmatpush3.bf16.msra.mxu0 %v8313_v58  ;;  %v8363_v58 = vld [vmem:[%s10748_s1 + $0x688] sm:$0xff]  }
  0x99   :  { %7524 = vmatprep.subr.bf16.mxu0 %v8315_v60  ;;  %v8365_v60 = vld [vmem:[%s10748_s1 + $0x6d0] sm:$0xff]  }
  0x9a   :  { %7545 = vmatpush3.bf16.msra.mxu1 %v8314_v59  ;;  %v8364_v59 = vld [vmem:[%s10748_s1 + $0x650] sm:$0xff]  }
  0x9b   :  { %7546 = vmatprep.subr.bf16.mxu1 %v8316_v62  ;;  %v8367_v62 = vld [vmem:[%s10748_s1 + $0x690] sm:$0xff]  }
  0x9c   :  { %7525 = vmatpush3.bf16.msra.mxu0 %v8317_v1  ;;  %v8370_v1 = vld [vmem:[%s10748_s1 + $0x618] sm:$0xff]  }
  0x9d   :  { %7526 = vmatprep.subr.bf16.mxu0 %v8319_v5  ;;  %v8374_v5 = vld [vmem:[%s10748_s1 + $0x620] sm:$0xff]  }
  0x9e   :  { %7547 = vmatpush3.bf16.msra.mxu1 %v8318_v2  ;;  %v8371_v2 = vld [vmem:[%s10748_s1 + $0x698] sm:$0xff]  }
  0x9f   :  { %7548 = vmatprep.subr.bf16.mxu1 %v8320_v6  ;;  %v8375_v6 = vld [vmem:[%s10748_s1 + $0x6a0] sm:$0xff]  }
  0xa0   :  { %7527 = vmatpush3.bf16.msra.mxu0 %v8321_v9  ;;  %v8378_v9 = vld [vmem:[%s10748_s1 + $0x628] sm:$0xff]  }
  0xa1   :  { %7556 = vmatprep.subr.bf16.mxu0 %v8323_v13  ;;  %v8381_v13 = vld [vmem:[%s10748_s1 + $0x6f0] sm:$0xff]  }
  0xa2   :  { %7549 = vmatpush3.bf16.msra.mxu1 %v8322_v10  ;;  %v8379_v10 = vld [vmem:[%s10748_s1 + $0x6a8] sm:$0xff]  }
  0xa3   :  { %5521 = vmatmul.mubr.bf16.vlgmr.msra.gmra.mrb[16].mxu0 %v1320_v12  ;;  %7578 = vmatprep.subr.bf16.mxu1 %v8324_v14  ;;  %v25_v12 = vld [vmem:[%s10747_s0 + $0x18] sm:$0xff] }
  0xa4   :  { %7557 = vmatpush3.bf16.msra.mxu0 %v8325_v16  ;;  %5600 = vmatprep.mubr.bf16.mxu0 %v1341_v15  ;;  %v1353_v14 = vrot.slane %v25_v12, %v8921_v41  ;;  %v1346_v15 = vcombine.high %v25_v12, %v25_v12  ;;  %v8382_v16 = vld [vmem:[%s10748_s1 + $0x630] sm:$0xff]   ;;  %v8419_v12 = vld [vmem:[%s10748_s1 + $0x7b8] sm:$0xff]  }
  0xa5   :  { %5561 = vmatmul.mubr.bf16.vlgmr.msra.gmra.mrb[16].mxu1 %v1342_v18  ;;  %7558 = vmatprep.subr.bf16.mxu0 %v8327_v19 }
  0xa6   :  { %7579 = vmatpush3.bf16.msra.mxu1 %v8326_v17  ;;  %5640 = vmatprep.mubr.bf16.mxu1 %v1345_v21  ;;  %v8384_v17 = vld [vmem:[%s10748_s1 + $0x678] sm:$0xff]   ;;  %v1361_v18 = vcombine.high %v1353_v14, %v1353_v14  ;;  %v9525_v19 = vrot.slane %v1346_v15, %v8921_v41  ;;  %v8422_v15 = vld [vmem:[%s10748_s1 + $0x8c0] sm:$0xff]  }
  0xa7   :  { %7580 = vmatprep.subr.bf16.mxu1 %v8328_v20  ;;  %v8383_v20 = vld [vmem:[%s10748_s1 + $0x6b0] sm:$0xff]   ;;  %v8385_v21 = vld [vmem:[%s10748_s1 + $0x6f8] sm:$0xff]  }
  0xa8   :  { %7559 = vmatpush3.bf16.msra.mxu0 %v8329_v22  ;;  %v1383_v22 = vrot.slane %v1361_v18, %v8921_v41 }
  0xa9   :  { %7560 = vmatprep.subr.bf16.mxu0 %v8331_v24  ;;  %v8386_v24 = vld [vmem:[%s10748_s1 + $0x638] sm:$0xff]  }
  0xaa   :  { %7581 = vmatpush3.bf16.msra.mxu1 %v8330_v23  ;;  %v1362_v23 = vcombine.high %v9525_v19, %v9525_v19 }
  0xab   :  { %7582 = vmatprep.subr.bf16.mxu1 %v8332_v25  ;;  %v1393_v25 = vcombine.high %v1383_v22, %v1383_v22 }
  0xac   :  { %7561 = vmatpush3.bf16.msra.mxu0 %v8333_v26  ;;  %v1369_v26 = vrot.slane %v1353_v14, %v8921_v41  ;;  %v8421_v14 = vld [vmem:[%s10748_s1 + $0x840] sm:$0xff]  }
  0xad   :  { %7562 = vmatprep.subr.bf16.mxu0 %v8335_v28  ;;  %v8387_v28 = vld [vmem:[%s10748_s1 + $0x6b8] sm:$0xff]  }
  0xae   :  { %7583 = vmatpush3.bf16.msra.mxu1 %v8334_v27  ;;  %v8388_v27 = vld [vmem:[%s10748_s1 + $0x740] sm:$0xff]  }
  0xaf   :  { %7584 = vmatprep.subr.bf16.mxu1 %v8336_v29  ;;  %v1390_v29 = vrot.slane %v1362_v23, %v8921_v41  ;;  %v8429_v23 = vld [vmem:[%s10748_s1 + $0x850] sm:$0xff]  }
  0xb0   :  { %7563 = vmatpush3.bf16.msra.mxu0 %v8337_v30  ;;  %v8389_v30 = vld [vmem:[%s10748_s1 + $0x7c0] sm:$0xff]  }
  0xb1   :  { %7564 = vmatprep.subr.bf16.mxu0 %v8339_v32  ;;  %v1391_v32 = vcombine.high %v1369_v26, %v1369_v26 }
  0xb2   :  { %7585 = vmatpush3.bf16.msra.mxu1 %v8338_v31  ;;  %v8390_v31 = vld [vmem:[%s10748_s1 + $0x700] sm:$0xff]  }
  0xb3   :  { %7586 = vmatprep.subr.bf16.mxu1 %v8340_v33  ;;  %v8392_v33 = vld [vmem:[%s10748_s1 + $0x748] sm:$0xff]  }
  0xb4   :  { %7565 = vmatpush3.bf16.msra.mxu0 %v8341_v34  ;;  %v8391_v34 = vld [vmem:[%s10748_s1 + $0x780] sm:$0xff]  }
  0xb5   :  { %7566 = vmatprep.subr.bf16.mxu0 %v8343_v36  ;;  %v8393_v36 = vld [vmem:[%s10748_s1 + $0x7c8] sm:$0xff]  }
  0xb6   :  { %7587 = vmatpush3.bf16.msra.mxu1 %v8342_v35  ;;  %v1394_v35 = vcombine.high %v1390_v29, %v1390_v29 }
  0xb7   :  { %7588 = vmatprep.subr.bf16.mxu1 %v8344_v37  ;;  %v8394_v37 = vld [vmem:[%s10748_s1 + $0x708] sm:$0xff]  }
  0xb8   :  { %7567 = vmatpush3.bf16.msra.mxu0 %v8345_v38  ;;  %v8396_v38 = vld [vmem:[%s10748_s1 + $0x750] sm:$0xff]  }
  0xb9   :  { %7568 = vmatprep.subr.bf16.mxu0 %v8347_v40  ;;  %v8397_v40 = vld [vmem:[%s10748_s1 + $0x7d0] sm:$0xff]  }
  0xba   :  { %7589 = vmatpush3.bf16.msra.mxu1 %v8346_v39  ;;  %v8395_v39 = vld [vmem:[%s10748_s1 + $0x788] sm:$0xff]  }
  0xbb   :  { %7590 = vmatprep.subr.bf16.mxu1 %v8348_v42  ;;  %v8398_v42 = vld [vmem:[%s10748_s1 + $0x710] sm:$0xff]  }
  0xbc   :  { %7569 = vmatpush3.bf16.msra.mxu0 %v8349_v43  ;;  %v8400_v43 = vld [vmem:[%s10748_s1 + $0x758] sm:$0xff]  }
  0xbd   :  { %7570 = vmatprep.subr.bf16.mxu0 %v8351_v45  ;;  %v8401_v45 = vld [vmem:[%s10748_s1 + $0x7d8] sm:$0xff]  }
  0xbe   :  { %7591 = vmatpush3.bf16.msra.mxu1 %v8350_v44  ;;  %v8399_v44 = vld [vmem:[%s10748_s1 + $0x790] sm:$0xff]  }
  0xbf   :  { %7592 = vmatprep.subr.bf16.mxu1 %v8352_v46  ;;  %v8402_v46 = vld [vmem:[%s10748_s1 + $0x718] sm:$0xff]  }
  0xc0   :  { %7571 = vmatpush3.bf16.msra.mxu0 %v8353_v47  ;;  %v8403_v47 = vld [vmem:[%s10748_s1 + $0x798] sm:$0xff]  }
  0xc1   :  { %7600 = vmatprep.subr.bf16.mxu0 %v8356_v50  ;;  %v8406_v50 = vld [vmem:[%s10748_s1 + $0x720] sm:$0xff]  }
  0xc2   :  { %7593 = vmatpush3.bf16.msra.mxu1 %v8354_v48  ;;  %v8404_v48 = vld [vmem:[%s10748_s1 + $0x760] sm:$0xff]  }
  0xc3   :  { %5601 = vmatmul.mubr.bf16.vlgmr.msra.gmra.mrb[20].mxu0 %v1327_v49  ;;  %7622 = vmatprep.subr.bf16.mxu1 %v8357_v51  ;;  %v8405_v49 = vld [vmem:[%s10748_s1 + $0x7e0] sm:$0xff]  }
  0xc4   :  { %7601 = vmatpush3.bf16.msra.mxu0 %v8358_v52  ;;  %5680 = vmatprep.mubr.bf16.mxu0 %v1383_v22  ;;  %v8407_v51 = vld [vmem:[%s10748_s1 + $0x7a0] sm:$0xff]   ;;  %v8408_v52 = vld [vmem:[%s10748_s1 + $0x768] sm:$0xff]  }
  0xc5   :  { %5641 = vmatmul.mubr.bf16.vlgmr.msra.gmra.mrb[20].mxu1 %v1343_v54  ;;  %7602 = vmatprep.subr.bf16.mxu0 %v8360_v55  ;;  %v8410_v54 = vld [vmem:[%s10748_s1 + $0x728] sm:$0xff]  }
  0xc6   :  { %7623 = vmatpush3.bf16.msra.mxu1 %v8359_v53  ;;  %5720 = vmatprep.mubr.bf16.mxu1 %v1393_v25  ;;  %v8409_v53 = vld [vmem:[%s10748_s1 + $0x7e8] sm:$0xff]   ;;  %v8431_v25 = vld [vmem:[%s10748_s1 + $0x810] sm:$0xff]  }
  0xc7   :  { %7624 = vmatprep.subr.bf16.mxu1 %v8361_v56  ;;  %v8411_v55 = vld [vmem:[%s10748_s1 + $0x7a8] sm:$0xff]   ;;  %v6750_v56 = vld [vmem:[%s10749_s2] ss:$0 sm:$0xff] }
  0xc8   :  { %7603 = vmatpush3.bf16.msra.mxu0 %v8362_v57  ;;  %v8412_v57 = vld [vmem:[%s10748_s1 + $0x770] sm:$0xff]   ;;  %v8428_v22 = vld [vmem:[%s10748_s1 + $0x888] sm:$0xff]  }
  0xc9   :  { %7604 = vmatprep.subr.bf16.mxu0 %v8364_v59  ;;  %v8413_v59 = vld [vmem:[%s10748_s1 + $0x7f0] sm:$0xff]  }
  0xca   :  { %7625 = vmatpush3.bf16.msra.mxu1 %v8363_v58 }
  0xcb   :  { %7626 = vmatprep.subr.bf16.mxu1 %v8365_v60 }
  0xcc   :  { %7605 = vmatpush3.bf16.msra.mxu0 %v8366_v61  ;;  %v8414_v61 = vld [vmem:[%s10748_s1 + $0x730] sm:$0xff]  }
  0xcd   :  { %7606 = vmatprep.subr.bf16.mxu0 %v8368_v63 }
  0xce   :  { %7627 = vmatpush3.bf16.msra.mxu1 %v8367_v62 }
  0xcf   :  { %7628 = vmatprep.subr.bf16.mxu1 %v8369_v0 }
  0xd0   :  { %7607 = vmatpush3.bf16.msra.mxu0 %v8370_v1  ;;  %v8415_v1 = vld [vmem:[%s10748_s1 + $0x7b0] sm:$0xff]  }
  0xd1   :  { %7608 = vmatprep.subr.bf16.mxu0 %v8372_v3 }
  0xd2   :  { %7629 = vmatpush3.bf16.msra.mxu1 %v8371_v2  ;;  %v8416_v2 = vld [vmem:[%s10748_s1 + $0x778] sm:$0xff]  }
  0xd3   :  { %7630 = vmatprep.subr.bf16.mxu1 %v8373_v4 }
  0xd4   :  { %7609 = vmatpush3.bf16.msra.mxu0 %v8374_v5 }
  0xd5   :  { %7610 = vmatprep.subr.bf16.mxu0 %v8376_v7 }
  0xd6   :  { %7631 = vmatpush3.bf16.msra.mxu1 %v8375_v6 }
  0xd7   :  { %7632 = vmatprep.subr.bf16.mxu1 %v8377_v8  ;;  %v8417_v8 = vld [vmem:[%s10748_s1 + $0x7f8] sm:$0xff]  }
  0xd8   :  { %7611 = vmatpush3.bf16.msra.mxu0 %v8378_v9 }
  0xd9   :  { %7612 = vmatprep.subr.bf16.mxu0 %v8380_v11 }
  0xda   :  { %7633 = vmatpush3.bf16.msra.mxu1 %v8379_v10  ;;  %v8418_v10 = vld [vmem:[%s10748_s1 + $0x738] sm:$0xff]  }
  0xdb   :  { %7634 = vmatprep.subr.bf16.mxu1 %v8381_v13  ;;  %v1376_v13 = vrot.slane %v9525_v19, %v8921_v41  ;;  %v8425_v19 = vld [vmem:[%s10748_s1 + $0x848] sm:$0xff]  }
  0xdc   :  { %7613 = vmatpush3.bf16.msra.mxu0 %v8382_v16  ;;  %v8423_v16 = vld [vmem:[%s10748_s1 + $0x800] sm:$0xff]  }
  0xdd   :  { %7614 = vmatprep.subr.bf16.mxu0 %v8384_v17  ;;  %v8424_v17 = vld [vmem:[%s10748_s1 + $0x880] sm:$0xff]   ;;  %v1392_v18 = vcombine.high %v1376_v13, %v1376_v13 }
  0xde   :  { %7635 = vmatpush3.bf16.msra.mxu1 %v8383_v20  ;;  %v8426_v20 = vld [vmem:[%s10748_s1 + $0x8c8] sm:$0xff]  }
  0xdf   :  { %7636 = vmatprep.subr.bf16.mxu1 %v8385_v21  ;;  %v8427_v21 = vld [vmem:[%s10748_s1 + $0x808] sm:$0xff]  }
  0xe0   :  { %7615 = vmatpush3.bf16.msra.mxu0 %v8386_v24  ;;  %v8430_v24 = vld [vmem:[%s10748_s1 + $0x8d0] sm:$0xff]  }
  0xe1   :  { %7644 = vmatprep.subr.bf16.mxu0 %v8388_v27  ;;  %v8433_v27 = vld [vmem:[%s10748_s1 + $0x858] sm:$0xff]  }
  0xe2   :  { %7637 = vmatpush3.bf16.msra.mxu1 %v8387_v28  ;;  %v8434_v28 = vld [vmem:[%s10748_s1 + $0x8d8] sm:$0xff]  }
  0xe3   :  { %5681 = vmatmul.mubr.bf16.vlgmr.msra.gmra.mrb[24].mxu0 %v1369_v26  ;;  %7666 = vmatprep.subr.bf16.mxu1 %v8389_v30  ;;  %v8432_v26 = vld [vmem:[%s10748_s1 + $0x890] sm:$0xff]   ;;  %v8436_v30 = vld [vmem:[%s10748_s1 + $0x898] sm:$0xff]  }
  0xe4   :  { %7645 = vmatpush3.bf16.msra.mxu0 %v8390_v31  ;;  %5760 = vmatprep.mubr.bf16.mxu0 %v1390_v29  ;;  %v8435_v29 = vld [vmem:[%s10748_s1 + $0x818] sm:$0xff]   ;;  %v8437_v31 = vld [vmem:[%s10748_s1 + $0x860] sm:$0xff]  }
  0xe5   :  { %5721 = vmatmul.mubr.bf16.vlgmr.msra.gmra.mrb[24].mxu1 %v1391_v32  ;;  %7646 = vmatprep.subr.bf16.mxu0 %v8392_v33  ;;  %v8438_v32 = vld [vmem:[%s10748_s1 + $0x8e0] sm:$0xff]  }
  0xe6   :  { %7667 = vmatpush3.bf16.msra.mxu1 %v8391_v34  ;;  %5800 = vmatprep.mubr.bf16.mxu1 %v1394_v35  ;;  %v8439_v33 = vld [vmem:[%s10748_s1 + $0x820] sm:$0xff]   ;;  %v8441_v35 = vld [vmem:[%s10748_s1 + $0x868] sm:$0xff]  }
  0xe7   :  { %7668 = vmatprep.subr.bf16.mxu1 %v8393_v36  ;;  %v8440_v34 = vld [vmem:[%s10748_s1 + $0x8a0] sm:$0xff]   ;;  %v8442_v36 = vld [vmem:[%s10748_s1 + $0x8e8] sm:$0xff]  }
  0xe8   :  { %7647 = vmatpush3.bf16.msra.mxu0 %v8394_v37  ;;  %v8443_v37 = vld [vmem:[%s10748_s1 + $0x828] sm:$0xff]  }
  0xe9   :  { %7648 = vmatprep.subr.bf16.mxu0 %v8396_v38  ;;  %v8444_v38 = vld [vmem:[%s10748_s1 + $0x8a8] sm:$0xff]  }
  0xea   :  { %7669 = vmatpush3.bf16.msra.mxu1 %v8395_v39  ;;  %v8445_v39 = vld [vmem:[%s10748_s1 + $0x870] sm:$0xff]  }
  0xeb   :  { %7670 = vmatprep.subr.bf16.mxu1 %v8397_v40  ;;  %v8446_v40 = vld [vmem:[%s10748_s1 + $0x8f0] sm:$0xff]  }
  0xec   :  { %7649 = vmatpush3.bf16.msra.mxu0 %v8398_v42 }
  0xed   :  { %7650 = vmatprep.subr.bf16.mxu0 %v8400_v43  ;;  %v8447_v43 = vld [vmem:[%s10748_s1 + $0x830] sm:$0xff]  }
  0xee   :  { %7671 = vmatpush3.bf16.msra.mxu1 %v8399_v44 }
  0xef   :  { %7672 = vmatprep.subr.bf16.mxu1 %v8401_v45  ;;  %v26_v45 = vld [vmem:[%s10747_s0 + $0x20] sm:$0xff] }
  0xf0   :  { %7651 = vmatpush3.bf16.msra.mxu0 %v8402_v46 }
  0xf1   :  { %7652 = vmatprep.subr.bf16.mxu0 %v8404_v48 }
  0xf2   :  { %7673 = vmatpush3.bf16.msra.mxu1 %v8403_v47 }
  0xf3   :  { %7674 = vmatprep.subr.bf16.mxu1 %v8405_v49  ;;  %v8448_v49 = vld [vmem:[%s10748_s1 + $0x8b0] sm:$0xff]  }
  0xf4   :  { %7653 = vmatpush3.bf16.msra.mxu0 %v8406_v50  ;;  %v8449_v50 = vld [vmem:[%s10748_s1 + $0x878] sm:$0xff]  }
  0xf5   :  { %7654 = vmatprep.subr.bf16.mxu0 %v8408_v52  ;;  %v1395_v52 = vcombine.high %v26_v45, %v26_v45 }
  0xf6   :  { %7675 = vmatpush3.bf16.msra.mxu1 %v8407_v51  ;;  %v7352_v58 = vpop.f32.mrb[0].mxu0  ;;  %v1402_v51 = vrot.slane %v26_v45, %v8921_v41 }
  0xf7   :  { %v7353_v60 = vpop.f32.mrb[1].mxu0  ;;  %7676 = vmatprep.subr.bf16.mxu1 %v8409_v53  ;;  %v7374_v62 = vpop.f32.mrb[0].mxu1 }
  0xf8   :  { %v7354_v63 = vadd.f32 %v7353_v60, %v7352_v58  ;;  %v7355_v0 = vpop.f32.mrb[2].mxu0  ;;  %7655 = vmatpush3.bf16.msra.mxu0 %v8410_v54  ;;  %v7375_v3 = vpop.f32.mrb[1].mxu1  ;;  %v8450_v58 = vld [vmem:[%s10748_s1 + $0x8f8] sm:$0xff]  }
  0xf9   :  { %v7356_v4 = vpop.f32.mrb[3].mxu0  ;;  %7656 = vmatprep.subr.bf16.mxu0 %v8412_v57  ;;  %v7376_v6 = vadd.f32 %v7375_v3, %v7374_v62  ;;  %v7377_v7 = vpop.f32.mrb[2].mxu1  ;;  %v9746_v62 = vrot.slane %v1395_v52, %v8921_v41  ;;  %v8452_v0 = vld [vmem:[%s10748_s1 + $0x8b8] sm:$0xff]   ;;  %v8453_v3 = vld [vmem:[%s10748_s1 + $0x940] sm:$0xff]  }
  0xfa   :  { %v5203_v5 = vadd.f32 %v7354_v63, %v6750_v56  ;;  %7677 = vmatpush3.bf16.msra.mxu1 %v8411_v55  ;;  %v7378_v9 = vpop.f32.mrb[3].mxu1  ;;  %v8455_v7 = vld [vmem:[%s10748_s1 + $0x900] sm:$0xff]   ;;  %v8484_v52 = vld [vmem:[%s10748_s1 + $0x9b8] sm:$0xff]  }
  0xfb   :  { %7678 = vmatprep.subr.bf16.mxu1 %v8413_v59  ;;  %v1410_v59 = vcombine.high %v1402_v51, %v1402_v51  ;;  %v1411_v4 = vcombine.high %v9746_v62, %v9746_v62  ;;  %v8456_v9 = vld [vmem:[%s10748_s1 + $0x980] sm:$0xff]  }
  0xfc   :  { %v9640_v11 = vadd.f32 %v7376_v6, %v5203_v5  ;;  %7657 = vmatpush3.bf16.msra.mxu0 %v8414_v61  ;;  %v8451_v61 = vld [vmem:[%s10748_s1 + $0x838] sm:$0xff]   ;;  %v8454_v6 = vld [vmem:[%s10748_s1 + $0x9c0] sm:$0xff]  }
  0xfd   :  { %7658 = vmatprep.subr.bf16.mxu0 %v8416_v2  ;;  %v1418_v2 = vrot.slane %v1402_v51, %v8921_v41 }
  0xfe   :  { %7679 = vmatpush3.bf16.msra.mxu1 %v8415_v1  ;;  %v1432_v1 = vrot.slane %v1410_v59, %v8921_v41  ;;  %v8490_v59 = vld [vmem:[%s10748_s1 + $0xa48] sm:$0xff]  }
  0xff   :  { %7680 = vmatprep.subr.bf16.mxu1 %v8417_v8  ;;  %v1439_v8 = vrot.slane %v1411_v4, %v8921_v41  ;;  %v8499_v4 = vld [vmem:[%s10748_s1 + $0xad8] sm:$0xff]  }
 0x100   :  { %7659 = vmatpush3.bf16.msra.mxu0 %v8418_v10  ;;  %v1442_v5 = vcombine.high %v1432_v1, %v1432_v1  ;;  %v1440_v10 = vcombine.high %v1418_v2, %v1418_v2 }
 0x101   :  { %7688 = vmatprep.subr.bf16.mxu0 %v8421_v14  ;;  %v8459_v14 = vld [vmem:[%s10748_s1 + $0x908] sm:$0xff]  }
 0x102   :  { %7681 = vmatpush3.bf16.msra.mxu1 %v8419_v12  ;;  %v8458_v12 = vld [vmem:[%s10748_s1 + $0x9c8] sm:$0xff]  }
 0x103   :  { %5761 = vmatmul.mubr.bf16.vlgmr.msra.gmra.mrb[28].mxu0 %v1376_v13  ;;  %7710 = vmatprep.subr.bf16.mxu1 %v8422_v15  ;;  %v1443_v13 = vcombine.high %v1439_v8, %v1439_v8  ;;  %v8460_v15 = vld [vmem:[%s10748_s1 + $0x988] sm:$0xff]  }
 0x104   :  { %7689 = vmatpush3.bf16.msra.mxu0 %v8423_v16  ;;  %5840 = vmatprep.mubr.bf16.mxu0 %v1432_v1  ;;  %v8461_v16 = vld [vmem:[%s10748_s1 + $0x950] sm:$0xff]  }
 0x105   :  { %5801 = vmatmul.mubr.bf16.vlgmr.msra.gmra.mrb[28].mxu1 %v1392_v18  ;;  %7690 = vmatprep.subr.bf16.mxu0 %v8425_v19  ;;  %v8463_v18 = vld [vmem:[%s10748_s1 + $0x910] sm:$0xff]  }
 0x106   :  { %7711 = vmatpush3.bf16.msra.mxu1 %v8424_v17  ;;  %5880 = vmatprep.mubr.bf16.mxu1 %v1442_v5  ;;  %v8462_v17 = vld [vmem:[%s10748_s1 + $0x9d0] sm:$0xff]   ;;  %v8500_v5 = vld [vmem:[%s10748_s1 + $0xa18] sm:$0xff]  }
 0x107   :  { %7712 = vmatprep.subr.bf16.mxu1 %v8426_v20  ;;  %v8464_v19 = vld [vmem:[%s10748_s1 + $0x990] sm:$0xff]   ;;  %v8465_v20 = vld [vmem:[%s10748_s1 + $0x958] sm:$0xff]  }
 0x108   :  { %7691 = vmatpush3.bf16.msra.mxu0 %v8427_v21  ;;  %v8466_v21 = vld [vmem:[%s10748_s1 + $0x9d8] sm:$0xff]   ;;  %v8496_v1 = vld [vmem:[%s10748_s1 + $0xa10] sm:$0xff]  }
 0x109   :  { %7692 = vmatprep.subr.bf16.mxu0 %v8429_v23  ;;  %v8468_v23 = vld [vmem:[%s10748_s1 + $0x998] sm:$0xff]  }
 0x10a   :  { %7713 = vmatpush3.bf16.msra.mxu1 %v8428_v22  ;;  %v8467_v22 = vld [vmem:[%s10748_s1 + $0x918] sm:$0xff]  }
 0x10b   :  { %7714 = vmatprep.subr.bf16.mxu1 %v8430_v24  ;;  %v8469_v24 = vld [vmem:[%s10748_s1 + $0x960] sm:$0xff]  }
 0x10c   :  { %7693 = vmatpush3.bf16.msra.mxu0 %v8431_v25  ;;  %v8470_v25 = vld [vmem:[%s10748_s1 + $0x9e0] sm:$0xff]  }
 0x10d   :  { %7694 = vmatprep.subr.bf16.mxu0 %v8433_v27  ;;  %v8472_v27 = vld [vmem:[%s10748_s1 + $0x9a0] sm:$0xff]  }
 0x10e   :  { %7715 = vmatpush3.bf16.msra.mxu1 %v8432_v26  ;;  %v8471_v26 = vld [vmem:[%s10748_s1 + $0x920] sm:$0xff]  }
 0x10f   :  { %7716 = vmatprep.subr.bf16.mxu1 %v8434_v28  ;;  %v8473_v28 = vld [vmem:[%s10748_s1 + $0x968] sm:$0xff]  }
 0x110   :  { %7695 = vmatpush3.bf16.msra.mxu0 %v8435_v29  ;;  %v8474_v29 = vld [vmem:[%s10748_s1 + $0x9e8] sm:$0xff]  }
 0x111   :  { %7696 = vmatprep.subr.bf16.mxu0 %v8437_v31  ;;  %v8476_v31 = vld [vmem:[%s10748_s1 + $0x9a8] sm:$0xff]  }
 0x112   :  { %7717 = vmatpush3.bf16.msra.mxu1 %v8436_v30  ;;  %v8475_v30 = vld [vmem:[%s10748_s1 + $0x928] sm:$0xff]  }
 0x113   :  { %7718 = vmatprep.subr.bf16.mxu1 %v8438_v32  ;;  %v8477_v32 = vld [vmem:[%s10748_s1 + $0x970] sm:$0xff]  }
 0x114   :  { %7697 = vmatpush3.bf16.msra.mxu0 %v8439_v33 }
 0x115   :  { %7698 = vmatprep.subr.bf16.mxu0 %v8441_v35 }
 0x116   :  { %7719 = vmatpush3.bf16.msra.mxu1 %v8440_v34  ;;  %v7396_v42 = vpop.f32.mrb[4].mxu0  ;;  %v8478_v34 = vld [vmem:[%s10748_s1 + $0x9f0] sm:$0xff]  }
 0x117   :  { %v7397_v44 = vpop.f32.mrb[5].mxu0  ;;  %7720 = vmatprep.subr.bf16.mxu1 %v8442_v36  ;;  %v7418_v46 = vpop.f32.mrb[4].mxu1  ;;  %v8479_v36 = vld [vmem:[%s10748_s1 + $0x930] sm:$0xff]  }
 0x118   :  { %v7398_v47 = vadd.f32 %v7397_v44, %v7396_v42  ;;  %v7399_v48 = vpop.f32.mrb[6].mxu0  ;;  %7699 = vmatpush3.bf16.msra.mxu0 %v8443_v37  ;;  %v7419_v53 = vpop.f32.mrb[5].mxu1  ;;  %v8481_v42 = vld [vmem:[%s10748_s1 + $0x978] sm:$0xff]  }
 0x119   :  { %v7400_v54 = vpop.f32.mrb[7].mxu0  ;;  %7700 = vmatprep.subr.bf16.mxu0 %v8445_v39  ;;  %v7420_v56 = vadd.f32 %v7419_v53, %v7418_v46  ;;  %v7421_v57 = vpop.f32.mrb[6].mxu1  ;;  %v8482_v48 = vld [vmem:[%s10748_s1 + $0x9f8] sm:$0xff]   ;;  %v1425_v53 = vrot.slane %v9746_v62, %v8921_v41  ;;  %v8493_v62 = vld [vmem:[%s10748_s1 + $0xa88] sm:$0xff]  }
 0x11a   :  { %v5283_v55 = vadd.f32 %v7398_v47, %v9640_v11  ;;  %7721 = vmatpush3.bf16.msra.mxu1 %v8444_v38  ;;  %v7422_v60 = vpop.f32.mrb[7].mxu1  ;;  %v8457_v11 = vld [vmem:[%s10748_s1 + $0x948] sm:$0xff]   ;;  %v8486_v54 = vld [vmem:[%s10748_s1 + $0xa40] sm:$0xff]  }
 0x11b   :  { %7722 = vmatprep.subr.bf16.mxu1 %v8446_v40  ;;  %v8480_v40 = vld [vmem:[%s10748_s1 + $0x9b0] sm:$0xff]   ;;  %v8489_v57 = vld [vmem:[%s10748_s1 + $0xa80] sm:$0xff]   ;;  %v8491_v60 = vld [vmem:[%s10748_s1 + $0xac8] sm:$0xff]  }
 0x11c   :  { %v9748_v63 = vadd.f32 %v7420_v56, %v5283_v55  ;;  %7701 = vmatpush3.bf16.msra.mxu0 %v8447_v43  ;;  %v8487_v55 = vld [vmem:[%s10748_s1 + $0xac0] sm:$0xff]  }
 0x11d   :  { %7702 = vmatprep.subr.bf16.mxu0 %v8449_v50  ;;  %v8483_v50 = vld [vmem:[%s10748_s1 + $0x938] sm:$0xff]   ;;  %v8488_v56 = vld [vmem:[%s10748_s1 + $0xa00] sm:$0xff]  }
 0x11e   :  { %7723 = vmatpush3.bf16.msra.mxu1 %v8448_v49 }
 0x11f   :  { %7724 = vmatprep.subr.bf16.mxu1 %v8450_v58  ;;  %v1441_v58 = vcombine.high %v1425_v53, %v1425_v53 }
 0x120   :  { %7703 = vmatpush3.bf16.msra.mxu0 %v8451_v61  ;;  %v8492_v61 = vld [vmem:[%s10748_s1 + $0xa08] sm:$0xff]  }
 0x121   :  { %7732 = vmatprep.subr.bf16.mxu0 %v8453_v3  ;;  %v8498_v3 = vld [vmem:[%s10748_s1 + $0xa58] sm:$0xff]  }
 0x122   :  { %7725 = vmatpush3.bf16.msra.mxu1 %v8452_v0  ;;  %v8495_v0 = vld [vmem:[%s10748_s1 + $0xad0] sm:$0xff]  }
 0x123   :  { %5841 = vmatmul.mubr.bf16.vlgmr.msra.gmra.mrb[32].mxu0 %v1418_v2  ;;  %7754 = vmatprep.subr.bf16.mxu1 %v8454_v6  ;;  %v8497_v2 = vld [vmem:[%s10748_s1 + $0xa90] sm:$0xff]   ;;  %v8501_v6 = vld [vmem:[%s10748_s1 + $0xa98] sm:$0xff]  }
 0x124   :  { %7733 = vmatpush3.bf16.msra.mxu0 %v8455_v7  ;;  %5920 = vmatprep.mubr.bf16.mxu0 %v1439_v8  ;;  %v8502_v7 = vld [vmem:[%s10748_s1 + $0xa60] sm:$0xff]  }
 0x125   :  { %5881 = vmatmul.mubr.bf16.vlgmr.msra.gmra.mrb[32].mxu1 %v1440_v10  ;;  %7734 = vmatprep.subr.bf16.mxu0 %v8457_v11  ;;  %v8503_v8 = vld [vmem:[%s10748_s1 + $0xae0] sm:$0xff]   ;;  %v8506_v11 = vld [vmem:[%s10748_s1 + $0xa68] sm:$0xff]  }
 0x126   :  { %7755 = vmatpush3.bf16.msra.mxu1 %v8456_v9  ;;  %5960 = vmatprep.mubr.bf16.mxu1 %v1443_v13  ;;  %v8504_v9 = vld [vmem:[%s10748_s1 + $0xa20] sm:$0xff]   ;;  %v8508_v13 = vld [vmem:[%s10748_s1 + $0xa28] sm:$0xff]  }
 0x127   :  { %7756 = vmatprep.subr.bf16.mxu1 %v8458_v12  ;;  %v8505_v10 = vld [vmem:[%s10748_s1 + $0xaa0] sm:$0xff]   ;;  %v8507_v12 = vld [vmem:[%s10748_s1 + $0xae8] sm:$0xff]  }
 0x128   :  { %7735 = vmatpush3.bf16.msra.mxu0 %v8459_v14  ;;  %v8509_v14 = vld [vmem:[%s10748_s1 + $0xaa8] sm:$0xff]  }
 0x129   :  { %7736 = vmatprep.subr.bf16.mxu0 %v8461_v16 }
 0x12a   :  { %7757 = vmatpush3.bf16.msra.mxu1 %v8460_v15  ;;  %v8510_v15 = vld [vmem:[%s10748_s1 + $0xa70] sm:$0xff]  }
 0x12b   :  { %7758 = vmatprep.subr.bf16.mxu1 %v8462_v17  ;;  %v8511_v17 = vld [vmem:[%s10748_s1 + $0xaf0] sm:$0xff]  }
 0x12c   :  { %7737 = vmatpush3.bf16.msra.mxu0 %v8463_v18 }
 0x12d   :  { %7738 = vmatprep.subr.bf16.mxu0 %v8465_v20 }
 0x12e   :  { %7759 = vmatpush3.bf16.msra.mxu1 %v8464_v19  ;;  %v8512_v19 = vld [vmem:[%s10748_s1 + $0xa30] sm:$0xff]  }
 0x12f   :  { %7760 = vmatprep.subr.bf16.mxu1 %v8466_v21 }
 0x130   :  { %7739 = vmatpush3.bf16.msra.mxu0 %v8467_v22 }
 0x131   :  { %7740 = vmatprep.subr.bf16.mxu0 %v8469_v24  ;;  %v8514_v24 = vld [vmem:[%s10748_s1 + $0xa78] sm:$0xff]  }
 0x132   :  { %7761 = vmatpush3.bf16.msra.mxu1 %v8468_v23  ;;  %v8513_v23 = vld [vmem:[%s10748_s1 + $0xab0] sm:$0xff]  }
 0x133   :  { %7762 = vmatprep.subr.bf16.mxu1 %v8470_v25  ;;  %v27_v25 = vld [vmem:[%s10747_s0 + $0x28] sm:$0xff] }
 0x134   :  { %7741 = vmatpush3.bf16.msra.mxu0 %v8471_v26 }
 0x135   :  { %7742 = vmatprep.subr.bf16.mxu0 %v8473_v28  ;;  %v1451_v28 = vrot.slane %v27_v25, %v8921_v41 }
 0x136   :  { %7763 = vmatpush3.bf16.msra.mxu1 %v8472_v27  ;;  %v7440_v33 = vpop.f32.mrb[8].mxu0 }
 0x137   :  { %v7441_v35 = vpop.f32.mrb[9].mxu0  ;;  %7764 = vmatprep.subr.bf16.mxu1 %v8474_v29  ;;  %v1444_v29 = vcombine.high %v27_v25, %v27_v25  ;;  %v8548_v25 = vld [vmem:[%s10748_s1 + $0xb38] sm:$0xff]  }
 0x138   :  { %v7462_v37 = vpop.f32.mrb[8].mxu1  ;;  %v7442_v38 = vadd.f32 %v7441_v35, %v7440_v33  ;;  %v7443_v39 = vpop.f32.mrb[10].mxu0  ;;  %7743 = vmatpush3.bf16.msra.mxu0 %v8475_v30  ;;  %v8515_v33 = vld [vmem:[%s10748_s1 + $0xaf8] sm:$0xff]  }
 0x139   :  { %v7463_v43 = vpop.f32.mrb[9].mxu1  ;;  %v7444_v44 = vpop.f32.mrb[11].mxu0  ;;  %7744 = vmatprep.subr.bf16.mxu0 %v8477_v32  ;;  %v8516_v35 = vld [vmem:[%s10748_s1 + $0xa38] sm:$0xff]  }
 0x13a   :  { %v5363_v45 = vadd.f32 %v7442_v38, %v9748_v63  ;;  %v7464_v46 = vadd.f32 %v7463_v43, %v7462_v37  ;;  %v7465_v47 = vpop.f32.mrb[10].mxu1  ;;  %7765 = vmatpush3.bf16.msra.mxu1 %v8476_v31  ;;  %v8494_v63 = vld [vmem:[%s10748_s1 + $0xa50] sm:$0xff]   ;;  %v9958_v37 = vrot.slane %v1444_v29, %v8921_v41  ;;  %v8517_v39 = vld [vmem:[%s10748_s1 + $0xab8] sm:$0xff]   ;;  %v8518_v43 = vld [vmem:[%s10748_s1 + $0xb40] sm:$0xff]  }
 0x13b   :  { %v7466_v49 = vpop.f32.mrb[11].mxu1  ;;  %7766 = vmatprep.subr.bf16.mxu1 %v8478_v34  ;;  %v8520_v47 = vld [vmem:[%s10748_s1 + $0xb00] sm:$0xff]  }
 0x13c   :  { %v9852_v51 = vadd.f32 %v7464_v46, %v5363_v45  ;;  %7745 = vmatpush3.bf16.msra.mxu0 %v8479_v36  ;;  %v1459_v36 = vcombine.high %v1451_v28, %v1451_v28  ;;  %v1460_v44 = vcombine.high %v9958_v37, %v9958_v37  ;;  %v8519_v45 = vld [vmem:[%s10748_s1 + $0xbc0] sm:$0xff]  }
 0x13d   :  { %7746 = vmatprep.subr.bf16.mxu0 %v8481_v42  ;;  %v1467_v42 = vrot.slane %v1451_v28, %v8921_v41  ;;  %v8521_v49 = vld [vmem:[%s10748_s1 + $0xb80] sm:$0xff]   ;;  %v1474_v28 = vrot.slane %v9958_v37, %v8921_v41  ;;  %v8558_v37 = vld [vmem:[%s10748_s1 + $0xc88] sm:$0xff]  }
 0x13e   :  { %7767 = vmatpush3.bf16.msra.mxu1 %v8480_v40  ;;  %v1481_v40 = vrot.slane %v1459_v36, %v8921_v41  ;;  %v8551_v29 = vld [vmem:[%s10748_s1 + $0xc40] sm:$0xff]   ;;  %v8557_v36 = vld [vmem:[%s10748_s1 + $0xc08] sm:$0xff]  }
 0x13f   :  { %7768 = vmatprep.subr.bf16.mxu1 %v8482_v48  ;;  %v1488_v48 = vrot.slane %v1460_v44, %v8921_v41  ;;  %v8564_v44 = vld [vmem:[%s10748_s1 + $0xcd8] sm:$0xff]  }
 0x140   :  { %7747 = vmatpush3.bf16.msra.mxu0 %v8483_v50  ;;  %v1491_v46 = vcombine.high %v1481_v40, %v1481_v40  ;;  %v1489_v50 = vcombine.high %v1467_v42, %v1467_v42 }
 0x141   :  { %7776 = vmatprep.subr.bf16.mxu0 %v8486_v54  ;;  %v8524_v54 = vld [vmem:[%s10748_s1 + $0xb08] sm:$0xff]  }
 0x142   :  { %7769 = vmatpush3.bf16.msra.mxu1 %v8484_v52  ;;  %v8523_v52 = vld [vmem:[%s10748_s1 + $0xbc8] sm:$0xff]  }
 0x143   :  { %5921 = vmatmul.mubr.bf16.vlgmr.msra.gmra.mrb[36].mxu0 %v1425_v53  ;;  %7798 = vmatprep.subr.bf16.mxu1 %v8487_v55  ;;  %v1492_v53 = vcombine.high %v1488_v48, %v1488_v48  ;;  %v8525_v55 = vld [vmem:[%s10748_s1 + $0xb88] sm:$0xff]  }
 0x144   :  { %7777 = vmatpush3.bf16.msra.mxu0 %v8488_v56  ;;  %6000 = vmatprep.mubr.bf16.mxu0 %v1481_v40  ;;  %v8526_v56 = vld [vmem:[%s10748_s1 + $0xb50] sm:$0xff]  }
 0x145   :  { %5961 = vmatmul.mubr.bf16.vlgmr.msra.gmra.mrb[36].mxu1 %v1441_v58  ;;  %7778 = vmatprep.subr.bf16.mxu0 %v8490_v59  ;;  %v8528_v58 = vld [vmem:[%s10748_s1 + $0xb10] sm:$0xff]  }
 0x146   :  { %7799 = vmatpush3.bf16.msra.mxu1 %v8489_v57  ;;  %6040 = vmatprep.mubr.bf16.mxu1 %v1491_v46  ;;  %v8527_v57 = vld [vmem:[%s10748_s1 + $0xbd0] sm:$0xff]   ;;  %v8566_v46 = vld [vmem:[%s10748_s1 + $0xc98] sm:$0xff]  }
 0x147   :  { %7800 = vmatprep.subr.bf16.mxu1 %v8491_v60  ;;  %v8529_v59 = vld [vmem:[%s10748_s1 + $0xb90] sm:$0xff]   ;;  %v8530_v60 = vld [vmem:[%s10748_s1 + $0xb58] sm:$0xff]  }
 0x148   :  { %7779 = vmatpush3.bf16.msra.mxu0 %v8492_v61  ;;  %v8531_v61 = vld [vmem:[%s10748_s1 + $0xbd8] sm:$0xff]   ;;  %v8561_v40 = vld [vmem:[%s10748_s1 + $0xc10] sm:$0xff]  }
 0x149   :  { %7780 = vmatprep.subr.bf16.mxu0 %v8494_v63  ;;  %v8533_v63 = vld [vmem:[%s10748_s1 + $0xb98] sm:$0xff]  }
 0x14a   :  { %7801 = vmatpush3.bf16.msra.mxu1 %v8493_v62  ;;  %v8532_v62 = vld [vmem:[%s10748_s1 + $0xb18] sm:$0xff]  }
 0x14b   :  { %7802 = vmatprep.subr.bf16.mxu1 %v8495_v0  ;;  %v8534_v0 = vld [vmem:[%s10748_s1 + $0xb60] sm:$0xff]  }
 0x14c   :  { %7781 = vmatpush3.bf16.msra.mxu0 %v8496_v1  ;;  %v8535_v1 = vld [vmem:[%s10748_s1 + $0xbe0] sm:$0xff]  }
 0x14d   :  { %7782 = vmatprep.subr.bf16.mxu0 %v8498_v3  ;;  %v8537_v3 = vld [vmem:[%s10748_s1 + $0xba0] sm:$0xff]  }
 0x14e   :  { %7803 = vmatpush3.bf16.msra.mxu1 %v8497_v2  ;;  %v8536_v2 = vld [vmem:[%s10748_s1 + $0xb20] sm:$0xff]  }
 0x14f   :  { %7804 = vmatprep.subr.bf16.mxu1 %v8499_v4  ;;  %v8538_v4 = vld [vmem:[%s10748_s1 + $0xb68] sm:$0xff]  }
 0x150   :  { %7783 = vmatpush3.bf16.msra.mxu0 %v8500_v5  ;;  %v8539_v5 = vld [vmem:[%s10748_s1 + $0xbe8] sm:$0xff]  }
 0x151   :  { %7784 = vmatprep.subr.bf16.mxu0 %v8502_v7  ;;  %v8541_v7 = vld [vmem:[%s10748_s1 + $0xba8] sm:$0xff]  }
 0x152   :  { %7805 = vmatpush3.bf16.msra.mxu1 %v8501_v6  ;;  %v8540_v6 = vld [vmem:[%s10748_s1 + $0xb28] sm:$0xff]  }
 0x153   :  { %7806 = vmatprep.subr.bf16.mxu1 %v8503_v8  ;;  %v8542_v8 = vld [vmem:[%s10748_s1 + $0xb70] sm:$0xff]  }
 0x154   :  { %7785 = vmatpush3.bf16.msra.mxu0 %v8504_v9 }
 0x155   :  { %7786 = vmatprep.subr.bf16.mxu0 %v8506_v11 }
 0x156   :  { %7807 = vmatpush3.bf16.msra.mxu1 %v8505_v10  ;;  %v7484_v16 = vpop.f32.mrb[12].mxu0  ;;  %v8543_v10 = vld [vmem:[%s10748_s1 + $0xbf0] sm:$0xff]  }
 0x157   :  { %v7485_v18 = vpop.f32.mrb[13].mxu0  ;;  %7808 = vmatprep.subr.bf16.mxu1 %v8507_v12  ;;  %v8544_v12 = vld [vmem:[%s10748_s1 + $0xb30] sm:$0xff]  }
 0x158   :  { %v7506_v20 = vpop.f32.mrb[12].mxu1  ;;  %v7486_v21 = vadd.f32 %v7485_v18, %v7484_v16  ;;  %v7487_v22 = vpop.f32.mrb[14].mxu0  ;;  %7787 = vmatpush3.bf16.msra.mxu0 %v8508_v13  ;;  %v8545_v16 = vld [vmem:[%s10748_s1 + $0xbb0] sm:$0xff]  }
 0x159   :  { %v7507_v26 = vpop.f32.mrb[13].mxu1  ;;  %v7488_v27 = vpop.f32.mrb[15].mxu0  ;;  %7788 = vmatprep.subr.bf16.mxu0 %v8510_v15 }
 0x15a   :  { %v5443_v30 = vadd.f32 %v7486_v21, %v9852_v51  ;;  %v7508_v31 = vadd.f32 %v7507_v26, %v7506_v20  ;;  %v7509_v32 = vpop.f32.mrb[14].mxu1  ;;  %7809 = vmatpush3.bf16.msra.mxu1 %v8509_v14  ;;  %v8522_v51 = vld [vmem:[%s10748_s1 + $0xb48] sm:$0xff]   ;;  %v8549_v27 = vld [vmem:[%s10748_s1 + $0xbb8] sm:$0xff]  }
 0x15b   :  { %v7510_v34 = vpop.f32.mrb[15].mxu1  ;;  %7810 = vmatprep.subr.bf16.mxu1 %v8511_v17  ;;  %v8546_v17 = vld [vmem:[%s10748_s1 + $0xb78] sm:$0xff]   ;;  %v8554_v32 = vld [vmem:[%s10748_s1 + $0xc80] sm:$0xff]  }
 0x15c   :  { %v9960_v38 = vadd.f32 %v7508_v31, %v5443_v30  ;;  %7789 = vmatpush3.bf16.msra.mxu0 %v8512_v19  ;;  %v8552_v30 = vld [vmem:[%s10748_s1 + $0xcc0] sm:$0xff]   ;;  %v8555_v34 = vld [vmem:[%s10748_s1 + $0xc48] sm:$0xff]  }
 0x15d   :  { %7790 = vmatprep.subr.bf16.mxu0 %v8514_v24  ;;  %v8553_v31 = vld [vmem:[%s10748_s1 + $0xc00] sm:$0xff]  }
 0x15e   :  { %7811 = vmatpush3.bf16.msra.mxu1 %v8513_v23  ;;  %v8547_v23 = vld [vmem:[%s10748_s1 + $0xbf8] sm:$0xff]  }
 0x15f   :  { %7812 = vmatprep.subr.bf16.mxu1 %v8515_v33  ;;  %v1490_v33 = vcombine.high %v1474_v28, %v1474_v28 }
 0x160   :  { %7791 = vmatpush3.bf16.msra.mxu0 %v8516_v35  ;;  %v8556_v35 = vld [vmem:[%s10748_s1 + $0xcc8] sm:$0xff]  }
 0x161   :  { %7820 = vmatprep.subr.bf16.mxu0 %v8518_v43  ;;  %v8563_v43 = vld [vmem:[%s10748_s1 + $0xc58] sm:$0xff]  }
 0x162   :  { %7813 = vmatpush3.bf16.msra.mxu1 %v8517_v39  ;;  %v8560_v39 = vld [vmem:[%s10748_s1 + $0xcd0] sm:$0xff]  }
 0x163   :  { %6001 = vmatmul.mubr.bf16.vlgmr.msra.gmra.mrb[40].mxu0 %v1467_v42  ;;  %7842 = vmatprep.subr.bf16.mxu1 %v8519_v45  ;;  %v8562_v42 = vld [vmem:[%s10748_s1 + $0xc90] sm:$0xff]   ;;  %v8565_v45 = vld [vmem:[%s10748_s1 + $0xc18] sm:$0xff]  }
 0x164   :  { %7821 = vmatpush3.bf16.msra.mxu0 %v8520_v47  ;;  %6080 = vmatprep.mubr.bf16.mxu0 %v1488_v48  ;;  %v8567_v47 = vld [vmem:[%s10748_s1 + $0xc60] sm:$0xff]  }
 0x165   :  { %6041 = vmatmul.mubr.bf16.vlgmr.msra.gmra.mrb[40].mxu1 %v1489_v50  ;;  %7822 = vmatprep.subr.bf16.mxu0 %v8522_v51  ;;  %v8568_v48 = vld [vmem:[%s10748_s1 + $0xce0] sm:$0xff]   ;;  %v8571_v51 = vld [vmem:[%s10748_s1 + $0xc68] sm:$0xff]  }
 0x166   :  { %7843 = vmatpush3.bf16.msra.mxu1 %v8521_v49  ;;  %6120 = vmatprep.mubr.bf16.mxu1 %v1492_v53  ;;  %v8569_v49 = vld [vmem:[%s10748_s1 + $0xc20] sm:$0xff]   ;;  %v8573_v53 = vld [vmem:[%s10748_s1 + $0xc28] sm:$0xff]  }
 0x167   :  { %7844 = vmatprep.subr.bf16.mxu1 %v8523_v52  ;;  %v8570_v50 = vld [vmem:[%s10748_s1 + $0xca0] sm:$0xff]   ;;  %v8572_v52 = vld [vmem:[%s10748_s1 + $0xce8] sm:$0xff]  }
 0x168   :  { %7823 = vmatpush3.bf16.msra.mxu0 %v8524_v54  ;;  %v8574_v54 = vld [vmem:[%s10748_s1 + $0xca8] sm:$0xff]  }
 0x169   :  { %7824 = vmatprep.subr.bf16.mxu0 %v8526_v56 }
 0x16a   :  { %7845 = vmatpush3.bf16.msra.mxu1 %v8525_v55  ;;  %v8575_v55 = vld [vmem:[%s10748_s1 + $0xc70] sm:$0xff]  }
 0x16b   :  { %7846 = vmatprep.subr.bf16.mxu1 %v8527_v57  ;;  %v8576_v57 = vld [vmem:[%s10748_s1 + $0xcf0] sm:$0xff]  }
 0x16c   :  { %7825 = vmatpush3.bf16.msra.mxu0 %v8528_v58 }
 0x16d   :  { %7826 = vmatprep.subr.bf16.mxu0 %v8530_v60 }
 0x16e   :  { %7847 = vmatpush3.bf16.msra.mxu1 %v8529_v59  ;;  %v8577_v59 = vld [vmem:[%s10748_s1 + $0xc30] sm:$0xff]  }
 0x16f   :  { %7848 = vmatprep.subr.bf16.mxu1 %v8531_v61 }
 0x170   :  { %7827 = vmatpush3.bf16.msra.mxu0 %v8532_v62 }
 0x171   :  { %7828 = vmatprep.subr.bf16.mxu0 %v8534_v0 }
 0x172   :  { %7849 = vmatpush3.bf16.msra.mxu1 %v8533_v63  ;;  %v8578_v63 = vld [vmem:[%s10748_s1 + $0xcb0] sm:$0xff]  }
 0x173   :  { %7850 = vmatprep.subr.bf16.mxu1 %v8535_v1 }
 0x174   :  { %7829 = vmatpush3.bf16.msra.mxu0 %v8536_v2  ;;  %v8579_v2 = vld [vmem:[%s10748_s1 + $0xc78] sm:$0xff]  }
 0x175   :  { %7830 = vmatprep.subr.bf16.mxu0 %v8538_v4 }
 0x176   :  { %7851 = vmatpush3.bf16.msra.mxu1 %v8537_v3  ;;  %v7528_v9 = vpop.f32.mrb[16].mxu0  ;;  %v28_v3 = vld [vmem:[%s10747_s0 + $0x30] sm:$0xff] }
 0x177   :  { %v7529_v11 = vpop.f32.mrb[17].mxu0  ;;  %7852 = vmatprep.subr.bf16.mxu1 %v8539_v5 }
 0x178   :  { %v7550_v13 = vpop.f32.mrb[16].mxu1  ;;  %v7530_v14 = vadd.f32 %v7529_v11, %v7528_v9  ;;  %v7531_v15 = vpop.f32.mrb[18].mxu0  ;;  %7831 = vmatpush3.bf16.msra.mxu0 %v8540_v6  ;;  %v1493_v9 = vcombine.high %v28_v3, %v28_v3  ;;  %v8581_v11 = vld [vmem:[%s10748_s1 + $0xc38] sm:$0xff]  }
 0x179   :  { %v7551_v18 = vpop.f32.mrb[17].mxu1  ;;  %v7532_v19 = vpop.f32.mrb[19].mxu0  ;;  %7832 = vmatprep.subr.bf16.mxu0 %v8542_v8  ;;  %v1500_v8 = vrot.slane %v28_v3, %v8921_v41  ;;  %v8614_v3 = vld [vmem:[%s10748_s1 + $0xdb8] sm:$0xff]  }
 0x17a   :  { %v5523_v20 = vadd.f32 %v7530_v14, %v9960_v38  ;;  %v7552_v21 = vadd.f32 %v7551_v18, %v7550_v13  ;;  %v7553_v22 = vpop.f32.mrb[18].mxu1  ;;  %7853 = vmatpush3.bf16.msra.mxu1 %v8541_v7  ;;  %v8559_v38 = vld [vmem:[%s10748_s1 + $0xc50] sm:$0xff]   ;;  %v8580_v7 = vld [vmem:[%s10748_s1 + $0xcf8] sm:$0xff]   ;;  %v10175_v15 = vrot.slane %v1493_v9, %v8921_v41  ;;  %v8584_v19 = vld [vmem:[%s10748_s1 + $0xdc0] sm:$0xff]  }
 0x17b   :  { %v7554_v24 = vpop.f32.mrb[19].mxu1  ;;  %7854 = vmatprep.subr.bf16.mxu1 %v8543_v10  ;;  %v8582_v13 = vld [vmem:[%s10748_s1 + $0xcb8] sm:$0xff]   ;;  %v1508_v14 = vcombine.high %v1500_v8, %v1500_v8 }
 0x17c   :  { %v10064_v26 = vadd.f32 %v7552_v21, %v5523_v20  ;;  %7833 = vmatpush3.bf16.msra.mxu0 %v8544_v12  ;;  %v1509_v20 = vcombine.high %v10175_v15, %v10175_v15  ;;  %v8585_v21 = vld [vmem:[%s10748_s1 + $0xd00] sm:$0xff]  }
 0x17d   :  { %7834 = vmatprep.subr.bf16.mxu0 %v8546_v17  ;;  %v8583_v17 = vld [vmem:[%s10748_s1 + $0xd40] sm:$0xff]   ;;  %v1530_v18 = vrot.slane %v1508_v14, %v8921_v41  ;;  %v8624_v14 = vld [vmem:[%s10748_s1 + $0xe50] sm:$0xff]  }
 0x17e   :  { %7855 = vmatpush3.bf16.msra.mxu1 %v8545_v16  ;;  %v1516_v16 = vrot.slane %v1500_v8, %v8921_v41  ;;  %v1537_v24 = vrot.slane %v1509_v20, %v8921_v41  ;;  %v8619_v8 = vld [vmem:[%s10748_s1 + $0xe80] sm:$0xff]   ;;  %v8630_v20 = vld [vmem:[%s10748_s1 + $0xe18] sm:$0xff]  }
 0x17f   :  { %7856 = vmatprep.subr.bf16.mxu1 %v8547_v23  ;;  %v1540_v22 = vcombine.high %v1530_v18, %v1530_v18  ;;  %v8586_v23 = vld [vmem:[%s10748_s1 + $0xd80] sm:$0xff]  }
 0x180   :  { %7835 = vmatpush3.bf16.msra.mxu0 %v8548_v25  ;;  %v1538_v25 = vcombine.high %v1516_v16, %v1516_v16 }
 0x181   :  { %7864 = vmatprep.subr.bf16.mxu0 %v8551_v29  ;;  %v8589_v29 = vld [vmem:[%s10748_s1 + $0xd08] sm:$0xff]  }
 0x182   :  { %7857 = vmatpush3.bf16.msra.mxu1 %v8549_v27  ;;  %v8588_v27 = vld [vmem:[%s10748_s1 + $0xdc8] sm:$0xff]  }
 0x183   :  { %6081 = vmatmul.mubr.bf16.vlgmr.msra.gmra.mrb[44].mxu0 %v1474_v28  ;;  %7886 = vmatprep.subr.bf16.mxu1 %v8552_v30  ;;  %v1541_v28 = vcombine.high %v1537_v24, %v1537_v24  ;;  %v8590_v30 = vld [vmem:[%s10748_s1 + $0xd88] sm:$0xff]  }
 0x184   :  { %7865 = vmatpush3.bf16.msra.mxu0 %v8553_v31  ;;  %6160 = vmatprep.mubr.bf16.mxu0 %v1530_v18  ;;  %v8591_v31 = vld [vmem:[%s10748_s1 + $0xd50] sm:$0xff]   ;;  %v8628_v18 = vld [vmem:[%s10748_s1 + $0xe58] sm:$0xff]  }
 0x185   :  { %6121 = vmatmul.mubr.bf16.vlgmr.msra.gmra.mrb[44].mxu1 %v1490_v33  ;;  %7866 = vmatprep.subr.bf16.mxu0 %v8555_v34  ;;  %v8593_v33 = vld [vmem:[%s10748_s1 + $0xd10] sm:$0xff]  }
 0x186   :  { %7887 = vmatpush3.bf16.msra.mxu1 %v8554_v32  ;;  %6200 = vmatprep.mubr.bf16.mxu1 %v1540_v22  ;;  %v8592_v32 = vld [vmem:[%s10748_s1 + $0xdd0] sm:$0xff]   ;;  %v8632_v22 = vld [vmem:[%s10748_s1 + $0xe60] sm:$0xff]  }
 0x187   :  { %7888 = vmatprep.subr.bf16.mxu1 %v8556_v35  ;;  %v8594_v34 = vld [vmem:[%s10748_s1 + $0xd90] sm:$0xff]   ;;  %v8595_v35 = vld [vmem:[%s10748_s1 + $0xd58] sm:$0xff]  }
 0x188   :  { %7867 = vmatpush3.bf16.msra.mxu0 %v8557_v36  ;;  %v8596_v36 = vld [vmem:[%s10748_s1 + $0xdd8] sm:$0xff]  }
 0x189   :  { %7868 = vmatprep.subr.bf16.mxu0 %v8559_v38  ;;  %v8598_v38 = vld [vmem:[%s10748_s1 + $0xd98] sm:$0xff]  }
 0x18a   :  { %7889 = vmatpush3.bf16.msra.mxu1 %v8558_v37  ;;  %v8597_v37 = vld [vmem:[%s10748_s1 + $0xd18] sm:$0xff]  }
 0x18b   :  { %7890 = vmatprep.subr.bf16.mxu1 %v8560_v39  ;;  %v8599_v39 = vld [vmem:[%s10748_s1 + $0xd60] sm:$0xff]  }
 0x18c   :  { %7869 = vmatpush3.bf16.msra.mxu0 %v8561_v40  ;;  %v8600_v40 = vld [vmem:[%s10748_s1 + $0xde0] sm:$0xff]  }
 0x18d   :  { %7870 = vmatprep.subr.bf16.mxu0 %v8563_v43  ;;  %v8602_v43 = vld [vmem:[%s10748_s1 + $0xda0] sm:$0xff]  }
 0x18e   :  { %7891 = vmatpush3.bf16.msra.mxu1 %v8562_v42  ;;  %v8601_v42 = vld [vmem:[%s10748_s1 + $0xd20] sm:$0xff]  }
 0x18f   :  { %7892 = vmatprep.subr.bf16.mxu1 %v8564_v44  ;;  %v8603_v44 = vld [vmem:[%s10748_s1 + $0xd68] sm:$0xff]  }
 0x190   :  { %7871 = vmatpush3.bf16.msra.mxu0 %v8565_v45  ;;  %v8604_v45 = vld [vmem:[%s10748_s1 + $0xde8] sm:$0xff]  }
 0x191   :  { %7872 = vmatprep.subr.bf16.mxu0 %v8567_v47  ;;  %v8606_v47 = vld [vmem:[%s10748_s1 + $0xda8] sm:$0xff]  }
 0x192   :  { %7893 = vmatpush3.bf16.msra.mxu1 %v8566_v46  ;;  %v8605_v46 = vld [vmem:[%s10748_s1 + $0xd28] sm:$0xff]  }
 0x193   :  { %7894 = vmatprep.subr.bf16.mxu1 %v8568_v48  ;;  %v8607_v48 = vld [vmem:[%s10748_s1 + $0xd70] sm:$0xff]  }
 0x194   :  { %7873 = vmatpush3.bf16.msra.mxu0 %v8569_v49 }
 0x195   :  { %7874 = vmatprep.subr.bf16.mxu0 %v8571_v51 }
 0x196   :  { %7895 = vmatpush3.bf16.msra.mxu1 %v8570_v50  ;;  %v7572_v56 = vpop.f32.mrb[20].mxu0  ;;  %v8608_v50 = vld [vmem:[%s10748_s1 + $0xdf0] sm:$0xff]  }
 0x197   :  { %v7573_v58 = vpop.f32.mrb[21].mxu0  ;;  %7896 = vmatprep.subr.bf16.mxu1 %v8572_v52  ;;  %v8609_v52 = vld [vmem:[%s10748_s1 + $0xd30] sm:$0xff]  }
 0x198   :  { %v7594_v60 = vpop.f32.mrb[20].mxu1  ;;  %v7574_v61 = vadd.f32 %v7573_v58, %v7572_v56  ;;  %v7575_v62 = vpop.f32.mrb[22].mxu0  ;;  %7875 = vmatpush3.bf16.msra.mxu0 %v8573_v53  ;;  %v8610_v56 = vld [vmem:[%s10748_s1 + $0xdb0] sm:$0xff]  }
 0x199   :  { %v7595_v0 = vpop.f32.mrb[21].mxu1  ;;  %v7576_v1 = vpop.f32.mrb[23].mxu0  ;;  %7876 = vmatprep.subr.bf16.mxu0 %v8575_v55 }
 0x19a   :  { %v5603_v4 = vadd.f32 %v7574_v61, %v10064_v26  ;;  %v7596_v5 = vadd.f32 %v7595_v0, %v7594_v60  ;;  %v7597_v6 = vpop.f32.mrb[22].mxu1  ;;  %7897 = vmatpush3.bf16.msra.mxu1 %v8574_v54  ;;  %v8587_v26 = vld [vmem:[%s10748_s1 + $0xd48] sm:$0xff]   ;;  %v8613_v1 = vld [vmem:[%s10748_s1 + $0xd38] sm:$0xff]  }
 0x19b   :  { %v7598_v10 = vpop.f32.mrb[23].mxu1  ;;  %7898 = vmatprep.subr.bf16.mxu1 %v8576_v57  ;;  %v8611_v57 = vld [vmem:[%s10748_s1 + $0xd78] sm:$0xff]   ;;  %v8617_v6 = vld [vmem:[%s10748_s1 + $0xec0] sm:$0xff]  }
 0x19c   :  { %v10169_v12 = vadd.f32 %v7596_v5, %v5603_v4  ;;  %7877 = vmatpush3.bf16.msra.mxu0 %v8577_v59  ;;  %v1523_v4 = vrot.slane %v10175_v15, %v8921_v41  ;;  %v8616_v5 = vld [vmem:[%s10748_s1 + $0xe40] sm:$0xff]   ;;  %v8620_v10 = vld [vmem:[%s10748_s1 + $0xe48] sm:$0xff]   ;;  %v8625_v15 = vld [vmem:[%s10748_s1 + $0xed0] sm:$0xff]  }
 0x19d   :  { %7878 = vmatprep.subr.bf16.mxu0 %v8579_v2 }
 0x19e   :  { %7899 = vmatpush3.bf16.msra.mxu1 %v8578_v63  ;;  %v8612_v63 = vld [vmem:[%s10748_s1 + $0xdf8] sm:$0xff]   ;;  %v1539_v9 = vcombine.high %v1523_v4, %v1523_v4 }
 0x19f   :  { %7900 = vmatprep.subr.bf16.mxu1 %v8580_v7  ;;  %v8618_v7 = vld [vmem:[%s10748_s1 + $0xe00] sm:$0xff]  }
 0x1a0   :  { %7879 = vmatpush3.bf16.msra.mxu0 %v8581_v11  ;;  %v8621_v11 = vld [vmem:[%s10748_s1 + $0xec8] sm:$0xff]  }
 0x1a1   :  { %7908 = vmatprep.subr.bf16.mxu0 %v8583_v17  ;;  %v8627_v17 = vld [vmem:[%s10748_s1 + $0xe90] sm:$0xff]  }
 0x1a2   :  { %7901 = vmatpush3.bf16.msra.mxu1 %v8582_v13  ;;  %v8623_v13 = vld [vmem:[%s10748_s1 + $0xe88] sm:$0xff]  }
 0x1a3   :  { %6161 = vmatmul.mubr.bf16.vlgmr.msra.gmra.mrb[48].mxu0 %v1516_v16  ;;  %7930 = vmatprep.subr.bf16.mxu1 %v8584_v19  ;;  %v8626_v16 = vld [vmem:[%s10748_s1 + $0xe10] sm:$0xff]   ;;  %v8629_v19 = vld [vmem:[%s10748_s1 + $0xed8] sm:$0xff]  }
 0x1a4   :  { %7909 = vmatpush3.bf16.msra.mxu0 %v8585_v21  ;;  %6240 = vmatprep.mubr.bf16.mxu0 %v1537_v24  ;;  %v8631_v21 = vld [vmem:[%s10748_s1 + $0xe98] sm:$0xff]   ;;  %v8634_v24 = vld [vmem:[%s10748_s1 + $0xe20] sm:$0xff]  }
 0x1a5   :  { %6201 = vmatmul.mubr.bf16.vlgmr.msra.gmra.mrb[48].mxu1 %v1538_v25  ;;  %7910 = vmatprep.subr.bf16.mxu0 %v8587_v26  ;;  %v8635_v25 = vld [vmem:[%s10748_s1 + $0xea0] sm:$0xff]   ;;  %v8636_v26 = vld [vmem:[%s10748_s1 + $0xe68] sm:$0xff]  }
 0x1a6   :  { %7931 = vmatpush3.bf16.msra.mxu1 %v8586_v23  ;;  %6280 = vmatprep.mubr.bf16.mxu1 %v1541_v28  ;;  %v8633_v23 = vld [vmem:[%s10748_s1 + $0xee0] sm:$0xff]   ;;  %v8638_v28 = vld [vmem:[%s10748_s1 + $0xe28] sm:$0xff]  }
 0x1a7   :  { %7932 = vmatprep.subr.bf16.mxu1 %v8588_v27  ;;  %v8637_v27 = vld [vmem:[%s10748_s1 + $0xee8] sm:$0xff]  }
 0x1a8   :  { %7911 = vmatpush3.bf16.msra.mxu0 %v8589_v29  ;;  %v8639_v29 = vld [vmem:[%s10748_s1 + $0xea8] sm:$0xff]  }
 0x1a9   :  { %7912 = vmatprep.subr.bf16.mxu0 %v8591_v31 }
 0x1aa   :  { %7933 = vmatpush3.bf16.msra.mxu1 %v8590_v30  ;;  %v8640_v30 = vld [vmem:[%s10748_s1 + $0xe70] sm:$0xff]  }
 0x1ab   :  { %7934 = vmatprep.subr.bf16.mxu1 %v8592_v32  ;;  %v8641_v32 = vld [vmem:[%s10748_s1 + $0xef0] sm:$0xff]  }
 0x1ac   :  { %7913 = vmatpush3.bf16.msra.mxu0 %v8593_v33 }
 0x1ad   :  { %7914 = vmatprep.subr.bf16.mxu0 %v8595_v35 }
 0x1ae   :  { %7935 = vmatpush3.bf16.msra.mxu1 %v8594_v34  ;;  %v8642_v34 = vld [vmem:[%s10748_s1 + $0xe30] sm:$0xff]  }
 0x1af   :  { %7936 = vmatprep.subr.bf16.mxu1 %v8596_v36 }
 0x1b0   :  { %7915 = vmatpush3.bf16.msra.mxu0 %v8597_v37 }
 0x1b1   :  { %7916 = vmatprep.subr.bf16.mxu0 %v8599_v39 }
 0x1b2   :  { %7937 = vmatpush3.bf16.msra.mxu1 %v8598_v38  ;;  %v8643_v38 = vld [vmem:[%s10748_s1 + $0xeb0] sm:$0xff]  }
 0x1b3   :  { %7938 = vmatprep.subr.bf16.mxu1 %v8600_v40 }
 0x1b4   :  { %7917 = vmatpush3.bf16.msra.mxu0 %v8601_v42  ;;  %v8644_v42 = vld [vmem:[%s10748_s1 + $0xe78] sm:$0xff]  }
 0x1b5   :  { %7918 = vmatprep.subr.bf16.mxu0 %v8603_v44 }
 0x1b6   :  { %7939 = vmatpush3.bf16.msra.mxu1 %v8602_v43  ;;  %v7616_v49 = vpop.f32.mrb[24].mxu0  ;;  %v8645_v43 = vld [vmem:[%s10748_s1 + $0xef8] sm:$0xff]  }
 0x1b7   :  { %v7617_v51 = vpop.f32.mrb[25].mxu0  ;;  %7940 = vmatprep.subr.bf16.mxu1 %v8604_v45 }
 0x1b8   :  { %v7638_v53 = vpop.f32.mrb[24].mxu1  ;;  %v7618_v54 = vadd.f32 %v7617_v51, %v7616_v49  ;;  %v7619_v55 = vpop.f32.mrb[26].mxu0  ;;  %7919 = vmatpush3.bf16.msra.mxu0 %v8605_v46  ;;  %v8646_v49 = vld [vmem:[%s10748_s1 + $0xe38] sm:$0xff]  }
 0x1b9   :  { %v7639_v58 = vpop.f32.mrb[25].mxu1  ;;  %v7620_v59 = vpop.f32.mrb[27].mxu0  ;;  %7920 = vmatprep.subr.bf16.mxu0 %v8607_v48 }
 0x1ba   :  { %v5683_v60 = vadd.f32 %v7618_v54, %v10169_v12  ;;  %v7640_v61 = vadd.f32 %v7639_v58, %v7638_v53  ;;  %v7641_v62 = vpop.f32.mrb[26].mxu1  ;;  %7941 = vmatpush3.bf16.msra.mxu1 %v8606_v47  ;;  %v8622_v12 = vld [vmem:[%s10748_s1 + $0xe08] sm:$0xff]   ;;  %v29_v47 = vld [vmem:[%s10747_s0 + $0x38] sm:$0xff]  ;;  %v8649_v58 = vld [vmem:[%s10748_s1 + $0xfc0] sm:$0xff]  }
 0x1bb   :  { %v7642_v0 = vpop.f32.mrb[27].mxu1  ;;  %7942 = vmatprep.subr.bf16.mxu1 %v8608_v50  ;;  %v1549_v50 = vrot.slane %v29_v47, %v8921_v41  ;;  %v1542_v51 = vcombine.high %v29_v47, %v29_v47  ;;  %v8647_v53 = vld [vmem:[%s10748_s1 + $0xeb8] sm:$0xff]   ;;  %v8651_v62 = vld [vmem:[%s10748_s1 + $0xf80] sm:$0xff]  }
 0x1bc   :  { %v10276_v2 = vadd.f32 %v7640_v61, %v5683_v60  ;;  %7921 = vmatpush3.bf16.msra.mxu0 %v8609_v52  ;;  %v8650_v60 = vld [vmem:[%s10748_s1 + $0xf00] sm:$0xff]  }
 0x1bd   :  { %7922 = vmatprep.subr.bf16.mxu0 %v8611_v57  ;;  %v1557_v54 = vcombine.high %v1549_v50, %v1549_v50  ;;  %v1565_v55 = vrot.slane %v1549_v50, %v8921_v41  ;;  %v10391_v57 = vrot.slane %v1542_v51, %v8921_v41  ;;  %v8683_v47 = vld [vmem:[%s10748_s1 + $0x1000] sm:$0xff]   ;;  %v8685_v50 = vld [vmem:[%s10748_s1 + $0x1048] sm:$0xff]  }
 0x1be   :  { %7943 = vmatpush3.bf16.msra.mxu1 %v8610_v56  ;;  %v8648_v56 = vld [vmem:[%s10748_s1 + $0xf40] sm:$0xff]   ;;  %v8686_v51 = vld [vmem:[%s10748_s1 + $0x10c8] sm:$0xff]  }
 0x1bf   :  { %7944 = vmatprep.subr.bf16.mxu1 %v8612_v63  ;;  %v1579_v59 = vrot.slane %v1557_v54, %v8921_v41  ;;  %v1558_v61 = vcombine.high %v10391_v57, %v10391_v57  ;;  %v1587_v0 = vcombine.high %v1565_v55, %v1565_v55  ;;  %v8689_v54 = vld [vmem:[%s10748_s1 + $0x1050] sm:$0xff]  }
 0x1c0   :  { %7923 = vmatpush3.bf16.msra.mxu0 %v8613_v1  ;;  %v8652_v1 = vld [vmem:[%s10748_s1 + $0xf48] sm:$0xff]  }
 0x1c1   :  { %7952 = vmatprep.subr.bf16.mxu0 %v8616_v5  ;;  %v1589_v63 = vcombine.high %v1579_v59, %v1579_v59 }
 0x1c2   :  { %7945 = vmatpush3.bf16.msra.mxu1 %v8614_v3  ;;  %v8653_v3 = vld [vmem:[%s10748_s1 + $0xfc8] sm:$0xff]  }
 0x1c3   :  { %6241 = vmatmul.mubr.bf16.vlgmr.msra.gmra.mrb[52].mxu0 %v1523_v4  ;;  %7974 = vmatprep.subr.bf16.mxu1 %v8617_v6  ;;  %v8654_v4 = vld [vmem:[%s10748_s1 + $0xf08] sm:$0xff]  }
 0x1c4   :  { %7953 = vmatpush3.bf16.msra.mxu0 %v8618_v7  ;;  %6320 = vmatprep.mubr.bf16.mxu0 %v1579_v59  ;;  %v8655_v6 = vld [vmem:[%s10748_s1 + $0xf88] sm:$0xff]   ;;  %v8656_v7 = vld [vmem:[%s10748_s1 + $0xf50] sm:$0xff]   ;;  %v8694_v59 = vld [vmem:[%s10748_s1 + $0x10d8] sm:$0xff]  }
 0x1c5   :  { %6281 = vmatmul.mubr.bf16.vlgmr.msra.gmra.mrb[52].mxu1 %v1539_v9  ;;  %7954 = vmatprep.subr.bf16.mxu0 %v8620_v10  ;;  %v8658_v9 = vld [vmem:[%s10748_s1 + $0xf10] sm:$0xff]  }
 0x1c6   :  { %7975 = vmatpush3.bf16.msra.mxu1 %v8619_v8  ;;  %6360 = vmatprep.mubr.bf16.mxu1 %v1589_v63  ;;  %v8657_v8 = vld [vmem:[%s10748_s1 + $0xfd0] sm:$0xff]   ;;  %v8698_v63 = vld [vmem:[%s10748_s1 + $0x10e0] sm:$0xff]  }
 0x1c7   :  { %7976 = vmatprep.subr.bf16.mxu1 %v8621_v11  ;;  %v8659_v10 = vld [vmem:[%s10748_s1 + $0xf90] sm:$0xff]   ;;  %v8660_v11 = vld [vmem:[%s10748_s1 + $0xf58] sm:$0xff]  }
 0x1c8   :  { %7955 = vmatpush3.bf16.msra.mxu0 %v8622_v12  ;;  %v8661_v12 = vld [vmem:[%s10748_s1 + $0xfd8] sm:$0xff]  }
 0x1c9   :  { %7956 = vmatprep.subr.bf16.mxu0 %v8624_v14  ;;  %v8663_v14 = vld [vmem:[%s10748_s1 + $0xf98] sm:$0xff]  }
 0x1ca   :  { %7977 = vmatpush3.bf16.msra.mxu1 %v8623_v13  ;;  %v8662_v13 = vld [vmem:[%s10748_s1 + $0xf18] sm:$0xff]  }
 0x1cb   :  { %7978 = vmatprep.subr.bf16.mxu1 %v8625_v15  ;;  %v8664_v15 = vld [vmem:[%s10748_s1 + $0xf60] sm:$0xff]  }
 0x1cc   :  { %7957 = vmatpush3.bf16.msra.mxu0 %v8626_v16  ;;  %v8665_v16 = vld [vmem:[%s10748_s1 + $0xfe0] sm:$0xff]  }
 0x1cd   :  { %7958 = vmatprep.subr.bf16.mxu0 %v8628_v18  ;;  %v8667_v18 = vld [vmem:[%s10748_s1 + $0xfa0] sm:$0xff]  }
 0x1ce   :  { %7979 = vmatpush3.bf16.msra.mxu1 %v8627_v17  ;;  %v8666_v17 = vld [vmem:[%s10748_s1 + $0xf20] sm:$0xff]  }
 0x1cf   :  { %7980 = vmatprep.subr.bf16.mxu1 %v8629_v19  ;;  %v8668_v19 = vld [vmem:[%s10748_s1 + $0xf68] sm:$0xff]  }
 0x1d0   :  { %7959 = vmatpush3.bf16.msra.mxu0 %v8630_v20  ;;  %v8669_v20 = vld [vmem:[%s10748_s1 + $0xfe8] sm:$0xff]  }
 0x1d1   :  { %7960 = vmatprep.subr.bf16.mxu0 %v8632_v22  ;;  %v8671_v22 = vld [vmem:[%s10748_s1 + $0xfa8] sm:$0xff]  }
 0x1d2   :  { %7981 = vmatpush3.bf16.msra.mxu1 %v8631_v21  ;;  %v8670_v21 = vld [vmem:[%s10748_s1 + $0xf28] sm:$0xff]  }
 0x1d3   :  { %7982 = vmatprep.subr.bf16.mxu1 %v8633_v23  ;;  %v8672_v23 = vld [vmem:[%s10748_s1 + $0xf70] sm:$0xff]  }
 0x1d4   :  { %7961 = vmatpush3.bf16.msra.mxu0 %v8634_v24 }
 0x1d5   :  { %7962 = vmatprep.subr.bf16.mxu0 %v8636_v26 }
 0x1d6   :  { %7983 = vmatpush3.bf16.msra.mxu1 %v8635_v25  ;;  %v7660_v31 = vpop.f32.mrb[28].mxu0  ;;  %v8673_v25 = vld [vmem:[%s10748_s1 + $0xff0] sm:$0xff]  }
 0x1d7   :  { %v7661_v33 = vpop.f32.mrb[29].mxu0  ;;  %7984 = vmatprep.subr.bf16.mxu1 %v8637_v27  ;;  %v8674_v27 = vld [vmem:[%s10748_s1 + $0xf30] sm:$0xff]  }
 0x1d8   :  { %v7682_v35 = vpop.f32.mrb[28].mxu1  ;;  %v7662_v36 = vadd.f32 %v7661_v33, %v7660_v31  ;;  %v7663_v37 = vpop.f32.mrb[30].mxu0  ;;  %7963 = vmatpush3.bf16.msra.mxu0 %v8638_v28  ;;  %v8675_v31 = vld [vmem:[%s10748_s1 + $0xfb0] sm:$0xff]  }
 0x1d9   :  { %v7683_v39 = vpop.f32.mrb[29].mxu1  ;;  %v7664_v40 = vpop.f32.mrb[31].mxu0  ;;  %7964 = vmatprep.subr.bf16.mxu0 %v8640_v30 }
 0x1da   :  { %v5763_v44 = vadd.f32 %v7662_v36, %v10276_v2  ;;  %v7684_v45 = vadd.f32 %v7683_v39, %v7682_v35  ;;  %v7685_v46 = vpop.f32.mrb[30].mxu1  ;;  %7985 = vmatpush3.bf16.msra.mxu1 %v8639_v29  ;;  %v1586_v2 = vrot.slane %v1558_v61, %v8921_v41  ;;  %v8678_v40 = vld [vmem:[%s10748_s1 + $0xf38] sm:$0xff]  }
 0x1db   :  { %v7686_v48 = vpop.f32.mrb[31].mxu1  ;;  %7986 = vmatprep.subr.bf16.mxu1 %v8641_v32  ;;  %v8676_v32 = vld [vmem:[%s10748_s1 + $0xf78] sm:$0xff]   ;;  %v8682_v46 = vld [vmem:[%s10748_s1 + $0x10c0] sm:$0xff]  }
 0x1dc   :  { %v10381_v52 = vadd.f32 %v7684_v45, %v5763_v44  ;;  %7965 = vmatpush3.bf16.msra.mxu0 %v8642_v34  ;;  %v1590_v5 = vcombine.high %v1586_v2, %v1586_v2  ;;  %v1572_v44 = vrot.slane %v10391_v57, %v8921_v41  ;;  %v8681_v45 = vld [vmem:[%s10748_s1 + $0x1040] sm:$0xff]   ;;  %v8692_v57 = vld [vmem:[%s10748_s1 + $0x1090] sm:$0xff]   ;;  %v8696_v61 = vld [vmem:[%s10748_s1 + $0x1098] sm:$0xff]  }
 0x1dd   :  { %7966 = vmatprep.subr.bf16.mxu0 %v8644_v42  ;;  %v8684_v48 = vld [vmem:[%s10748_s1 + $0x1080] sm:$0xff]  }
 0x1de   :  { %7987 = vmatpush3.bf16.msra.mxu1 %v8643_v38  ;;  %v8677_v38 = vld [vmem:[%s10748_s1 + $0xff8] sm:$0xff]  }
 0x1df   :  { %7988 = vmatprep.subr.bf16.mxu1 %v8645_v43  ;;  %v8679_v43 = vld [vmem:[%s10748_s1 + $0xfb8] sm:$0xff]  }
 0x1e0   :  { %7967 = vmatpush3.bf16.msra.mxu0 %v8646_v49  ;;  %v1588_v49 = vcombine.high %v1572_v44, %v1572_v44 }
 0x1e1   :  { %7996 = vmatprep.subr.bf16.mxu0 %v8648_v56  ;;  %v8691_v56 = vld [vmem:[%s10748_s1 + $0x1010] sm:$0xff]  }
 0x1e2   :  { %7989 = vmatpush3.bf16.msra.mxu1 %v8647_v53  ;;  %v8688_v53 = vld [vmem:[%s10748_s1 + $0x1088] sm:$0xff]  }
 0x1e3   :  { %6321 = vmatmul.mubr.bf16.vlgmr.msra.gmra.mrb[56].mxu0 %v1565_v55  ;;  %8018 = vmatprep.subr.bf16.mxu1 %v8649_v58  ;;  %v8690_v55 = vld [vmem:[%s10748_s1 + $0x10d0] sm:$0xff]   ;;  %v8693_v58 = vld [vmem:[%s10748_s1 + $0x1058] sm:$0xff]  }
 0x1e4   :  { %7997 = vmatpush3.bf16.msra.mxu0 %v8650_v60  ;;  %6400 = vmatprep.mubr.bf16.mxu0 %v1586_v2  ;;  %v8695_v60 = vld [vmem:[%s10748_s1 + $0x1018] sm:$0xff]   ;;  %v8701_v2 = vld [vmem:[%s10748_s1 + $0x1068] sm:$0xff]  }
 0x1e5   :  { %6361 = vmatmul.mubr.bf16.vlgmr.msra.gmra.mrb[56].mxu1 %v1587_v0  ;;  %7998 = vmatprep.subr.bf16.mxu0 %v8652_v1  ;;  %v8699_v0 = vld [vmem:[%s10748_s1 + $0x1020] sm:$0xff]  }
 0x1e6   :  { %8019 = vmatpush3.bf16.msra.mxu1 %v8651_v62  ;;  %6440 = vmatprep.mubr.bf16.mxu1 %v1590_v5  ;;  %v8697_v62 = vld [vmem:[%s10748_s1 + $0x1060] sm:$0xff]   ;;  %v8704_v5 = vld [vmem:[%s10748_s1 + $0x10a8] sm:$0xff]  }
 0x1e7   :  { %8020 = vmatprep.subr.bf16.mxu1 %v8653_v3  ;;  %v8700_v1 = vld [vmem:[%s10748_s1 + $0x10a0] sm:$0xff]   ;;  %v8702_v3 = vld [vmem:[%s10748_s1 + $0x10e8] sm:$0xff]  }
 0x1e8   :  { %7999 = vmatpush3.bf16.msra.mxu0 %v8654_v4  ;;  %v8703_v4 = vld [vmem:[%s10748_s1 + $0x1028] sm:$0xff]  }
 0x1e9   :  { %8000 = vmatprep.subr.bf16.mxu0 %v8656_v7 }
 0x1ea   :  { %8021 = vmatpush3.bf16.msra.mxu1 %v8655_v6  ;;  %v8705_v6 = vld [vmem:[%s10748_s1 + $0x1070] sm:$0xff]  }
 0x1eb   :  { %8022 = vmatprep.subr.bf16.mxu1 %v8657_v8  ;;  %v8706_v8 = vld [vmem:[%s10748_s1 + $0x10f0] sm:$0xff]  }
 0x1ec   :  { %8001 = vmatpush3.bf16.msra.mxu0 %v8658_v9 }
 0x1ed   :  { %8002 = vmatprep.subr.bf16.mxu0 %v8660_v11 }
 0x1ee   :  { %8023 = vmatpush3.bf16.msra.mxu1 %v8659_v10  ;;  %v8707_v10 = vld [vmem:[%s10748_s1 + $0x1030] sm:$0xff]  }
 0x1ef   :  { %8024 = vmatprep.subr.bf16.mxu1 %v8661_v12 }
 0x1f0   :  { %8003 = vmatpush3.bf16.msra.mxu0 %v8662_v13 }
 0x1f1   :  { %8004 = vmatprep.subr.bf16.mxu0 %v8664_v15 }
 0x1f2   :  { %8025 = vmatpush3.bf16.msra.mxu1 %v8663_v14  ;;  %v8708_v14 = vld [vmem:[%s10748_s1 + $0x10b0] sm:$0xff]  }
 0x1f3   :  { %8026 = vmatprep.subr.bf16.mxu1 %v8665_v16 }
 0x1f4   :  { %8005 = vmatpush3.bf16.msra.mxu0 %v8666_v17  ;;  %v8709_v17 = vld [vmem:[%s10748_s1 + $0x1078] sm:$0xff]  }
 0x1f5   :  { %8006 = vmatprep.subr.bf16.mxu0 %v8668_v19 }
 0x1f6   :  { %8027 = vmatpush3.bf16.msra.mxu1 %v8667_v18  ;;  %v7704_v24 = vpop.f32.mrb[32].mxu0  ;;  %v8710_v18 = vld [vmem:[%s10748_s1 + $0x10f8] sm:$0xff]  }
 0x1f7   :  { %v7705_v26 = vpop.f32.mrb[33].mxu0  ;;  %8028 = vmatprep.subr.bf16.mxu1 %v8669_v20 }
 0x1f8   :  { %v7726_v28 = vpop.f32.mrb[32].mxu1  ;;  %v7706_v29 = vadd.f32 %v7705_v26, %v7704_v24  ;;  %v7707_v30 = vpop.f32.mrb[34].mxu0  ;;  %8007 = vmatpush3.bf16.msra.mxu0 %v8670_v21  ;;  %v30_v24 = vld [vmem:[%s10747_s0 + $0x40] sm:$0xff]  ;;  %v8712_v26 = vld [vmem:[%s10748_s1 + $0x10b8] sm:$0xff]  }
 0x1f9   :  { %v7727_v33 = vpop.f32.mrb[33].mxu1  ;;  %v7708_v34 = vpop.f32.mrb[35].mxu0  ;;  %8008 = vmatprep.subr.bf16.mxu0 %v8672_v23 }
 0x1fa   :  { %v5843_v35 = vadd.f32 %v7706_v29, %v10381_v52  ;;  %v7728_v36 = vadd.f32 %v7727_v33, %v7726_v28  ;;  %v7729_v37 = vpop.f32.mrb[34].mxu1  ;;  %8029 = vmatpush3.bf16.msra.mxu1 %v8671_v22  ;;  %v8687_v52 = vld [vmem:[%s10748_s1 + $0x1008] sm:$0xff]   ;;  %v8711_v22 = vld [vmem:[%s10748_s1 + $0x1038] sm:$0xff]   ;;  %v1591_v28 = vcombine.high %v30_v24, %v30_v24  ;;  %v8713_v29 = vld [vmem:[%s10748_s1 + $0x1140] sm:$0xff]  }
 0x1fb   :  { %v7730_v39 = vpop.f32.mrb[35].mxu1  ;;  %8030 = vmatprep.subr.bf16.mxu1 %v8673_v25  ;;  %v8715_v34 = vld [vmem:[%s10748_s1 + $0x1100] sm:$0xff]  }
 0x1fc   :  { %v10488_v42 = vadd.f32 %v7728_v36, %v5843_v35  ;;  %8009 = vmatpush3.bf16.msra.mxu0 %v8674_v27  ;;  %v1598_v27 = vrot.slane %v30_v24, %v8921_v41  ;;  %v10606_v33 = vrot.slane %v1591_v28, %v8921_v41  ;;  %v8716_v36 = vld [vmem:[%s10748_s1 + $0x1180] sm:$0xff]   ;;  %v8717_v39 = vld [vmem:[%s10748_s1 + $0x1148] sm:$0xff]  }
 0x1fd   :  { %8010 = vmatprep.subr.bf16.mxu0 %v8676_v32  ;;  %v8714_v32 = vld [vmem:[%s10748_s1 + $0x11c0] sm:$0xff]  }
 0x1fe   :  { %8031 = vmatpush3.bf16.msra.mxu1 %v8675_v31  ;;  %v1606_v30 = vcombine.high %v1598_v27, %v1598_v27  ;;  %v1614_v31 = vrot.slane %v1598_v27, %v8921_v41  ;;  %v1607_v37 = vcombine.high %v10606_v33, %v10606_v33 }
 0x1ff   :  { %8032 = vmatprep.subr.bf16.mxu1 %v8677_v38 }
 0x200   :  { %8011 = vmatpush3.bf16.msra.mxu0 %v8678_v40  ;;  %v1628_v35 = vrot.slane %v1606_v30, %v8921_v41  ;;  %v1636_v38 = vcombine.high %v1614_v31, %v1614_v31 }
 0x201   :  { %8040 = vmatprep.subr.bf16.mxu0 %v8681_v45  ;;  %v8720_v45 = vld [vmem:[%s10748_s1 + $0x1188] sm:$0xff]  }
 0x202   :  { %8033 = vmatpush3.bf16.msra.mxu1 %v8679_v43  ;;  %v1638_v40 = vcombine.high %v1628_v35, %v1628_v35  ;;  %v1635_v43 = vrot.slane %v1607_v37, %v8921_v41 }
 0x203   :  { %6401 = vmatmul.mubr.bf16.vlgmr.msra.gmra.mrb[60].mxu0 %v1572_v44  ;;  %8062 = vmatprep.subr.bf16.mxu1 %v8682_v46  ;;  %v8719_v44 = vld [vmem:[%s10748_s1 + $0x1108] sm:$0xff]  }
 0x204   :  { %8041 = vmatpush3.bf16.msra.mxu0 %v8683_v47  ;;  %6480 = vmatprep.mubr.bf16.mxu0 %v1628_v35  ;;  %v1639_v46 = vcombine.high %v1635_v43, %v1635_v43  ;;  %v8721_v47 = vld [vmem:[%s10748_s1 + $0x1150] sm:$0xff]  }
 0x205   :  { %6441 = vmatmul.mubr.bf16.vlgmr.msra.gmra.mrb[60].mxu1 %v1588_v49  ;;  %8042 = vmatprep.subr.bf16.mxu0 %v8685_v50  ;;  %v8723_v49 = vld [vmem:[%s10748_s1 + $0x1110] sm:$0xff]  }
 0x206   :  { %8063 = vmatpush3.bf16.msra.mxu1 %v8684_v48  ;;  %6520 = vmatprep.mubr.bf16.mxu1 %v1638_v40  ;;  %v8722_v48 = vld [vmem:[%s10748_s1 + $0x11d0] sm:$0xff]  }
 0x207   :  { %8064 = vmatprep.subr.bf16.mxu1 %v8686_v51  ;;  %v8724_v50 = vld [vmem:[%s10748_s1 + $0x1190] sm:$0xff]   ;;  %v8725_v51 = vld [vmem:[%s10748_s1 + $0x1158] sm:$0xff]  }
 0x208   :  { %8043 = vmatpush3.bf16.msra.mxu0 %v8687_v52  ;;  %v8726_v52 = vld [vmem:[%s10748_s1 + $0x11d8] sm:$0xff]  }
 0x209   :  { %8044 = vmatprep.subr.bf16.mxu0 %v8689_v54  ;;  %v8728_v54 = vld [vmem:[%s10748_s1 + $0x1198] sm:$0xff]  }
 0x20a   :  { %8065 = vmatpush3.bf16.msra.mxu1 %v8688_v53  ;;  %v8727_v53 = vld [vmem:[%s10748_s1 + $0x1118] sm:$0xff]  }
 0x20b   :  { %8066 = vmatprep.subr.bf16.mxu1 %v8690_v55  ;;  %v8729_v55 = vld [vmem:[%s10748_s1 + $0x1160] sm:$0xff]  }
 0x20c   :  { %8045 = vmatpush3.bf16.msra.mxu0 %v8691_v56  ;;  %v8730_v56 = vld [vmem:[%s10748_s1 + $0x11e0] sm:$0xff]  }
 0x20d   :  { %8046 = vmatprep.subr.bf16.mxu0 %v8693_v58  ;;  %v8732_v58 = vld [vmem:[%s10748_s1 + $0x11a0] sm:$0xff]  }
 0x20e   :  { %8067 = vmatpush3.bf16.msra.mxu1 %v8692_v57  ;;  %v8731_v57 = vld [vmem:[%s10748_s1 + $0x1120] sm:$0xff]  }
 0x20f   :  { %8068 = vmatprep.subr.bf16.mxu1 %v8694_v59  ;;  %v8733_v59 = vld [vmem:[%s10748_s1 + $0x1168] sm:$0xff]  }
 0x210   :  { %8047 = vmatpush3.bf16.msra.mxu0 %v8695_v60  ;;  %v8734_v60 = vld [vmem:[%s10748_s1 + $0x11e8] sm:$0xff]  }
 0x211   :  { %8048 = vmatprep.subr.bf16.mxu0 %v8697_v62  ;;  %v8736_v62 = vld [vmem:[%s10748_s1 + $0x11a8] sm:$0xff]  }
 0x212   :  { %8069 = vmatpush3.bf16.msra.mxu1 %v8696_v61  ;;  %v8735_v61 = vld [vmem:[%s10748_s1 + $0x1128] sm:$0xff]  }
 0x213   :  { %8070 = vmatprep.subr.bf16.mxu1 %v8698_v63  ;;  %v8737_v63 = vld [vmem:[%s10748_s1 + $0x1170] sm:$0xff]  }
 0x214   :  { %8049 = vmatpush3.bf16.msra.mxu0 %v8699_v0 }
 0x215   :  { %8050 = vmatprep.subr.bf16.mxu0 %v8701_v2 }
 0x216   :  { %8071 = vmatpush3.bf16.msra.mxu1 %v8700_v1  ;;  %v7748_v7 = vpop.f32.mrb[36].mxu0  ;;  %v8738_v1 = vld [vmem:[%s10748_s1 + $0x11f0] sm:$0xff]  }
 0x217   :  { %v7749_v9 = vpop.f32.mrb[37].mxu0  ;;  %8072 = vmatprep.subr.bf16.mxu1 %v8702_v3  ;;  %v8739_v3 = vld [vmem:[%s10748_s1 + $0x1130] sm:$0xff]  }
 0x218   :  { %v7770_v11 = vpop.f32.mrb[36].mxu1  ;;  %v7750_v12 = vadd.f32 %v7749_v9, %v7748_v7  ;;  %v7751_v13 = vpop.f32.mrb[38].mxu0  ;;  %8051 = vmatpush3.bf16.msra.mxu0 %v8703_v4  ;;  %v8740_v7 = vld [vmem:[%s10748_s1 + $0x11b0] sm:$0xff]  }
 0x219   :  { %v7771_v15 = vpop.f32.mrb[37].mxu1  ;;  %v7752_v16 = vpop.f32.mrb[39].mxu0  ;;  %8052 = vmatprep.subr.bf16.mxu0 %v8705_v6 }
 0x21a   :  { %v5923_v19 = vadd.f32 %v7750_v12, %v10488_v42  ;;  %v7772_v20 = vadd.f32 %v7771_v15, %v7770_v11  ;;  %v7773_v21 = vpop.f32.mrb[38].mxu1  ;;  %8073 = vmatpush3.bf16.msra.mxu1 %v8704_v5  ;;  %v8718_v42 = vld [vmem:[%s10748_s1 + $0x11c8] sm:$0xff]   ;;  %v8743_v16 = vld [vmem:[%s10748_s1 + $0x1138] sm:$0xff]  }
 0x21b   :  { %v7774_v23 = vpop.f32.mrb[39].mxu1  ;;  %8074 = vmatprep.subr.bf16.mxu1 %v8706_v8  ;;  %v8741_v8 = vld [vmem:[%s10748_s1 + $0x1178] sm:$0xff]  }
 0x21c   :  { %v10592_v25 = vadd.f32 %v7772_v20, %v5923_v19  ;;  %8053 = vmatpush3.bf16.msra.mxu0 %v8707_v10  ;;  %v1621_v19 = vrot.slane %v10606_v33, %v8921_v41 }
 0x21d   :  { %8054 = vmatprep.subr.bf16.mxu0 %v8709_v17 }
 0x21e   :  { %8075 = vmatpush3.bf16.msra.mxu1 %v8708_v14  ;;  %v8742_v14 = vld [vmem:[%s10748_s1 + $0x11f8] sm:$0xff]   ;;  %v1637_v20 = vcombine.high %v1621_v19, %v1621_v19 }
 0x21f   :  { %8076 = vmatprep.subr.bf16.mxu1 %v8710_v18  ;;  %v8744_v18 = vld [vmem:[%s10748_s1 + $0x11b8] sm:$0xff]  }
 0x220   :  { %8055 = vmatpush3.bf16.msra.mxu0 %v8711_v22 }
 0x221   :  { %8084 = vmatprep.subr.bf16.mxu0 %v8713_v29 }
 0x222   :  { %8077 = vmatpush3.bf16.msra.mxu1 %v8712_v26 }
 0x223   :  { %6481 = vmatmul.mubr.bf16.vlgmr.msra.gmra.mrb[64].mxu0 %v1614_v31  ;;  %8106 = vmatprep.subr.bf16.mxu1 %v8714_v32 }
 0x224   :  { %8085 = vmatpush3.bf16.msra.mxu0 %v8715_v34  ;;  %6560 = vmatprep.mubr.bf16.mxu0 %v1635_v43 }
 0x225   :  { %6521 = vmatmul.mubr.bf16.vlgmr.msra.gmra.mrb[64].mxu1 %v1636_v38  ;;  %8086 = vmatprep.subr.bf16.mxu0 %v8717_v39 }
 0x226   :  { %8107 = vmatpush3.bf16.msra.mxu1 %v8716_v36  ;;  %6600 = vmatprep.mubr.bf16.mxu1 %v1639_v46 }
 0x227   :  { %8108 = vmatprep.subr.bf16.mxu1 %v8718_v42 }
 0x228   :  { %8087 = vmatpush3.bf16.msra.mxu0 %v8719_v44 }
 0x229   :  { %8088 = vmatprep.subr.bf16.mxu0 %v8721_v47 }
 0x22a   :  { %8109 = vmatpush3.bf16.msra.mxu1 %v8720_v45 }
 0x22b   :  { %8110 = vmatprep.subr.bf16.mxu1 %v8722_v48 }
 0x22c   :  { %8089 = vmatpush3.bf16.msra.mxu0 %v8723_v49 }
 0x22d   :  { %8090 = vmatprep.subr.bf16.mxu0 %v8725_v51 }
 0x22e   :  { %8111 = vmatpush3.bf16.msra.mxu1 %v8724_v50 }
 0x22f   :  { %8112 = vmatprep.subr.bf16.mxu1 %v8726_v52 }
 0x230   :  { %8091 = vmatpush3.bf16.msra.mxu0 %v8727_v53 }
 0x231   :  { %8092 = vmatprep.subr.bf16.mxu0 %v8729_v55 }
 0x232   :  { %8113 = vmatpush3.bf16.msra.mxu1 %v8728_v54 }
 0x233   :  { %8114 = vmatprep.subr.bf16.mxu1 %v8730_v56 }
 0x234   :  { %8093 = vmatpush3.bf16.msra.mxu0 %v8731_v57 }
 0x235   :  { %8094 = vmatprep.subr.bf16.mxu0 %v8733_v59 }
 0x236   :  { %8115 = vmatpush3.bf16.msra.mxu1 %v8732_v58  ;;  %v7792_v0 = vpop.f32.mrb[40].mxu0 }
 0x237   :  { %v7793_v2 = vpop.f32.mrb[41].mxu0  ;;  %8116 = vmatprep.subr.bf16.mxu1 %v8734_v60 }
 0x238   :  { %v7814_v4 = vpop.f32.mrb[40].mxu1  ;;  %v7794_v5 = vadd.f32 %v7793_v2, %v7792_v0  ;;  %v7795_v6 = vpop.f32.mrb[42].mxu0  ;;  %8095 = vmatpush3.bf16.msra.mxu0 %v8735_v61 }
 0x239   :  { %v7815_v9 = vpop.f32.mrb[41].mxu1  ;;  %v7796_v10 = vpop.f32.mrb[43].mxu0  ;;  %8096 = vmatprep.subr.bf16.mxu0 %v8737_v63 }
 0x23a   :  { %v6003_v11 = vadd.f32 %v7794_v5, %v10592_v25  ;;  %v7816_v12 = vadd.f32 %v7815_v9, %v7814_v4  ;;  %v7817_v13 = vpop.f32.mrb[42].mxu1  ;;  %8117 = vmatpush3.bf16.msra.mxu1 %v8736_v62 }
 0x23b   :  { %v7818_v15 = vpop.f32.mrb[43].mxu1  ;;  %8118 = vmatprep.subr.bf16.mxu1 %v8738_v1 }
 0x23c   :  { %v6043_v17 = vadd.f32 %v7816_v12, %v6003_v11  ;;  %8097 = vmatpush3.bf16.msra.mxu0 %v8739_v3 }
 0x23d   :  { %8098 = vmatprep.subr.bf16.mxu0 %v8741_v8 }
 0x23e   :  { %8119 = vmatpush3.bf16.msra.mxu1 %v8740_v7 }
 0x23f   :  { %8120 = vmatprep.subr.bf16.mxu1 %v8742_v14 }
 0x240   :  { %8099 = vmatpush3.bf16.msra.mxu0 %v8743_v16 }
 0x241   :  { %10 = vsyncpa [#allocation3], 0  ;;  %v8746_v45 = vld [vmem:[%s10750_s3] sm:$0xff]   ;;  %v8783_v46 = vmov 0.0   ;;  %v8747_v47 = vld [vmem:[%s10750_s3 + $0x8] sm:$0xff]   ;;  %vm8784_vm0 = vmmov 0  }
 0x242   :  { %8121 = vmatpush3.bf16.msra.mxu1 %v8744_v18  ;;  %8137 = vmatprep.subr.bf16.mxu0 %v8783_v46  ;;  %v8748_v48 = vld [vmem:[%s10750_s3 + $0x10] sm:$0xff]   ;;  %v8749_v49 = vld [vmem:[%s10750_s3 + $0x18] sm:$0xff]   ;;  %v8750_v50 = vld [vmem:[%s10750_s3 + $0x20] sm:$0xff]   ;;  %vm6721_vm1 = vcmask 74752  }
 0x243   :  { %6561 = vmatmul.mubr.bf16.vlgmr.msra.gmra.mrb[68].mxu0 %v1621_v19  ;;  %v8751_v53 = vld [vmem:[%s10750_s3 + $0x28] sm:$0xff]   ;;  %v8752_v63 = vld [vmem:[%s10750_s3 + $0x30] sm:$0xff]   ;;  %v8753_v1 = vld [vmem:[%s10750_s3 + $0x38] sm:$0xff]  }
 0x244   :  { %8138 = vmatpush3.bf16.msra.mxu0 %v8746_v45  ;;  %8153 = vmatprep.mubr.msk.bf16.mxu0 %vm8784_vm0, %v8783_v46 }
 0x245   :  { %6601 = vmatmul.mubr.bf16.vlgmr.msra.gmra.mrb[68].mxu1 %v1637_v20  ;;  %8139 = vmatprep.subr.bf16.mxu0 %v8783_v46 }
 0x248   :  { %8140 = vmatpush3.bf16.msra.mxu0 %v8747_v47 }
 0x249   :  { %8141 = vmatprep.subr.bf16.mxu0 %v8783_v46 }
 0x24c   :  { %8142 = vmatpush3.bf16.msra.mxu0 %v8748_v48 }
 0x24d   :  { %8143 = vmatprep.subr.bf16.mxu0 %v8783_v46 }
 0x250   :  { %8144 = vmatpush3.bf16.msra.mxu0 %v8749_v49 }
 0x251   :  { %8145 = vmatprep.subr.bf16.mxu0 %v8783_v46 }
 0x254   :  { %8146 = vmatpush3.bf16.msra.mxu0 %v8750_v50 }
 0x255   :  { %8147 = vmatprep.subr.bf16.mxu0 %v8783_v46 }
 0x256   :  { %v7836_v21 = vpop.f32.mrb[44].mxu0 }
 0x257   :  { %v7837_v22 = vpop.f32.mrb[45].mxu0 }
 0x258   :  { %v7858_v23 = vpop.f32.mrb[44].mxu1  ;;  %v7838_v24 = vadd.f32 %v7837_v22, %v7836_v21  ;;  %v7839_v25 = vpop.f32.mrb[46].mxu0  ;;  %8148 = vmatpush3.bf16.msra.mxu0 %v8751_v53 }
 0x259   :  { %v7859_v26 = vpop.f32.mrb[45].mxu1  ;;  %v7840_v27 = vpop.f32.mrb[47].mxu0  ;;  %8149 = vmatprep.subr.bf16.mxu0 %v8783_v46 }
 0x25a   :  { %v6083_v28 = vadd.f32 %v7838_v24, %v6043_v17  ;;  %v7860_v29 = vadd.f32 %v7859_v26, %v7858_v23  ;;  %v7861_v30 = vpop.f32.mrb[46].mxu1 }
 0x25b   :  { %v7862_v31 = vpop.f32.mrb[47].mxu1 }
 0x25c   :  { %v6123_v41 = vadd.f32 %v7860_v29, %v6083_v28  ;;  %8150 = vmatpush3.bf16.msra.mxu0 %v8752_v63 }
 0x25d   :  { %8151 = vmatprep.subr.bf16.mxu0 %v8783_v46 }
 0x260   :  { %8152 = vmatpush3.bf16.msra.mxu0 %v8753_v1 }
 0x276   :  { %v7880_v32 = vpop.f32.mrb[48].mxu0 }
 0x277   :  { %v7881_v33 = vpop.f32.mrb[49].mxu0 }
 0x278   :  { %v7902_v34 = vpop.f32.mrb[48].mxu1  ;;  %v7882_v35 = vadd.f32 %v7881_v33, %v7880_v32  ;;  %v7883_v36 = vpop.f32.mrb[50].mxu0 }
 0x279   :  { %v7903_v37 = vpop.f32.mrb[49].mxu1  ;;  %v7884_v38 = vpop.f32.mrb[51].mxu0 }
 0x27a   :  { %v6163_v39 = vadd.f32 %v7882_v35, %v6123_v41  ;;  %v7904_v40 = vadd.f32 %v7903_v37, %v7902_v34  ;;  %v7905_v42 = vpop.f32.mrb[50].mxu1 }
 0x27b   :  { %v7906_v43 = vpop.f32.mrb[51].mxu1 }
 0x27c   :  { %v6203_v44 = vadd.f32 %v7904_v40, %v6163_v39 }
 0x296   :  { %v7924_v51 = vpop.f32.mrb[52].mxu0 }
 0x297   :  { %v7925_v52 = vpop.f32.mrb[53].mxu0 }
 0x298   :  { %v7946_v54 = vpop.f32.mrb[52].mxu1  ;;  %v7926_v55 = vadd.f32 %v7925_v52, %v7924_v51  ;;  %v7927_v56 = vpop.f32.mrb[54].mxu0  ;;  %v7327_v52 = vld [vmem:[%s10751_s4] ss:$0 sm:$0xff]  ;;  %s8785_s4 = smov [#allocation2]  }
 0x299   :  { %v7947_v57 = vpop.f32.mrb[53].mxu1  ;;  %v7928_v58 = vpop.f32.mrb[55].mxu0  ;;  %s6742_s27 = sshll.u32 %s8785_s4, 4  ;;  %s6743_s27 = int_to_ptr.vmem [resolvable:$true] %s6742_s27 }
 0x29a   :  { %v6243_v59 = vadd.f32 %v7926_v55, %v6203_v44  ;;  %v7948_v60 = vadd.f32 %v7947_v57, %v7946_v54  ;;  %v7949_v61 = vpop.f32.mrb[54].mxu1  ;;  %s8758_s28 = scalar_lea.vmem %s6743_s27, 32  ;;  %p8763_p1 = scmp.lt.s32.totalorder %s6743_s27, %s6743_s27 }
 0x29b   :  { %v7950_v62 = vpop.f32.mrb[55].mxu1  ;;  %p8759_p0 = scmp.ne.s32.totalorder %s6743_s27, %s8758_s28  ;;  %p8764_p2 = scmp.lt.s32.totalorder %s8758_s28, %s8758_s28 }
 0x29c   :  { %v6283_v0 = vadd.f32 %v7948_v60, %v6243_v59 }
 0x29d   :  { %p8765_p3 = por %p8764_p2, %p8763_p1 }
 0x29f   :  { %p8766_p4 = pnand %p8765_p3, %p8759_p0 }
 0x2b6   :  { %v7968_v2 = vpop.f32.mrb[56].mxu0 }
 0x2b7   :  { %v7969_v3 = vpop.f32.mrb[57].mxu0 }
 0x2b8   :  { %v7990_v4 = vpop.f32.mrb[56].mxu1  ;;  %v7970_v5 = vadd.f32 %v7969_v3, %v7968_v2  ;;  %v7971_v6 = vpop.f32.mrb[58].mxu0 }
 0x2b9   :  { %v7991_v7 = vpop.f32.mrb[57].mxu1  ;;  %v7972_v8 = vpop.f32.mrb[59].mxu0 }
 0x2ba   :  { %v6323_v9 = vadd.f32 %v7970_v5, %v6283_v0  ;;  %v7992_v10 = vadd.f32 %v7991_v7, %v7990_v4  ;;  %v7993_v11 = vpop.f32.mrb[58].mxu1 }
 0x2bb   :  { %v7994_v12 = vpop.f32.mrb[59].mxu1 }
 0x2bc   :  { %v6363_v13 = vadd.f32 %v7992_v10, %v6323_v9 }
 0x2d6   :  { %v8012_v14 = vpop.f32.mrb[60].mxu0 }
 0x2d7   :  { %v8013_v15 = vpop.f32.mrb[61].mxu0 }
 0x2d8   :  { %v8034_v16 = vpop.f32.mrb[60].mxu1  ;;  %v8014_v17 = vadd.f32 %v8013_v15, %v8012_v14  ;;  %v8015_v18 = vpop.f32.mrb[62].mxu0 }
 0x2d9   :  { %v8035_v19 = vpop.f32.mrb[61].mxu1  ;;  %v8016_v20 = vpop.f32.mrb[63].mxu0 }
 0x2da   :  { %v6403_v21 = vadd.f32 %v8014_v17, %v6363_v13  ;;  %v8036_v22 = vadd.f32 %v8035_v19, %v8034_v16  ;;  %v8037_v23 = vpop.f32.mrb[62].mxu1 }
 0x2db   :  { %v8038_v24 = vpop.f32.mrb[63].mxu1 }
 0x2dc   :  { %v6443_v25 = vadd.f32 %v8036_v22, %v6403_v21 }
 0x2f6   :  { %v8056_v26 = vpop.f32.mrb[64].mxu0 }
 0x2f7   :  { %v8057_v27 = vpop.f32.mrb[65].mxu0 }
 0x2f8   :  { %v8078_v28 = vpop.f32.mrb[64].mxu1  ;;  %v8058_v29 = vadd.f32 %v8057_v27, %v8056_v26  ;;  %v8059_v30 = vpop.f32.mrb[66].mxu0 }
 0x2f9   :  { %v8079_v31 = vpop.f32.mrb[65].mxu1  ;;  %v8060_v41 = vpop.f32.mrb[67].mxu0 }
 0x2fa   :  { %v6483_v32 = vadd.f32 %v8058_v29, %v6443_v25  ;;  %v8080_v33 = vadd.f32 %v8079_v31, %v8078_v28  ;;  %v8081_v34 = vpop.f32.mrb[66].mxu1 }
 0x2fb   :  { %v8082_v35 = vpop.f32.mrb[67].mxu1 }
 0x2fc   :  { %v6523_v36 = vadd.f32 %v8080_v33, %v6483_v32 }
 0x316   :  { %v8100_v37 = vpop.f32.mrb[68].mxu0 }
 0x317   :  { %v8101_v38 = vpop.f32.mrb[69].mxu0 }
 0x318   :  { %v8122_v39 = vpop.f32.mrb[68].mxu1  ;;  %v8102_v40 = vadd.f32 %v8101_v38, %v8100_v37  ;;  %v8103_v42 = vpop.f32.mrb[70].mxu0 }
 0x319   :  { %v8123_v43 = vpop.f32.mrb[69].mxu1  ;;  %v8104_v44 = vpop.f32.mrb[71].mxu0 }
 0x31a   :  { %v6563_v45 = vadd.f32 %v8102_v40, %v6523_v36  ;;  %v8124_v46 = vadd.f32 %v8123_v43, %v8122_v39  ;;  %v8125_v47 = vpop.f32.mrb[70].mxu1 }
 0x31b   :  { %v8126_v48 = vpop.f32.mrb[71].mxu1 }
 0x31c   :  { %v6603_v49 = vadd.f32 %v8124_v46, %v6563_v45 }
 0x31e   :  { %v6608_v50 = vmax.f32 %v6603_v49, 0.0 }
 0x320   :  { %v6609_v51 = vpack.c.bf16 %v6608_v50, %v6608_v50 }
 0x322   :  { %8154 = vmatmul.mubr.bf16.vlgmr.msra.gmra.mrb[72].mxu0 %v6609_v51 }
 0x3f5   :  { %v6715_v53 = vpop.f32.mrb[72].mxu0 }
 0x3f6   :  { %v6716_v54 = vadd.f32 %v7327_v52, %v6715_v53  ;;  %v8155_v55 = vpop.f32.mrb[73].mxu0 }
 0x3f7   :  { %v6718_v56 = vpop.f32.mrb[74].mxu0 }
 0x3f8   :  { %v8156_v57 = vpop.f32.mrb[75].mxu0  ;;  %v6722_v58 = vsel %vm6721_vm1, %v6716_v54, -inf }
 0x3f9   :  { %6723 = vmax.xlane.f32.xlu0 %v6722_v58 }
 0x486   :  { %v6724_v59 = vpop.xlane.xlu0 %6723 }
 0x487   :  { %v6725_v60 = vsub.f32 %v6716_v54, %v6724_v59 }
 0x489   :  { %v6726_v61 = vmul.f32 1.442695, %v6725_v60 }
 0x48b   :  { %8754 = vpow2.f32 %v6726_v61 }
 0x495   :  { %v8755_v62 = vpop.eup %8754 }
 0x496   :  { %v6728_v63 = vsel %vm6721_vm1, %v8755_v62, 0.0 }
 0x497   :  { %6729 = vadd.xlane.f32.xlu0 %v6728_v63 }
 0x524   :  { %v6730_v0 = vpop.xlane.xlu0 %6729 }
 0x525   :  { %8756 = vlog2.f32 %v6730_v0 }
 0x52f   :  { %v8757_v1 = vpop.eup %8756 }
 0x530   :  { %v6732_v2 = vmul.f32 0.6931472, %v8757_v1 }
 0x532   :  { %v6733_v3 = vadd.f32 %v6732_v2, %v6724_v59 }
 0x534   :  { %v6734_v4 = vsub.f32 %v6716_v54, %v6733_v3 }
 0x536   :  { %6735 = vst.msk [vmem:[#allocation2] sm:$0x3] %vm6721_vm1, %v6734_v4 }
 0x537   :  { %8769 = shalt.err (!%p8766_p4)
}
 0x538   :  { %s8770_s2 = scalar_lea.hbm %s10752_s5, 32 }
 0x539   :  { %p8771_p5 = scmp.ne.s32.totalorder %s10752_s5, %s8770_s2  ;;  %p8774_p6 = scmp.lt.u32.totalorder %s8770_s2, %s10752_s5 }
 0x53b   :  { %p8776_p7 = pnand %p8774_p6, %p8771_p5 }
 0x53d   :  { %8779 = shalt.err (!%p8776_p7)
}
 0x53e   :  { %6745 = dma.vmem_to_hbm [thread:$0]  %s6743_s27, 32, %s10752_s5, [#allocation3]  }
 0x53f   :  { %8780 = dma.done.wait [#allocation3], 32  }
 0x540   :  { %8781 = vsyncadd [#allocation3], 4294967264 }
 0x541   :  { %6749 = vsyncpa [#allocation3], 1 }

// kernel: net_forward.2
= control target key start
LH: loop header
LB: loop body
LE: loop exit
PB: predicated region body
PF: predicated region fallthrough
CT: control target
= control target key end

     0   :  { %10 = vsyncpa [#allocation6], 0  ;;  %s11073_s0 = inlined_call_operand.vmem [shape: bf16[1360,9], index: 0, kind: input, shape index: {}]   ;;  %s11074_s1 = inlined_call_operand.hbm [shape: bf16[9,32], index: 1, kind: input, shape index: {}]   ;;  %s11075_s2 = inlined_call_operand.hbm [shape: f32[1,32], index: 2, kind: input, shape index: {}]   ;;  %s11076_s3 = inlined_call_operand.vmem [shape: bf16[288,64], index: 3, kind: input, shape index: {}]   ;;  %s11077_s4 = inlined_call_operand.hbm [shape: f32[1,64], index: 4, kind: input, shape index: {}]   ;;  %s11078_s5 = inlined_call_operand.vmem [shape: bf16[144,128], index: 5, kind: output, shape index: {}]  }
   0x1   :  { %11 = vsyncpa [#allocation8], 0  ;;  %s7557_s18 = smov 0  }
   0x2 LB: > { %s7515_s19 = smov [#allocation7]   ;;  %s7563_s21 = sadd.s32 4294967295, %s7513_s18   ;;  %s7513_s18 = sphi %s7557_s18, %s17_s18  }
   0x3   : > { %s184_s20 = sshll.u32 %s7515_s19, 4  ;;  %p6072_p0 = scmp.ge.s32.totalorder %s7513_s18, 1  ;;  %s185_s20 = int_to_ptr.vmem [resolvable:$true] %s184_s20 }
   0x4   : > { %p158_p1 = scmp.lt.s32.totalorder %s7513_s18, 3  ;;  %p11079_p2 = scmp.eq.s32.totalorder %s7563_s21, 0 }
   0x5   : > { %s7516_s23 = smov [#allocation5]   ;;  %s7517_s26 = smov [#allocation9]  }
   0x6   : > { %p7568_p3 = pnand %p6072_p0, %p158_p1  ;;  %s170_s24 = sshll.u32 %s7516_s23, 4  ;;  %s7580_s24 = int_to_ptr.vmem [resolvable:$true] %s170_s24 }
   0x7   : > { %s198_s27 = sshll.u32 %s7517_s26, 4  ;;  %s7415_s30 = scalar_lea.hbm %s11075_s2, 16  ;;  %s7582_s27 = int_to_ptr.vmem [resolvable:$true] %s198_s27 }
   0x8   : > { %s11211_s22 = scalar_select %p7568_p3, 1, 0 }
   0x9   : > { %p7187_p4 = pneg %p7568_p3  ;;  %p7416_p6 = scmp.ne.s32.totalorder %s11075_s2, %s7415_s30 }
   0xa   : > { %p7422_p10 = scmp.lt.u32.totalorder %s7415_s30, %s11075_s2 }
   0xb   : > { %p7576_p5 = pnand %p11079_p2, %p7187_p4 }
   0xd   : > { %p7592_p7 = pneg %p7576_p5 }
   0xf   : > { %p7418_p8 = pnand %p7592_p7, %p7416_p6 }
  0x11   : > { %p7419_p9 = pneg %p7418_p8 }
  0x13   : > { %p7424_p11 = pnand %p7422_p10, %p7419_p9 }
  0x15   : > { %7427 = shalt.err (!%p7424_p11)
}
  0x16   : > { %s7428_s11 = scalar_lea.vmem %s185_s20, 16  ;;  %s7435_s12 = scalar_lea.vmem %s185_s20, 32 }
  0x17   : > { %p7429_p12 = scmp.ne.s32.totalorder %s185_s20, %s7428_s11  ;;  %p7436_p1 = scmp.lt.s32.totalorder %s185_s20, %s185_s20 }
  0x18   : > { %p7437_p4 = scmp.lt.s32.totalorder %s7435_s12, %s7428_s11 }
  0x19   : > { %p7431_p13 = pnand %p7429_p12, %p7592_p7 }
  0x1a   : > { %p7438_p2 = por %p7437_p4, %p7436_p1 }
  0x1b   : > { %p7432_p0 = pneg %p7431_p13 }
  0x1d   : > { %p7439_p3 = pnand %p7438_p2, %p7432_p0 }
  0x1f   : > { %7442 = shalt.err (!%p7439_p3)
}
  0x20   : > { %7193 = dma.hbm_to_vmem [thread:$0]  (!%p7576_p5), %s11075_s2, 16, %s185_s20, [#allocation8]  }
  0x21   : > { %s7443_s17 = scalar_lea.hbm %s11074_s1, 128 }
  0x22   : > { %p7444_p6 = scmp.ne.s32.totalorder %s11074_s1, %s7443_s17  ;;  %p7450_p2 = scmp.lt.u32.totalorder %s7443_s17, %s11074_s1 }
  0x24   : > { %p7446_p8 = pnand %p7444_p6, %p7592_p7 }
  0x26   : > { %p7447_p9 = pneg %p7446_p8 }
  0x28   : > { %p7452_p3 = pnand %p7450_p2, %p7447_p9 }
  0x2a   : > { %7455 = shalt.err (!%p7452_p3)
}
  0x2b   : > { %s7456_s20 = scalar_lea.vmem %s7580_s24, 128  ;;  %p7464_p13 = scmp.lt.s32.totalorder %s7580_s24, %s7580_s24 }
  0x2c   : > { %p7457_p10 = scmp.ne.s32.totalorder %s7580_s24, %s7456_s20  ;;  %p7465_p0 = scmp.lt.s32.totalorder %s7456_s20, %s7456_s20 }
  0x2e   : > { %p7459_p11 = pnand %p7457_p10, %p7592_p7  ;;  %p7466_p1 = por %p7465_p0, %p7464_p13 }
  0x30   : > { %p7460_p12 = pneg %p7459_p11 }
  0x32   : > { %p7467_p4 = pnand %p7466_p1, %p7460_p12 }
  0x34   : > { %7470 = shalt.err (!%p7467_p4)
}
  0x35   : > { %s7518_s29 = smov 64   ;;  %s7519_s30 = smov 4  }
  0x36   : > { %7190 = dma.hbm_to_vmem [thread:$0]  (!%p7576_p5), %s11074_s1, 128, %s7580_s24, [#allocation6], %s7518_s29, %s7518_s29, %s7519_s30  }
  0x37   : > { %s7471_s11 = scalar_lea.hbm %s11077_s4, 16 }
  0x38   : > { %p7472_p6 = scmp.ne.s32.totalorder %s11077_s4, %s7471_s11  ;;  %p7478_p2 = scmp.lt.u32.totalorder %s7471_s11, %s11077_s4 }
  0x3a   : > { %p7474_p8 = pnand %p7472_p6, %p7592_p7 }
  0x3c   : > { %p7475_p9 = pneg %p7474_p8 }
  0x3e   : > { %p7480_p3 = pnand %p7478_p2, %p7475_p9 }
  0x40   : > { %7483 = shalt.err (!%p7480_p3)
}
  0x41   : > { %s7484_s24 = scalar_lea.vmem %s7582_s27, 16  ;;  %s7491_s16 = scalar_lea.vmem %s7582_s27, 32 }
  0x42   : > { %p7485_p10 = scmp.ne.s32.totalorder %s7582_s27, %s7484_s24  ;;  %p7492_p13 = scmp.lt.s32.totalorder %s7582_s27, %s7582_s27 }
  0x43   : > { %p7493_p0 = scmp.lt.s32.totalorder %s7491_s16, %s7484_s24 }
  0x44   : > { %p7487_p11 = pnand %p7485_p10, %p7592_p7 }
  0x45   : > { %p7494_p1 = por %p7493_p0, %p7492_p13 }
  0x46   : > { %p7488_p12 = pneg %p7487_p11 }
  0x48   : > { %p7495_p4 = pnand %p7494_p1, %p7488_p12 }
  0x4a   : > { %7498 = shalt.err (!%p7495_p4)
}
  0x4b   : > { %7196 = dma.hbm_to_vmem [thread:$0]  (!%p7576_p5), %s11077_s4, 16, %s7582_s27, [#allocation8]  }
  0x4c   : > { %p11214_p6 = scmp.ne.s32.totalorder %s11211_s22, 0 }
  0x4e   : > { %220 = sbr.rel (%p11214_p6) target bundleno = 1532 (0x5fc), region = 40 }
  0x55   : > { %p11215_p7 = scmp.eq.s32.totalorder %s7563_s21, 0 }
  0x57   : > { %7504 = dma.done.wait (%p11215_p7), [#allocation6], 128   ;;  %p11216_p8 = pmov %p11215_p7 }
  0x58   : > { %p11217_p9 = pmov %p11215_p7 }
  0x59   : > { %7506 = vsyncadd (%p11216_p8), [#allocation6], 4294967168 }
  0x5a   : > { %7508 = dma.done.wait (%p11217_p9), [#allocation8], 32   ;;  %p11218_p2 = pmov %p11215_p7 }
  0x5b   : > { %vm711_vm0 = vcmask 1043456   ;;  %v11082_v0 = vmov 0.0   ;;  %s256_s25 = smul.u32 85, %s7563_s21  ;;  %vm7521_vm1 = vmmov 0   ;;  %vm712_vm2 = vcmask 1044480   ;;  %s7525_s26 = smov 32  }
  0x5c   : > { %7510 = vsyncadd (%p11218_p2), [#allocation8], 4294967264  ;;  %6617 = vmatprep.subr.bf16.mxu0 %v11082_v0  ;;  %6619 = vmatprep.mubr.msk.bf16.mxu0 %vm7521_vm1, %v11082_v0  ;;  %v7522_v1 = vmov 65535   ;;  %v7243_v4 = vld [vmem:[#allocation5] sm:$0x1f]   ;;  %vm581_vm3 = vcmask 72704  }
  0x5d   : > { %v713_v2 = vsel %vm711_vm0, 4294967295, %v7522_v1  ;;  %p257_p5 = scmp.lt.s32.totalorder %s256_s25, 169  ;;  %v7782_v33 = vld [vmem:[#allocation7] ss:$0 sm:$0xff]  ;;  %vm1520_vm4 = vcmask 257024   ;;  %vm2296_vm6 = vcmask 1046528  }
  0x5e   : > { %v714_v3 = vsel %vm712_vm2, %v713_v2, 0  ;;  %vm2664_vm5 = vsmask.f32 6400  ;;  %vm1898_vm7 = vsmask.f32 7424  ;;  %vm3027_vm9 = vcmask 1045504  }
  0x5f   : > { %s11476_s25 = smov (!%p257_p5, %s256_s25), 169  ;;  %v716_v5 = vand.u32 %v7243_v4, %v714_v3  ;;  %vm3360_vm8 = vsmask.f32 5376  ;;  %s7526_s11 = smov 96   ;;  %vm3706_vm10 = vcmask 261120   ;;  %vm3785_vm11 = vcmask 523264  }
  0x60   : > { %s6081_s22 = sshll.u32 %s11476_s25, 2  ;;  %vm3864_vm12 = vcmask 785408   ;;  %vm5640_vm13 = vcmask 1042432   ;;  %vm5761_vm14 = vcmask 1041408   ;;  %s262_s17 = smul.u32 9, %s7563_s21 }
  0x61   : > { %s7674_s23 = scalar_lea.vmem %s11073_s0, %s6081_s22  ;;  %6618 = vmatpush3.bf16.msra.mxu0 %v716_v5 }
  0x62   : > { %v7244_v6 = vld [vmem:[%s7674_s23] sm:$0xff]   ;;  %v7245_v7 = vld [vmem:[%s7674_s23 + $0x8] sm:$0xff]   ;;  %v7246_v8 = vld [vmem:[%s7674_s23 + $0x10] sm:$0xff]   ;;  %p10963_p3 = scmp.lt.s32.totalorder %s262_s17, 17 }
  0x63   : > { %v7247_v9 = vld [vmem:[%s7674_s23 + $0x18] sm:$0xff]   ;;  %v7248_v10 = vld [vmem:[%s7674_s23 + $0x20] sm:$0xff]   ;;  %v7249_v11 = vld [vmem:[%s7674_s23 + $0x28] sm:$0xff]  }
  0x64   : > { %6620 = vmatmul.mubr.msk.bf16.vlgmr.msra.gmra.mrb[0].mxu0 %vm581_vm3, %v7244_v6  ;;  %v7250_v12 = vld [vmem:[%s7674_s23 + $0x30] sm:$0xff]   ;;  %v7251_v13 = vld [vmem:[%s7674_s23 + $0x38] sm:$0xff]   ;;  %v7252_v14 = vld [vmem:[%s7674_s23 + $0x40] sm:$0xff]   ;;  %s11478_s17 = smov (!%p10963_p3, %s262_s17), 17 }
  0x65   : > { %6623 = vmatprep.mubr.msk.bf16.mxu0 %vm7521_vm1, %v11082_v0  ;;  %v7253_v15 = vld [vmem:[%s7674_s23 + $0x48] sm:$0xff]   ;;  %v7254_v16 = vld [vmem:[%s7674_s23 + $0x50] sm:$0xff]   ;;  %v7255_v17 = vld [vmem:[%s7674_s23 + $0x58] sm:$0xff]   ;;  %s6082_s21 = sshll.u32 %s11478_s17, 2 }
  0x66   : > { %v7256_v18 = vld [vmem:[%s7674_s23 + $0x60] sm:$0xff]   ;;  %v7257_v19 = vld [vmem:[%s7674_s23 + $0x68] sm:$0xff]   ;;  %v7258_v20 = vld [vmem:[%s7674_s23 + $0x70] sm:$0xff]   ;;  %s10999_s27 = scalar_lea.vmem %s11078_s5, %s6082_s21 }
  0x67   : > { %v7259_v21 = vld [vmem:[%s7674_s23 + $0x78] sm:$0xff]   ;;  %v7260_v22 = vld [vmem:[%s7674_s23 + $0x80] sm:$0xff]   ;;  %v7261_v23 = vld [vmem:[%s7674_s23 + $0x88] sm:$0xff]  }
  0x68   : > { %v7262_v24 = vld [vmem:[%s7674_s23 + $0x90] sm:$0xff]   ;;  %v7263_v25 = vld [vmem:[%s7674_s23 + $0x98] sm:$0xff]   ;;  %v7264_v26 = vld [vmem:[%s7674_s23 + $0xa0] sm:$0xff]  }
  0x69   : > { %v7265_v27 = vld [vmem:[%s7674_s23 + $0xa8] sm:$0xff]   ;;  %v7266_v28 = vld [vmem:[%s7674_s23 + $0xb0] sm:$0xff]   ;;  %v7267_v29 = vld [vmem:[%s7674_s23 + $0xb8] sm:$0xff]  }
  0x6a   : > { %v7268_v30 = vld [vmem:[%s7674_s23 + $0xc0] sm:$0xff]   ;;  %v7269_v31 = vld [vmem:[%s7674_s23 + $0xc8] sm:$0xff]   ;;  %v7270_v32 = vld [vmem:[%s7674_s23 + $0xd0] sm:$0xff]  }
  0x6b   : > { %v7271_v37 = vld [vmem:[%s7674_s23 + $0xd8] sm:$0xff]   ;;  %v7272_v48 = vld [vmem:[%s7674_s23 + $0xe0] sm:$0xff]   ;;  %v7273_v59 = vld [vmem:[%s7674_s23 + $0xe8] sm:$0xff]  }
  0x6c   : > { %6624 = vmatmul.mubr.msk.bf16.gmra.mrb[4].mxu0 %vm581_vm3, %v7245_v7  ;;  %v7274_v7 = vld [vmem:[%s7674_s23 + $0xf0] sm:$0xff]  }
  0x6d   : > { %6627 = vmatprep.mubr.msk.bf16.mxu0 %vm7521_vm1, %v11082_v0 }
  0x74   : > { %6628 = vmatmul.mubr.msk.bf16.gmra.mrb[8].mxu0 %vm581_vm3, %v7246_v8 }
  0x75   : > { %6631 = vmatprep.mubr.msk.bf16.mxu0 %vm7521_vm1, %v11082_v0 }
  0x7c   : > { %6632 = vmatmul.mubr.msk.bf16.gmra.mrb[12].mxu0 %vm581_vm3, %v7247_v9 }
  0x7d   : > { %6635 = vmatprep.mubr.msk.bf16.mxu0 %vm7521_vm1, %v11082_v0 }
  0x84   : > { %6636 = vmatmul.mubr.msk.bf16.gmra.mrb[16].mxu0 %vm581_vm3, %v7248_v10 }
  0x85   : > { %6639 = vmatprep.mubr.msk.bf16.mxu0 %vm7521_vm1, %v11082_v0 }
  0x8c   : > { %6640 = vmatmul.mubr.msk.bf16.gmra.mrb[20].mxu0 %vm581_vm3, %v7249_v11 }
  0x8d   : > { %6643 = vmatprep.mubr.msk.bf16.mxu0 %vm7521_vm1, %v11082_v0 }
  0x94   : > { %6644 = vmatmul.mubr.msk.bf16.gmra.mrb[24].mxu0 %vm581_vm3, %v7250_v12 }
  0x95   : > { %6647 = vmatprep.mubr.msk.bf16.mxu0 %vm7521_vm1, %v11082_v0 }
  0x9c   : > { %6648 = vmatmul.mubr.msk.bf16.gmra.mrb[28].mxu0 %vm581_vm3, %v7251_v13 }
  0x9d   : > { %6651 = vmatprep.mubr.msk.bf16.mxu0 %vm7521_vm1, %v11082_v0 }
  0xa4   : > { %6652 = vmatmul.mubr.msk.bf16.gmra.mrb[32].mxu0 %vm581_vm3, %v7252_v14 }
  0xa5   : > { %6655 = vmatprep.mubr.msk.bf16.mxu0 %vm7521_vm1, %v11082_v0 }
  0xac   : > { %6656 = vmatmul.mubr.msk.bf16.gmra.mrb[36].mxu0 %vm581_vm3, %v7253_v15 }
  0xad   : > { %6659 = vmatprep.mubr.msk.bf16.mxu0 %vm7521_vm1, %v11082_v0 }
  0xb4   : > { %6660 = vmatmul.mubr.msk.bf16.gmra.mrb[40].mxu0 %vm581_vm3, %v7254_v16 }
  0xb5   : > { %6663 = vmatprep.mubr.msk.bf16.mxu0 %vm7521_vm1, %v11082_v0 }
  0xbc   : > { %6664 = vmatmul.mubr.msk.bf16.gmra.mrb[44].mxu0 %vm581_vm3, %v7255_v17 }
  0xbd   : > { %6667 = vmatprep.mubr.msk.bf16.mxu0 %vm7521_vm1, %v11082_v0 }
  0xc4   : > { %6668 = vmatmul.mubr.msk.bf16.gmra.mrb[48].mxu0 %vm581_vm3, %v7256_v18  ;;  %v7275_v18 = vld [vmem:[%s7674_s23 + $0xf8] sm:$0xff]  }
  0xc5   : > { %6671 = vmatprep.mubr.msk.bf16.mxu0 %vm7521_vm1, %v11082_v0 }
  0xcc   : > { %6672 = vmatmul.mubr.msk.bf16.gmra.mrb[52].mxu0 %vm581_vm3, %v7257_v19 }
  0xcd   : > { %6675 = vmatprep.mubr.msk.bf16.mxu0 %vm7521_vm1, %v11082_v0 }
  0xd4   : > { %6676 = vmatmul.mubr.msk.bf16.gmra.mrb[56].mxu0 %vm581_vm3, %v7258_v20 }
  0xd5   : > { %6679 = vmatprep.mubr.msk.bf16.mxu0 %vm7521_vm1, %v11082_v0 }
  0xdc   : > { %6680 = vmatmul.mubr.msk.bf16.gmra.mrb[60].mxu0 %vm581_vm3, %v7259_v21 }
  0xdd   : > { %6683 = vmatprep.mubr.msk.bf16.mxu0 %vm7521_vm1, %v11082_v0 }
  0xe4   : > { %6684 = vmatmul.mubr.msk.bf16.gmra.mrb[64].mxu0 %vm581_vm3, %v7260_v22 }
  0xe5   : > { %6687 = vmatprep.mubr.msk.bf16.mxu0 %vm7521_vm1, %v11082_v0 }
  0xec   : > { %6688 = vmatmul.mubr.msk.bf16.gmra.mrb[68].mxu0 %vm581_vm3, %v7261_v23 }
  0xed   : > { %6691 = vmatprep.mubr.msk.bf16.mxu0 %vm7521_vm1, %v11082_v0 }
  0xf4   : > { %6692 = vmatmul.mubr.msk.bf16.gmra.mrb[72].mxu0 %vm581_vm3, %v7262_v24 }
  0xf5   : > { %6695 = vmatprep.mubr.msk.bf16.mxu0 %vm7521_vm1, %v11082_v0 }
  0xfc   : > { %6696 = vmatmul.mubr.msk.bf16.gmra.mrb[76].mxu0 %vm581_vm3, %v7263_v25 }
  0xfd   : > { %6699 = vmatprep.mubr.msk.bf16.mxu0 %vm7521_vm1, %v11082_v0 }
 0x104   : > { %6700 = vmatmul.mubr.msk.bf16.gmra.mrb[80].mxu0 %vm581_vm3, %v7264_v26 }
 0x105   : > { %6703 = vmatprep.mubr.msk.bf16.mxu0 %vm7521_vm1, %v11082_v0 }
 0x10c   : > { %6704 = vmatmul.mubr.msk.bf16.gmra.mrb[84].mxu0 %vm581_vm3, %v7265_v27 }
 0x10d   : > { %6707 = vmatprep.mubr.msk.bf16.mxu0 %vm7521_vm1, %v11082_v0 }
 0x114   : > { %6708 = vmatmul.mubr.msk.bf16.gmra.mrb[88].mxu0 %vm581_vm3, %v7266_v28 }
 0x115   : > { %6711 = vmatprep.mubr.msk.bf16.mxu0 %vm7521_vm1, %v11082_v0 }
 0x11c   : > { %6712 = vmatmul.mubr.msk.bf16.gmra.mrb[92].mxu0 %vm581_vm3, %v7267_v29 }
 0x11d   : > { %6715 = vmatprep.mubr.msk.bf16.mxu0 %vm7521_vm1, %v11082_v0 }
 0x124   : > { %6716 = vmatmul.mubr.msk.bf16.gmra.mrb[96].mxu0 %vm581_vm3, %v7268_v30 }
 0x125   : > { %6719 = vmatprep.mubr.msk.bf16.mxu0 %vm7521_vm1, %v11082_v0 }
 0x12c   : > { %6720 = vmatmul.mubr.msk.bf16.gmra.mrb[100].mxu0 %vm581_vm3, %v7269_v31 }
 0x12d   : > { %6723 = vmatprep.mubr.msk.bf16.mxu0 %vm7521_vm1, %v11082_v0 }
 0x134   : > { %6724 = vmatmul.mubr.msk.bf16.gmra.mrb[104].mxu0 %vm581_vm3, %v7270_v32 }
 0x135   : > { %6727 = vmatprep.mubr.msk.bf16.mxu0 %vm7521_vm1, %v11082_v0 }
 0x137   : > { %v752_v34 = vpop.f32.mrb[0].mxu0 }
 0x138   : > { %v753_v35 = vadd.f32 %v7782_v33, %v752_v34  ;;  %v6621_v36 = vpop.f32.mrb[1].mxu0 }
 0x139   : > { %v755_v38 = vpop.f32.mrb[2].mxu0  ;;  %v7276_v36 = vld [vmem:[%s7674_s23 + $0x100] sm:$0xff]  }
 0x13a   : > { %v1094_v39 = vmax.f32 %v753_v35, 0.0  ;;  %v756_v40 = vadd.f32 %v7782_v33, %v755_v38  ;;  %v6622_v41 = vpop.f32.mrb[3].mxu0 }
 0x13c   : > { %v6415_v42 = vpack.c.bf16 %v1094_v39, %v1094_v39  ;;  %v1095_v43 = vmax.f32 %v756_v40, 0.0  ;;  %6728 = vmatmul.mubr.msk.bf16.gmra.mrb[108].mxu0 %vm581_vm3, %v7271_v37 }
 0x13d   : > { %6731 = vmatprep.mubr.msk.bf16.mxu0 %vm7521_vm1, %v11082_v0 }
 0x13e   : > { %1521 = vst.msk [vmem:[#allocation2] sm:$0xf] %vm1520_vm4, %v6415_v42  ;;  %v6416_v44 = vpack.c.bf16 %v1095_v43, %v1095_v43 }
 0x13f   : > { %v760_v45 = vpop.f32.mrb[4].mxu0 }
 0x140   : > { %1522 = vst.msk [vmem:[#allocation2 + $0x4] sm:$0xf] %vm1520_vm4, %v6416_v44  ;;  %v761_v46 = vadd.f32 %v7782_v33, %v760_v45  ;;  %v6625_v47 = vpop.f32.mrb[5].mxu0 }
 0x141   : > { %v763_v49 = vpop.f32.mrb[6].mxu0 }
 0x142   : > { %v1096_v50 = vmax.f32 %v761_v46, 0.0  ;;  %v764_v51 = vadd.f32 %v7782_v33, %v763_v49  ;;  %v6626_v52 = vpop.f32.mrb[7].mxu0 }
 0x144   : > { %v6417_v53 = vpack.c.bf16 %v1096_v50, %v1096_v50  ;;  %v1097_v54 = vmax.f32 %v764_v51, 0.0  ;;  %6732 = vmatmul.mubr.msk.bf16.gmra.mrb[112].mxu0 %vm581_vm3, %v7272_v48 }
 0x145   : > { %6735 = vmatprep.mubr.msk.bf16.mxu0 %vm7521_vm1, %v11082_v0 }
 0x146   : > { %1523 = vst.msk [vmem:[#allocation2 + $0x8] sm:$0xf] %vm1520_vm4, %v6417_v53  ;;  %v6418_v55 = vpack.c.bf16 %v1097_v54, %v1097_v54 }
 0x147   : > { %v768_v56 = vpop.f32.mrb[8].mxu0 }
 0x148   : > { %1524 = vst.msk [vmem:[#allocation2 + $0xc] sm:$0xf] %vm1520_vm4, %v6418_v55  ;;  %v769_v57 = vadd.f32 %v7782_v33, %v768_v56  ;;  %v6629_v58 = vpop.f32.mrb[9].mxu0 }
 0x149   : > { %v771_v60 = vpop.f32.mrb[10].mxu0  ;;  %v7277_v58 = vld [vmem:[%s7674_s23 + $0x108] sm:$0xff]  }
 0x14a   : > { %v1098_v61 = vmax.f32 %v769_v57, 0.0  ;;  %v772_v62 = vadd.f32 %v7782_v33, %v771_v60  ;;  %v6630_v63 = vpop.f32.mrb[11].mxu0 }
 0x14c   : > { %v6419_v1 = vpack.c.bf16 %v1098_v61, %v1098_v61  ;;  %v1099_v2 = vmax.f32 %v772_v62, 0.0  ;;  %6736 = vmatmul.mubr.msk.bf16.gmra.mrb[116].mxu0 %vm581_vm3, %v7273_v59 }
 0x14d   : > { %6739 = vmatprep.mubr.msk.bf16.mxu0 %vm7521_vm1, %v11082_v0 }
 0x14e   : > { %1525 = vst.msk [vmem:[#allocation2 + $0x10] sm:$0xf] %vm1520_vm4, %v6419_v1  ;;  %v6420_v3 = vpack.c.bf16 %v1099_v2, %v1099_v2 }
 0x14f   : > { %v776_v4 = vpop.f32.mrb[12].mxu0  ;;  %v1686_v26 = vld [vmem:[#allocation2 + $0xc] sm:$0xe] }
 0x150   : > { %1526 = vst.msk [vmem:[#allocation2 + $0x14] sm:$0xf] %vm1520_vm4, %v6420_v3  ;;  %v777_v5 = vadd.f32 %v7782_v33, %v776_v4  ;;  %v6633_v6 = vpop.f32.mrb[13].mxu0 }
 0x151   : > { %v779_v8 = vpop.f32.mrb[14].mxu0 }
 0x152   : > { %v1100_v9 = vmax.f32 %v777_v5, 0.0  ;;  %v780_v10 = vadd.f32 %v7782_v33, %v779_v8  ;;  %v6634_v11 = vpop.f32.mrb[15].mxu0 }
 0x154   : > { %v6421_v12 = vpack.c.bf16 %v1100_v9, %v1100_v9  ;;  %v1101_v13 = vmax.f32 %v780_v10, 0.0  ;;  %6740 = vmatmul.mubr.msk.bf16.gmra.mrb[120].mxu0 %vm581_vm3, %v7274_v7 }
 0x155   : > { %6743 = vmatprep.mubr.msk.bf16.mxu0 %vm7521_vm1, %v11082_v0  ;;  %v1610_v23 = vld [vmem:[#allocation2 + $0x10] sm:$0xf] }
 0x156   : > { %1527 = vst.msk [vmem:[#allocation2 + $0x18] sm:$0xf] %vm1520_vm4, %v6421_v12  ;;  %v6422_v14 = vpack.c.bf16 %v1101_v13, %v1101_v13  ;;  %v7824_v29 = vcombine.low %v1686_v26, %v1610_v23 }
 0x157   : > { %v784_v15 = vpop.f32.mrb[16].mxu0  ;;  %v1611_v27 = vld [vmem:[#allocation2 + $0x14] sm:$0xf] }
 0x158   : > { %1528 = vst.msk [vmem:[#allocation2 + $0x1c] sm:$0xf] %vm1520_vm4, %v6422_v14  ;;  %v785_v16 = vadd.f32 %v7782_v33, %v784_v15  ;;  %v6637_v17 = vpop.f32.mrb[17].mxu0  ;;  %11219 = vst [vmem:[#allocation12_spill] sm:$0xff] %v7824_v29  ;;  %v2666_v38 = vshrl.u32 %v7824_v29, 16  ;;  %v2669_v43 = vshll.u32 %v7824_v29, 16 }
 0x159   : > { %v787_v19 = vpop.f32.mrb[18].mxu0  ;;  %v7278_v14 = vld [vmem:[%s7674_s23 + $0x110] sm:$0xff]  }
 0x15a   : > { %v1102_v20 = vmax.f32 %v785_v16, 0.0  ;;  %v788_v21 = vadd.f32 %v7782_v33, %v787_v19  ;;  %v6638_v22 = vpop.f32.mrb[19].mxu0  ;;  %v2668_v49 = vrot.slane %v2666_v38, 1  ;;  %v2671_v53 = vrot.slane %v2669_v43, 2 }
 0x15c   : > { %v6423_v24 = vpack.c.bf16 %v1102_v20, %v1102_v20  ;;  %v1103_v25 = vmax.f32 %v788_v21, 0.0  ;;  %6744 = vmatmul.mubr.msk.bf16.gmra.mrb[124].mxu0 %vm581_vm3, %v7275_v18  ;;  %v2672_v1 = vor.u32 %v2671_v53, %v2668_v49 }
 0x15d   : > { %6747 = vmatprep.mubr.msk.bf16.mxu0 %vm7521_vm1, %v11082_v0  ;;  %v1612_v28 = vld [vmem:[#allocation2 + $0x18] sm:$0xf] }
 0x15e   : > { %1529 = vst.msk [vmem:[#allocation2 + $0x20] sm:$0xf] %vm1520_vm4, %v6423_v24  ;;  %v6424_v30 = vpack.c.bf16 %v1103_v25, %v1103_v25  ;;  %v7827_v31 = vcombine.low %v1611_v27, %v1612_v28 }
 0x15f   : > { %v792_v32 = vpop.f32.mrb[20].mxu0  ;;  %v1613_v47 = vld [vmem:[#allocation2 + $0x1c] sm:$0xf] }
 0x160   : > { %11220 = vst [vmem:[#allocation13_spill] sm:$0xff] %v7827_v31  ;;  %1530 = vst.msk [vmem:[#allocation2 + $0x24] sm:$0xf] %vm1520_vm4, %v6424_v30  ;;  %v793_v34 = vadd.f32 %v7782_v33, %v792_v32  ;;  %v6641_v35 = vpop.f32.mrb[21].mxu0  ;;  %v2674_v39 = vshrl.u32 %v7827_v31, 16  ;;  %v2677_v44 = vshll.u32 %v7827_v31, 16 }
 0x161   : > { %v795_v37 = vpop.f32.mrb[22].mxu0 }
 0x162   : > { %v1104_v40 = vmax.f32 %v793_v34, 0.0  ;;  %v796_v41 = vadd.f32 %v7782_v33, %v795_v37  ;;  %v6642_v42 = vpop.f32.mrb[23].mxu0  ;;  %v2676_v50 = vrot.slane %v2674_v39, 1  ;;  %v2679_v54 = vrot.slane %v2677_v44, 2  ;;  %v7279_v34 = vld [vmem:[%s7674_s23 + $0x118] sm:$0xff]  }
 0x164   : > { %v6425_v45 = vpack.c.bf16 %v1104_v40, %v1104_v40  ;;  %v1105_v46 = vmax.f32 %v796_v41, 0.0  ;;  %6748 = vmatmul.mubr.msk.bf16.gmra.mrb[128].mxu0 %vm581_vm3, %v7276_v36  ;;  %v2680_v60 = vor.u32 %v2679_v54, %v2676_v50 }
 0x165   : > { %6751 = vmatprep.mubr.msk.bf16.mxu0 %vm7521_vm1, %v11082_v0  ;;  %v1614_v48 = vld [vmem:[#allocation2 + $0x20] sm:$0xf] }
 0x166   : > { %1531 = vst.msk [vmem:[#allocation2 + $0x28] sm:$0xf] %vm1520_vm4, %v6425_v45  ;;  %v6426_v51 = vpack.c.bf16 %v1105_v46, %v1105_v46  ;;  %v7841_v52 = vcombine.low %v1613_v47, %v1614_v48  ;;  %v7851_v6 = vsel %vm2664_vm5, %v2672_v1, %v2680_v60 }
 0x167   : > { %v800_v55 = vpop.f32.mrb[24].mxu0  ;;  %11222 = vst [vmem:[#allocation15_spill] sm:$0xff] %v7851_v6  ;;  %v1615_v16 = vld [vmem:[#allocation2 + $0x24] sm:$0xf] }
 0x168   : > { %11221 = vst [vmem:[#allocation14_spill] sm:$0xff] %v7841_v52  ;;  %1532 = vst.msk [vmem:[#allocation2 + $0x2c] sm:$0xf] %vm1520_vm4, %v6426_v51  ;;  %v801_v56 = vadd.f32 %v7782_v33, %v800_v55  ;;  %v6645_v57 = vpop.f32.mrb[25].mxu0  ;;  %v2683_v2 = vshrl.u32 %v7841_v52, 16  ;;  %v2686_v3 = vshll.u32 %v7841_v52, 16 }
 0x169   : > { %v803_v59 = vpop.f32.mrb[26].mxu0  ;;  %v7280_v51 = vld [vmem:[%s7674_s23 + $0x120] sm:$0xff]  }
 0x16a   : > { %v1106_v61 = vmax.f32 %v801_v56, 0.0  ;;  %v804_v62 = vadd.f32 %v7782_v33, %v803_v59  ;;  %v6646_v63 = vpop.f32.mrb[27].mxu0  ;;  %v2685_v8 = vrot.slane %v2683_v2, 1  ;;  %v2688_v11 = vrot.slane %v2686_v3, 2 }
 0x16c   : > { %v6427_v4 = vpack.c.bf16 %v1106_v61, %v1106_v61  ;;  %v1107_v5 = vmax.f32 %v804_v62, 0.0  ;;  %6752 = vmatmul.mubr.msk.bf16.gmra.mrb[132].mxu0 %vm581_vm3, %v7277_v58  ;;  %v2689_v17 = vor.u32 %v2688_v11, %v2685_v8 }
 0x16d   : > { %6755 = vmatprep.mubr.msk.bf16.mxu0 %vm7521_vm1, %v11082_v0  ;;  %v1616_v10 = vld [vmem:[#allocation2 + $0x28] sm:$0xf] }
 0x16e   : > { %1533 = vst.msk [vmem:[#allocation2 + $0x30] sm:$0xf] %vm1520_vm4, %v6427_v4  ;;  %v6428_v7 = vpack.c.bf16 %v1107_v5, %v1107_v5  ;;  %v7860_v21 = vcombine.low %v1615_v16, %v1616_v10  ;;  %v7864_v24 = vsel %vm2664_vm5, %v2680_v60, %v2689_v17 }
 0x16f   : > { %v808_v9 = vpop.f32.mrb[28].mxu0  ;;  %11224 = vst [vmem:[#allocation17_spill] sm:$0xff] %v7864_v24  ;;  %v1617_v44 = vld [vmem:[#allocation2 + $0x2c] sm:$0xf] }
 0x170   : > { %1534 = vst.msk [vmem:[#allocation2 + $0x34] sm:$0xf] %vm1520_vm4, %v6428_v7  ;;  %v809_v12 = vadd.f32 %v7782_v33, %v808_v9  ;;  %v6649_v13 = vpop.f32.mrb[29].mxu0  ;;  %11223 = vst [vmem:[#allocation16_spill] sm:$0xff] %v7860_v21  ;;  %v2692_v26 = vshrl.u32 %v7860_v21, 16  ;;  %v2695_v28 = vshll.u32 %v7860_v21, 16 }
 0x171   : > { %v811_v15 = vpop.f32.mrb[30].mxu0  ;;  %v7281_v9 = vld [vmem:[%s7674_s23 + $0x128] sm:$0xff]  }
 0x172   : > { %v1108_v18 = vmax.f32 %v809_v12, 0.0  ;;  %v812_v19 = vadd.f32 %v7782_v33, %v811_v15  ;;  %v6650_v20 = vpop.f32.mrb[31].mxu0  ;;  %v2694_v40 = vrot.slane %v2692_v26, 1  ;;  %v2697_v41 = vrot.slane %v2695_v28, 2 }
 0x174   : > { %v6429_v22 = vpack.c.bf16 %v1108_v18, %v1108_v18  ;;  %v1109_v23 = vmax.f32 %v812_v19, 0.0  ;;  %6756 = vmatmul.mubr.msk.bf16.gmra.mrb[136].mxu0 %vm581_vm3, %v7278_v14  ;;  %v2698_v47 = vor.u32 %v2697_v41, %v2694_v40 }
 0x175   : > { %6759 = vmatprep.mubr.msk.bf16.mxu0 %vm7521_vm1, %v11082_v0  ;;  %v1618_v39 = vld [vmem:[#allocation2 + $0x30] sm:$0xf] }
 0x176   : > { %1535 = vst.msk [vmem:[#allocation2 + $0x38] sm:$0xf] %vm1520_vm4, %v6429_v22  ;;  %v6430_v25 = vpack.c.bf16 %v1109_v23, %v1109_v23  ;;  %v7878_v45 = vcombine.low %v1617_v44, %v1618_v39  ;;  %v7885_v54 = vsel %vm2664_vm5, %v2689_v17, %v2698_v47 }
 0x177   : > { %v816_v27 = vpop.f32.mrb[32].mxu0  ;;  %11226 = vst [vmem:[#allocation19_spill] sm:$0xff] %v7885_v54  ;;  %v1619_v63 = vld [vmem:[#allocation2 + $0x34] sm:$0xf] }
 0x178   : > { %1536 = vst.msk [vmem:[#allocation2 + $0x3c] sm:$0xf] %vm1520_vm4, %v6430_v25  ;;  %v817_v30 = vadd.f32 %v7782_v33, %v816_v27  ;;  %v6653_v32 = vpop.f32.mrb[33].mxu0  ;;  %11225 = vst [vmem:[#allocation18_spill] sm:$0xff] %v7878_v45  ;;  %v2701_v55 = vshrl.u32 %v7878_v45, 16  ;;  %v2704_v59 = vshll.u32 %v7878_v45, 16 }
 0x179   : > { %v819_v35 = vpop.f32.mrb[34].mxu0 }
 0x17a   : > { %v1110_v36 = vmax.f32 %v817_v30, 0.0  ;;  %v820_v37 = vadd.f32 %v7782_v33, %v819_v35  ;;  %v6654_v38 = vpop.f32.mrb[35].mxu0  ;;  %v2703_v1 = vrot.slane %v2701_v55, 1  ;;  %v2706_v4 = vrot.slane %v2704_v59, 2  ;;  %v7283_v55 = vld [vmem:[%s7674_s23 + $0x138] sm:$0xff]  }
 0x17c   : > { %v6431_v42 = vpack.c.bf16 %v1110_v36, %v1110_v36  ;;  %v1111_v43 = vmax.f32 %v820_v37, 0.0  ;;  %6760 = vmatmul.mubr.msk.bf16.gmra.mrb[140].mxu0 %vm581_vm3, %v7279_v34  ;;  %v2707_v11 = vor.u32 %v2706_v4, %v2703_v1  ;;  %v7282_v34 = vld [vmem:[%s7674_s23 + $0x130] sm:$0xff]  }
 0x17d   : > { %6763 = vmatprep.mubr.msk.bf16.mxu0 %vm7521_vm1, %v11082_v0  ;;  %v1620_v60 = vld [vmem:[#allocation2 + $0x38] sm:$0xf] }
 0x17e   : > { %1537 = vst.msk [vmem:[#allocation2 + $0x40] sm:$0xf] %vm1520_vm4, %v6431_v42  ;;  %v6432_v46 = vpack.c.bf16 %v1111_v43, %v1111_v43  ;;  %v7894_v3 = vcombine.low %v1619_v63, %v1620_v60  ;;  %v7904_v20 = vsel %vm2664_vm5, %v2698_v47, %v2707_v11 }
 0x17f   : > { %v824_v48 = vpop.f32.mrb[36].mxu0  ;;  %11228 = vst [vmem:[#allocation21_spill] sm:$0xff] %v7904_v20  ;;  %v1621_v22 = vld [vmem:[#allocation2 + $0x3c] sm:$0xf] }
 0x180   : > { %1538 = vst.msk [vmem:[#allocation2 + $0x44] sm:$0xf] %vm1520_vm4, %v6432_v46  ;;  %v825_v49 = vadd.f32 %v7782_v33, %v824_v48  ;;  %v6657_v50 = vpop.f32.mrb[37].mxu0  ;;  %11227 = vst [vmem:[#allocation20_spill] sm:$0xff] %v7894_v3  ;;  %v2710_v15 = vshrl.u32 %v7894_v3, 16  ;;  %v2713_v16 = vshll.u32 %v7894_v3, 16 }
 0x181   : > { %v827_v53 = vpop.f32.mrb[38].mxu0 }
 0x182   : > { %v1112_v56 = vmax.f32 %v825_v49, 0.0  ;;  %v828_v57 = vadd.f32 %v7782_v33, %v827_v53  ;;  %v6658_v58 = vpop.f32.mrb[39].mxu0  ;;  %v2712_v26 = vrot.slane %v2710_v15, 1  ;;  %v2715_v27 = vrot.slane %v2713_v16, 2 }
 0x184   : > { %v6433_v61 = vpack.c.bf16 %v1112_v56, %v1112_v56  ;;  %v1113_v62 = vmax.f32 %v828_v57, 0.0  ;;  %6764 = vmatmul.mubr.msk.bf16.gmra.mrb[144].mxu0 %vm581_vm3, %v7280_v51  ;;  %v2716_v39 = vor.u32 %v2715_v27, %v2712_v26 }
 0x185   : > { %6767 = vmatprep.mubr.msk.bf16.mxu0 %vm7521_vm1, %v11082_v0  ;;  %v1622_v17 = vld [vmem:[#allocation2 + $0x40] sm:$0xf] }
 0x186   : > { %1539 = vst.msk [vmem:[#allocation2 + $0x48] sm:$0xf] %vm1520_vm4, %v6433_v61  ;;  %v6434_v2 = vpack.c.bf16 %v1113_v62, %v1113_v62  ;;  %v7909_v25 = vcombine.low %v1621_v22, %v1622_v17  ;;  %v7922_v46 = vsel %vm2664_vm5, %v2707_v11, %v2716_v39 }
 0x187   : > { %v832_v5 = vpop.f32.mrb[40].mxu0  ;;  %11230 = vst [vmem:[#allocation23_spill] sm:$0xff] %v7922_v46  ;;  %v1623_v57 = vld [vmem:[#allocation2 + $0x44] sm:$0xf] }
 0x188   : > { %1540 = vst.msk [vmem:[#allocation2 + $0x4c] sm:$0xf] %vm1520_vm4, %v6434_v2  ;;  %v833_v7 = vadd.f32 %v7782_v33, %v832_v5  ;;  %v6661_v8 = vpop.f32.mrb[41].mxu0  ;;  %11229 = vst [vmem:[#allocation22_spill] sm:$0xff] %v7909_v25  ;;  %v2719_v40 = vshrl.u32 %v7909_v25, 16  ;;  %v2722_v41 = vshll.u32 %v7909_v25, 16 }
 0x189   : > { %v835_v10 = vpop.f32.mrb[42].mxu0 }
 0x18a   : > { %v1114_v12 = vmax.f32 %v833_v7, 0.0  ;;  %v836_v13 = vadd.f32 %v7782_v33, %v835_v10  ;;  %v6662_v14 = vpop.f32.mrb[43].mxu0  ;;  %v2721_v47 = vrot.slane %v2719_v40, 1  ;;  %v2724_v50 = vrot.slane %v2722_v41, 2 }
 0x18c   : > { %v6435_v18 = vpack.c.bf16 %v1114_v12, %v1114_v12  ;;  %v1115_v19 = vmax.f32 %v836_v13, 0.0  ;;  %6768 = vmatmul.mubr.msk.bf16.gmra.mrb[148].mxu0 %vm581_vm3, %v7281_v9  ;;  %v2725_v62 = vor.u32 %v2724_v50, %v2721_v47  ;;  %v7284_v12 = vld [vmem:[%s7674_s23 + $0x140] sm:$0xff]  }
 0x18d   : > { %6771 = vmatprep.mubr.msk.bf16.mxu0 %vm7521_vm1, %v11082_v0  ;;  %v1624_v49 = vld [vmem:[#allocation2 + $0x48] sm:$0xf] }
 0x18e   : > { %1541 = vst.msk [vmem:[#allocation2 + $0x50] sm:$0xf] %vm1520_vm4, %v6435_v18  ;;  %v6436_v23 = vpack.c.bf16 %v1115_v19, %v1115_v19  ;;  %v7928_v61 = vcombine.low %v1623_v57, %v1624_v49  ;;  %v7935_v5 = vsel %vm2664_vm5, %v2716_v39, %v2725_v62 }
 0x18f   : > { %v840_v28 = vpop.f32.mrb[44].mxu0  ;;  %11232 = vst [vmem:[#allocation25_spill] sm:$0xff] %v7935_v5  ;;  %v1625_v13 = vld [vmem:[#allocation2 + $0x4c] sm:$0xf] }
 0x190   : > { %1542 = vst.msk [vmem:[#allocation2 + $0x54] sm:$0xf] %vm1520_vm4, %v6436_v23  ;;  %v841_v30 = vadd.f32 %v7782_v33, %v840_v28  ;;  %v6665_v32 = vpop.f32.mrb[45].mxu0  ;;  %11231 = vst [vmem:[#allocation24_spill] sm:$0xff] %v7928_v61  ;;  %v2728_v7 = vshrl.u32 %v7928_v61, 16  ;;  %v2731_v8 = vshll.u32 %v7928_v61, 16 }
 0x191   : > { %v843_v35 = vpop.f32.mrb[46].mxu0 }
 0x192   : > { %v1116_v36 = vmax.f32 %v841_v30, 0.0  ;;  %v844_v37 = vadd.f32 %v7782_v33, %v843_v35  ;;  %v6666_v38 = vpop.f32.mrb[47].mxu0  ;;  %v2730_v19 = vrot.slane %v2728_v7, 1  ;;  %v2733_v22 = vrot.slane %v2731_v8, 2 }
 0x194   : > { %v6437_v42 = vpack.c.bf16 %v1116_v36, %v1116_v36  ;;  %v1117_v43 = vmax.f32 %v844_v37, 0.0  ;;  %6772 = vmatmul.mubr.msk.bf16.gmra.mrb[152].mxu0 %vm581_vm3, %v7282_v34  ;;  %v2734_v28 = vor.u32 %v2733_v22, %v2730_v19  ;;  %v7285_v37 = vld [vmem:[%s7674_s23 + $0x148] sm:$0xff]  }
 0x195   : > { %6775 = vmatprep.mubr.msk.bf16.mxu0 %vm7521_vm1, %v11082_v0  ;;  %v1626_v4 = vld [vmem:[#allocation2 + $0x50] sm:$0xf] }
 0x196   : > { %1543 = vst.msk [vmem:[#allocation2 + $0x58] sm:$0xf] %vm1520_vm4, %v6437_v42  ;;  %v6438_v44 = vpack.c.bf16 %v1117_v43, %v1117_v43  ;;  %v7942_v15 = vcombine.low %v1625_v13, %v1626_v4  ;;  %v7955_v39 = vsel %vm2664_vm5, %v2725_v62, %v2734_v28 }
 0x197   : > { %v848_v48 = vpop.f32.mrb[48].mxu0  ;;  %11234 = vst [vmem:[#allocation27_spill] sm:$0xff] %v7955_v39  ;;  %v1627_v50 = vld [vmem:[#allocation2 + $0x54] sm:$0xf] }
 0x198   : > { %1544 = vst.msk [vmem:[#allocation2 + $0x5c] sm:$0xf] %vm1520_vm4, %v6438_v44  ;;  %v849_v51 = vadd.f32 %v7782_v33, %v848_v48  ;;  %v6669_v53 = vpop.f32.mrb[49].mxu0  ;;  %11233 = vst [vmem:[#allocation26_spill] sm:$0xff] %v7942_v15  ;;  %v2737_v30 = vshrl.u32 %v7942_v15, 16  ;;  %v2740_v32 = vshll.u32 %v7942_v15, 16 }
 0x199   : > { %v851_v56 = vpop.f32.mrb[50].mxu0 }
 0x19a   : > { %v1118_v58 = vmax.f32 %v849_v51, 0.0  ;;  %v852_v59 = vadd.f32 %v7782_v33, %v851_v56  ;;  %v6670_v60 = vpop.f32.mrb[51].mxu0  ;;  %v2739_v43 = vrot.slane %v2737_v30, 1  ;;  %v2742_v44 = vrot.slane %v2740_v32, 2 }
 0x19c   : > { %v6439_v63 = vpack.c.bf16 %v1118_v58, %v1118_v58  ;;  %v1119_v1 = vmax.f32 %v852_v59, 0.0  ;;  %6776 = vmatmul.mubr.msk.bf16.gmra.mrb[156].mxu0 %vm581_vm3, %v7283_v55  ;;  %v2743_v55 = vor.u32 %v2742_v44, %v2739_v43  ;;  %v7286_v59 = vld [vmem:[%s7674_s23 + $0x150] ss:$0 sps:$4 sm:$0xff]   ;;  %s7524_s23 = smov 64  }
 0x19d   : > { %6779 = vmatprep.mubr.msk.bf16.mxu0 %vm7521_vm1, %v11082_v0  ;;  %v1628_v47 = vld [vmem:[#allocation2 + $0x58] sm:$0xf] }
 0x19e   : > { %1545 = vst.msk [vmem:[#allocation2 + $0x60] sm:$0xf] %vm1520_vm4, %v6439_v63  ;;  %v6440_v2 = vpack.c.bf16 %v1119_v1, %v1119_v1  ;;  %v7962_v53 = vcombine.low %v1627_v50, %v1628_v47  ;;  %v7968_v62 = vsel %vm2664_vm5, %v2734_v28, %v2743_v55 }
 0x19f   : > { %v856_v9 = vpop.f32.mrb[52].mxu0  ;;  %11236 = vst [vmem:[#allocation29_spill] sm:$0xff] %v7968_v62 }
 0x1a0   : > { %1546 = vst.msk [vmem:[#allocation2 + $0x64] sm:$0xf] %vm1520_vm4, %v6440_v2  ;;  %v857_v10 = vadd.f32 %v7782_v33, %v856_v9  ;;  %v6673_v11 = vpop.f32.mrb[53].mxu0  ;;  %11235 = vst [vmem:[#allocation28_spill] sm:$0xff] %v7962_v53  ;;  %v2746_v4 = vshrl.u32 %v7962_v53, 16  ;;  %v2749_v7 = vshll.u32 %v7962_v53, 16 }
 0x1a1   : > { %v859_v14 = vpop.f32.mrb[54].mxu0  ;;  %v1629_v11 = vld [vmem:[#allocation2 + $0x5c] sm:$0xf] }
 0x1a2   : > { %v1120_v16 = vmax.f32 %v857_v10, 0.0  ;;  %v860_v17 = vadd.f32 %v7782_v33, %v859_v14  ;;  %v6674_v18 = vpop.f32.mrb[55].mxu0  ;;  %v2748_v14 = vrot.slane %v2746_v4, 1 }
 0x1a4   : > { %v6441_v23 = vpack.c.bf16 %v1120_v16, %v1120_v16  ;;  %v1121_v26 = vmax.f32 %v860_v17, 0.0  ;;  %6780 = vmatmul.mubr.msk.bf16.gmra.mrb[160].mxu0 %vm581_vm3, %v7284_v12  ;;  %v2751_v16 = vrot.slane %v2749_v7, 2 }
 0x1a5   : > { %6783 = vmatprep.mubr.msk.bf16.mxu0 %vm7521_vm1, %v11082_v0  ;;  %v1630_v8 = vld [vmem:[#allocation2 + $0x60] sm:$0xf] }
 0x1a6   : > { %1547 = vst.msk [vmem:[#allocation2 + $0x68] sm:$0xf] %vm1520_vm4, %v6441_v23  ;;  %v6442_v27 = vpack.c.bf16 %v1121_v26, %v1121_v26  ;;  %v7975_v13 = vcombine.low %v1629_v11, %v1630_v8  ;;  %v2752_v28 = vor.u32 %v2751_v16, %v2748_v14 }
 0x1a7   : > { %v864_v34 = vpop.f32.mrb[56].mxu0 }
 0x1a8   : > { %1548 = vst.msk [vmem:[#allocation2 + $0x6c] sm:$0xf] %vm1520_vm4, %v6442_v27  ;;  %v865_v35 = vadd.f32 %v7782_v33, %v864_v34  ;;  %v6677_v36 = vpop.f32.mrb[57].mxu0  ;;  %11237 = vst [vmem:[#allocation30_spill] sm:$0xff] %v7975_v13  ;;  %v2755_v30 = vshrl.u32 %v7975_v13, 16  ;;  %v2758_v34 = vshll.u32 %v7975_v13, 16 }
 0x1a9   : > { %v867_v38 = vpop.f32.mrb[58].mxu0 }
 0x1aa   : > { %v1122_v40 = vmax.f32 %v865_v35, 0.0  ;;  %v868_v41 = vadd.f32 %v7782_v33, %v867_v38  ;;  %v6678_v42 = vpop.f32.mrb[59].mxu0  ;;  %v2760_v44 = vrot.slane %v2758_v34, 2 }
 0x1ab   : > { %v2757_v42 = vrot.slane %v2755_v30, 1 }
 0x1ac   : > { %v6443_v48 = vpack.c.bf16 %v1122_v40, %v1122_v40  ;;  %v1123_v49 = vmax.f32 %v868_v41, 0.0  ;;  %6784 = vmatmul.mubr.msk.bf16.gmra.mrb[164].mxu0 %vm581_vm3, %v7285_v37  ;;  %v1631_v37 = vld [vmem:[#allocation2 + $0x64] sm:$0xf]  ;;  %v7986_v41 = vsel %vm2664_vm5, %v2743_v55, %v2752_v28 }
 0x1ad   : > { %6787 = vmatprep.mubr.msk.bf16.mxu0 %vm7521_vm1, %v11082_v0  ;;  %v1632_v32 = vld [vmem:[#allocation2 + $0x68] sm:$0xf]  ;;  %11239 = vst [vmem:[#allocation32_spill] sm:$0xff] %v7986_v41 }
 0x1ae   : > { %1549 = vst.msk [vmem:[#allocation2 + $0x70] sm:$0xf] %vm1520_vm4, %v6443_v48  ;;  %v6444_v51 = vpack.c.bf16 %v1123_v49, %v1123_v49  ;;  %v7983_v40 = vcombine.low %v1631_v37, %v1632_v32 }
 0x1af   : > { %v872_v56 = vpop.f32.mrb[60].mxu0  ;;  %v1633_v11 = vld [vmem:[#allocation2 + $0x6c] sm:$0xf] }
 0x1b0   : > { %1550 = vst.msk [vmem:[#allocation2 + $0x74] sm:$0xf] %vm1520_vm4, %v6444_v51  ;;  %v873_v57 = vadd.f32 %v7782_v33, %v872_v56  ;;  %v6681_v58 = vpop.f32.mrb[61].mxu0  ;;  %11238 = vst [vmem:[#allocation31_spill] sm:$0xff] %v7983_v40 }
 0x1b1   : > { %v875_v60 = vpop.f32.mrb[62].mxu0  ;;  %v2764_v58 = vshrl.u32 %v7983_v40, 16 }
 0x1b2   : > { %v1124_v63 = vmax.f32 %v873_v57, 0.0  ;;  %v876_v1 = vadd.f32 %v7782_v33, %v875_v60  ;;  %v6682_v2 = vpop.f32.mrb[63].mxu0  ;;  %v2761_v57 = vor.u32 %v2760_v44, %v2757_v42 }
 0x1b3   : > { %v2766_v4 = vrot.slane %v2764_v58, 1 }
 0x1b4   : > { %v6445_v9 = vpack.c.bf16 %v1124_v63, %v1124_v63  ;;  %v1125_v10 = vmax.f32 %v876_v1, 0.0  ;;  %6788 = vmatmul.mubr.msk.bf16.gmra.mrb[168].mxu0 %vm581_vm3, %v7286_v59  ;;  %v2767_v59 = vshll.u32 %v7983_v40, 16  ;;  %v7995_v2 = vsel %vm2664_vm5, %v2752_v28, %v2761_v57 }
 0x1b5   : > { %v1634_v1 = vld [vmem:[#allocation2 + $0x70] sm:$0xf]  ;;  %11240 = vst [vmem:[#allocation33_spill] sm:$0xff] %v7995_v2  ;;  %v11267_v2 = vmov 0.0  }
 0x1b6   : > { %1551 = vst.msk [vmem:[#allocation2 + $0x78] sm:$0xf] %vm1520_vm4, %v6445_v9  ;;  %v6446_v12 = vpack.c.bf16 %v1125_v10, %v1125_v10  ;;  %v2769_v8 = vrot.slane %v2767_v59, 2  ;;  %v7999_v14 = vcombine.low %v1633_v11, %v1634_v1  ;;  %v7298_v59 = vld [vmem:[%s11076_s3 + $0x8] sm:$0xff]  }
 0x1b7   : > { %v880_v17 = vpop.f32.mrb[64].mxu0  ;;  %v1635_v37 = vld [vmem:[#allocation2 + $0x74] sm:$0xf] }
 0x1b8   : > { %1552 = vst.msk [vmem:[#allocation2 + $0x7c] sm:$0xf] %vm1520_vm4, %v6446_v12  ;;  %v881_v18 = vadd.f32 %v7782_v33, %v880_v17  ;;  %v6685_v19 = vpop.f32.mrb[65].mxu0  ;;  %11241 = vst [vmem:[#allocation34_spill] sm:$0xff] %v7999_v14  ;;  %v2776_v32 = vshll.u32 %v7999_v14, 16 }
 0x1b9   : > { %v883_v22 = vpop.f32.mrb[66].mxu0  ;;  %v2770_v19 = vor.u32 %v2769_v8, %v2766_v4 }
 0x1ba   : > { %v1126_v23 = vmax.f32 %v881_v18, 0.0  ;;  %v884_v26 = vadd.f32 %v7782_v33, %v883_v22  ;;  %v6686_v27 = vpop.f32.mrb[67].mxu0 }
 0x1bb   : > { %v8005_v30 = vsel %vm2664_vm5, %v2761_v57, %v2770_v19 }
 0x1bc   : > { %v6447_v35 = vpack.c.bf16 %v1126_v23, %v1126_v23  ;;  %v1127_v36 = vmax.f32 %v884_v26, 0.0  ;;  %v2773_v26 = vshrl.u32 %v7999_v14, 16  ;;  %11242 = vst [vmem:[#allocation35_spill] sm:$0xff] %v8005_v30 }
 0x1bd   : > { %v1636_v28 = vld [vmem:[#allocation2 + $0x78] sm:$0xf] }
 0x1be   : > { %1553 = vst.msk [vmem:[#allocation2 + $0x80] sm:$0xf] %vm1520_vm4, %v6447_v35  ;;  %v6448_v38 = vpack.c.bf16 %v1127_v36, %v1127_v36  ;;  %v8010_v42 = vcombine.low %v1635_v37, %v1636_v28  ;;  %v7301_v28 = vld [vmem:[%s11076_s3 + $0x18] sm:$0xff]  }
 0x1bf   : > { %v888_v43 = vpop.f32.mrb[68].mxu0 }
 0x1c0   : > { %1554 = vst.msk [vmem:[#allocation2 + $0x84] sm:$0xf] %vm1520_vm4, %v6448_v38  ;;  %v889_v47 = vadd.f32 %v7782_v33, %v888_v43  ;;  %v6689_v48 = vpop.f32.mrb[69].mxu0  ;;  %11243 = vst [vmem:[#allocation36_spill] sm:$0xff] %v8010_v42  ;;  %v2775_v43 = vrot.slane %v2773_v26, 1 }
 0x1c1   : > { %v891_v49 = vpop.f32.mrb[70].mxu0 }
 0x1c2   : > { %v1128_v50 = vmax.f32 %v889_v47, 0.0  ;;  %v892_v51 = vadd.f32 %v7782_v33, %v891_v49  ;;  %v6690_v56 = vpop.f32.mrb[71].mxu0  ;;  %v7297_v49 = vld [vmem:[%s11076_s3] sm:$0xff]  }
 0x1c4   : > { %v6449_v55 = vpack.c.bf16 %v1128_v50, %v1128_v50  ;;  %v1129_v60 = vmax.f32 %v892_v51, 0.0  ;;  %v2778_v50 = vrot.slane %v2776_v32, 2  ;;  %v11091_v51 = vmov 0  }
 0x1c5   : > { %6951 = vmatprep.subr.bf16.mxu1 %v11091_v51  ;;  %4562 = vmatprep.subr.bf16.mxu0 %v11091_v51 }
 0x1c6   : > { %1555 = vst.msk [vmem:[#allocation2 + $0x88] sm:$0xf] %vm1520_vm4, %v6449_v55  ;;  %v6450_v63 = vpack.c.bf16 %v1129_v60, %v1129_v60  ;;  %6967 = vmatpush1.bf16.msra.mxu1 %v7297_v49  ;;  %4563 = vmatpush1.bf16.msra.mxu0 %v7297_v49  ;;  %v2779_v55 = vor.u32 %v2778_v50, %v2775_v43  ;;  %v2782_v60 = vshrl.u32 %v8010_v42, 16  ;;  %v7302_v49 = vld [vmem:[%s11076_s3 + $0x20] sm:$0xff]  }
 0x1c7   : > { %v896_v7 = vpop.f32.mrb[72].mxu0  ;;  %6952 = vmatprep.subr.bf16.mxu1 %v11091_v51  ;;  %4564 = vmatprep.subr.bf16.mxu0 %v11091_v51 }
 0x1c8   : > { %1556 = vst.msk [vmem:[#allocation2 + $0x8c] sm:$0xf] %vm1520_vm4, %v6450_v63  ;;  %v897_v9 = vadd.f32 %v7782_v33, %v896_v7  ;;  %v6693_v10 = vpop.f32.mrb[73].mxu0  ;;  %v2785_v63 = vshll.u32 %v8010_v42, 16 }
 0x1c9   : > { %v899_v12 = vpop.f32.mrb[74].mxu0 }
 0x1ca   : > { %v1130_v16 = vmax.f32 %v897_v9, 0.0  ;;  %v900_v17 = vadd.f32 %v7782_v33, %v899_v12  ;;  %v6694_v18 = vpop.f32.mrb[75].mxu0  ;;  %6968 = vmatpush1.bf16.msra.mxu1 %v7298_v59  ;;  %4565 = vmatpush1.bf16.msra.mxu0 %v7298_v59  ;;  %v8031_v9 = vsel %vm2664_vm5, %v2770_v19, %v2779_v55  ;;  %v1637_v19 = vld [vmem:[#allocation2 + $0x7c] sm:$0xf] }
 0x1cb   : > { %6953 = vmatprep.subr.bf16.mxu1 %v11091_v51  ;;  %4566 = vmatprep.subr.bf16.mxu0 %v11091_v51  ;;  %11244 = vst [vmem:[#allocation37_spill] sm:$0xff] %v8031_v9  ;;  %v2787_v18 = vrot.slane %v2785_v63, 2 }
 0x1cc   : > { %v6451_v22 = vpack.c.bf16 %v1130_v16, %v1130_v16  ;;  %v1131_v23 = vmax.f32 %v900_v17, 0.0  ;;  %v7300_v16 = vld [vmem:[%s11076_s3 + $0x10] sm:$0xff]   ;;  %v2784_v17 = vrot.slane %v2782_v60, 1 }
 0x1ce   : > { %1557 = vst.msk [vmem:[#allocation2 + $0x90] sm:$0xf] %vm1520_vm4, %v6451_v22  ;;  %v6452_v27 = vpack.c.bf16 %v1131_v23, %v1131_v23  ;;  %v1638_v22 = vld [vmem:[#allocation2 + $0x80] sm:$0xf]  ;;  %6969 = vmatpush1.bf16.msra.mxu1 %v7300_v16  ;;  %4567 = vmatpush1.bf16.msra.mxu0 %v7300_v16 }
 0x1cf   : > { %v904_v34 = vpop.f32.mrb[76].mxu0  ;;  %6954 = vmatprep.subr.bf16.mxu1 %v11091_v51  ;;  %4568 = vmatprep.subr.bf16.mxu0 %v11091_v51  ;;  %v8043_v32 = vcombine.low %v1637_v19, %v1638_v22 }
 0x1d0   : > { %1558 = vst.msk [vmem:[#allocation2 + $0x94] sm:$0xf] %vm1520_vm4, %v6452_v27  ;;  %v905_v35 = vadd.f32 %v7782_v33, %v904_v34  ;;  %v6697_v36 = vpop.f32.mrb[77].mxu0  ;;  %v2788_v34 = vor.u32 %v2787_v18, %v2784_v17  ;;  %v7305_v18 = vld [vmem:[%s11076_s3 + $0x30] sm:$0xff]  }
 0x1d1   : > { %v907_v38 = vpop.f32.mrb[78].mxu0  ;;  %11245 = vst [vmem:[#allocation38_spill] sm:$0xff] %v8043_v32  ;;  %v2791_v50 = vshrl.u32 %v8043_v32, 16 }
 0x1d2   : > { %v1132_v44 = vmax.f32 %v905_v35, 0.0  ;;  %v908_v47 = vadd.f32 %v7782_v33, %v907_v38  ;;  %v6698_v48 = vpop.f32.mrb[79].mxu0  ;;  %6970 = vmatpush1.bf16.msra.mxu1 %v7301_v28  ;;  %4569 = vmatpush1.bf16.msra.mxu0 %v7301_v28  ;;  %v8050_v43 = vsel %vm2664_vm5, %v2779_v55, %v2788_v34  ;;  %v7304_v55 = vld [vmem:[%s11076_s3 + $0x28] sm:$0xff]  }
 0x1d3   : > { %6955 = vmatprep.subr.bf16.mxu1 %v11091_v51  ;;  %4570 = vmatprep.subr.bf16.mxu0 %v11091_v51  ;;  %11246 = vst [vmem:[#allocation39_spill] sm:$0xff] %v8050_v43  ;;  %v2793_v60 = vrot.slane %v2791_v50, 1 }
 0x1d4   : > { %v6453_v56 = vpack.c.bf16 %v1132_v44, %v1132_v44  ;;  %v1133_v57 = vmax.f32 %v908_v47, 0.0 }
 0x1d5   : > { %v1642_v28 = vld [vmem:[#allocation2 + $0x90] sm:$0xf] }
 0x1d6   : > { %1559 = vst.msk [vmem:[#allocation2 + $0x98] sm:$0xf] %vm1520_vm4, %v6453_v56  ;;  %v6454_v58 = vpack.c.bf16 %v1133_v57, %v1133_v57  ;;  %v2794_v56 = vshll.u32 %v8043_v32, 16  ;;  %6971 = vmatpush1.bf16.msra.mxu1 %v7302_v49  ;;  %4571 = vmatpush1.bf16.msra.mxu0 %v7302_v49 }
 0x1d7   : > { %v912_v1 = vpop.f32.mrb[80].mxu0  ;;  %6956 = vmatprep.subr.bf16.mxu1 %v11091_v51  ;;  %4572 = vmatprep.subr.bf16.mxu0 %v11091_v51 }
 0x1d8   : > { %1560 = vst.msk [vmem:[#allocation2 + $0x9c] sm:$0xf] %vm1520_vm4, %v6454_v58  ;;  %v913_v4 = vadd.f32 %v7782_v33, %v912_v1  ;;  %v6701_v7 = vpop.f32.mrb[81].mxu0  ;;  %v2796_v63 = vrot.slane %v2794_v56, 2 }
 0x1d9   : > { %v915_v8 = vpop.f32.mrb[82].mxu0 }
 0x1da   : > { %v1134_v10 = vmax.f32 %v913_v4, 0.0  ;;  %v916_v11 = vadd.f32 %v7782_v33, %v915_v8  ;;  %v6702_v12 = vpop.f32.mrb[83].mxu0  ;;  %v1640_v4 = vld [vmem:[#allocation2 + $0x88] sm:$0xf]  ;;  %6972 = vmatpush1.bf16.msra.mxu1 %v7304_v55  ;;  %4573 = vmatpush1.bf16.msra.mxu0 %v7304_v55 }
 0x1db   : > { %6957 = vmatprep.subr.bf16.mxu1 %v11091_v51  ;;  %4574 = vmatprep.subr.bf16.mxu0 %v11091_v51 }
 0x1dc   : > { %v6455_v23 = vpack.c.bf16 %v1134_v10, %v1134_v10  ;;  %v1135_v26 = vmax.f32 %v916_v11, 0.0  ;;  %v1639_v11 = vld [vmem:[#allocation2 + $0x84] sm:$0xf] }
 0x1dd   : > { %v8072_v22 = vcombine.low %v1639_v11, %v1640_v4 }
 0x1de   : > { %1561 = vst.msk [vmem:[#allocation2 + $0xa0] sm:$0xf] %vm1520_vm4, %v6455_v23  ;;  %v6456_v27 = vpack.c.bf16 %v1135_v26, %v1135_v26  ;;  %v8074_v23 = vor.u32 %v2796_v63, %v2793_v60  ;;  %6973 = vmatpush1.bf16.msra.mxu1 %v7305_v18  ;;  %4575 = vmatpush1.bf16.msra.mxu0 %v7305_v18 }
 0x1df   : > { %v920_v35 = vpop.f32.mrb[84].mxu0  ;;  %11247 = vst [vmem:[#allocation40_spill] sm:$0xff] %v8072_v22  ;;  %6958 = vmatprep.subr.bf16.mxu1 %v11091_v51  ;;  %4576 = vmatprep.subr.bf16.mxu0 %v11091_v51 }
 0x1e0   : > { %1562 = vst.msk [vmem:[#allocation2 + $0xa4] sm:$0xf] %vm1520_vm4, %v6456_v27  ;;  %v921_v36 = vadd.f32 %v7782_v33, %v920_v35  ;;  %v6705_v37 = vpop.f32.mrb[85].mxu0  ;;  %v8081_v35 = vsel %vm2664_vm5, %v2788_v34, %v8074_v23 }
 0x1e1   : > { %v923_v38 = vpop.f32.mrb[86].mxu0  ;;  %11248 = vst [vmem:[#allocation41_spill] sm:$0xff] %v8081_v35  ;;  %v2803_v37 = vshll.u32 %v8072_v22, 16  ;;  %v11262_v35 = vmov 0  }
 0x1e2   : > { %v1136_v44 = vmax.f32 %v921_v36, 0.0  ;;  %v924_v47 = vadd.f32 %v7782_v33, %v923_v38  ;;  %v6706_v48 = vpop.f32.mrb[87].mxu0  ;;  %v2800_v36 = vshrl.u32 %v8072_v22, 16 }
 0x1e3   : > { %v7306_v48 = vld [vmem:[%s11076_s3 + $0x38] sm:$0xff]  }
 0x1e4   : > { %v6457_v57 = vpack.c.bf16 %v1136_v44, %v1136_v44  ;;  %v1137_v58 = vmax.f32 %v924_v47, 0.0  ;;  %6974 = vmatpush1.bf16.msra.mxu1 %v7306_v48  ;;  %4577 = vmatpush1.bf16.msra.mxu0 %v7306_v48 }
 0x1e5   : > { %6959 = vmatprep.subr.bf16.mxu1 %v11091_v51  ;;  %4578 = vmatprep.subr.bf16.mxu0 %v11091_v51 }
 0x1e6   : > { %1563 = vst.msk [vmem:[#allocation2 + $0xa8] sm:$0xf] %vm1520_vm4, %v6457_v57  ;;  %v6458_v59 = vpack.c.bf16 %v1137_v58, %v1137_v58  ;;  %v1641_v57 = vld [vmem:[#allocation2 + $0x8c] sm:$0xf] }
 0x1e7   : > { %v928_v1 = vpop.f32.mrb[88].mxu0 }
 0x1e8   : > { %1564 = vst.msk [vmem:[#allocation2 + $0xac] sm:$0xf] %vm1520_vm4, %v6458_v59  ;;  %v929_v7 = vadd.f32 %v7782_v33, %v928_v1  ;;  %v6709_v8 = vpop.f32.mrb[89].mxu0  ;;  %v8092_v59 = vld [vmem:[#allocation7] ss:$0 sm:$0xff]  ;;  %v8101_v1 = vcombine.low %v1641_v57, %v1642_v28 }
 0x1e9   : > { %v931_v10 = vpop.f32.mrb[90].mxu0  ;;  %v2805_v8 = vrot.slane %v2803_v37, 2  ;;  %v7309_v37 = vld [vmem:[%s11076_s3 + $0x48] sm:$0xff]  }
 0x1ea   : > { %v1138_v12 = vmax.f32 %v929_v7, 0.0  ;;  %v932_v16 = vadd.f32 %v7782_v33, %v931_v10  ;;  %v6710_v17 = vpop.f32.mrb[91].mxu0  ;;  %11250 = vst [vmem:[#allocation43_spill] sm:$0xff] %v8101_v1  ;;  %v2802_v7 = vrot.slane %v2800_v36, 1  ;;  %v2812_v48 = vshll.u32 %v8101_v1, 16 }
 0x1ec   : > { %v6459_v26 = vpack.c.bf16 %v1138_v12, %v1138_v12  ;;  %v1139_v19 = vmax.f32 %v932_v16, 0.0 }
 0x1ed   : > { %v1648_v44 = vld [vmem:[#allocation2 + $0xa8] sm:$0xf] }
 0x1ee   : > { %1565 = vst.msk [vmem:[#allocation2 + $0xb0] sm:$0xf] %vm1520_vm4, %v6459_v26  ;;  %v6460_v27 = vpack.c.bf16 %v1139_v19, %v1139_v19  ;;  %v2809_v19 = vshrl.u32 %v8101_v1, 16 }
 0x1ef   : > { %v936_v38 = vpop.f32.mrb[92].mxu0  ;;  %v1649_v47 = vld [vmem:[#allocation2 + $0xac] sm:$0xf] }
 0x1f0   : > { %1566 = vst.msk [vmem:[#allocation2 + $0xb4] sm:$0xf] %vm1520_vm4, %v6460_v27  ;;  %v937_v49 = vadd.f32 %v7782_v33, %v936_v38  ;;  %v6713_v50 = vpop.f32.mrb[93].mxu0  ;;  %v8090_v56 = vcombine.low %v1648_v44, %v1649_v47  ;;  %v7308_v33 = vld [vmem:[%s11076_s3 + $0x40] sm:$0xff]   ;;  %v2806_v44 = vor.u32 %v2805_v8, %v2802_v7 }
 0x1f1   : > { %v939_v34 = vpop.f32.mrb[94].mxu0  ;;  %6975 = vmatpush1.bf16.msra.mxu1 %v7308_v33  ;;  %4579 = vmatpush1.bf16.msra.mxu0 %v7308_v33 }
 0x1f2   : > { %11249 = vst [vmem:[#allocation42_spill] sm:$0xff] %v8090_v56  ;;  %v1140_v58 = vmax.f32 %v937_v49, 0.0  ;;  %v940_v55 = vadd.f32 %v8092_v59, %v939_v34  ;;  %v6714_v60 = vpop.f32.mrb[95].mxu0  ;;  %v2067_v63 = vshll.u32 %v8090_v56, 16  ;;  %v2071_v4 = vshrl.u32 %v8090_v56, 16  ;;  %6960 = vmatprep.subr.bf16.mxu1 %v11091_v51  ;;  %4580 = vmatprep.subr.bf16.mxu0 %v11091_v51 }
 0x1f3   : > { %v11081_v57 = vrot.slane %v8090_v56, 1 }
 0x1f4   : > { %v6461_v10 = vpack.c.bf16 %v1140_v58, %v1140_v58  ;;  %v1141_v11 = vmax.f32 %v940_v55, 0.0  ;;  %v3438_v12 = vrot.slane %v2067_v63, 3  ;;  %v3437_v17 = vrot.slane %v2071_v4, 2 }
 0x1f5   : > { %v1650_v16 = vld [vmem:[#allocation2 + $0xb0] sm:$0xf]  ;;  %v8112_v36 = vrot.slane %v2067_v63, 1  ;;  %6976 = vmatpush1.bf16.msra.mxu1 %v7309_v37  ;;  %4581 = vmatpush1.bf16.msra.mxu0 %v7309_v37  ;;  %v8128_v58 = vsel %vm2664_vm5, %v8074_v23, %v2806_v44 }
 0x1f6   : > { %1567 = vst.msk [vmem:[#allocation2 + $0xb8] sm:$0xf] %vm1520_vm4, %v6461_v10  ;;  %v6462_v18 = vpack.c.bf16 %v1141_v11, %v1141_v11  ;;  %v8107_v26 = vcombine.low %v1649_v47, %v1650_v16  ;;  %v8117_v38 = vor.u32 %v3438_v12, %v3437_v17  ;;  %11254 = vst [vmem:[#allocation47_spill] sm:$0xff] %v8128_v58  ;;  %6961 = vmatprep.subr.bf16.mxu1 %v11091_v51 }
 0x1f7   : > { %v944_v27 = vpop.f32.mrb[96].mxu0  ;;  %v8110_v28 = vld [vmem:[#allocation2 + $0xb4] sm:$0xf]  ;;  %11252 = vst [vmem:[#allocation45_spill] sm:$0xff] %v8112_v36  ;;  %4582 = vmatprep.subr.bf16.mxu0 %v11091_v51  ;;  %v2073_v8 = vor.u32 %v2071_v4, %v8112_v36  ;;  %v2811_v11 = vrot.slane %v2809_v19, 1  ;;  %v2814_v12 = vrot.slane %v2812_v48, 2 }
 0x1f8   : > { %11251 = vst [vmem:[#allocation44_spill] sm:$0xff] %v8107_v26  ;;  %11253 = vst [vmem:[#allocation46_spill] sm:$0xff] %v8117_v38  ;;  %v945_v47 = vadd.f32 %v8092_v59, %v944_v27  ;;  %v6717_v49 = vpop.f32.mrb[97].mxu0  ;;  %v8123_v50 = vcombine.low %v1650_v16, %v8110_v28  ;;  %v7310_v27 = vld [vmem:[%s11076_s3 + $0x50] sm:$0xff]  }
 0x1f9   : > { %1568 = vst.msk [vmem:[#allocation2 + $0xbc] sm:$0xf] %vm1520_vm4, %v6462_v18  ;;  %v947_v34 = vpop.f32.mrb[98].mxu0  ;;  %6977 = vmatpush1.bf16.msra.mxu1 %v7310_v27  ;;  %4583 = vmatpush1.bf16.msra.mxu0 %v7310_v27 }
 0x1fa   : > { %v1142_v55 = vmax.f32 %v945_v47, 0.0  ;;  %v948_v60 = vadd.f32 %v8092_v59, %v947_v34  ;;  %v6718_v63 = vpop.f32.mrb[99].mxu0  ;;  %v2340_v33 = vrot.slane %v8123_v50, 1  ;;  %v2075_v7 = vshll.u32 %v8123_v50, 16  ;;  %6962 = vmatprep.subr.bf16.mxu1 %v11091_v51  ;;  %4584 = vmatprep.subr.bf16.mxu0 %v11091_v51 }
 0x1fb   : > { %v2079_v10 = vshrl.u32 %v8123_v50, 16  ;;  %v8153_v63 = vor.u32 %v2814_v12, %v2811_v11 }
 0x1fc   : > { %v6463_v23 = vpack.c.bf16 %v1142_v55, %v1142_v55  ;;  %v1143_v16 = vmax.f32 %v948_v60, 0.0  ;;  %v2341_v17 = vsel %vm2296_vm6, %v11081_v57, %v2340_v33  ;;  %v2077_v18 = vrot.slane %v2075_v7, 1  ;;  %v7312_v55 = vld [vmem:[%s11076_s3 + $0x58] sm:$0xff]  }
 0x1fd   : > { %2418 = vrot.lane.b32.xlu1 %v2341_v17, %s7524_s23  ;;  %v3442_v4 = vrot.slane %v2075_v7, 3  ;;  %v3441_v37 = vrot.slane %v2079_v10, 2  ;;  %v1652_v49 = vld [vmem:[#allocation2 + $0xb8] sm:$0xf]  ;;  %11255 = vst [vmem:[#allocation48_spill] sm:$0xff] %v8153_v63  ;;  %v8167_v11 = vsel %vm2664_vm5, %v2806_v44, %v8153_v63  ;;  %6978 = vmatpush1.bf16.msra.mxu1 %v7312_v55  ;;  %v7313_v44 = vld [vmem:[%s11076_s3 + $0x60] sm:$0xff]  }
 0x1fe   : > { %1569 = vst.msk [vmem:[#allocation2 + $0xc0] sm:$0xf] %vm1520_vm4, %v6463_v23  ;;  %v6464_v19 = vpack.c.bf16 %v1143_v16, %v1143_v16  ;;  %v2078_v48 = vsel %vm1898_vm7, %v2073_v8, %v2077_v18  ;;  %11257 = vst [vmem:[#allocation50_spill] sm:$0xff] %v8167_v11  ;;  %6963 = vmatprep.subr.bf16.mxu1 %v11091_v51  ;;  %4585 = vmatpush1.bf16.msra.mxu0 %v7312_v55 }
 0x1ff   : > { %2257 = vrot.lane.b32.xlu0 %v2078_v48, %s7525_s26  ;;  %v952_v47 = vpop.f32.mrb[100].mxu0  ;;  %v8151_v60 = vor.u32 %v3442_v4, %v3441_v37  ;;  %v8173_v48 = vcombine.low %v8110_v28, %v1652_v49  ;;  %v2081_v28 = vor.u32 %v2079_v10, %v2077_v18  ;;  %4586 = vmatprep.subr.bf16.mxu0 %v11091_v51 }
 0x200   : > { %v1653_v34 = vld [vmem:[#allocation2 + $0xbc] sm:$0xf]  ;;  %1570 = vst.msk [vmem:[#allocation2 + $0xc4] sm:$0xf] %vm1520_vm4, %v6464_v19  ;;  %v953_v7 = vadd.f32 %v8092_v59, %v952_v47  ;;  %v6721_v8 = vpop.f32.mrb[101].mxu0 }
 0x201   : > { %v8157_v23 = vcombine.low %v1652_v49, %v1653_v34  ;;  %v955_v16 = vpop.f32.mrb[102].mxu0  ;;  %v8163_v17 = vsel %vm3360_vm8, %v8117_v38, %v8151_v60  ;;  %11258 = vst [vmem:[#allocation51_spill] sm:$0xff] %v8173_v48  ;;  %6979 = vmatpush1.bf16.msra.mxu1 %v7313_v44  ;;  %v11086_v55 = vrot.slane %v8173_v48, 2 }
 0x202   : > { %11256 = vst [vmem:[#allocation49_spill] sm:$0xff] %v8163_v17  ;;  %v1144_v12 = vmax.f32 %v953_v7, 0.0  ;;  %v956_v4 = vadd.f32 %v8092_v59, %v955_v16  ;;  %v6722_v37 = vpop.f32.mrb[103].mxu0  ;;  %6964 = vmatprep.subr.bf16.mxu1 %v11091_v51  ;;  %4587 = vmatpush1.bf16.msra.mxu0 %v7313_v44 }
 0x203   : > { %v11084_v19 = vrot.slane %v8157_v23, 1  ;;  %v2083_v27 = vshll.u32 %v8157_v23, 16  ;;  %v11085_v47 = vshrl.u32 %v8157_v23, 16  ;;  %4588 = vmatprep.subr.bf16.mxu0 %v11091_v51 }
 0x204   : > { %v6465_v7 = vpack.c.bf16 %v1144_v12, %v1144_v12  ;;  %v1145_v8 = vmax.f32 %v956_v4, 0.0 }
 0x205   : > { %v2343_v16 = vsel %vm2296_vm6, %v2340_v33, %v11084_v19  ;;  %v2085_v37 = vrot.slane %v2083_v27, 1  ;;  %v1654_v49 = vld [vmem:[#allocation2 + $0xc0] sm:$0xf]  ;;  %v3445_v57 = vrot.slane %v11085_v47, 2  ;;  %v3446_v10 = vrot.slane %v2083_v27, 3 }
 0x206   : > { %2420 = vrot.lane.b32.xlu1 %v2343_v16, %s7524_s23  ;;  %1571 = vst.msk [vmem:[#allocation2 + $0xc8] sm:$0xf] %vm1520_vm4, %v6465_v7  ;;  %v6466_v0 = vpack.c.bf16 %v1145_v8, %v1145_v8  ;;  %v8188_v12 = vcombine.low %v1653_v34, %v1654_v49  ;;  %v11088_v34 = vrot.slane %v8173_v48, 1 }
 0x207   : > { %v960_v4 = vpop.f32.mrb[104].mxu0  ;;  %v2086_v33 = vsel %vm1898_vm7, %v2081_v28, %v2085_v37  ;;  %v1655_v19 = vld [vmem:[#allocation2 + $0xc4] sm:$0xf]  ;;  %v7314_v28 = vld [vmem:[%s11076_s3 + $0x68] sm:$0xff]  }
 0x208   : > { %1572 = vst.msk [vmem:[#allocation2 + $0xcc] sm:$0xf] %vm1520_vm4, %v6466_v0  ;;  %v961_v18 = vadd.f32 %v8092_v59, %v960_v4  ;;  %v6725_v16 = vpop.f32.mrb[105].mxu0  ;;  %v11087_v7 = vrot.slane %v8188_v12, 2  ;;  %v8196_v8 = vcombine.low %v1654_v49, %v1655_v19  ;;  %v3447_v0 = vor.u32 %v3446_v10, %v3445_v57  ;;  %6980 = vmatpush1.bf16.msra.mxu1 %v7314_v28 }
 0x209   : > { %v963_v47 = vpop.f32.mrb[106].mxu0  ;;  %6965 = vmatprep.subr.bf16.mxu1 %v11091_v51  ;;  %v11259_v10 = vrot.slane %v8188_v12, 1  ;;  %4589 = vmatpush1.bf16.msra.mxu0 %v7314_v28 }
 0x20a   : > { %2259 = vrot.lane.b32.xlu1 %v2086_v33, %s7525_s26  ;;  %v1146_v27 = vmax.f32 %v961_v18, 0.0  ;;  %v964_v4 = vadd.f32 %v8092_v59, %v963_v47  ;;  %v6726_v16 = vpop.f32.mrb[107].mxu0  ;;  %v3072_v49 = vsel %vm3027_vm9, %v11086_v55, %v11087_v7  ;;  %v2091_v44 = vshll.u32 %v8196_v8, 16  ;;  %4590 = vmatprep.subr.bf16.mxu0 %v11091_v51 }
 0x20b   : > { %3149 = vrot.lane.b32.xlu0 %v3072_v49, %s7525_s26  ;;  %v11090_v33 = vshrl.u32 %v8196_v8, 16  ;;  %v2548_v18 = vsel %vm2296_vm6, %v11088_v34, %v11259_v10  ;;  %v7316_v49 = vld [vmem:[%s11076_s3 + $0x70] sm:$0xff]   ;;  %v2863_v7 = vshrl.u32 %v8188_v12, 16  ;;  %v2866_v16 = vshll.u32 %v8188_v12, 16 }
 0x20c   : > { %v6467_v57 = vpack.c.bf16 %v1146_v27, %v1146_v27  ;;  %v1147_v47 = vmax.f32 %v964_v4, 0.0  ;;  %v3450_v4 = vrot.slane %v2091_v44, 3  ;;  %6981 = vmatpush1.bf16.msra.mxu1 %v7316_v49  ;;  %v8235_v28 = vsel %vm3360_vm8, %v8151_v60, %v3447_v0 }
 0x20d   : > { %v1656_v55 = vld [vmem:[#allocation2 + $0xc8] sm:$0xf]  ;;  %v3449_v27 = vrot.slane %v11090_v33, 2  ;;  %11260 = vst [vmem:[#allocation52_spill] sm:$0xff] %v8235_v28  ;;  %v11261_v33 = vshrl.u32 %v8157_v23, 16  ;;  %v8239_v58 = vrot.slane %v2091_v44, 1  ;;  %6966 = vmatprep.subr.bf16.mxu1 %v11262_v35  ;;  %4591 = vmatpush1.bf16.msra.mxu0 %v7316_v49 }
 0x20e   : > { %2625 = vrot.lane.b32.xlu1 %v2548_v18, %s7526_s11  ;;  %1573 = vst.msk [vmem:[#allocation2 + $0xd0] sm:$0xf] %vm1520_vm4, %v6467_v57  ;;  %v6468_v10 = vpack.c.bf16 %v1147_v47, %v1147_v47  ;;  %v8230_v34 = vcombine.low %v1655_v19, %v1656_v55  ;;  %v11263_v47 = vrot.slane %v8196_v8, 1  ;;  %v11264_v60 = vrot.slane %v8157_v23, 1  ;;  %4592 = vmatprep.subr.bf16.mxu0 %v11262_v35 }
 0x20f   : > { %v968_v18 = vpop.f32.mrb[108].mxu0  ;;  %v1657_v63 = vld [vmem:[#allocation2 + $0xcc] sm:$0xf]  ;;  %v2089_v11 = vor.u32 %v11261_v33, %v2085_v37  ;;  %v3451_v51 = vor.u32 %v3450_v4, %v3449_v27  ;;  %v2865_v44 = vrot.slane %v2863_v7, 1  ;;  %v7317_v4 = vld [vmem:[%s11076_s3 + $0x78] sm:$0xff]  }
 0x210   : > { %1574 = vst.msk [vmem:[#allocation2 + $0xd4] sm:$0xf] %vm1520_vm4, %v6468_v10  ;;  %v969_v19 = vadd.f32 %v8092_v59, %v968_v18  ;;  %v6729_v57 = vpop.f32.mrb[109].mxu0  ;;  %v2345_v43 = vsel %vm2296_vm6, %v11264_v60, %v11263_v47  ;;  %v11093_v9 = vrot.slane %v8230_v34, 2  ;;  %v8250_v30 = vcombine.low %v1656_v55, %v1657_v63  ;;  %6982 = vmatpush1.bf16.msra.mxu1 %v7317_v4 }
 0x211   : > { %v971_v37 = vpop.f32.mrb[110].mxu0  ;;  %v2872_v33 = vshrl.u32 %v8230_v34, 16  ;;  %v2875_v27 = vshll.u32 %v8230_v34, 16  ;;  %v8260_v10 = vsel %vm3360_vm8, %v3447_v0, %v3451_v51  ;;  %v2868_v57 = vrot.slane %v2866_v16, 2  ;;  %6791 = vmatprep.subr.bf16.mxu1 %v11267_v2  ;;  %4593 = vmatpush1.bf16.msra.mxu0 %v7317_v4 }
 0x212   : > { %2422 = vrot.lane.b32.xlu1 %v2345_v43, %s7524_s23  ;;  %11265 = vst [vmem:[#allocation53_spill] sm:$0xff] %v8260_v10  ;;  %v1148_v55 = vmax.f32 %v969_v19, 0.0  ;;  %v972_v49 = vadd.f32 %v8092_v59, %v971_v37  ;;  %v11266_v43 = vrot.slane %v8188_v12, 2  ;;  %v6730_v18 = vpop.f32.mrb[111].mxu0  ;;  %v2094_v47 = vsel %vm1898_vm7, %v2089_v11, %v8239_v58 }
 0x213   : > { %v11095_v35 = vrot.slane %v8230_v34, 1  ;;  %v2099_v0 = vshll.u32 %v8250_v30, 16  ;;  %v11094_v19 = vshrl.u32 %v8250_v30, 16  ;;  %v2874_v10 = vrot.slane %v2872_v33, 1 }
 0x214   : > { %v3074_v7 = vsel %vm3027_vm9, %v11266_v43, %v11093_v9  ;;  %v6469_v60 = vpack.c.bf16 %v1148_v55, %v1148_v55  ;;  %v1149_v37 = vmax.f32 %v972_v49, 0.0  ;;  %v2877_v28 = vrot.slane %v2875_v27, 2 }
 0x215   : > { %3151 = vrot.lane.b32.xlu0 %v3074_v7, %s7525_s26  ;;  %v3453_v16 = vrot.slane %v11094_v19, 2  ;;  %v3454_v11 = vrot.slane %v2099_v0, 3  ;;  %v1658_v43 = vld [vmem:[#allocation2 + $0xd0] sm:$0xf]  ;;  %v8285_v49 = vor.u32 %v2868_v57, %v2865_v44  ;;  %v11280_v62 = vshrl.u32 %v8250_v30, 16 }
 0x216   : > { %2261 = vrot.lane.b32.xlu1 %v2094_v47, %s7525_s26  ;;  %1575 = vst.msk [vmem:[#allocation2 + $0xd8] sm:$0xf] %vm1520_vm4, %v6469_v60  ;;  %v6470_v7 = vpack.c.bf16 %v1149_v37, %v1149_v37  ;;  %v8279_v18 = vcombine.low %v1657_v63, %v1658_v43  ;;  %v8281_v9 = vor.u32 %v2877_v28, %v2874_v10  ;;  %v11268_v60 = vrot.slane %v8188_v12, 1 }
 0x217   : > { %v976_v55 = vpop.f32.mrb[112].mxu0  ;;  %v8283_v33 = vor.u32 %v3454_v11, %v3453_v16  ;;  %v1659_v27 = vld [vmem:[#allocation2 + $0xd4] sm:$0xf]  ;;  %v3243_v28 = vrot.slane %v8250_v30, 2 }
 0x218   : > { %1576 = vst.msk [vmem:[#allocation2 + $0xdc] sm:$0xf] %vm1520_vm4, %v6470_v7  ;;  %v977_v4 = vadd.f32 %v8092_v59, %v976_v55  ;;  %v6733_v47 = vpop.f32.mrb[113].mxu0  ;;  %v2550_v63 = vsel %vm2296_vm6, %v11268_v60, %v11095_v35  ;;  %v8295_v10 = vcombine.low %v1658_v43, %v1659_v27  ;;  %v11098_v37 = vrot.slane %v8279_v18, 2 }
 0x219   : > { %v3456_v44 = vsel %vm3360_vm8, %v3451_v51, %v8283_v33  ;;  %v979_v57 = vpop.f32.mrb[114].mxu0  ;;  %v8304_v16 = vsel %vm2664_vm5, %v8285_v49, %v8281_v9  ;;  %v11096_v43 = vrot.slane %v8196_v8, 2  ;;  %v2884_v55 = vshll.u32 %v8279_v18, 16 }
 0x21a   : > { %2627 = vrot.lane.b32.xlu1 %v2550_v63, %s7526_s11  ;;  %v1150_v12 = vmax.f32 %v977_v4, 0.0  ;;  %3587 = vrot.lane.b32.xlu0 %v3456_v44, %s7526_s11  ;;  %v980_v11 = vadd.f32 %v8092_v59, %v979_v57  ;;  %v6734_v7 = vpop.f32.mrb[115].mxu0  ;;  %v11100_v51 = vshll.u32 %v8295_v10, 16  ;;  %v11099_v47 = vshrl.u32 %v8295_v10, 16 }
 0x21b   : > { %v3244_v19 = vsel %vm3027_vm9, %v11096_v43, %v3243_v28  ;;  %v2881_v4 = vshrl.u32 %v8279_v18, 16  ;;  %v11269_v44 = vrot.slane %v8230_v34, 2  ;;  %v2886_v41 = vrot.slane %v2884_v55, 2 }
 0x21c   : > { %v6471_v60 = vpack.c.bf16 %v1150_v12, %v1150_v12  ;;  %v1151_v63 = vmax.f32 %v980_v11, 0.0  ;;  %v3457_v12 = vrot.slane %v11099_v47, 2  ;;  %v3458_v11 = vrot.slane %v11100_v51, 3 }
 0x21d   : > { %v3076_v57 = vsel %vm3027_vm9, %v11269_v44, %v11098_v37  ;;  %v1660_v35 = vld [vmem:[#allocation2 + $0xd8] sm:$0xf]  ;;  %v8332_v44 = vrot.slane %v2099_v0, 1  ;;  %v11270_v51 = vrot.slane %v8250_v30, 1  ;;  %v2883_v17 = vrot.slane %v2881_v4, 1 }
 0x21e   : > { %3321 = vrot.lane.b32.xlu1 %v3244_v19, %s7524_s23  ;;  %1577 = vst.msk [vmem:[#allocation2 + $0xe0] sm:$0xf] %vm1520_vm4, %v6471_v60  ;;  %v6472_v43 = vpack.c.bf16 %v1151_v63, %v1151_v63  ;;  %3153 = vrot.lane.b32.xlu0 %v3076_v57, %s7525_s26  ;;  %v8329_v19 = vcombine.low %v1659_v27, %v1660_v35  ;;  %v11271_v60 = vrot.slane %v8196_v8, 1  ;;  %v11272_v27 = vshrl.u32 %v8196_v8, 16 }
 0x21f   : > { %v984_v36 = vpop.f32.mrb[116].mxu0  ;;  %v1661_v37 = vld [vmem:[#allocation2 + $0xdc] sm:$0xf]  ;;  %v11273_v0 = vrot.slane %v8295_v10, 2  ;;  %v2887_v55 = vor.u32 %v2886_v41, %v2883_v17 }
 0x220   : > { %1578 = vst.msk [vmem:[#allocation2 + $0xe4] sm:$0xf] %vm1520_vm4, %v6472_v43  ;;  %v985_v47 = vadd.f32 %v8092_v59, %v984_v36  ;;  %v6737_v7 = vpop.f32.mrb[117].mxu0  ;;  %v2347_v63 = vsel %vm2296_vm6, %v11271_v60, %v11270_v51  ;;  %v2097_v57 = vor.u32 %v11272_v27, %v8239_v58  ;;  %v8348_v36 = vor.u32 %v3458_v11, %v3457_v12 }
 0x221   : > { %v3246_v43 = vsel %vm3027_vm9, %v3243_v28, %v11273_v0  ;;  %v987_v26 = vpop.f32.mrb[118].mxu0  ;;  %v8350_v7 = vcombine.low %v1660_v35, %v1661_v37  ;;  %v2890_v58 = vshrl.u32 %v8329_v19, 16  ;;  %v2893_v28 = vshll.u32 %v8329_v19, 16 }
 0x222   : > { %2424 = vrot.lane.b32.xlu1 %v2347_v63, %s7524_s23  ;;  %v1152_v38 = vmax.f32 %v985_v47, 0.0  ;;  %3323 = vrot.lane.b32.xlu0 %v3246_v43, %s7524_s23  ;;  %v988_v51 = vadd.f32 %v8092_v59, %v987_v26  ;;  %v6738_v60 = vpop.f32.mrb[119].mxu0  ;;  %v2102_v4 = vsel %vm1898_vm7, %v2097_v57, %v8332_v44  ;;  %v11103_v63 = vrot.slane %v8279_v18, 1 }
 0x223   : > { %v11104_v35 = vrot.slane %v8329_v19, 2  ;;  %v3460_v26 = vsel %vm3360_vm8, %v8283_v33, %v8348_v36  ;;  %v11106_v47 = vshll.u32 %v8350_v7, 16  ;;  %v11105_v27 = vshrl.u32 %v8350_v7, 16 }
 0x224   : > { %v6473_v12 = vpack.c.bf16 %v1152_v38, %v1152_v38  ;;  %v1153_v11 = vmax.f32 %v988_v51, 0.0  ;;  %v8372_v41 = vsel %vm2664_vm5, %v8281_v9, %v2887_v55  ;;  %v2892_v17 = vrot.slane %v2890_v58, 1 }
 0x225   : > { %v1662_v57 = vld [vmem:[#allocation2 + $0xe0] sm:$0xf]  ;;  %v11107_v33 = vrot.slane %v8295_v10, 1  ;;  %v2895_v51 = vrot.slane %v2893_v28, 2  ;;  %v11275_v9 = vrot.slane %v8279_v18, 2 }
 0x226   : > { %2263 = vrot.lane.b32.xlu1 %v2102_v4, %s7525_s26  ;;  %1579 = vst.msk [vmem:[#allocation2 + $0xe8] sm:$0xf] %vm1520_vm4, %v6473_v12  ;;  %v6474_v0 = vpack.c.bf16 %v1153_v11, %v1153_v11  ;;  %3589 = vrot.lane.b32.xlu0 %v3460_v26, %s7526_s11  ;;  %v8368_v38 = vcombine.low %v1661_v37, %v1662_v57  ;;  %v11274_v4 = vrot.slane %v8230_v34, 1  ;;  %v3461_v26 = vrot.slane %v11105_v27, 2 }
 0x227   : > { %v992_v43 = vpop.f32.mrb[120].mxu0  ;;  %v3078_v58 = vsel %vm3027_vm9, %v11275_v9, %v11104_v35  ;;  %v3462_v34 = vrot.slane %v11106_v47, 3  ;;  %v1663_v9 = vld [vmem:[#allocation2 + $0xe4] sm:$0xf]  ;;  %v11276_v35 = vrot.slane %v8250_v30, 1 }
 0x228   : > { %1580 = vst.msk [vmem:[#allocation2 + $0xec] sm:$0xf] %vm1520_vm4, %v6474_v0  ;;  %v993_v60 = vadd.f32 %v8092_v59, %v992_v43  ;;  %v2552_v37 = vsel %vm2296_vm6, %v11274_v4, %v11103_v63  ;;  %v6741_v12 = vpop.f32.mrb[121].mxu0  ;;  %v2896_v0 = vor.u32 %v2895_v51, %v2892_v17  ;;  %v11277_v17 = vshll.u32 %v8295_v10, 16 }
 0x229   : > { %v995_v11 = vpop.f32.mrb[122].mxu0  ;;  %v2899_v12 = vshrl.u32 %v8368_v38, 16  ;;  %v2349_v27 = vsel %vm2296_vm6, %v11276_v35, %v11107_v33  ;;  %v2105_v35 = vor.u32 %v11280_v62, %v8332_v44 }
 0x22a   : > { %2629 = vrot.lane.b32.xlu1 %v2552_v37, %s7526_s11  ;;  %v1154_v43 = vmax.f32 %v993_v60, 0.0  ;;  %3155 = vrot.lane.b32.xlu0 %v3078_v58, %s7525_s26  ;;  %v996_v4 = vadd.f32 %v8092_v59, %v995_v11  ;;  %v6742_v63 = vpop.f32.mrb[123].mxu0  ;;  %v2902_v37 = vshll.u32 %v8368_v38, 16  ;;  %v2109_v51 = vrot.slane %v11277_v17, 1 }
 0x22b   : > { %v8405_v60 = vsel %vm2664_vm5, %v2887_v55, %v2896_v0  ;;  %v11278_v63 = vrot.slane %v8350_v7, 2  ;;  %v11279_v58 = vrot.slane %v8295_v10, 2  ;;  %v2901_v33 = vrot.slane %v2899_v12, 1 }
 0x22c   : > { %v6475_v28 = vpack.c.bf16 %v1154_v43, %v1154_v43  ;;  %v1155_v47 = vmax.f32 %v996_v4, 0.0  ;;  %v8416_v43 = vor.u32 %v3462_v34, %v3461_v26  ;;  %v8418_v4 = vcombine.low %v1662_v57, %v1663_v9 }
 0x22d   : > { %v3248_v11 = vsel %vm3027_vm9, %v11279_v58, %v11278_v63  ;;  %v1664_v17 = vld [vmem:[#allocation2 + $0xe8] sm:$0xf]  ;;  %v2904_v39 = vrot.slane %v2902_v37, 2  ;;  %v11108_v63 = vrot.slane %v8329_v19, 1  ;;  %v2110_v44 = vsel %vm1898_vm7, %v2105_v35, %v2109_v51 }
 0x22e   : > { %2426 = vrot.lane.b32.xlu1 %v2349_v27, %s7524_s23  ;;  %11281 = vst [vmem:[#allocation54_spill] sm:$0xff] %v8418_v4  ;;  %1581 = vst.msk [vmem:[#allocation2 + $0xf0] sm:$0xf] %vm1520_vm4, %v6475_v28  ;;  %3325 = vrot.lane.b32.xlu0 %v3248_v11, %s7524_s23  ;;  %v6476_v55 = vpack.c.bf16 %v1155_v47, %v1155_v47  ;;  %v8422_v27 = vcombine.low %v1663_v9, %v1664_v17  ;;  %v11109_v57 = vrot.slane %v8368_v38, 2 }
 0x22f   : > { %v1000_v5 = vpop.f32.mrb[124].mxu0  ;;  %v3464_v47 = vsel %vm3360_vm8, %v8348_v36, %v8416_v43  ;;  %v11111_v34 = vshll.u32 %v8418_v4, 16  ;;  %v11110_v9 = vshrl.u32 %v8418_v4, 16  ;;  %v2905_v12 = vor.u32 %v2904_v39, %v2901_v33 }
 0x230   : > { %1582 = vst.msk [vmem:[#allocation2 + $0xf4] sm:$0xf] %vm1520_vm4, %v6476_v55  ;;  %v1001_v62 = vadd.f32 %v8092_v59, %v1000_v5  ;;  %v6745_v26 = vpop.f32.mrb[125].mxu0  ;;  %v2908_v11 = vshrl.u32 %v8422_v27, 16  ;;  %v2911_v35 = vshll.u32 %v8422_v27, 16  ;;  %v11282_v36 = vrot.slane %v8279_v18, 1 }
 0x231   : > { %v1003_v28 = vpop.f32.mrb[126].mxu0  ;;  %v3465_v18 = vrot.slane %v11110_v9, 2 }
 0x232   : > { %2265 = vrot.lane.b32.xlu1 %v2110_v44, %s7525_s26  ;;  %v1156_v37 = vmax.f32 %v1001_v62, 0.0  ;;  %3591 = vrot.lane.b32.xlu0 %v3464_v47, %s7526_s11  ;;  %v1004_v5 = vadd.f32 %v8092_v59, %v1003_v28  ;;  %v6746_v58 = vpop.f32.mrb[127].mxu0  ;;  %v2554_v55 = vsel %vm2296_vm6, %v11282_v36, %v11108_v63  ;;  %v11116_v44 = vrot.slane %v8350_v7, 1 }
 0x233   : > { %v8447_v62 = vsel %vm2664_vm5, %v2896_v0, %v2905_v12  ;;  %v11283_v47 = vrot.slane %v8329_v19, 2  ;;  %v2913_v63 = vrot.slane %v2911_v35, 2  ;;  %v11287_v35 = vrot.slane %v8418_v4, 2 }
 0x234   : > { %v6477_v26 = vpack.c.bf16 %v1156_v37, %v1156_v37  ;;  %v1157_v39 = vmax.f32 %v1004_v5, 0.0  ;;  %v3466_v37 = vrot.slane %v11111_v34, 3  ;;  %v1665_v5 = vld [vmem:[#allocation2 + $0xec] sm:$0xf]  ;;  %v11285_v34 = vrot.slane %v8295_v10, 1 }
 0x235   : > { %v3080_v28 = vsel %vm3027_vm9, %v11283_v47, %v11109_v57  ;;  %v8459_v58 = vld [vmem:[#allocation2 + $0xf0] sm:$0xf]  ;;  %v11284_v57 = vshll.u32 %v8350_v7, 16  ;;  %v8487_v46 = vcombine.low %v1664_v17, %v1665_v5  ;;  %v11118_v17 = vrot.slane %v8422_v27, 2 }
 0x236   : > { %2631 = vrot.lane.b32.xlu1 %v2554_v55, %s7526_s11  ;;  %1583 = vst.msk [vmem:[#allocation2 + $0xf8] sm:$0xf] %vm1520_vm4, %v6477_v26  ;;  %3157 = vrot.lane.b32.xlu0 %v3080_v28, %s7525_s26  ;;  %v6478_v0 = vpack.c.bf16 %v1157_v39, %v1157_v39  ;;  %v8464_v36 = vcombine.low %v1665_v5, %v8459_v58  ;;  %v2910_v55 = vrot.slane %v2908_v11, 1  ;;  %v11286_v28 = vshrl.u32 %v8295_v10, 16 }
 0x237   : > { %v1008_v47 = vpop.f32.mrb[128].mxu0  ;;  %v8468_v9 = vrot.slane %v11284_v57, 1  ;;  %v2351_v26 = vsel %vm2296_vm6, %v11285_v34, %v11116_v44  ;;  %v11288_v57 = vrot.slane %v8350_v7, 2  ;;  %v8485_v1 = vor.u32 %v3466_v37, %v3465_v18  ;;  %11289 = vst [vmem:[#allocation55_spill] sm:$0xff] %v8487_v46 }
 0x238   : > { %1584 = vst.msk [vmem:[#allocation2 + $0xfc] sm:$0xf] %vm1520_vm4, %v6478_v0  ;;  %v1009_v39 = vadd.f32 %v8092_v59, %v1008_v47  ;;  %v2113_v33 = vor.u32 %v11286_v28, %v2109_v51  ;;  %v6749_v11 = vpop.f32.mrb[129].mxu0  ;;  %v2914_v34 = vor.u32 %v2913_v63, %v2910_v55  ;;  %v11117_v18 = vrot.slane %v8368_v38, 1 }
 0x239   : > { %v3250_v0 = vsel %vm3027_vm9, %v11288_v57, %v11287_v35  ;;  %v1011_v22 = vpop.f32.mrb[130].mxu0  ;;  %v2920_v11 = vshll.u32 %v8464_v36, 16  ;;  %v11120_v55 = vshll.u32 %v8487_v46, 16  ;;  %v11307_v24 = vrot.slane %v8487_v46, 1 }
 0x23a   : > { %2428 = vrot.lane.b32.xlu1 %v2351_v26, %s7524_s23  ;;  %3327 = vrot.lane.b32.xlu0 %v3250_v0, %s7524_s23  ;;  %v1158_v47 = vmax.f32 %v1009_v39, 0.0  ;;  %v1012_v51 = vadd.f32 %v8092_v59, %v1011_v22  ;;  %v6750_v28 = vpop.f32.mrb[131].mxu0  ;;  %v2917_v26 = vshrl.u32 %v8464_v36, 16  ;;  %v2118_v44 = vsel %vm1898_vm7, %v2113_v33, %v8468_v9  ;;  %v1667_v33 = vld [vmem:[#allocation2 + $0xf4] sm:$0xf] }
 0x23b   : > { %v8498_v63 = vsel %vm2664_vm5, %v2905_v12, %v2914_v34  ;;  %v3468_v22 = vsel %vm3360_vm8, %v8416_v43, %v8485_v1  ;;  %v11119_v39 = vshrl.u32 %v8487_v46, 16  ;;  %v2922_v0 = vrot.slane %v2920_v11, 2 }
 0x23c   : > { %v6479_v37 = vpack.c.bf16 %v1158_v47, %v1158_v47  ;;  %v1159_v5 = vmax.f32 %v1012_v51, 0.0  ;;  %v11290_v51 = vrot.slane %v8329_v19, 1 }
 0x23d   : > { %v8506_v35 = vld [vmem:[#allocation2 + $0xf8] sm:$0xf]  ;;  %v3469_v19 = vrot.slane %v11119_v39, 2 }
 0x23e   : > { %2267 = vrot.lane.b32.xlu1 %v2118_v44, %s7525_s26  ;;  %1585 = vst.msk [vmem:[#allocation2 + $0x100] sm:$0xf] %vm1520_vm4, %v6479_v37  ;;  %3593 = vrot.lane.b32.xlu0 %v3468_v22, %s7526_s11  ;;  %v6480_v57 = vpack.c.bf16 %v1159_v5, %v1159_v5  ;;  %v8511_v12 = vcombine.low %v1667_v33, %v8506_v35  ;;  %v2919_v44 = vrot.slane %v2917_v26, 1  ;;  %v11291_v37 = vrot.slane %v8368_v38, 2 }
 0x23f   : > { %v1016_v43 = vpop.f32.mrb[132].mxu0  ;;  %v2556_v28 = vsel %vm2296_vm6, %v11290_v51, %v11117_v18  ;;  %v3470_v51 = vrot.slane %v11120_v55, 3  ;;  %v11293_v22 = vrot.slane %v8350_v7, 1  ;;  %v8541_v20 = vld [vmem:[#allocation2 + $0xfc] sm:$0xf] }
 0x240   : > { %v3082_v5 = vsel %vm3027_vm9, %v11291_v37, %v11118_v17  ;;  %1586 = vst.msk [vmem:[#allocation2 + $0x104] sm:$0xf] %vm1520_vm4, %v6480_v57  ;;  %v1017_v26 = vadd.f32 %v8092_v59, %v1016_v43  ;;  %v6753_v11 = vpop.f32.mrb[133].mxu0  ;;  %v2923_v47 = vor.u32 %v2922_v0, %v2919_v44  ;;  %v2926_v43 = vshrl.u32 %v8511_v12, 16 }
 0x241   : > { %v1019_v18 = vpop.f32.mrb[134].mxu0  ;;  %v11292_v11 = vrot.slane %v8418_v4, 1  ;;  %v11294_v44 = vshll.u32 %v8418_v4, 16 }
 0x242   : > { %2633 = vrot.lane.b32.xlu1 %v2556_v28, %s7526_s11  ;;  %3159 = vrot.lane.b32.xlu0 %v3082_v5, %s7525_s26  ;;  %v1160_v37 = vmax.f32 %v1017_v26, 0.0  ;;  %v1020_v57 = vadd.f32 %v8092_v59, %v1019_v18  ;;  %v6754_v17 = vpop.f32.mrb[135].mxu0  ;;  %v2929_v28 = vshll.u32 %v8511_v12, 16  ;;  %v8546_v18 = vsel %vm2664_vm5, %v2914_v34, %v2923_v47 }
 0x243   : > { %v2353_v39 = vsel %vm2296_vm6, %v11293_v22, %v11292_v11  ;;  %v2125_v0 = vrot.slane %v11294_v44, 1  ;;  %v11295_v17 = vrot.slane %v8487_v46, 2  ;;  %v11296_v26 = vrot.slane %v8418_v4, 2 }
 0x244   : > { %v6481_v55 = vpack.c.bf16 %v1160_v37, %v1160_v37  ;;  %v1161_v5 = vmax.f32 %v1020_v57, 0.0  ;;  %v11297_v22 = vshrl.u32 %v8350_v7, 16  ;;  %v8557_v37 = vor.u32 %v3470_v51, %v3469_v19 }
 0x245   : > { %v3252_v32 = vsel %vm3027_vm9, %v11296_v26, %v11295_v17  ;;  %v8560_v44 = vcombine.low %v8459_v58, %v1667_v33  ;;  %v8562_v57 = vld [vmem:[#allocation2 + $0x100] sm:$0xf]  ;;  %v2928_v17 = vrot.slane %v2926_v43, 1  ;;  %v2931_v26 = vrot.slane %v2929_v28, 2 }
 0x246   : > { %2430 = vrot.lane.b32.xlu1 %v2353_v39, %s7524_s23  ;;  %v2121_v11 = vor.u32 %v11297_v22, %v8468_v9  ;;  %3329 = vrot.lane.b32.xlu0 %v3252_v32, %s7524_s23  ;;  %1587 = vst.msk [vmem:[#allocation2 + $0x108] sm:$0xf] %vm1520_vm4, %v6481_v55  ;;  %v6482_v34 = vpack.c.bf16 %v1161_v5, %v1161_v5  ;;  %v11123_v9 = vrot.slane %v8422_v27, 1 }
 0x247   : > { %11298 = vst [vmem:[#allocation56_spill] sm:$0xff] %v8560_v44  ;;  %v8568_v39 = vcombine.low %v8541_v20, %v8562_v57  ;;  %v1024_v19 = vpop.f32.mrb[136].mxu0  ;;  %v3472_v55 = vsel %vm3360_vm8, %v8485_v1, %v8557_v37  ;;  %v2932_v22 = vor.u32 %v2931_v26, %v2928_v17  ;;  %v11299_v1 = vrot.slane %v8368_v38, 1  ;;  %v8590_v43 = vld [vmem:[#allocation2 + $0x104] sm:$0xf] }
 0x248   : > { %v2126_v51 = vsel %vm1898_vm7, %v2121_v11, %v2125_v0  ;;  %1588 = vst.msk [vmem:[#allocation2 + $0x10c] sm:$0xf] %vm1520_vm4, %v6482_v34  ;;  %v1025_v32 = vadd.f32 %v8092_v59, %v1024_v19  ;;  %v6757_v33 = vpop.f32.mrb[137].mxu0  ;;  %v11304_v17 = vshll.u32 %v8560_v44, 16  ;;  %v11305_v38 = vshrl.u32 %v8418_v4, 16 }
 0x249   : > { %v1027_v5 = vpop.f32.mrb[138].mxu0  ;;  %v2935_v19 = vshrl.u32 %v8568_v39, 16  ;;  %v2558_v33 = vsel %vm2296_vm6, %v11299_v1, %v11123_v9  ;;  %v11303_v1 = vshrl.u32 %v8560_v44, 16  ;;  %v11322_v15 = vrot.slane %v8560_v44, 2 }
 0x24a   : > { %2269 = vrot.lane.b32.xlu1 %v2126_v51, %s7525_s26  ;;  %3595 = vrot.lane.b32.xlu0 %v3472_v55, %s7526_s11  ;;  %v1162_v11 = vmax.f32 %v1025_v32, 0.0  ;;  %v1028_v34 = vadd.f32 %v8092_v59, %v1027_v5  ;;  %v6758_v58 = vpop.f32.mrb[139].mxu0  ;;  %v2938_v51 = vshll.u32 %v8568_v39, 16  ;;  %v8594_v32 = vsel %vm2664_vm5, %v2923_v47, %v2932_v22 }
 0x24b   : > { %11300 = vst [vmem:[#allocation57_spill] sm:$0xff] %v8594_v32  ;;  %v11301_v58 = vrot.slane %v8464_v36, 2  ;;  %v11302_v5 = vrot.slane %v8422_v27, 2  ;;  %v3473_v9 = vrot.slane %v11303_v1, 2  ;;  %v2129_v54 = vor.u32 %v11305_v38, %v2125_v0 }
 0x24c   : > { %v6483_v26 = vpack.c.bf16 %v1162_v11, %v1162_v11  ;;  %v1163_v55 = vmax.f32 %v1028_v34, 0.0  ;;  %v3474_v11 = vrot.slane %v11304_v17, 3  ;;  %v11306_v1 = vshll.u32 %v8487_v46, 16 }
 0x24d   : > { %v3084_v28 = vsel %vm3027_vm9, %v11302_v5, %v11301_v58  ;;  %v8607_v34 = vld [vmem:[#allocation2 + $0x108] sm:$0xf]  ;;  %v2937_v58 = vrot.slane %v2935_v19, 1  ;;  %v2940_v5 = vrot.slane %v2938_v51, 2  ;;  %v11309_v19 = vrot.slane %v8560_v44, 2 }
 0x24e   : > { %2635 = vrot.lane.b32.xlu1 %v2558_v33, %s7526_s11  ;;  %3161 = vrot.lane.b32.xlu0 %v3084_v28, %s7525_s26  ;;  %1589 = vst.msk [vmem:[#allocation2 + $0x110] sm:$0xf] %vm1520_vm4, %v6483_v26  ;;  %v6484_v47 = vpack.c.bf16 %v1163_v55, %v1163_v55  ;;  %v8613_v33 = vcombine.low %v8590_v43, %v8607_v34  ;;  %v2133_v42 = vrot.slane %v11306_v1, 1  ;;  %v11308_v28 = vrot.slane %v8418_v4, 1 }
 0x24f   : > { %v1032_v17 = vpop.f32.mrb[140].mxu0  ;;  %v11310_v0 = vrot.slane %v8487_v46, 2  ;;  %v8632_v38 = vor.u32 %v3474_v11, %v3473_v9  ;;  %v8636_v1 = vcombine.low %v8506_v35, %v8541_v20  ;;  %v11128_v9 = vrot.slane %v8464_v36, 1  ;;  %v8644_v11 = vld [vmem:[#allocation2 + $0x10c] sm:$0xf] }
 0x250   : > { %v2355_v26 = vsel %vm2296_vm6, %v11308_v28, %v11307_v24  ;;  %1590 = vst.msk [vmem:[#allocation2 + $0x114] sm:$0xf] %vm1520_vm4, %v6484_v47  ;;  %v1033_v55 = vadd.f32 %v8092_v59, %v1032_v17  ;;  %v6761_v14 = vpop.f32.mrb[141].mxu0  ;;  %v2941_v28 = vor.u32 %v2940_v5, %v2937_v58  ;;  %v2947_v6 = vshll.u32 %v8613_v33, 16 }
 0x251   : > { %v3254_v51 = vsel %vm3027_vm9, %v11310_v0, %v11309_v19  ;;  %11311 = vst [vmem:[#allocation58_spill] sm:$0xff] %v8636_v1  ;;  %v1035_v24 = vpop.f32.mrb[142].mxu0  ;;  %v2134_v19 = vsel %vm1898_vm7, %v2129_v54, %v2133_v42  ;;  %v11131_v20 = vrot.slane %v8511_v12, 2  ;;  %v11132_v54 = vshrl.u32 %v8636_v1, 16 }
 0x252   : > { %2432 = vrot.lane.b32.xlu1 %v2355_v26, %s7524_s23  ;;  %3331 = vrot.lane.b32.xlu0 %v3254_v51, %s7524_s23  ;;  %v1164_v47 = vmax.f32 %v1033_v55, 0.0  ;;  %v1036_v14 = vadd.f32 %v8092_v59, %v1035_v24  ;;  %v6762_v17 = vpop.f32.mrb[143].mxu0  ;;  %v2944_v26 = vshrl.u32 %v8613_v33, 16  ;;  %v8648_v5 = vsel %vm2664_vm5, %v2932_v22, %v2941_v28 }
 0x253   : > { %11312 = vst [vmem:[#allocation59_spill] sm:$0xff] %v8648_v5  ;;  %v3476_v55 = vsel %vm3360_vm8, %v8557_v37, %v8632_v38  ;;  %v11321_v53 = vrot.slane %v8636_v1, 2 }
 0x254   : > { %v6485_v35 = vpack.c.bf16 %v1164_v47, %v1164_v47  ;;  %v1165_v58 = vmax.f32 %v1036_v14, 0.0  ;;  %v2946_v47 = vrot.slane %v2944_v26, 1  ;;  %v2949_v14 = vrot.slane %v2947_v6, 2 }
 0x255   : > { %v8656_v51 = vld [vmem:[#allocation2 + $0x110] sm:$0xf] }
 0x256   : > { %2271 = vrot.lane.b32.xlu1 %v2134_v19, %s7525_s26  ;;  %3597 = vrot.lane.b32.xlu0 %v3476_v55, %s7526_s11  ;;  %1591 = vst.msk [vmem:[#allocation2 + $0x118] sm:$0xf] %vm1520_vm4, %v6485_v35  ;;  %v6486_v24 = vpack.c.bf16 %v1165_v58, %v1165_v58  ;;  %v8662_v22 = vcombine.low %v8644_v11, %v8656_v51  ;;  %v11313_v19 = vrot.slane %v8422_v27, 1  ;;  %v11314_v35 = vrot.slane %v8464_v36, 2 }
 0x257   : > { %v1040_v37 = vpop.f32.mrb[144].mxu0  ;;  %v3477_v27 = vrot.slane %v11132_v54, 2  ;;  %v2950_v40 = vor.u32 %v2949_v14, %v2946_v47  ;;  %v11317_v54 = vrot.slane %v8487_v46, 1  ;;  %v11318_v47 = vshrl.u32 %v8487_v46, 16 }
 0x258   : > { %v2560_v0 = vsel %vm2296_vm6, %v11313_v19, %v11128_v9  ;;  %v3086_v58 = vsel %vm3027_vm9, %v11314_v35, %v11131_v20  ;;  %1592 = vst.msk [vmem:[#allocation2 + $0x11c] sm:$0xf] %vm1520_vm4, %v6486_v24  ;;  %v1041_v26 = vadd.f32 %v8092_v59, %v1040_v37  ;;  %v6765_v6 = vpop.f32.mrb[145].mxu0  ;;  %v11315_v19 = vshll.u32 %v8636_v1, 16  ;;  %v8684_v20 = vld [vmem:[#allocation7] ss:$0 sm:$0xff] }
 0x259   : > { %v1043_v17 = vpop.f32.mrb[146].mxu0  ;;  %v2956_v37 = vshll.u32 %v8662_v22, 16  ;;  %v11316_v6 = vrot.slane %v8560_v44, 1  ;;  %v2137_v14 = vor.u32 %v11318_v47, %v2133_v42  ;;  %v8701_v13 = vsel %vm2664_vm5, %v2941_v28, %v2950_v40 }
 0x25a   : > { %2637 = vrot.lane.b32.xlu1 %v2560_v0, %s7526_s11  ;;  %v3478_v9 = vrot.slane %v11315_v19, 3  ;;  %3163 = vrot.lane.b32.xlu0 %v3086_v58, %s7525_s26  ;;  %v1166_v35 = vmax.f32 %v1041_v26, 0.0  ;;  %v1044_v59 = vadd.f32 %v8684_v20, %v1043_v17  ;;  %v6766_v24 = vpop.f32.mrb[147].mxu0  ;;  %v2953_v0 = vshrl.u32 %v8662_v22, 16  ;;  %v8696_v58 = vld [vmem:[#allocation2 + $0x114] sm:$0xf] }
 0x25b   : > { %v2357_v19 = vsel %vm2296_vm6, %v11317_v54, %v11316_v6  ;;  %v11319_v26 = vshll.u32 %v8560_v44, 16  ;;  %11320 = vst [vmem:[#allocation60_spill] sm:$0xff] %v8701_v13  ;;  %v3256_v54 = vsel %vm3027_vm9, %v11322_v15, %v11321_v53  ;;  %v8713_v42 = vcombine.low %v8562_v57, %v8590_v43 }
 0x25c   : > { %v6487_v17 = vpack.c.bf16 %v1166_v35, %v1166_v35  ;;  %v1167_v24 = vmax.f32 %v1044_v59, 0.0  ;;  %v8709_v6 = vor.u32 %v3478_v9, %v3477_v27  ;;  %v2955_v59 = vrot.slane %v2953_v0, 1 }
 0x25d   : > { %v2141_v55 = vrot.slane %v11319_v26, 1  ;;  %11323 = vst [vmem:[#allocation61_spill] sm:$0xff] %v8713_v42  ;;  %v8715_v47 = vld [vmem:[#allocation2 + $0x118] sm:$0xf]  ;;  %v11139_v15 = vrot.slane %v8511_v12, 1  ;;  %v11140_v57 = vrot.slane %v8568_v39, 2 }
 0x25e   : > { %2434 = vrot.lane.b32.xlu1 %v2357_v19, %s7524_s23  ;;  %3333 = vrot.lane.b32.xlu0 %v3256_v54, %s7524_s23  ;;  %1593 = vst.msk [vmem:[#allocation2 + $0x120] sm:$0xf] %vm1520_vm4, %v6487_v17  ;;  %v6488_v28 = vpack.c.bf16 %v1167_v24, %v1167_v24  ;;  %v8721_v35 = vcombine.low %v8696_v58, %v8715_v47  ;;  %v2958_v19 = vrot.slane %v2956_v37, 2  ;;  %v11141_v37 = vshrl.u32 %v8713_v42, 16 }
 0x25f   : > { %v1048_v53 = vpop.f32.mrb[148].mxu0  ;;  %v2142_v9 = vsel %vm1898_vm7, %v2137_v14, %v2141_v55  ;;  %v3480_v26 = vsel %vm3360_vm8, %v8632_v38, %v8709_v6  ;;  %v11324_v38 = vrot.slane %v8464_v36, 1  ;;  %v8743_v0 = vld [vmem:[#allocation2 + $0x11c] sm:$0xf]  ;;  %v11328_v36 = vshrl.u32 %v8560_v44, 16 }
 0x260   : > { %1594 = vst.msk [vmem:[#allocation2 + $0x124] sm:$0xf] %vm1520_vm4, %v6488_v28  ;;  %v1049_v43 = vadd.f32 %v8684_v20, %v1048_v53  ;;  %v6769_v27 = vpop.f32.mrb[149].mxu0  ;;  %v2959_v24 = vor.u32 %v2958_v19, %v2955_v59  ;;  %v2962_v53 = vshrl.u32 %v8721_v35, 16  ;;  %v8917_v5 = vcombine.low %v8715_v47, %v8743_v0 }
 0x261   : > { %v1051_v17 = vpop.f32.mrb[150].mxu0  ;;  %v2562_v27 = vsel %vm2296_vm6, %v11324_v38, %v11139_v15  ;;  %v3481_v38 = vrot.slane %v11141_v37, 2  ;;  %v11327_v15 = vshll.u32 %v8713_v42, 16  ;;  %v2145_v59 = vor.u32 %v11328_v36, %v2141_v55 }
 0x262   : > { %2273 = vrot.lane.b32.xlu1 %v2142_v9, %s7525_s26  ;;  %3599 = vrot.lane.b32.xlu0 %v3480_v26, %s7526_s11  ;;  %v1168_v14 = vmax.f32 %v1049_v43, 0.0  ;;  %v1052_v54 = vadd.f32 %v8684_v20, %v1051_v17  ;;  %v6770_v28 = vpop.f32.mrb[151].mxu0  ;;  %v2965_v9 = vshll.u32 %v8721_v35, 16  ;;  %v8747_v43 = vsel %vm2664_vm5, %v2950_v40, %v2959_v24  ;;  %11349 = vst [vmem:[#allocation66_spill] sm:$0xff] %v8917_v5 }
 0x263   : > { %11325 = vst [vmem:[#allocation62_spill] sm:$0xff] %v8747_v43  ;;  %v11326_v17 = vrot.slane %v8511_v12, 2  ;;  %v11329_v37 = vshll.u32 %v8636_v1, 16  ;;  %v11333_v55 = vrot.slane %v8713_v42, 2  ;;  %v11151_v43 = vrot.slane %v8568_v39, 1 }
 0x264   : > { %v6489_v19 = vpack.c.bf16 %v1168_v14, %v1168_v14  ;;  %v1169_v26 = vmax.f32 %v1052_v54, 0.0  ;;  %v3482_v14 = vrot.slane %v11327_v15, 3  ;;  %v8774_v15 = vcombine.low %v8607_v34, %v8644_v11 }
 0x265   : > { %v3088_v28 = vsel %vm3027_vm9, %v11326_v17, %v11140_v57  ;;  %v8760_v54 = vld [vmem:[#allocation2 + $0x120] sm:$0xf]  ;;  %v2964_v17 = vrot.slane %v2962_v53, 1  ;;  %v2967_v57 = vrot.slane %v2965_v9, 2  ;;  %v2149_v61 = vrot.slane %v11329_v37, 1 }
 0x266   : > { %2639 = vrot.lane.b32.xlu1 %v2562_v27, %s7526_s11  ;;  %3165 = vrot.lane.b32.xlu0 %v3088_v28, %s7525_s26  ;;  %1595 = vst.msk [vmem:[#allocation2 + $0x128] sm:$0xf] %vm1520_vm4, %v6489_v19  ;;  %v6490_v40 = vpack.c.bf16 %v1169_v26, %v1169_v26  ;;  %v8766_v27 = vcombine.low %v8743_v0, %v8760_v54  ;;  %11330 = vst [vmem:[#allocation63_spill] sm:$0xff] %v8774_v15  ;;  %v11331_v19 = vrot.slane %v8636_v1, 1 }
 0x267   : > { %v1056_v28 = vpop.f32.mrb[152].mxu0  ;;  %v11332_v26 = vrot.slane %v8560_v44, 1  ;;  %v11334_v37 = vrot.slane %v8636_v1, 2  ;;  %v8789_v11 = vor.u32 %v3482_v14, %v3481_v38  ;;  %v2968_v3 = vor.u32 %v2967_v57, %v2964_v17 }
 0x268   : > { %1596 = vst.msk [vmem:[#allocation2 + $0x12c] sm:$0xf] %vm1520_vm4, %v6490_v40  ;;  %v1057_v53 = vadd.f32 %v8684_v20, %v1056_v28  ;;  %v6773_v9 = vpop.f32.mrb[153].mxu0  ;;  %v2971_v28 = vshrl.u32 %v8766_v27, 16  ;;  %v11148_v38 = vshrl.u32 %v8774_v15, 16  ;;  %v11353_v0 = vshll.u32 %v8774_v15, 16 }
 0x269   : > { %v2359_v25 = vsel %vm2296_vm6, %v11332_v26, %v11331_v19  ;;  %v3258_v34 = vsel %vm3027_vm9, %v11334_v37, %v11333_v55  ;;  %v1059_v36 = vpop.f32.mrb[154].mxu0  ;;  %v2150_v9 = vsel %vm1898_vm7, %v2145_v59, %v2149_v61  ;;  %v11149_v55 = vshll.u32 %v8774_v15, 16 }
 0x26a   : > { %2436 = vrot.lane.b32.xlu1 %v2359_v25, %s7524_s23  ;;  %3335 = vrot.lane.b32.xlu0 %v3258_v34, %s7524_s23  ;;  %v1170_v19 = vmax.f32 %v1057_v53, 0.0  ;;  %v1060_v40 = vadd.f32 %v8684_v20, %v1059_v36  ;;  %v6774_v26 = vpop.f32.mrb[155].mxu0  ;;  %v2974_v25 = vshll.u32 %v8766_v27, 16  ;;  %v8800_v17 = vsel %vm2664_vm5, %v2959_v24, %v2968_v3 }
 0x26b   : > { %11335 = vst [vmem:[#allocation64_spill] sm:$0xff] %v8800_v17  ;;  %v3484_v53 = vsel %vm3360_vm8, %v8709_v6, %v8789_v11  ;;  %v11150_v37 = vrot.slane %v8613_v33, 2  ;;  %v2973_v34 = vrot.slane %v2971_v28, 1  ;;  %v11336_v24 = vrot.slane %v8511_v12, 1 }
 0x26c   : > { %v6491_v14 = vpack.c.bf16 %v1170_v19, %v1170_v19  ;;  %v1171_v57 = vmax.f32 %v1060_v40, 0.0  ;;  %v2976_v36 = vrot.slane %v2974_v25, 2  ;;  %v11154_v19 = vrot.slane %v8713_v42, 1 }
 0x26d   : > { %v2564_v26 = vsel %vm2296_vm6, %v11336_v24, %v11151_v43  ;;  %v3485_v6 = vrot.slane %v11148_v38, 2  ;;  %v8829_v38 = vld [vmem:[#allocation2 + $0x124] sm:$0xf]  ;;  %v11340_v43 = vshll.u32 %v8713_v42, 16  ;;  %v11355_v32 = vrot.slane %v8774_v15, 2 }
 0x26e   : > { %2275 = vrot.lane.b32.xlu1 %v2150_v9, %s7525_s26  ;;  %3601 = vrot.lane.b32.xlu0 %v3484_v53, %s7526_s11  ;;  %1597 = vst.msk [vmem:[#allocation2 + $0x130] sm:$0xf] %vm1520_vm4, %v6491_v14  ;;  %v6492_v59 = vpack.c.bf16 %v1171_v57, %v1171_v57  ;;  %v3486_v9 = vrot.slane %v11149_v55, 3  ;;  %v11337_v14 = vrot.slane %v8568_v39, 2 }
 0x26f   : > { %v1064_v40 = vpop.f32.mrb[156].mxu0  ;;  %v8836_v55 = vpop.permute.xlu1 %2418  ;;  %v2157_v57 = vrot.slane %v11340_v43, 1 }
 0x270   : > { %1598 = vst.msk [vmem:[#allocation2 + $0x134] sm:$0xf] %vm1520_vm4, %v6492_v59  ;;  %v1065_v28 = vadd.f32 %v8684_v20, %v1064_v40  ;;  %v6777_v25 = vpop.f32.mrb[157].mxu0  ;;  %v3090_v12 = vsel %vm3027_vm9, %v11337_v14, %v11150_v37  ;;  %v11338_v14 = vrot.slane %v8636_v1, 1 }
 0x271   : > { %v1067_v53 = vpop.f32.mrb[158].mxu0  ;;  %v8832_v25 = vld [vmem:[#allocation2 + $0x128] sm:$0xf] }
 0x272   : > { %2641 = vrot.lane.b32.xlu1 %v2564_v26, %s7526_s11  ;;  %3167 = vrot.lane.b32.xlu0 %v3090_v12, %s7525_s26  ;;  %v1172_v24 = vmax.f32 %v1065_v28, 0.0  ;;  %v1068_v59 = vadd.f32 %v8684_v20, %v1067_v53  ;;  %v6778_v40 = vpop.f32.mrb[159].mxu0  ;;  %v8834_v26 = vor.u32 %v2976_v36, %v2973_v34  ;;  %v2361_v37 = vsel %vm2296_vm6, %v11338_v14, %v11154_v19 }
 0x273   : > { %v11339_v12 = vshrl.u32 %v8636_v1, 16  ;;  %v8847_v53 = vor.u32 %v3486_v9, %v3485_v6  ;;  %v11341_v34 = vrot.slane %v8774_v15, 2  ;;  %v11342_v36 = vrot.slane %v8713_v42, 2 }
 0x274   : > { %v6493_v40 = vpack.c.bf16 %v1172_v24, %v1172_v24  ;;  %v1173_v17 = vmax.f32 %v1068_v59, 0.0  ;;  %v8857_v14 = vcombine.low %v8656_v51, %v8696_v58  ;;  %v11157_v9 = vrot.slane %v8613_v33, 1  ;;  %v8879_v59 = vld [vmem:[#allocation2 + $0x12c] sm:$0xf] }
 0x275   : > { %v2153_v28 = vor.u32 %v11339_v12, %v2149_v61  ;;  %v3260_v45 = vsel %vm3027_vm9, %v11342_v36, %v11341_v34  ;;  %v8861_v61 = vcombine.low %v8829_v38, %v8832_v25  ;;  %v3488_v58 = vsel %vm3360_vm8, %v8789_v11, %v8847_v53  ;;  %v8881_v12 = vld [vmem:[#allocation2 + $0x130] sm:$0xf] }
 0x276   : > { %2438 = vrot.lane.b32.xlu1 %v2361_v37, %s7524_s23  ;;  %3337 = vrot.lane.b32.xlu0 %v3260_v45, %s7524_s23  ;;  %1599 = vst.msk [vmem:[#allocation2 + $0x138] sm:$0xf] %vm1520_vm4, %v6493_v40  ;;  %v6494_v43 = vpack.c.bf16 %v1173_v17, %v1173_v17  ;;  %v8867_v37 = vsel %vm2664_vm5, %v2968_v3, %v8834_v26  ;;  %v2854_v45 = vshrl.u32 %v8173_v48, 16  ;;  %v11354_v52 = vrot.slane %v8857_v14, 2 }
 0x277   : > { %11343 = vst [vmem:[#allocation65_spill] sm:$0xff] %v8867_v37  ;;  %v1072_v24 = vpop.f32.mrb[160].mxu0  ;;  %v2158_v51 = vsel %vm1898_vm7, %v2153_v28, %v2157_v57  ;;  %v2980_v11 = vshrl.u32 %v8861_v61, 16  ;;  %v2983_v36 = vshll.u32 %v8861_v61, 16  ;;  %v8901_v37 = vcombine.low %v8879_v59, %v8881_v12 }
 0x278   : > { %v8869_v6 = vpop.permute.xlu1 %2420  ;;  %1600 = vst.msk [vmem:[#allocation2 + $0x13c] sm:$0xf] %vm1520_vm4, %v6494_v43  ;;  %v1073_v17 = vadd.f32 %v8684_v20, %v1072_v24  ;;  %v6781_v3 = vpop.f32.mrb[161].mxu0  ;;  %v2856_v46 = vrot.slane %v2854_v45, 1  ;;  %v11360_v4 = vshll.u32 %v8857_v14, 16 }
 0x279   : > { %v1075_v34 = vpop.f32.mrb[162].mxu0  ;;  %v2982_v44 = vrot.slane %v2980_v11, 1  ;;  %v2985_v21 = vrot.slane %v2983_v36, 2  ;;  %v8925_v11 = vpop.permute.xlu0 %2257  ;;  %v11350_v36 = vrot.slane %v8774_v15, 1 }
 0x27a   : > { %2277 = vrot.lane.b32.xlu1 %v2158_v51, %s7525_s26  ;;  %3603 = vrot.lane.b32.xlu0 %v3488_v58, %s7526_s11  ;;  %v1174_v43 = vmax.f32 %v1073_v17, 0.0  ;;  %v1076_v24 = vadd.f32 %v8684_v20, %v1075_v34  ;;  %v6782_v19 = vpop.f32.mrb[163].mxu0  ;;  %v11344_v51 = vrot.slane %v8568_v39, 1  ;;  %v11345_v58 = vrot.slane %v8662_v22, 2 }
 0x27b   : > { %v11346_v19 = vrot.slane %v8613_v33, 2  ;;  %v11347_v39 = vshrl.u32 %v8857_v14, 16  ;;  %v8999_v31 = vrot.slane %v11360_v4, 1 }
 0x27c   : > { %v8890_v3 = vpop.permute.xlu1 %2259  ;;  %v2566_v40 = vsel %vm2296_vm6, %v11344_v51, %v11157_v9  ;;  %v6495_v1 = vpack.c.bf16 %v1174_v43, %v1174_v43  ;;  %v1175_v13 = vmax.f32 %v1076_v24, 0.0  ;;  %v11348_v9 = vshll.u32 %v8857_v14, 16 }
 0x27d   : > { %v3092_v17 = vsel %vm3027_vm9, %v11346_v19, %v11345_v58  ;;  %v3489_v51 = vrot.slane %v11347_v39, 2  ;;  %v2857_v24 = vshll.u32 %v8173_v48, 16  ;;  %v2989_v19 = vshrl.u32 %v8901_v37, 16 }
 0x27e   : > { %2643 = vrot.lane.b32.xlu1 %v2566_v40, %s7526_s11  ;;  %v3490_v28 = vrot.slane %v11348_v9, 3  ;;  %3169 = vrot.lane.b32.xlu0 %v3092_v17, %s7525_s26  ;;  %1601 = vst.msk [vmem:[#allocation2 + $0x140] sm:$0xf] %vm1520_vm4, %v6495_v1  ;;  %v6496_v43 = vpack.c.bf16 %v1175_v13, %v1175_v13  ;;  %v2992_v9 = vshll.u32 %v8901_v37, 16  ;;  %v11351_v17 = vrot.slane %v8713_v42, 1 }
 0x27f   : > { %v1080_v58 = vpop.f32.mrb[164].mxu0  ;;  %v11352_v1 = vshrl.u32 %v8713_v42, 16  ;;  %v2165_v39 = vrot.slane %v11353_v0, 1  ;;  %v8952_v42 = vld [vmem:[#allocation2 + $0x134] sm:$0xf] }
 0x280   : > { %v8921_v40 = vpop.permute.xlu1 %2625  ;;  %v2363_v47 = vsel %vm2296_vm6, %v11351_v17, %v11350_v36  ;;  %1602 = vst.msk [vmem:[#allocation2 + $0x144] sm:$0xf] %vm1520_vm4, %v6496_v43  ;;  %v1081_v34 = vadd.f32 %v8684_v20, %v1080_v58  ;;  %v6785_v48 = vpop.f32.mrb[165].mxu0  ;;  %v3262_v36 = vsel %vm3027_vm9, %v11355_v32, %v11354_v52  ;;  %v8944_v17 = vor.u32 %v3490_v28, %v3489_v51  ;;  %v8954_v52 = vld [vmem:[#allocation2 + $0x138] sm:$0xf] }
 0x281   : > { %v2161_v13 = vor.u32 %v11352_v1, %v2157_v57  ;;  %v1083_v57 = vpop.f32.mrb[166].mxu0  ;;  %v2986_v1 = vor.u32 %v2985_v21, %v2982_v44  ;;  %v11170_v48 = vshrl.u32 %v8917_v5, 16  ;;  %v2991_v32 = vrot.slane %v2989_v19, 1  ;;  %v8956_v21 = vpop.permute.xlu0 %3149 }
 0x282   : > { %2440 = vrot.lane.b32.xlu1 %v2363_v47, %s7524_s23  ;;  %3339 = vrot.lane.b32.xlu0 %v3262_v36, %s7524_s23  ;;  %v1176_v45 = vmax.f32 %v1081_v34, 0.0  ;;  %v1084_v58 = vadd.f32 %v8684_v20, %v1083_v57  ;;  %v6786_v47 = vpop.f32.mrb[167].mxu0  ;;  %v2994_v28 = vrot.slane %v2992_v9, 2  ;;  %v11176_v51 = vrot.slane %v8662_v22, 1 }
 0x283   : > { %v2166_v44 = vsel %vm1898_vm7, %v2161_v13, %v2165_v39  ;;  %v2859_v34 = vrot.slane %v2857_v24, 2  ;;  %v3492_v57 = vsel %vm3360_vm8, %v8847_v53, %v8944_v17  ;;  %v8967_v19 = vsel %vm2664_vm5, %v8834_v26, %v2986_v1 }
 0x284   : > { %v8950_v0 = vpop.permute.xlu1 %2422  ;;  %v6497_v36 = vpack.c.bf16 %v1176_v45, %v1176_v45  ;;  %v1177_v43 = vmax.f32 %v1084_v58, 0.0  ;;  %11356 = vst [vmem:[#allocation67_spill] sm:$0xff] %v8967_v19  ;;  %v3493_v24 = vrot.slane %v11170_v48, 2  ;;  %v8976_v53 = vcombine.low %v8952_v42, %v8954_v52  ;;  %v8978_v45 = vld [vmem:[#allocation2 + $0x13c] sm:$0xf] }
 0x285   : > { %v11357_v26 = vshll.u32 %v8917_v5, 16  ;;  %v8984_v9 = vld [vmem:[#allocation2 + $0x140] sm:$0xf]  ;;  %v8986_v47 = vor.u32 %v2994_v28, %v2991_v32  ;;  %v11359_v19 = vshrl.u32 %v8774_v15, 16 }
 0x286   : > { %2279 = vrot.lane.b32.xlu1 %v2166_v44, %s7525_s26  ;;  %3605 = vrot.lane.b32.xlu0 %v3492_v57, %s7526_s11  ;;  %1603 = vst.msk [vmem:[#allocation2 + $0x148] sm:$0xf] %vm1520_vm4, %v6497_v36  ;;  %v6498_v13 = vpack.c.bf16 %v1177_v43, %v1177_v43  ;;  %v11358_v43 = vrot.slane %v8613_v33, 1  ;;  %v11362_v33 = vrot.slane %v8721_v35, 2 }
 0x287   : > { %v3494_v44 = vrot.slane %v11357_v26, 3  ;;  %v1088_v57 = vpop.f32.mrb[168].mxu0  ;;  %v8988_v48 = vpop.permute.xlu0 %3151  ;;  %v2169_v29 = vor.u32 %v11359_v19, %v2165_v39  ;;  %v9003_v26 = vor.u32 %v2859_v34, %v2856_v46  ;;  %v9014_v4 = vsel %vm2664_vm5, %v2986_v1, %v8986_v47 }
 0x288   : > { %v8980_v58 = vpop.permute.xlu1 %2261  ;;  %v2568_v36 = vsel %vm2296_vm6, %v11358_v43, %v11176_v51  ;;  %1604 = vst.msk [vmem:[#allocation2 + $0x14c] sm:$0xf] %vm1520_vm4, %v6498_v13  ;;  %v1089_v32 = vadd.f32 %v8684_v20, %v1088_v57  ;;  %v6789_v28 = vpop.f32.mrb[169].mxu0  ;;  %v11363_v43 = vrot.slane %v8662_v22, 2  ;;  %11364 = vst [vmem:[#allocation69_spill] sm:$0xff] %v9014_v4  ;;  %v9019_v46 = vcombine.low %v8978_v45, %v8984_v9 }
 0x289   : > { %11361 = vst [vmem:[#allocation68_spill] sm:$0xff] %v9003_v26  ;;  %v1091_v19 = vpop.f32.mrb[170].mxu0  ;;  %v9021_v13 = vld [vmem:[#allocation2 + $0x144] ss:$0 sps:$4 sm:$0x33]   ;;  %v2998_v57 = vshrl.u32 %v8976_v53, 16 }
 0x28a   : > { %2645 = vrot.lane.b32.xlu1 %v2568_v36, %s7526_s11  ;;  %v3094_v51 = vsel %vm3027_vm9, %v11363_v43, %v11362_v33  ;;  %v1178_v20 = vmax.f32 %v1089_v32, 0.0  ;;  %v6790_v34 = vpop.f32.mrb[171].mxu0  ;;  %v2870_v36 = vsel %vm2664_vm5, %v9003_v26, %v8285_v49  ;;  %v11365_v1 = vrot.slane %v8857_v14, 1 }
 0x28b   : > { %3171 = vrot.lane.b32.xlu0 %v3094_v51, %s7525_s26  ;;  %v11366_v51 = vrot.slane %v8774_v15, 1  ;;  %v9034_v33 = vor.u32 %v3494_v44, %v3493_v24  ;;  %v2174_v19 = vsel %vm1898_vm7, %v2169_v29, %v8999_v31  ;;  %v9041_v49 = vcombine.low %v8760_v54, %v8829_v38 }
 0x28c   : > { %v9027_v28 = vpop.permute.xlu1 %2627  ;;  %v3588_v43 = vpop.permute.xlu0 %3587  ;;  %v6499_v39 = vpack.c.bf16 %v1178_v20, %v1178_v20  ;;  %v3750_v26 = vsel %vm3706_vm10, %v8090_v56, %v8925_v11  ;;  %v11367_v24 = vrot.slane %v8917_v5, 2  ;;  %v11368_v44 = vrot.slane %v8857_v14, 2  ;;  %v7325_v56 = vld [vmem:[%s11076_s3 + $0x80] sm:$0xff]  }
 0x28d   : > { %v2365_v32 = vsel %vm2296_vm6, %v11366_v51, %v11365_v1  ;;  %v3001_v51 = vshll.u32 %v8976_v53, 16  ;;  %v3000_v54 = vrot.slane %v2998_v57, 1  ;;  %v3007_v38 = vshrl.u32 %v9019_v46, 16 }
 0x28e   : > { %2442 = vrot.lane.b32.xlu1 %v2365_v32, %s7524_s23  ;;  %v3264_v1 = vsel %vm3027_vm9, %v11368_v44, %v11367_v24  ;;  %1605 = vst.msk [vmem:[#allocation2 + $0x150] sm:$0xf] %vm1520_vm4, %v6499_v39  ;;  %v3010_v11 = vshll.u32 %v9019_v46, 16  ;;  %v3016_v20 = vshrl.u32 %v9021_v13, 16  ;;  %v4047_v32 = vsel %vm3706_vm10, %v2870_v36, %v8956_v21 }
 0x28f   : > { %3341 = vrot.lane.b32.xlu0 %v3264_v1, %s7524_s23  ;;  %v3496_v24 = vsel %vm3360_vm8, %v8944_v17, %v9034_v33  ;;  %v3003_v44 = vrot.slane %v3001_v51, 2  ;;  %v3019_v1 = vshll.u32 %v9021_v13, 16  ;;  %v3009_v4 = vrot.slane %v3007_v38, 1 }
 0x290   : > { %v3322_v34 = vpop.permute.xlu1 %3321  ;;  %v9066_v57 = vpop.permute.xlu0 %3153  ;;  %v3012_v21 = vrot.slane %v3010_v11, 2  ;;  %v3829_v17 = vsel %vm3785_vm11, %v3750_v26, %v8836_v55  ;;  %v2191_v51 = vshrl.u32 %v9041_v49, 16 }
 0x291   : > { %v4142_v39 = vsel %vm3785_vm11, %v4047_v32, %v3322_v34  ;;  %v3018_v34 = vrot.slane %v3016_v20, 1  ;;  %v3929_v32 = vsel %vm3864_vm12, %v3829_v17, %v8921_v40  ;;  %v3004_v29 = vor.u32 %v3003_v44, %v3000_v54 }
 0x292   : > { %2281 = vrot.lane.b32.xlu1 %v2174_v19, %s7525_s26  ;;  %v4241_v36 = vsel %vm3864_vm12, %v4142_v39, %v3588_v43  ;;  %v3013_v15 = vor.u32 %v3012_v21, %v3009_v4  ;;  %v11369_v19 = vrot.slane %v8721_v35, 1  ;;  %v11370_v43 = vrot.slane %v8662_v22, 1  ;;  %v7347_v21 = vld [vmem:[%s11076_s3 + $0x88] sm:$0xff]  }
 0x293   : > { %3607 = vrot.lane.b32.xlu0 %v3496_v24, %s7526_s11  ;;  %4762 = vmatprep.mubr.bf16.mxu1 %v4241_v36  ;;  %v3021_v26 = vrot.slane %v3019_v1, 2  ;;  %v2366_v20 = vrot.slane %v8917_v5, 1  ;;  %v3265_v24 = vrot.slane %v9041_v49, 2  ;;  %v9091_v40 = vsel %vm2664_vm5, %v8986_v47, %v3004_v29 }
 0x294   : > { %v9080_v38 = vpop.permute.xlu1 %2424  ;;  %4763 = vmatmul.mubr.bf16.vlgmr.msra.gmra.mrb[0].mxu1 %v3929_v32  ;;  %v2570_v55 = vsel %vm2296_vm6, %v11370_v43, %v11369_v19  ;;  %v3324_v11 = vpop.permute.xlu0 %3323  ;;  %v9094_v4 = vsel %vm2664_vm5, %v3004_v29, %v3013_v15  ;;  %v11371_v22 = vrot.slane %v8766_v27, 2  ;;  %v11372_v54 = vrot.slane %v8721_v35, 2 }
 0x295   : > { %6792 = vmatpush3.bf16.msra.mxu1 %v7325_v56  ;;  %v3497_v1 = vrot.slane %v2191_v51, 2  ;;  %v11373_v56 = vshll.u32 %v9041_v49, 16  ;;  %v3022_v47 = vor.u32 %v3021_v26, %v3018_v34  ;;  %v3752_v29 = vsel %vm3706_vm10, %v8123_v50, %v8890_v3 }
 0x296   : > { %2647 = vrot.lane.b32.xlu1 %v2570_v55, %s7526_s11  ;;  %v3096_v44 = vsel %vm3027_vm9, %v11372_v54, %v11371_v22  ;;  %6793 = vmatprep.subr.bf16.mxu1 %v11267_v2  ;;  %v4050_v36 = vsel %vm3706_vm10, %v8304_v16, %v8988_v48  ;;  %v11374_v32 = vshrl.u32 %v8857_v14, 16  ;;  %v11375_v55 = vrot.slane %v8857_v14, 1 }
 0x297   : > { %v3498_v39 = vrot.slane %v11373_v56, 3  ;;  %3173 = vrot.lane.b32.xlu0 %v3096_v44, %s7525_s26  ;;  %v9123_v19 = vsel %vm2664_vm5, %v3013_v15, %v3022_v47  ;;  %v4144_v3 = vsel %vm3785_vm11, %v4050_v36, %v3324_v11  ;;  %v11376_v22 = vrot.slane %v8917_v5, 2 }
 0x298   : > { %v9117_v17 = vpop.permute.xlu1 %2263  ;;  %v2177_v34 = vor.u32 %v11374_v32, %v8999_v31  ;;  %v3590_v43 = vpop.permute.xlu0 %3589  ;;  %v2367_v26 = vsel %vm2296_vm6, %v11375_v55, %v2366_v20  ;;  %v11377_v48 = vshll.u32 %v8917_v5, 16  ;;  %v3831_v15 = vsel %vm3785_vm11, %v3752_v29, %v8869_v6 }
 0x299   : > { %v3266_v16 = vsel %vm3027_vm9, %v11376_v22, %v3265_v24  ;;  %6794 = vmatpush3.bf16.msra.mxu1 %v7347_v21  ;;  %v4244_v31 = vsel %vm3864_vm12, %v4144_v3, %v3590_v43  ;;  %v3499_v11 = vor.u32 %v3498_v39, %v3497_v1  ;;  %v9140_v44 = vcombine.low %v8832_v25, %v8879_v59 }
 0x29a   : > { %v2181_v54 = vrot.slane %v11377_v48, 1  ;;  %2444 = vrot.lane.b32.xlu1 %v2367_v26, %s7524_s23  ;;  %4770 = vmatprep.mubr.bf16.mxu1 %v4244_v31  ;;  %v3932_v56 = vsel %vm3864_vm12, %v3831_v15, %v9027_v28  ;;  %v2571_v32 = vrot.slane %v8766_v27, 1  ;;  %v3097_v25 = vrot.slane %v8861_v61, 2 }
 0x29b   : > { %3343 = vrot.lane.b32.xlu0 %v3266_v16, %s7524_s23  ;;  %v3500_v6 = vsel %vm3360_vm8, %v9034_v33, %v3499_v11  ;;  %v2195_v59 = vshll.u32 %v9140_v44, 16  ;;  %v2199_v1 = vshrl.u32 %v9140_v44, 16  ;;  %v11378_v29 = vrot.slane %v8721_v35, 1 }
 0x29c   : > { %v2630_v47 = vpop.permute.xlu1 %2629  ;;  %4771 = vmatmul.mubr.bf16.gmra.mrb[4].mxu1 %v3932_v56  ;;  %v3156_v21 = vpop.permute.xlu0 %3155  ;;  %v2182_v36 = vsel %vm1898_vm7, %v2177_v34, %v2181_v54  ;;  %v2368_v3 = vrot.slane %v9041_v49, 1  ;;  %v3267_v43 = vrot.slane %v9140_v44, 2  ;;  %v11379_v33 = vrot.slane %v8766_v27, 2 }
 0x29d   : > { %v2572_v34 = vsel %vm2296_vm6, %v11378_v29, %v2571_v32  ;;  %v3501_v26 = vrot.slane %v2199_v1, 2  ;;  %v3502_v22 = vrot.slane %v2195_v59, 3  ;;  %v3754_v35 = vsel %vm3706_vm10, %v8157_v23, %v8980_v58 }
 0x29e   : > { %2283 = vrot.lane.b32.xlu1 %v2182_v36, %s7525_s26  ;;  %v3098_v55 = vsel %vm3027_vm9, %v11379_v33, %v3097_v25  ;;  %v4053_v16 = vsel %vm3706_vm10, %v8372_v41, %v9066_v57  ;;  %v11380_v27 = vshrl.u32 %v8917_v5, 16  ;;  %v2369_v36 = vsel %vm2296_vm6, %v2366_v20, %v2368_v3 }
 0x29f   : > { %3609 = vrot.lane.b32.xlu0 %v3500_v6, %s7526_s11  ;;  %v3268_v6 = vsel %vm3027_vm9, %v3265_v24, %v3267_v43  ;;  %v11381_v58 = vshll.u32 %v9041_v49, 16  ;;  %v3833_v41 = vsel %vm3785_vm11, %v3754_v35, %v8950_v0  ;;  %v3503_v57 = vor.u32 %v3502_v22, %v3501_v26 }
 0x2a0   : > { %v9154_v28 = vpop.permute.xlu1 %2426  ;;  %v3326_v39 = vpop.permute.xlu0 %3325  ;;  %v2185_v31 = vor.u32 %v11380_v27, %v2181_v54  ;;  %v9189_v54 = vcombine.low %v8881_v12, %v8952_v42  ;;  %v3935_v20 = vsel %vm3864_vm12, %v3833_v41, %v2630_v47  ;;  %v3099_v26 = vrot.slane %v8901_v37, 2 }
 0x2a1   : > { %v4146_v15 = vsel %vm3785_vm11, %v4053_v16, %v3326_v39  ;;  %v2189_v29 = vrot.slane %v11381_v58, 1  ;;  %v3504_v0 = vsel %vm3360_vm8, %v3499_v11, %v3503_v57  ;;  %v2370_v16 = vrot.slane %v9140_v44, 1 }
 0x2a2   : > { %2649 = vrot.lane.b32.xlu1 %v2572_v34, %s7526_s11  ;;  %v2203_v42 = vshll.u32 %v9189_v54, 16  ;;  %v2207_v12 = vshrl.u32 %v9189_v54, 16  ;;  %v3100_v11 = vsel %vm3027_vm9, %v3097_v25, %v3099_v26  ;;  %v2197_v41 = vrot.slane %v2195_v59, 1 }
 0x2a3   : > { %3175 = vrot.lane.b32.xlu0 %v3098_v55, %s7525_s26  ;;  %v2190_v33 = vsel %vm1898_vm7, %v2185_v31, %v2189_v29  ;;  %v2573_v55 = vrot.slane %v8861_v61, 1  ;;  %v3269_v61 = vrot.slane %v9189_v54, 2  ;;  %v2371_v58 = vsel %vm2296_vm6, %v2368_v3, %v2370_v16 }
 0x2a4   : > { %v9174_v48 = vpop.permute.xlu1 %2265  ;;  %v3592_v56 = vpop.permute.xlu0 %3591  ;;  %v3505_v27 = vrot.slane %v2207_v12, 2  ;;  %v3506_v31 = vrot.slane %v2203_v42, 3 }
 0x2a5   : > { %v4247_v34 = vsel %vm3864_vm12, %v4146_v15, %v3592_v56  ;;  %v2574_v35 = vsel %vm2296_vm6, %v2571_v32, %v2573_v55  ;;  %v3756_v15 = vsel %vm3706_vm10, %v8196_v8, %v9117_v17  ;;  %v4056_v32 = vsel %vm3706_vm10, %v8405_v60, %v3156_v21 }
 0x2a6   : > { %2446 = vrot.lane.b32.xlu1 %v2369_v36, %s7524_s23  ;;  %4778 = vmatprep.mubr.bf16.mxu1 %v4247_v34  ;;  %v2193_v36 = vor.u32 %v2191_v51, %v2189_v29  ;;  %v3270_v34 = vsel %vm3027_vm9, %v3267_v43, %v3269_v61  ;;  %v3835_v60 = vsel %vm3785_vm11, %v3756_v15, %v9080_v38  ;;  %v2575_v29 = vrot.slane %v8901_v37, 1 }
 0x2a7   : > { %3345 = vrot.lane.b32.xlu0 %v3268_v6, %s7524_s23  ;;  %4779 = vmatmul.mubr.bf16.gmra.mrb[8].mxu1 %v3935_v20  ;;  %v3507_v21 = vor.u32 %v3506_v31, %v3505_v27  ;;  %v9229_v20 = vcombine.low %v8954_v52, %v8978_v45  ;;  %v3758_v31 = vsel %vm3706_vm10, %v8250_v30, %v9174_v48  ;;  %v2205_v48 = vrot.slane %v2203_v42, 1 }
 0x2a8   : > { %v2632_v24 = vpop.permute.xlu1 %2631  ;;  %v3158_v39 = vpop.permute.xlu0 %3157  ;;  %v2198_v43 = vsel %vm1898_vm7, %v2193_v36, %v2197_v41 }
 0x2a9   : > { %11382 = vst [vmem:[#allocation70_spill] sm:$0xff] %v9229_v20  ;;  %v3938_v51 = vsel %vm3864_vm12, %v3835_v60, %v2632_v24  ;;  %v3508_v38 = vsel %vm3360_vm8, %v3503_v57, %v3507_v21  ;;  %v3510_v52 = vshrl.u32 %v9229_v20, 16  ;;  %v3513_v45 = vshll.u32 %v9229_v20, 16 }
 0x2aa   : > { %2285 = vrot.lane.b32.xlu1 %v2190_v33, %s7525_s26  ;;  %v3101_v33 = vrot.slane %v8976_v53, 2  ;;  %v3271_v57 = vrot.slane %v9229_v20, 2  ;;  %v4059_v15 = vsel %vm3706_vm10, %v8447_v62, %v3158_v39  ;;  %v3837_v39 = vsel %vm3785_vm11, %v3758_v31, %v9154_v28 }
 0x2ab   : > { %3611 = vrot.lane.b32.xlu0 %v3504_v0, %s7526_s11  ;;  %v3515_v27 = vrot.slane %v3513_v45, 3 }
 0x2ac   : > { %v9201_v47 = vpop.permute.xlu1 %2428  ;;  %v3328_v22 = vpop.permute.xlu0 %3327  ;;  %v3102_v37 = vsel %vm3027_vm9, %v3099_v26, %v3101_v33  ;;  %v3272_v62 = vsel %vm3027_vm9, %v3269_v61, %v3271_v57  ;;  %v2577_v61 = vrot.slane %v8976_v53, 1 }
 0x2ad   : > { %v4148_v25 = vsel %vm3785_vm11, %v4056_v32, %v3328_v22  ;;  %v2576_v22 = vsel %vm2296_vm6, %v2573_v55, %v2575_v29  ;;  %v9256_v32 = vld [vmem:[#allocation2 + $0x138] ss:$0 sps:$4 sm:$0x11]  }
 0x2ae   : > { %2651 = vrot.lane.b32.xlu1 %v2574_v35, %s7526_s11  ;;  %v2372_v35 = vrot.slane %v9189_v54, 1  ;;  %v2211_v42 = vshll.u32 %v9256_v32, 16  ;;  %v2578_v53 = vsel %vm2296_vm6, %v2575_v29, %v2577_v61 }
 0x2af   : > { %3177 = vrot.lane.b32.xlu0 %v3100_v11, %s7525_s26  ;;  %v3512_v11 = vrot.slane %v3510_v52, 2 }
 0x2b0   : > { %v9216_v56 = vpop.permute.xlu1 %2267  ;;  %v3594_v6 = vpop.permute.xlu0 %3593  ;;  %v2213_v52 = vrot.slane %v2211_v42, 1 }
 0x2b1   : > { %v4250_v17 = vsel %vm3864_vm12, %v4148_v25, %v3594_v6  ;;  %v2373_v25 = vsel %vm2296_vm6, %v2370_v16, %v2372_v35  ;;  %v2201_v6 = vor.u32 %v2199_v1, %v2197_v41 }
 0x2b2   : > { %2448 = vrot.lane.b32.xlu1 %v2371_v58, %s7524_s23  ;;  %4786 = vmatprep.mubr.bf16.mxu1 %v4250_v17  ;;  %v1694_v17 = vld [vmem:[#allocation2 + $0x144] sm:$0xf] }
 0x2b3   : > { %3347 = vrot.lane.b32.xlu0 %v3270_v34, %s7524_s23  ;;  %4787 = vmatmul.mubr.bf16.gmra.mrb[12].mxu1 %v3938_v51  ;;  %v9269_v34 = vor.u32 %v3515_v27, %v3512_v11  ;;  %v2206_v60 = vsel %vm1898_vm7, %v2201_v6, %v2205_v48  ;;  %v9279_v28 = vcombine.low %v8984_v9, %v1694_v17  ;;  %v9305_v27 = vld [vmem:[#allocation2 + $0x4] sm:$0xf] }
 0x2b4   : > { %v2634_v3 = vpop.permute.xlu1 %2633  ;;  %v3160_v59 = vpop.permute.xlu0 %3159  ;;  %v7326_v17 = vld [vmem:[#allocation2 + $0x144] ss:$0 sps:$4 sm:$0x11]  }
 0x2b5   : > { %v3941_v16 = vsel %vm3864_vm12, %v3837_v39, %v2634_v3  ;;  %11383 = vst [vmem:[#allocation71_spill] sm:$0xff] %v9279_v28  ;;  %v3517_v51 = vsel %vm3360_vm8, %v3507_v21, %v9269_v34  ;;  %v3103_v3 = vrot.slane %v9019_v46, 2  ;;  %v3273_v9 = vrot.slane %v9279_v28, 2 }
 0x2b6   : > { %2287 = vrot.lane.b32.xlu1 %v2198_v43, %s7525_s26  ;;  %v3519_v21 = vshrl.u32 %v9279_v28, 16 }
 0x2b7   : > { %3613 = vrot.lane.b32.xlu0 %v3508_v38, %s7526_s11  ;;  %v2209_v38 = vor.u32 %v2207_v12, %v2205_v48  ;;  %v4062_v12 = vsel %vm3706_vm10, %v8498_v63, %v3160_v59  ;;  %v1606_v48 = vld [vmem:[#allocation2] sm:$0xf] }
 0x2b8   : > { %v9241_v24 = vpop.permute.xlu1 %2430  ;;  %v3330_v0 = vpop.permute.xlu0 %3329 }
 0x2b9   : > { %v4150_v36 = vsel %vm3785_vm11, %v4059_v15, %v3330_v0  ;;  %v3104_v0 = vsel %vm3027_vm9, %v3101_v33, %v3103_v3  ;;  %v2214_v11 = vsel %vm1898_vm7, %v2209_v38, %v2213_v52  ;;  %v3274_v15 = vsel %vm3027_vm9, %v3271_v57, %v3273_v9 }
 0x2ba   : > { %2653 = vrot.lane.b32.xlu1 %v2576_v22, %s7526_s11  ;;  %v3522_v22 = vshll.u32 %v9279_v28, 16 }
 0x2bb   : > { %3179 = vrot.lane.b32.xlu0 %v3102_v37, %s7525_s26  ;;  %v3760_v37 = vsel %vm3706_vm10, %v8295_v10, %v9216_v56  ;;  %v2579_v56 = vrot.slane %v9019_v46, 1  ;;  %v9322_v46 = vcombine.low %v1606_v48, %v9305_v27 }
 0x2bc   : > { %v9254_v55 = vpop.permute.xlu1 %2269  ;;  %v3596_v26 = vpop.permute.xlu0 %3595  ;;  %v3839_v59 = vsel %vm3785_vm11, %v3760_v37, %v9201_v47  ;;  %v3524_v6 = vrot.slane %v3522_v22, 3  ;;  %v7334_v22 = vld [vmem:[#allocation2 + $0x150] ss:$0 sps:$4 sm:$0x77]  }
 0x2bd   : > { %v4253_v58 = vsel %vm3864_vm12, %v4150_v36, %v3596_v26  ;;  %v3105_v36 = vrot.slane %v9021_v13, 2  ;;  %v9313_v26 = vld [vmem:[#allocation2 + $0x148] sm:$0xff]   ;;  %v2580_v47 = vsel %vm2296_vm6, %v2577_v61, %v2579_v56  ;;  %v3762_v37 = vsel %vm3706_vm10, %v8350_v7, %v9254_v55 }
 0x2be   : > { %2450 = vrot.lane.b32.xlu1 %v2373_v25, %s7524_s23  ;;  %4794 = vmatprep.mubr.bf16.mxu1 %v4253_v58  ;;  %v3521_v25 = vrot.slane %v3519_v21, 2  ;;  %v2374_v58 = vrot.slane %v9256_v32, 1  ;;  %v3531_v42 = vshll.u32 %v9313_v26, 16  ;;  %v1902_v32 = vshll.u32 %v9322_v46, 16 }
 0x2bf   : > { %3349 = vrot.lane.b32.xlu0 %v3272_v62, %s7524_s23  ;;  %4795 = vmatmul.mubr.bf16.gmra.mrb[16].mxu1 %v3941_v16  ;;  %v9325_v62 = vld [vmem:[#allocation2 + $0x8] sm:$0xff]   ;;  %v3528_v16 = vshrl.u32 %v9313_v26, 16 }
 0x2c0   : > { %v2636_v1 = vpop.permute.xlu1 %2635  ;;  %v9274_v41 = vpop.permute.xlu0 %3161  ;;  %v2375_v61 = vsel %vm2296_vm6, %v2372_v35, %v2374_v58  ;;  %v1907_v38 = vshll.u32 %v9325_v62, 16  ;;  %v3533_v21 = vrot.slane %v3531_v42, 3  ;;  %v1904_v35 = vrot.slane %v1902_v32, 1  ;;  %v7377_v58 = vld [vmem:[#allocation2 + $0x10] sm:$0xf] }
 0x2c1   : > { %v3944_v57 = vsel %vm3864_vm12, %v3839_v59, %v2636_v1  ;;  %v3106_v1 = vsel %vm3027_vm9, %v3103_v3, %v3105_v36  ;;  %v2298_v42 = vrot.slane %v9325_v62, 1 }
 0x2c2   : > { %2289 = vrot.lane.b32.xlu1 %v2206_v60, %s7525_s26  ;;  %v3525_v60 = vor.u32 %v3524_v6, %v3521_v25  ;;  %v3537_v25 = vshrl.u32 %v7334_v22, 16  ;;  %v3540_v6 = vshll.u32 %v7334_v22, 16  ;;  %v7379_v22 = vld [vmem:[#allocation2 + $0x20] sm:$0xf] }
 0x2c3   : > { %3615 = vrot.lane.b32.xlu0 %v3517_v51, %s7526_s11 }
 0x2c4   : > { %v9286_v43 = vpop.permute.xlu1 %2432  ;;  %v3332_v45 = vpop.permute.xlu0 %3331  ;;  %v3526_v3 = vsel %vm3360_vm8, %v9269_v34, %v3525_v60  ;;  %v3539_v32 = vrot.slane %v3537_v25, 2 }
 0x2c5   : > { %v4152_v33 = vsel %vm3785_vm11, %v4062_v12, %v3332_v45  ;;  %v2581_v45 = vrot.slane %v7326_v17, 1  ;;  %v4065_v12 = vsel %vm3706_vm10, %v8546_v18, %v9274_v41  ;;  %v3841_v18 = vsel %vm3785_vm11, %v3762_v37, %v9241_v24  ;;  %v7331_v41 = vld [vmem:[#allocation2 + $0x150] ss:$0 sps:$4 sm:$0x33]   ;;  %v7380_v37 = vld [vmem:[#allocation2 + $0x24] sm:$0xf] }
 0x2c6   : > { %2655 = vrot.lane.b32.xlu1 %v2578_v53, %s7526_s11  ;;  %v3275_v53 = vrot.slane %v9313_v26, 2 }
 0x2c7   : > { %3181 = vrot.lane.b32.xlu0 %v3104_v0, %s7525_s26  ;;  %v3530_v0 = vrot.slane %v3528_v16, 2  ;;  %v2582_v36 = vsel %vm2296_vm6, %v2579_v56, %v2581_v45 }
 0x2c8   : > { %v9302_v29 = vpop.permute.xlu1 %2271  ;;  %v3598_v31 = vpop.permute.xlu0 %3597  ;;  %v3276_v55 = vsel %vm3027_vm9, %v3273_v9, %v3275_v53 }
 0x2c9   : > { %v4256_v63 = vsel %vm3864_vm12, %v4152_v33, %v3598_v31  ;;  %v1900_v33 = vshrl.u32 %v9322_v46, 16  ;;  %v9356_v31 = vrot.slane %v1907_v38, 1  ;;  %v3534_v26 = vor.u32 %v3533_v21, %v3530_v0  ;;  %v11384_v21 = vld [vmem:[#allocation13_spill] sm:$0xff] }
 0x2ca   : > { %2291 = vrot.lane.b32.xlu1 %v2214_v11, %s7525_s26  ;;  %4802 = vmatprep.mubr.bf16.mxu1 %v4256_v63  ;;  %v1685_v63 = vld [vmem:[#allocation2] sm:$0xe] }
 0x2cb   : > { %3351 = vrot.lane.b32.xlu0 %v3274_v15, %s7524_s23  ;;  %4803 = vmatmul.mubr.bf16.gmra.mrb[20].mxu1 %v3944_v57  ;;  %v1905_v48 = vor.u32 %v1904_v35, %v1900_v33  ;;  %v6296_v9 = vcombine.low %v1685_v63, %v9305_v27  ;;  %v3542_v27 = vrot.slane %v3540_v6, 3  ;;  %v1693_v33 = vld [vmem:[#allocation2 + $0x18] sm:$0xc]  ;;  %v1692_v63 = vld [vmem:[#allocation2 + $0xc] sm:$0xc]  ;;  %v1911_v6 = vshrl.u32 %v9325_v62, 16 }
 0x2cc   : > { %v2638_v13 = vpop.permute.xlu1 %2637  ;;  %v9327_v39 = vpop.permute.xlu0 %3163 }
 0x2cd   : > { %v3947_v56 = vsel %vm3864_vm12, %v3841_v18, %v2638_v13  ;;  %v1910_v24 = vsel %vm1898_vm7, %v1905_v48, %v9356_v31  ;;  %v3535_v13 = vsel %vm3360_vm8, %v3525_v60, %v3534_v26  ;;  %v9387_v60 = vcombine.low %v7379_v22, %v7380_v37  ;;  %v7382_v37 = vld [vmem:[#allocation2 + $0x18] sm:$0xf] }
 0x2ce   : > { %2657 = vrot.lane.b32.xlu1 %v2580_v47, %s7526_s11  ;;  %v7378_v47 = vld [vmem:[#allocation2 + $0x14] sm:$0xf] }
 0x2cf   : > { %3183 = vrot.lane.b32.xlu0 %v3106_v1, %s7525_s26  ;;  %v9370_v17 = vcombine.low %v7377_v58, %v7378_v47  ;;  %v3277_v1 = vrot.slane %v7331_v41, 2  ;;  %v11387_v41 = vld [vmem:[#allocation57_spill] sm:$0xff] }
 0x2d0   : > { %v9336_v51 = vpop.permute.xlu1 %2434  ;;  %v3334_v52 = vpop.permute.xlu0 %3333  ;;  %v4068_v25 = vsel %vm3706_vm10, %v11387_v41, %v9327_v39 }
 0x2d1   : > { %v4154_v34 = vsel %vm3785_vm11, %v4065_v12, %v3334_v52  ;;  %v1915_v52 = vshll.u32 %v9370_v17, 16  ;;  %v3278_v35 = vsel %vm3027_vm9, %v3275_v53, %v3277_v1  ;;  %v3543_v12 = vor.u32 %v3542_v27, %v3539_v32 }
 0x2d2   : > { %2452 = vrot.lane.b32.xlu1 %v2375_v61, %s7524_s23  ;;  %v2297_v61 = vrot.slane %v6296_v9, 1  ;;  %v3029_v32 = vrot.slane %v11384_v21, 2 }
 0x2d3   : > { %3617 = vrot.lane.b32.xlu0 %v3526_v3, %s7526_s11  ;;  %v2505_v3 = vrot.slane %v11384_v21, 1  ;;  %v3544_v1 = vsel %vm3360_vm8, %v3534_v26, %v3543_v12  ;;  %v2300_v12 = vrot.slane %v9370_v17, 1  ;;  %v7385_v21 = vld [vmem:[#allocation2 + $0x30] sm:$0xf] }
 0x2d4   : > { %v9353_v11 = vpop.permute.xlu1 %2273  ;;  %v3600_v15 = vpop.permute.xlu0 %3599  ;;  %v2299_v0 = vsel %vm2296_vm6, %v2297_v61, %v2298_v42  ;;  %v1913_v61 = vor.u32 %v1911_v6, %v9356_v31 }
 0x2d5   : > { %v4259_v59 = vsel %vm3864_vm12, %v4154_v34, %v3600_v15  ;;  %v11385_v34 = vld [vmem:[#allocation54_spill] sm:$0xff] }
 0x2d6   : > { %2659 = vrot.lane.b32.xlu1 %v2582_v36, %s7526_s11  ;;  %4810 = vmatprep.mubr.bf16.mxu1 %v4259_v59  ;;  %v3764_v15 = vsel %vm3706_vm10, %v11385_v34, %v9302_v29  ;;  %v11386_v36 = vld [vmem:[#allocation12_spill] sm:$0xff]  ;;  %v9396_v59 = vld [vmem:[#allocation2 + $0x1c] sm:$0xf]  ;;  %v6338_v29 = vcombine.low %v1692_v63, %v7377_v58 }
 0x2d7   : > { %3353 = vrot.lane.b32.xlu0 %v3276_v55, %s7524_s23  ;;  %4811 = vmatmul.mubr.bf16.gmra.mrb[24].mxu1 %v3947_v56  ;;  %v2504_v55 = vrot.slane %v11386_v36, 1  ;;  %v6339_v18 = vcombine.low %v1693_v33, %v9396_v59  ;;  %v9405_v56 = vrot.slane %v1915_v52, 1  ;;  %v3843_v58 = vsel %vm3785_vm11, %v3764_v15, %v9286_v43 }
 0x2d8   : > { %v2640_v57 = vpop.permute.xlu1 %2639  ;;  %v9372_v16 = vpop.permute.xlu0 %3165  ;;  %v3028_v22 = vrot.slane %v6338_v29, 2  ;;  %v9423_v26 = vcombine.low %v7382_v37, %v9396_v59  ;;  %v3201_v15 = vrot.slane %v9387_v60, 2  ;;  %v2301_v29 = vsel %vm2296_vm6, %v2298_v42, %v2300_v12  ;;  %v11390_v42 = vld [vmem:[#allocation59_spill] sm:$0xff] }
 0x2d9   : > { %v2506_v47 = vsel %vm2296_vm6, %v2504_v55, %v2505_v3  ;;  %v3950_v27 = vsel %vm3864_vm12, %v3843_v58, %v2640_v57  ;;  %v3362_v52 = vshrl.u32 %v6339_v18, 16  ;;  %v1918_v43 = vsel %vm1898_vm7, %v1913_v61, %v9405_v56  ;;  %v7384_v58 = vld [vmem:[#allocation2 + $0x2c] sm:$0xf] }
 0x2da   : > { %2215 = vrot.lane.b32.xlu1 %v1910_v24, %s7525_s26  ;;  %v1931_v24 = vshll.u32 %v9387_v60, 16  ;;  %v3030_v33 = vsel %vm3027_vm9, %v3028_v22, %v3029_v32  ;;  %v3200_v41 = vrot.slane %v6339_v18, 2  ;;  %v1919_v22 = vshrl.u32 %v9370_v17, 16 }
 0x2db   : > { %3619 = vrot.lane.b32.xlu0 %v3535_v13, %s7526_s11  ;;  %v1935_v13 = vshrl.u32 %v9387_v60, 16  ;;  %v3364_v36 = vrot.slane %v3362_v52, 2  ;;  %v4071_v52 = vsel %vm3706_vm10, %v11390_v42, %v9372_v16  ;;  %v11391_v42 = vld [vmem:[#allocation16_spill] sm:$0xff] }
 0x2dc   : > { %v9380_v38 = vpop.permute.xlu1 %2436  ;;  %v3336_v45 = vpop.permute.xlu0 %3335  ;;  %v3370_v31 = vrot.slane %v1931_v24, 3 }
 0x2dd   : > { %v4156_v48 = vsel %vm3785_vm11, %v4068_v25, %v3336_v45  ;;  %v3365_v45 = vshll.u32 %v6339_v18, 16  ;;  %v3369_v57 = vrot.slane %v1935_v13, 2  ;;  %v1923_v25 = vshll.u32 %v9423_v26, 16  ;;  %v11389_v18 = vld [vmem:[#allocation55_spill] sm:$0xff] }
 0x2de   : > { %2376 = vrot.lane.b32.xlu1 %v2299_v0, %s7524_s23  ;;  %v3766_v61 = vsel %vm3706_vm10, %v11389_v18, %v9353_v11 }
 0x2df   : > { %3355 = vrot.lane.b32.xlu0 %v3278_v35, %s7524_s23  ;;  %v3367_v55 = vrot.slane %v3365_v45, 3  ;;  %v1925_v37 = vrot.slane %v1923_v25, 1  ;;  %v3845_v16 = vsel %vm3785_vm11, %v3766_v61, %v9336_v51  ;;  %v1921_v25 = vor.u32 %v1919_v22, %v9405_v56  ;;  %v7386_v22 = vld [vmem:[#allocation2 + $0x34] sm:$0xf] }
 0x2e0   : > { %v9402_v53 = vpop.permute.xlu1 %2275  ;;  %v3602_v9 = vpop.permute.xlu0 %3601 }
 0x2e1   : > { %v4262_v39 = vsel %vm3864_vm12, %v4156_v48, %v3602_v9  ;;  %v11388_v48 = vld [vmem:[#allocation14_spill] sm:$0xff]  ;;  %v3368_v62 = vor.u32 %v3367_v55, %v3364_v36 }
 0x2e2   : > { %2583 = vrot.lane.b32.xlu1 %v2506_v47, %s7526_s11  ;;  %4818 = vmatprep.mubr.bf16.mxu1 %v4262_v39  ;;  %v2507_v9 = vrot.slane %v11388_v48, 1  ;;  %v3371_v47 = vor.u32 %v3370_v31, %v3369_v57  ;;  %v3202_v39 = vsel %vm3027_vm9, %v3200_v41, %v3201_v15 }
 0x2e3   : > { %3621 = vrot.lane.b32.xlu0 %v3544_v1, %s7526_s11  ;;  %4819 = vmatmul.mubr.bf16.gmra.mrb[28].mxu1 %v3950_v27  ;;  %v7383_v1 = vld [vmem:[#allocation2 + $0x28] sm:$0xf] }
 0x2e4   : > { %v2642_v0 = vpop.permute.xlu1 %2641  ;;  %v9425_v35 = vpop.permute.xlu0 %3167  ;;  %v9449_v27 = vcombine.low %v7383_v1, %v7384_v58  ;;  %v2508_v31 = vsel %vm2296_vm6, %v2505_v3, %v2507_v9  ;;  %v3372_v11 = vsel %vm3360_vm8, %v3368_v62, %v3371_v47 }
 0x2e5   : > { %v3953_v3 = vsel %vm3864_vm12, %v3845_v16, %v2642_v0 }
 0x2e6   : > { %2217 = vrot.lane.b32.xlu1 %v1918_v43, %s7525_s26  ;;  %v1939_v55 = vshll.u32 %v9449_v27, 16  ;;  %v1943_v41 = vshrl.u32 %v9449_v27, 16  ;;  %v3203_v1 = vrot.slane %v9449_v27, 2 }
 0x2e7   : > { %3107 = vrot.lane.b32.xlu0 %v3030_v33, %s7525_s26  ;;  %v3031_v33 = vrot.slane %v11388_v48, 2  ;;  %v1926_v48 = vsel %vm1898_vm7, %v1921_v25, %v1925_v37  ;;  %v1933_v25 = vrot.slane %v1931_v24, 1  ;;  %v3033_v24 = vrot.slane %v11391_v42, 2 }
 0x2e8   : > { %v9440_v63 = vpop.permute.xlu1 %2438  ;;  %v3338_v6 = vpop.permute.xlu0 %3337  ;;  %v3373_v0 = vrot.slane %v1943_v41, 2  ;;  %v3374_v56 = vrot.slane %v1939_v55, 3 }
 0x2e9   : > { %v4158_v43 = vsel %vm3785_vm11, %v4071_v52, %v3338_v6  ;;  %v3032_v51 = vsel %vm3027_vm9, %v3029_v32, %v3031_v33  ;;  %v2509_v52 = vrot.slane %v11391_v42, 1  ;;  %v9494_v32 = vcombine.low %v7385_v21, %v7386_v22 }
 0x2ea   : > { %2378 = vrot.lane.b32.xlu1 %v2301_v29, %s7524_s23  ;;  %v3034_v42 = vsel %vm3027_vm9, %v3031_v33, %v3033_v24  ;;  %v11395_v33 = vld [vmem:[#allocation58_spill] sm:$0xff] }
 0x2eb   : > { %3279 = vrot.lane.b32.xlu0 %v3202_v39, %s7524_s23  ;;  %v2302_v39 = vrot.slane %v9423_v26, 1 }
 0x2ec   : > { %v9458_v45 = vpop.permute.xlu1 %2277  ;;  %v3604_v57 = vpop.permute.xlu0 %3603 }
 0x2ed   : > { %v4265_v36 = vsel %vm3864_vm12, %v4158_v43, %v3604_v57  ;;  %v2303_v62 = vsel %vm2296_vm6, %v2300_v12, %v2302_v39  ;;  %v3204_v43 = vsel %vm3027_vm9, %v3201_v15, %v3203_v1  ;;  %v3375_v57 = vor.u32 %v3374_v56, %v3373_v0 }
 0x2ee   : > { %2585 = vrot.lane.b32.xlu1 %v2508_v31, %s7526_s11  ;;  %4826 = vmatprep.mubr.bf16.mxu1 %v4265_v36  ;;  %v11392_v31 = vld [vmem:[#allocation56_spill] sm:$0xff]  ;;  %v1951_v0 = vshrl.u32 %v9494_v32, 16 }
 0x2ef   : > { %3545 = vrot.lane.b32.xlu0 %v3372_v11, %s7526_s11  ;;  %4827 = vmatmul.mubr.bf16.gmra.mrb[32].mxu1 %v3953_v3  ;;  %v3768_v11 = vsel %vm3706_vm10, %v11392_v31, %v9402_v53  ;;  %v11393_v36 = vld [vmem:[#allocation60_spill] sm:$0xff]  ;;  %v1927_v3 = vshrl.u32 %v9423_v26, 16  ;;  %v1947_v53 = vshll.u32 %v9494_v32, 16 }
 0x2f0   : > { %v2644_v6 = vpop.permute.xlu1 %2643  ;;  %v9476_v29 = vpop.permute.xlu0 %3169  ;;  %v4074_v12 = vsel %vm3706_vm10, %v11393_v36, %v9425_v35  ;;  %v3376_v35 = vsel %vm3360_vm8, %v3371_v47, %v3375_v57  ;;  %v2304_v36 = vrot.slane %v9387_v60, 1  ;;  %v3377_v47 = vrot.slane %v1951_v0, 2 }
 0x2f2   : > { %2219 = vrot.lane.b32.xlu1 %v1926_v48, %s7525_s26 }
 0x2f3   : > { %3109 = vrot.lane.b32.xlu0 %v3032_v51, %s7525_s26  ;;  %v2510_v51 = vsel %vm2296_vm6, %v2507_v9, %v2509_v52 }
 0x2f4   : > { %v9490_v58 = vpop.permute.xlu1 %2440  ;;  %v3340_v61 = vpop.permute.xlu0 %3339 }
 0x2f5   : > { %v4160_v15 = vsel %vm3785_vm11, %v4074_v12, %v3340_v61  ;;  %v1929_v61 = vor.u32 %v1927_v3, %v1925_v37  ;;  %v2305_v12 = vsel %vm2296_vm6, %v2302_v39, %v2304_v36  ;;  %v11394_v3 = vld [vmem:[#allocation18_spill] sm:$0xff] }
 0x2f6   : > { %2380 = vrot.lane.b32.xlu1 %v2303_v62, %s7524_s23  ;;  %v3847_v62 = vsel %vm3785_vm11, %v3768_v11, %v9380_v38  ;;  %v3378_v38 = vrot.slane %v1947_v53, 3 }
 0x2f7   : > { %3281 = vrot.lane.b32.xlu0 %v3204_v43, %s7524_s23  ;;  %v3956_v9 = vsel %vm3864_vm12, %v3847_v62, %v2644_v6  ;;  %v1934_v43 = vsel %vm1898_vm7, %v1929_v61, %v1933_v25  ;;  %v3205_v6 = vrot.slane %v9494_v32, 2  ;;  %v11396_v61 = vld [vmem:[#allocation62_spill] sm:$0xff] }
 0x2f8   : > { %v9505_v16 = vpop.permute.xlu1 %2279  ;;  %v3606_v48 = vpop.permute.xlu0 %3605  ;;  %v4077_v39 = vsel %vm3706_vm10, %v11396_v61, %v9476_v29  ;;  %v2306_v61 = vrot.slane %v9449_v27, 1 }
 0x2f9   : > { %v4268_v56 = vsel %vm3864_vm12, %v4160_v15, %v3606_v48  ;;  %v2511_v15 = vrot.slane %v11394_v3, 1  ;;  %v3379_v48 = vor.u32 %v3378_v38, %v3377_v47  ;;  %v1941_v47 = vrot.slane %v1939_v55, 1 }
 0x2fa   : > { %2587 = vrot.lane.b32.xlu1 %v2510_v51, %s7526_s11  ;;  %4834 = vmatprep.mubr.bf16.mxu1 %v4268_v56  ;;  %v3206_v51 = vsel %vm3027_vm9, %v3203_v1, %v3205_v6  ;;  %v7387_v56 = vld [vmem:[#allocation2 + $0x38] sm:$0xf] }
 0x2fb   : > { %3547 = vrot.lane.b32.xlu0 %v3376_v35, %s7526_s11  ;;  %4835 = vmatmul.mubr.bf16.gmra.mrb[36].mxu1 %v3956_v9  ;;  %v7388_v35 = vld [vmem:[#allocation2 + $0x3c] sm:$0xf]  ;;  %v3770_v9 = vsel %vm3706_vm10, %v11395_v33, %v9458_v45  ;;  %v3035_v45 = vrot.slane %v11394_v3, 2 }
 0x2fc   : > { %v2646_v21 = vpop.permute.xlu1 %2645  ;;  %v9538_v62 = vcombine.low %v7387_v56, %v7388_v35  ;;  %v3849_v29 = vsel %vm3785_vm11, %v3770_v9, %v9440_v63 }
 0x2fd   : > { %v3172_v22 = vpop.permute.xlu0 %3171  ;;  %v3036_v63 = vsel %vm3027_vm9, %v3033_v24, %v3035_v45 }
 0x2fe   : > { %2221 = vrot.lane.b32.xlu1 %v1934_v43, %s7525_s26  ;;  %v1955_v56 = vshll.u32 %v9538_v62, 16  ;;  %v11182_v55 = vshrl.u32 %v9538_v62, 16  ;;  %v3207_v9 = vrot.slane %v9538_v62, 2 }
 0x2ff   : > { %3111 = vrot.lane.b32.xlu0 %v3034_v42, %s7525_s26  ;;  %v2512_v42 = vsel %vm2296_vm6, %v2509_v52, %v2511_v15  ;;  %v3959_v52 = vsel %vm3864_vm12, %v3849_v29, %v2646_v21 }
 0x300   : > { %v9532_v37 = vpop.permute.xlu1 %2442  ;;  %v3382_v21 = vrot.slane %v1955_v56, 3  ;;  %v3208_v29 = vsel %vm3027_vm9, %v3205_v6, %v3207_v9 }
 0x301   : > { %v3342_v11 = vpop.permute.xlu0 %3341 }
 0x302   : > { %2382 = vrot.lane.b32.xlu1 %v2305_v12, %s7524_s23  ;;  %v4162_v1 = vsel %vm3785_vm11, %v4077_v39, %v3342_v11  ;;  %v3380_v12 = vsel %vm3360_vm8, %v3375_v57, %v3379_v48  ;;  %v1937_v57 = vor.u32 %v1935_v13, %v1933_v25  ;;  %v3381_v39 = vrot.slane %v11182_v55, 2 }
 0x303   : > { %3283 = vrot.lane.b32.xlu0 %v3206_v51, %s7524_s23 }
 0x304   : > { %v9547_v43 = vpop.permute.xlu1 %2281  ;;  %v1942_v35 = vsel %vm1898_vm7, %v1937_v57, %v1941_v47  ;;  %v11398_v57 = vld [vmem:[#allocation61_spill] sm:$0xff] }
 0x305   : > { %v3608_v38 = vpop.permute.xlu0 %3607 }
 0x306   : > { %v4271_v51 = vsel %vm3864_vm12, %v4162_v1, %v3608_v38  ;;  %2589 = vrot.lane.b32.xlu1 %v2512_v42, %s7526_s11  ;;  %v2307_v1 = vsel %vm2296_vm6, %v2304_v36, %v2306_v61  ;;  %v11397_v38 = vld [vmem:[#allocation20_spill] sm:$0xff] }
 0x307   : > { %4842 = vmatprep.mubr.bf16.mxu1 %v4271_v51  ;;  %3549 = vrot.lane.b32.xlu0 %v3380_v12, %s7526_s11  ;;  %v2513_v42 = vrot.slane %v11397_v38, 1  ;;  %v7389_v12 = vld [vmem:[#allocation2 + $0x40] sm:$0xf]  ;;  %v7390_v51 = vld [vmem:[#allocation2 + $0x44] sm:$0xf] }
 0x308   : > { %4843 = vmatmul.mubr.bf16.gmra.mrb[40].mxu1 %v3959_v52  ;;  %v2648_v11 = vpop.permute.xlu1 %2647  ;;  %v9579_v24 = vcombine.low %v7389_v12, %v7390_v51  ;;  %v3383_v52 = vor.u32 %v3382_v21, %v3381_v39  ;;  %v1949_v12 = vrot.slane %v1947_v53, 1  ;;  %v3037_v53 = vrot.slane %v11397_v38, 2 }
 0x309   : > { %v3174_v3 = vpop.permute.xlu0 %3173  ;;  %v2514_v6 = vsel %vm2296_vm6, %v2511_v15, %v2513_v42 }
 0x30a   : > { %2223 = vrot.lane.b32.xlu1 %v1942_v35, %s7525_s26  ;;  %v3772_v35 = vsel %vm3706_vm10, %v11398_v57, %v9505_v16  ;;  %v11184_v39 = vshll.u32 %v9579_v24, 16  ;;  %v11183_v21 = vshrl.u32 %v9579_v24, 16 }
 0x30b   : > { %3113 = vrot.lane.b32.xlu0 %v3036_v63, %s7525_s26  ;;  %v11399_v63 = vld [vmem:[#allocation64_spill] sm:$0xff] }
 0x30c   : > { %v9575_v13 = vpop.permute.xlu1 %2444  ;;  %v4080_v36 = vsel %vm3706_vm10, %v11399_v63, %v3172_v22  ;;  %v3384_v22 = vsel %vm3360_vm8, %v3379_v48, %v3383_v52  ;;  %v2308_v48 = vrot.slane %v9494_v32, 1  ;;  %v3386_v38 = vrot.slane %v11184_v39, 3 }
 0x30d   : > { %v3344_v25 = vpop.permute.xlu0 %3343 }
 0x30e   : > { %2384 = vrot.lane.b32.xlu1 %v2307_v1, %s7524_s23  ;;  %v4164_v51 = vsel %vm3785_vm11, %v4080_v36, %v3344_v25  ;;  %v1945_v25 = vor.u32 %v1943_v41, %v1941_v47 }
 0x30f   : > { %3285 = vrot.lane.b32.xlu0 %v3208_v29, %s7524_s23  ;;  %v3851_v29 = vsel %vm3785_vm11, %v3772_v35, %v9490_v58  ;;  %v3385_v58 = vrot.slane %v11183_v21, 2  ;;  %v3209_v35 = vrot.slane %v9579_v24, 2  ;;  %v11402_v21 = vld [vmem:[#allocation65_spill] sm:$0xff] }
 0x310   : > { %v9589_v55 = vpop.permute.xlu1 %2283  ;;  %v3962_v15 = vsel %vm3864_vm12, %v3851_v29, %v2648_v11  ;;  %v3038_v11 = vsel %vm3027_vm9, %v3035_v45, %v3037_v53  ;;  %v11401_v45 = vld [vmem:[#allocation63_spill] sm:$0xff] }
 0x311   : > { %v3610_v1 = vpop.permute.xlu0 %3609  ;;  %v3210_v29 = vsel %vm3027_vm9, %v3207_v9, %v3209_v35 }
 0x312   : > { %v4274_v16 = vsel %vm3864_vm12, %v4164_v51, %v3610_v1  ;;  %2591 = vrot.lane.b32.xlu1 %v2514_v6, %s7526_s11  ;;  %v1950_v51 = vsel %vm1898_vm7, %v1945_v25, %v1949_v12  ;;  %v2309_v1 = vsel %vm2296_vm6, %v2306_v61, %v2308_v48  ;;  %v11400_v6 = vld [vmem:[#allocation22_spill] sm:$0xff]  ;;  %v7392_v25 = vld [vmem:[#allocation2 + $0x4c] sm:$0xf]  ;;  %v4083_v61 = vsel %vm3706_vm10, %v11402_v21, %v3174_v3 }
 0x313   : > { %4850 = vmatprep.mubr.bf16.mxu1 %v4274_v16  ;;  %3551 = vrot.lane.b32.xlu0 %v3384_v22, %s7526_s11  ;;  %v2515_v16 = vrot.slane %v11400_v6, 1  ;;  %v3387_v22 = vor.u32 %v3386_v38, %v3385_v58  ;;  %v1957_v58 = vrot.slane %v1955_v56, 1 }
 0x314   : > { %4851 = vmatmul.mubr.bf16.gmra.mrb[44].mxu1 %v3962_v15  ;;  %v2650_v63 = vpop.permute.xlu1 %2649  ;;  %v7391_v15 = vld [vmem:[#allocation2 + $0x48] sm:$0xf] }
 0x315   : > { %v3176_v36 = vpop.permute.xlu0 %3175 }
 0x316   : > { %2225 = vrot.lane.b32.xlu1 %v1950_v51, %s7525_s26  ;;  %v9623_v51 = vcombine.low %v7391_v15, %v7392_v25  ;;  %v3388_v15 = vsel %vm3360_vm8, %v3383_v52, %v3387_v22  ;;  %v3039_v25 = vrot.slane %v11400_v6, 2  ;;  %v1953_v52 = vor.u32 %v1951_v0, %v1949_v12 }
 0x317   : > { %3115 = vrot.lane.b32.xlu0 %v3038_v11, %s7525_s26  ;;  %v3774_v11 = vsel %vm3706_vm10, %v11401_v45, %v9547_v43 }
 0x318   : > { %v9617_v41 = vpop.permute.xlu1 %2446  ;;  %v3853_v3 = vsel %vm3785_vm11, %v3774_v11, %v9532_v37  ;;  %v11186_v21 = vshll.u32 %v9623_v51, 16  ;;  %v11185_v56 = vshrl.u32 %v9623_v51, 16  ;;  %v3040_v37 = vsel %vm3027_vm9, %v3037_v53, %v3039_v25 }
 0x319   : > { %v3346_v47 = vpop.permute.xlu0 %3345  ;;  %v3211_v11 = vrot.slane %v9623_v51, 2 }
 0x31a   : > { %2386 = vrot.lane.b32.xlu1 %v2309_v1, %s7524_s23  ;;  %v4166_v9 = vsel %vm3785_vm11, %v4083_v61, %v3346_v47  ;;  %v2516_v1 = vsel %vm2296_vm6, %v2513_v42, %v2515_v16  ;;  %v3965_v42 = vsel %vm3864_vm12, %v3853_v3, %v2650_v63  ;;  %v2310_v61 = vrot.slane %v9538_v62, 1  ;;  %v7394_v3 = vld [vmem:[#allocation2 + $0x54] sm:$0xf] }
 0x31b   : > { %3287 = vrot.lane.b32.xlu0 %v3210_v29, %s7524_s23  ;;  %v1958_v29 = vsel %vm1898_vm7, %v1953_v52, %v1957_v58  ;;  %v3390_v63 = vrot.slane %v11186_v21, 3  ;;  %v11405_v21 = vshll.u32 %v9579_v24, 16 }
 0x31c   : > { %v9631_v39 = vpop.permute.xlu1 %2285 }
 0x31d   : > { %v3612_v38 = vpop.permute.xlu0 %3611 }
 0x31e   : > { %v4277_v43 = vsel %vm3864_vm12, %v4166_v9, %v3612_v38  ;;  %2593 = vrot.lane.b32.xlu1 %v2516_v1, %s7526_s11  ;;  %v3389_v9 = vrot.slane %v11185_v56, 2  ;;  %v2311_v38 = vsel %vm2296_vm6, %v2308_v48, %v2310_v61  ;;  %v11403_v1 = vld [vmem:[#allocation24_spill] sm:$0xff] }
 0x31f   : > { %4858 = vmatprep.mubr.bf16.mxu1 %v4277_v43  ;;  %3553 = vrot.lane.b32.xlu0 %v3388_v15, %s7526_s11  ;;  %v2517_v15 = vrot.slane %v11403_v1, 1  ;;  %v7393_v43 = vld [vmem:[#allocation2 + $0x50] sm:$0xf] }
 0x320   : > { %4859 = vmatmul.mubr.bf16.gmra.mrb[48].mxu1 %v3965_v42  ;;  %v2652_v47 = vpop.permute.xlu1 %2651  ;;  %v9663_v53 = vcombine.low %v7393_v43, %v7394_v3  ;;  %v3212_v42 = vsel %vm3027_vm9, %v3209_v35, %v3211_v11  ;;  %v3391_v52 = vor.u32 %v3390_v63, %v3389_v9  ;;  %v1965_v43 = vrot.slane %v11405_v21, 1 }
 0x321   : > { %v3178_v6 = vpop.permute.xlu0 %3177  ;;  %v2518_v35 = vsel %vm2296_vm6, %v2515_v16, %v2517_v15  ;;  %v3041_v21 = vrot.slane %v11403_v1, 2 }
 0x322   : > { %2227 = vrot.lane.b32.xlu1 %v1958_v29, %s7525_s26  ;;  %v3776_v29 = vsel %vm3706_vm10, %v8857_v14, %v9589_v55  ;;  %v11188_v9 = vshll.u32 %v9663_v53, 16  ;;  %v11187_v63 = vshrl.u32 %v9663_v53, 16 }
 0x323   : > { %3117 = vrot.lane.b32.xlu0 %v3040_v37, %s7525_s26  ;;  %v11404_v37 = vld [vmem:[#allocation67_spill] sm:$0xff] }
 0x324   : > { %v9659_v0 = vpop.permute.xlu1 %2448  ;;  %v4086_v48 = vsel %vm3706_vm10, %v11404_v37, %v3176_v36  ;;  %v3392_v36 = vsel %vm3360_vm8, %v3387_v22, %v3391_v52  ;;  %v2312_v22 = vrot.slane %v9579_v24, 1  ;;  %v3394_v1 = vrot.slane %v11188_v9, 3 }
 0x325   : > { %v3348_v12 = vpop.permute.xlu0 %3347 }
 0x326   : > { %2388 = vrot.lane.b32.xlu1 %v2311_v38, %s7524_s23  ;;  %v4168_v3 = vsel %vm3785_vm11, %v4086_v48, %v3348_v12  ;;  %v11406_v12 = vshrl.u32 %v9538_v62, 16 }
 0x327   : > { %3289 = vrot.lane.b32.xlu0 %v3212_v42, %s7524_s23  ;;  %v3855_v42 = vsel %vm3785_vm11, %v3776_v29, %v9575_v13  ;;  %v3393_v13 = vrot.slane %v11187_v63, 2 }
 0x328   : > { %v9673_v56 = vpop.permute.xlu1 %2287  ;;  %v3968_v16 = vsel %vm3864_vm12, %v3855_v42, %v2652_v47  ;;  %v1961_v37 = vor.u32 %v11406_v12, %v1957_v58  ;;  %v3042_v47 = vsel %vm3027_vm9, %v3039_v25, %v3041_v21  ;;  %v3213_v58 = vrot.slane %v9663_v53, 2 }
 0x329   : > { %v3614_v38 = vpop.permute.xlu0 %3613  ;;  %v3778_v25 = vsel %vm3706_vm10, %v8917_v5, %v9631_v39 }
 0x32a   : > { %v4280_v55 = vsel %vm3864_vm12, %v4168_v3, %v3614_v38  ;;  %2595 = vrot.lane.b32.xlu1 %v2518_v35, %s7526_s11  ;;  %v1966_v38 = vsel %vm1898_vm7, %v1961_v37, %v1965_v43  ;;  %v3214_v12 = vsel %vm3027_vm9, %v3211_v11, %v3213_v58  ;;  %v7395_v37 = vld [vmem:[#allocation2 + $0x58] sm:$0xf] }
 0x32b   : > { %4866 = vmatprep.mubr.bf16.mxu1 %v4280_v55  ;;  %3555 = vrot.lane.b32.xlu0 %v3392_v36, %s7526_s11  ;;  %v2313_v55 = vsel %vm2296_vm6, %v2310_v61, %v2312_v22  ;;  %v11407_v36 = vld [vmem:[#allocation26_spill] sm:$0xff] }
 0x32c   : > { %4867 = vmatmul.mubr.bf16.gmra.mrb[52].mxu1 %v3968_v16  ;;  %v2654_v48 = vpop.permute.xlu1 %2653  ;;  %v2519_v42 = vrot.slane %v11407_v36, 1  ;;  %v3395_v16 = vor.u32 %v3394_v1, %v3393_v13  ;;  %v11409_v13 = vshll.u32 %v9623_v51, 16  ;;  %v3043_v28 = vrot.slane %v11407_v36, 2 }
 0x32d   : > { %v9691_v3 = vpop.permute.xlu0 %3179 }
 0x32e   : > { %2229 = vrot.lane.b32.xlu1 %v1966_v38, %s7525_s26  ;;  %v7396_v38 = vld [vmem:[#allocation2 + $0x5c] sm:$0xf]  ;;  %v1973_v1 = vrot.slane %v11409_v13, 1 }
 0x32f   : > { %3119 = vrot.lane.b32.xlu0 %v3042_v47, %s7525_s26  ;;  %v9709_v63 = vcombine.low %v7395_v37, %v7396_v38  ;;  %v11408_v47 = vld [vmem:[#allocation69_spill] sm:$0xff]  ;;  %v2520_v37 = vsel %vm2296_vm6, %v2517_v15, %v2519_v42  ;;  %v3396_v38 = vsel %vm3360_vm8, %v3391_v52, %v3395_v16  ;;  %v11410_v52 = vshrl.u32 %v9579_v24, 16 }
 0x330   : > { %v9703_v29 = vpop.permute.xlu1 %2450  ;;  %v4089_v61 = vsel %vm3706_vm10, %v11408_v47, %v3178_v6  ;;  %v3857_v6 = vsel %vm3785_vm11, %v3778_v25, %v9617_v41  ;;  %v3044_v41 = vsel %vm3027_vm9, %v3041_v21, %v3043_v28 }
 0x331   : > { %v3350_v35 = vpop.permute.xlu0 %3349  ;;  %v11190_v47 = vshrl.u32 %v9709_v63, 16  ;;  %v3971_v15 = vsel %vm3864_vm12, %v3857_v6, %v2654_v48  ;;  %v3215_v25 = vrot.slane %v9709_v63, 2 }
 0x332   : > { %2390 = vrot.lane.b32.xlu1 %v2313_v55, %s7524_s23  ;;  %v4170_v11 = vsel %vm3785_vm11, %v4089_v61, %v3350_v35  ;;  %v1969_v35 = vor.u32 %v11410_v52, %v1965_v43  ;;  %v7398_v52 = vld [vmem:[#allocation2 + $0x64] sm:$0xf] }
 0x333   : > { %3291 = vrot.lane.b32.xlu0 %v3214_v12, %s7524_s23  ;;  %v11191_v12 = vshll.u32 %v9709_v63, 16 }
 0x334   : > { %v9717_v9 = vpop.permute.xlu1 %2289  ;;  %v1974_v13 = vsel %vm1898_vm7, %v1969_v35, %v1973_v1  ;;  %v3216_v35 = vsel %vm3027_vm9, %v3213_v58, %v3215_v25 }
 0x335   : > { %v3616_v55 = vpop.permute.xlu0 %3615  ;;  %v3398_v48 = vrot.slane %v11191_v12, 3 }
 0x336   : > { %v4283_v39 = vsel %vm3864_vm12, %v4170_v11, %v3616_v55  ;;  %2597 = vrot.lane.b32.xlu1 %v2520_v37, %s7526_s11  ;;  %v2314_v11 = vrot.slane %v9623_v51, 1  ;;  %v3397_v55 = vrot.slane %v11190_v47, 2 }
 0x337   : > { %4874 = vmatprep.mubr.bf16.mxu1 %v4283_v39  ;;  %3557 = vrot.lane.b32.xlu0 %v3396_v38, %s7526_s11  ;;  %v11411_v39 = vld [vmem:[#allocation28_spill] sm:$0xff] }
 0x338   : > { %4875 = vmatmul.mubr.bf16.gmra.mrb[56].mxu1 %v3971_v15  ;;  %v2656_v36 = vpop.permute.xlu1 %2655  ;;  %v2315_v38 = vsel %vm2296_vm6, %v2312_v22, %v2314_v11  ;;  %v2521_v6 = vrot.slane %v11411_v39, 1  ;;  %v7397_v15 = vld [vmem:[#allocation2 + $0x60] sm:$0xf]  ;;  %v11412_v22 = vshll.u32 %v9663_v53, 16  ;;  %v3045_v58 = vrot.slane %v11411_v39, 2 }
 0x339   : > { %v3182_v61 = vpop.permute.xlu0 %3181  ;;  %v9749_v21 = vcombine.low %v7397_v15, %v7398_v52  ;;  %v4092_v52 = vsel %vm3706_vm10, %v9091_v40, %v9691_v3 }
 0x33a   : > { %2231 = vrot.lane.b32.xlu1 %v1974_v13, %s7525_s26  ;;  %v3399_v13 = vor.u32 %v3398_v48, %v3397_v55  ;;  %v2522_v12 = vsel %vm2296_vm6, %v2519_v42, %v2521_v6  ;;  %v1981_v20 = vrot.slane %v11412_v22, 1  ;;  %v3780_v55 = vsel %vm3706_vm10, %v9041_v49, %v9673_v56 }
 0x33b   : > { %3121 = vrot.lane.b32.xlu0 %v3044_v41, %s7525_s26  ;;  %v1995_v5 = vshll.u32 %v9749_v21, 16  ;;  %v11194_v15 = vshrl.u32 %v9749_v21, 16  ;;  %v11413_v42 = vshrl.u32 %v9623_v51, 16  ;;  %v3046_v40 = vsel %vm3027_vm9, %v3043_v28, %v3045_v58 }
 0x33c   : > { %v9745_v43 = vpop.permute.xlu1 %2291  ;;  %v3859_v3 = vsel %vm3785_vm11, %v3780_v55, %v9659_v0  ;;  %v7399_v0 = vld [vmem:[#allocation2 + $0x68] sm:$0xf]  ;;  %v7400_v55 = vld [vmem:[#allocation2 + $0x6c] sm:$0xf] }
 0x33d   : > { %v3352_v37 = vpop.permute.xlu0 %3351  ;;  %v1977_v48 = vor.u32 %v11413_v42, %v1973_v1  ;;  %v3401_v56 = vrot.slane %v11194_v15, 2  ;;  %v3974_v42 = vsel %vm3864_vm12, %v3859_v3, %v2656_v36  ;;  %v3782_v36 = vsel %vm3706_vm10, %v9140_v44, %v9717_v9 }
 0x33e   : > { %2392 = vrot.lane.b32.xlu1 %v2315_v38, %s7524_s23  ;;  %v3400_v38 = vsel %vm3360_vm8, %v3395_v16, %v3399_v13  ;;  %v4172_v16 = vsel %vm3785_vm11, %v4092_v52, %v3352_v37  ;;  %v3217_v37 = vrot.slane %v9749_v21, 2 }
 0x33f   : > { %3293 = vrot.lane.b32.xlu0 %v3216_v35, %s7524_s23  ;;  %v1982_v22 = vsel %vm1898_vm7, %v1977_v48, %v1981_v20 }
 0x340   : > { %v2658_v47 = vpop.permute.xlu1 %2657  ;;  %v3218_v28 = vsel %vm3027_vm9, %v3215_v25, %v3217_v37 }
 0x341   : > { %v9754_v41 = vpop.permute.xlu0 %3183 }
 0x342   : > { %2599 = vrot.lane.b32.xlu1 %v2522_v12, %s7526_s11  ;;  %v2316_v12 = vrot.slane %v9663_v53, 1 }
 0x343   : > { %3559 = vrot.lane.b32.xlu0 %v3400_v38, %s7526_s11  ;;  %v3402_v38 = vrot.slane %v1995_v5, 3 }
 0x344   : > { %v9773_v35 = vpop.permute.xlu1 %2452  ;;  %v2317_v15 = vsel %vm2296_vm6, %v2314_v11, %v2316_v12  ;;  %v4095_v11 = vsel %vm3706_vm10, %v9094_v4, %v3182_v61  ;;  %v3861_v4 = vsel %vm3785_vm11, %v3782_v36, %v9703_v29 }
 0x345   : > { %v3618_v39 = vpop.permute.xlu0 %3617 }
 0x346   : > { %v4286_v1 = vsel %vm3864_vm12, %v4172_v16, %v3618_v39  ;;  %2233 = vrot.lane.b32.xlu1 %v1982_v22, %s7525_s26  ;;  %v11414_v16 = vld [vmem:[#allocation30_spill] sm:$0xff]  ;;  %v9792_v22 = vor.u32 %v3402_v38, %v3401_v56  ;;  %v11415_v56 = vshll.u32 %v9709_v63, 16 }
 0x347   : > { %4882 = vmatprep.mubr.bf16.mxu1 %v4286_v1  ;;  %3123 = vrot.lane.b32.xlu0 %v3046_v40, %s7525_s26  ;;  %v2523_v39 = vrot.slane %v11414_v16, 1  ;;  %v9796_v1 = vcombine.low %v7399_v0, %v7400_v55  ;;  %v3047_v9 = vrot.slane %v11414_v16, 2 }
 0x348   : > { %4883 = vmatmul.mubr.bf16.gmra.mrb[60].mxu1 %v3974_v42  ;;  %v2660_v48 = vpop.permute.xlu1 %2659  ;;  %v3404_v42 = vsel %vm3360_vm8, %v3399_v13, %v9792_v22  ;;  %v11416_v13 = vshrl.u32 %v9663_v53, 16 }
 0x349   : > { %v3354_v52 = vpop.permute.xlu0 %3353  ;;  %v2524_v3 = vsel %vm2296_vm6, %v2521_v6, %v2523_v39  ;;  %v2003_v61 = vshll.u32 %v9796_v1, 16  ;;  %v11195_v0 = vshrl.u32 %v9796_v1, 16  ;;  %v3977_v6 = vsel %vm3864_vm12, %v3861_v4, %v2658_v47 }
 0x34a   : > { %2394 = vrot.lane.b32.xlu1 %v2317_v15, %s7524_s23  ;;  %v1989_v15 = vrot.slane %v11415_v56, 1  ;;  %v4174_v25 = vsel %vm3785_vm11, %v4095_v11, %v3354_v52  ;;  %v1985_v52 = vor.u32 %v11416_v13, %v1981_v20  ;;  %v2318_v11 = vrot.slane %v9709_v63, 1  ;;  %v11417_v13 = vld [vmem:[#allocation31_spill] sm:$0xff] }
 0x34b   : > { %3295 = vrot.lane.b32.xlu0 %v3218_v28, %s7524_s23  ;;  %v3219_v36 = vrot.slane %v9796_v1, 2  ;;  %v3405_v47 = vrot.slane %v11195_v0, 2  ;;  %v3406_v20 = vrot.slane %v2003_v61, 3 }
 0x34c   : > { %v9804_v40 = vpop.permute.xlu1 %2215  ;;  %v1990_v29 = vsel %vm1898_vm7, %v1985_v52, %v1989_v15  ;;  %v2525_v52 = vrot.slane %v11417_v13, 1 }
 0x34d   : > { %v3620_v38 = vpop.permute.xlu0 %3619 }
 0x34e   : > { %2601 = vrot.lane.b32.xlu1 %v2524_v3, %s7526_s11  ;;  %v4289_v28 = vsel %vm3864_vm12, %v4174_v25, %v3620_v38  ;;  %v3048_v25 = vsel %vm3027_vm9, %v3045_v58, %v3047_v9  ;;  %v4098_v38 = vsel %vm3706_vm10, %v9123_v19, %v9754_v41  ;;  %v3784_v58 = vsel %vm3706_vm10, %v9189_v54, %v9745_v43 }
 0x34f   : > { %4890 = vmatprep.mubr.bf16.mxu1 %v4289_v28  ;;  %3561 = vrot.lane.b32.xlu0 %v3404_v42, %s7526_s11  ;;  %v2319_v42 = vsel %vm2296_vm6, %v2316_v12, %v2318_v11  ;;  %v9853_v41 = vor.u32 %v3406_v20, %v3405_v47  ;;  %v7401_v12 = vld [vmem:[#allocation2 + $0x70] sm:$0xf]  ;;  %v1997_v47 = vrot.slane %v1995_v5, 1  ;;  %v11418_v5 = vshrl.u32 %v9709_v63, 16 }
 0x350   : > { %4891 = vmatmul.mubr.bf16.gmra.mrb[64].mxu1 %v3977_v6  ;;  %v9823_v55 = vpop.permute.xlu1 %2376  ;;  %v3220_v6 = vsel %vm3027_vm9, %v3217_v37, %v3219_v36 }
 0x351   : > { %v3356_v56 = vpop.permute.xlu0 %3355 }
 0x352   : > { %2235 = vrot.lane.b32.xlu1 %v1990_v29, %s7525_s26  ;;  %v4176_v28 = vsel %vm3785_vm11, %v4098_v38, %v3356_v56  ;;  %v3863_v29 = vsel %vm3785_vm11, %v3784_v58, %v9773_v35  ;;  %v1699_v56 = vld [vmem:[#allocation2 + $0x18] sm:$0x8]  ;;  %v2526_v38 = vsel %vm2296_vm6, %v2523_v39, %v2525_v52 }
 0x353   : > { %3125 = vrot.lane.b32.xlu0 %v3048_v25, %s7525_s26  ;;  %v7402_v25 = vld [vmem:[#allocation2 + $0x74] sm:$0xf]  ;;  %v3980_v43 = vsel %vm3864_vm12, %v3863_v29, %v2660_v48  ;;  %v6345_v20 = vcombine.low %v1699_v56, %v9396_v59  ;;  %v3408_v48 = vsel %vm3360_vm8, %v9792_v22, %v9853_v41 }
 0x354   : > { %v9840_v3 = vpop.permute.xlu1 %2583  ;;  %v9855_v0 = vcombine.low %v7401_v12, %v7402_v25 }
 0x355   : > { %v3622_v4 = vpop.permute.xlu0 %3621 }
 0x356   : > { %2396 = vrot.lane.b32.xlu1 %v2319_v42, %s7524_s23  ;;  %v4292_v19 = vsel %vm3864_vm12, %v4176_v28, %v3622_v4  ;;  %v3049_v42 = vrot.slane %v11417_v13, 2  ;;  %v11199_v58 = vshll.u32 %v9855_v0, 16  ;;  %v11197_v39 = vshrl.u32 %v9855_v0, 16 }
 0x357   : > { %3297 = vrot.lane.b32.xlu0 %v3220_v6, %s7524_s23  ;;  %4898 = vmatprep.mubr.bf16.mxu1 %v4292_v19  ;;  %v1993_v28 = vor.u32 %v11418_v5, %v1989_v15  ;;  %v3628_v4 = vrot.slane %v9387_v60, 3  ;;  %v2320_v6 = vrot.slane %v9749_v21, 1  ;;  %v3627_v19 = vrot.slane %v6345_v20, 3 }
 0x358   : > { %4899 = vmatmul.mubr.bf16.gmra.mrb[68].mxu1 %v3980_v43  ;;  %v9859_v37 = vpop.permute.xlu1 %2217  ;;  %v3221_v12 = vrot.slane %v9855_v0, 2  ;;  %v3050_v25 = vsel %vm3027_vm9, %v3047_v9, %v3049_v42  ;;  %v3409_v15 = vrot.slane %v11197_v39, 2  ;;  %v3410_v43 = vrot.slane %v11199_v58, 3  ;;  %v11423_v39 = vld [vmem:[#allocation36_spill] sm:$0xff] }
 0x359   : > { %v3108_v35 = vpop.permute.xlu0 %3107  ;;  %6795 = vmatprep.mubr.msk.bf16.mxu1 %vm7521_vm1, %v11267_v2  ;;  %v1998_v22 = vsel %vm1898_vm7, %v1993_v28, %v1997_v47  ;;  %v3629_v56 = vsel %vm712_vm2, %v3627_v19, %v3628_v4  ;;  %v2321_v16 = vsel %vm2296_vm6, %v2318_v11, %v2320_v6  ;;  %v3708_v9 = vsel %vm3706_vm10, %v9322_v46, %v9804_v40  ;;  %v7403_v46 = vld [vmem:[#allocation2 + $0x78] sm:$0xf]  ;;  %v7404_v40 = vld [vmem:[#allocation2 + $0x7c] sm:$0xf]  ;;  %v7407_v58 = vld [vmem:[#allocation2 + $0x84] sm:$0xf] }
 0x35a   : > { %2603 = vrot.lane.b32.xlu1 %v2526_v38, %s7526_s11  ;;  %v11419_v38 = vld [vmem:[#allocation15_spill] sm:$0xff] }
 0x35b   : > { %3563 = vrot.lane.b32.xlu0 %v3408_v48, %s7526_s11  ;;  %v3984_v20 = vsel %vm3706_vm10, %v11419_v38, %v3108_v35  ;;  %v3787_v35 = vsel %vm3785_vm11, %v3708_v9, %v9823_v55  ;;  %v3630_v38 = vrot.slane %v9449_v27, 3 }
 0x35c   : > { %v9880_v59 = vpop.permute.xlu1 %2378 }
 0x35d   : > { %v3280_v29 = vpop.permute.xlu0 %3279  ;;  %v3631_v13 = vsel %vm712_vm2, %v3628_v4, %v3630_v38 }
 0x35e   : > { %2237 = vrot.lane.b32.xlu1 %v1998_v22, %s7525_s26  ;;  %v4100_v5 = vsel %vm3785_vm11, %v3984_v20, %v3280_v29  ;;  %v3222_v22 = vsel %vm3027_vm9, %v3219_v36, %v3221_v12  ;;  %v9915_v29 = vcombine.low %v7403_v46, %v7404_v40  ;;  %v3866_v36 = vsel %vm3864_vm12, %v3787_v35, %v9840_v3 }
 0x35f   : > { %3127 = vrot.lane.b32.xlu0 %v3050_v25, %s7525_s26  ;;  %v11420_v25 = vld [vmem:[#allocation34_spill] sm:$0xff]  ;;  %v3632_v40 = vrot.slane %v9494_v32, 3 }
 0x360   : > { %6796 = vmatmul.mubr.msk.bf16.vlgmr.msra.gmra.mrb[72].mxu1 %vm3706_vm10, %v3629_v56  ;;  %v9898_v48 = vpop.permute.xlu1 %2585  ;;  %v11200_v19 = vrot.slane %v11420_v25, 1  ;;  %v9913_v56 = vor.u32 %v3410_v43, %v3409_v15  ;;  %v2005_v43 = vrot.slane %v2003_v61, 1  ;;  %v11198_v9 = vshll.u32 %v9915_v29, 16 }
 0x361   : > { %v3546_v28 = vpop.permute.xlu0 %3545  ;;  %6799 = vmatprep.mubr.msk.bf16.mxu1 %vm7521_vm1, %v11267_v2 }
 0x362   : > { %2398 = vrot.lane.b32.xlu1 %v2321_v16, %s7524_s23  ;;  %v4178_v11 = vsel %vm3864_vm12, %v4100_v5, %v3546_v28  ;;  %v2528_v15 = vsel %vm2296_vm6, %v2525_v52, %v11200_v19  ;;  %v3412_v3 = vsel %vm3360_vm8, %v9853_v41, %v9913_v56  ;;  %v3051_v16 = vrot.slane %v11420_v25, 2 }
 0x363   : > { %3299 = vrot.lane.b32.xlu0 %v3222_v22, %s7524_s23  ;;  %4594 = vmatprep.mubr.bf16.mxu0 %v4178_v11  ;;  %v11196_v5 = vshrl.u32 %v9915_v29, 16  ;;  %v11421_v52 = vshrl.u32 %v9749_v21, 16  ;;  %v2322_v22 = vrot.slane %v9796_v1, 1  ;;  %v3223_v11 = vrot.slane %v9915_v29, 2 }
 0x364   : > { %4595 = vmatmul.mubr.bf16.vlgmr.msra.gmra.mrb[172].mxu0 %v3866_v36  ;;  %v9921_v55 = vpop.permute.xlu1 %2219  ;;  %v3052_v4 = vsel %vm3027_vm9, %v3049_v42, %v3051_v16  ;;  %v3414_v46 = vrot.slane %v11198_v9, 3  ;;  %v11422_v36 = vld [vmem:[#allocation17_spill] sm:$0xff] }
 0x365   : > { %v3110_v20 = vpop.permute.xlu0 %3109  ;;  %v2001_v28 = vor.u32 %v11421_v52, %v1997_v47  ;;  %v3413_v47 = vrot.slane %v11196_v5, 2  ;;  %v7405_v52 = vld [vmem:[#allocation2 + $0x8] sm:$0xff]   ;;  %v3224_v5 = vsel %vm3027_vm9, %v3221_v12, %v3223_v11  ;;  %v3633_v12 = vsel %vm712_vm2, %v3630_v38, %v3632_v40 }
 0x366   : > { %2605 = vrot.lane.b32.xlu1 %v2528_v15, %s7526_s11  ;;  %v3987_v15 = vsel %vm3706_vm10, %v11422_v36, %v3110_v20  ;;  %v3710_v42 = vsel %vm3706_vm10, %v7405_v52, %v9859_v37  ;;  %v3053_v38 = vrot.slane %v11423_v39, 2  ;;  %v3634_v52 = vrot.slane %v9538_v62, 3 }
 0x367   : > { %3565 = vrot.lane.b32.xlu0 %v3412_v3, %s7526_s11  ;;  %v2006_v35 = vsel %vm1898_vm7, %v2001_v28, %v2005_v43  ;;  %v3789_v9 = vsel %vm3785_vm11, %v3710_v42, %v9880_v59  ;;  %v3415_v36 = vor.u32 %v3414_v46, %v3413_v47  ;;  %v11424_v47 = vrot.slane %v11420_v25, 1 }
 0x368   : > { %6800 = vmatmul.mubr.msk.bf16.gmra.mrb[76].mxu1 %vm3706_vm10, %v3631_v13  ;;  %v9942_v61 = vpop.permute.xlu1 %2380  ;;  %v2323_v13 = vsel %vm2296_vm6, %v2320_v6, %v2322_v22  ;;  %v7406_v6 = vld [vmem:[#allocation2 + $0x80] sm:$0xf]  ;;  %v3869_v37 = vsel %vm3864_vm12, %v3789_v9, %v9898_v48  ;;  %v11426_v25 = vshrl.u32 %v9796_v1, 16 }
 0x369   : > { %v3282_v41 = vpop.permute.xlu0 %3281  ;;  %6803 = vmatprep.mubr.msk.bf16.mxu1 %vm7521_vm1, %v11267_v2  ;;  %v9971_v19 = vcombine.low %v7406_v6, %v7407_v58  ;;  %v3416_v48 = vsel %vm3360_vm8, %v9913_v56, %v3415_v36  ;;  %v3054_v6 = vsel %vm3027_vm9, %v3051_v16, %v3053_v38  ;;  %v3712_v16 = vsel %vm3706_vm10, %v9370_v17, %v9921_v55  ;;  %v7409_v17 = vld [vmem:[#allocation2 + $0x8c] sm:$0xf] }
 0x36a   : > { %2239 = vrot.lane.b32.xlu1 %v2006_v35, %s7525_s26  ;;  %v4102_v28 = vsel %vm3785_vm11, %v3987_v15, %v3282_v41 }
 0x36b   : > { %3129 = vrot.lane.b32.xlu0 %v3052_v4, %s7525_s26  ;;  %v2529_v4 = vrot.slane %v11423_v39, 1  ;;  %v11204_v9 = vshll.u32 %v9971_v19, 16  ;;  %v11202_v15 = vshrl.u32 %v9971_v19, 16  ;;  %v11430_v39 = vshrl.u32 %v9855_v0, 16 }
 0x36c   : > { %v9959_v3 = vpop.permute.xlu1 %2587 }
 0x36d   : > { %v3548_v35 = vpop.permute.xlu0 %3547  ;;  %v2530_v58 = vsel %vm2296_vm6, %v11424_v47, %v2529_v4  ;;  %v11427_v47 = vld [vmem:[#allocation19_spill] sm:$0xff] }
 0x36e   : > { %2400 = vrot.lane.b32.xlu1 %v2323_v13, %s7524_s23  ;;  %v4181_v20 = vsel %vm3864_vm12, %v4102_v28, %v3548_v35  ;;  %v2009_v13 = vor.u32 %v11426_v25, %v2005_v43  ;;  %v2324_v28 = vrot.slane %v9855_v0, 1  ;;  %v3418_v43 = vrot.slane %v11204_v9, 3 }
 0x36f   : > { %3301 = vrot.lane.b32.xlu0 %v3224_v5, %s7524_s23  ;;  %4602 = vmatprep.mubr.bf16.mxu0 %v4181_v20  ;;  %v11425_v5 = vshll.u32 %v9855_v0, 16  ;;  %v3225_v20 = vrot.slane %v9971_v19, 2 }
 0x370   : > { %4603 = vmatmul.mubr.bf16.gmra.mrb[176].mxu0 %v3869_v37  ;;  %6804 = vmatmul.mubr.msk.bf16.gmra.mrb[80].mxu1 %vm3706_vm10, %v3633_v12  ;;  %v9978_v59 = vpop.permute.xlu1 %2221  ;;  %v3417_v37 = vrot.slane %v11202_v15, 2  ;;  %v3635_v12 = vsel %vm712_vm2, %v3632_v40, %v3634_v52  ;;  %v11432_v15 = vld [vmem:[#allocation40_spill] sm:$0xff] }
 0x371   : > { %v3112_v41 = vpop.permute.xlu0 %3111  ;;  %v2013_v46 = vrot.slane %v11425_v5, 1  ;;  %6807 = vmatprep.mubr.msk.bf16.mxu1 %vm7521_vm1, %v11267_v2 }
 0x372   : > { %2607 = vrot.lane.b32.xlu1 %v2530_v58, %s7526_s11  ;;  %v3990_v58 = vsel %vm3706_vm10, %v11427_v47, %v3112_v41  ;;  %v3791_v41 = vsel %vm3785_vm11, %v3712_v16, %v9942_v61  ;;  %v7408_v47 = vld [vmem:[#allocation2 + $0x88] sm:$0xf] }
 0x373   : > { %3567 = vrot.lane.b32.xlu0 %v3416_v48, %s7526_s11  ;;  %v2014_v56 = vsel %vm1898_vm7, %v2009_v13, %v2013_v46  ;;  %v2325_v48 = vsel %vm2296_vm6, %v2322_v22, %v2324_v28  ;;  %v10030_v55 = vcombine.low %v7408_v47, %v7409_v17 }
 0x374   : > { %v9999_v42 = vpop.permute.xlu1 %2382 }
 0x375   : > { %v3284_v35 = vpop.permute.xlu0 %3283  ;;  %v3227_v17 = vrot.slane %v10030_v55, 2 }
 0x376   : > { %2241 = vrot.lane.b32.xlu1 %v2014_v56, %s7525_s26  ;;  %v4104_v25 = vsel %vm3785_vm11, %v3990_v58, %v3284_v35  ;;  %v3226_v56 = vsel %vm3027_vm9, %v3223_v11, %v3225_v20  ;;  %v3872_v11 = vsel %vm3864_vm12, %v3791_v41, %v9959_v3  ;;  %v3636_v35 = vrot.slane %v9579_v24, 3 }
 0x377   : > { %3131 = vrot.lane.b32.xlu0 %v3054_v6, %s7525_s26  ;;  %v11428_v6 = vld [vmem:[#allocation38_spill] sm:$0xff] }
 0x378   : > { %6808 = vmatmul.mubr.msk.bf16.gmra.mrb[84].mxu1 %vm3706_vm10, %v3635_v12  ;;  %v10015_v5 = vpop.permute.xlu1 %2589  ;;  %v11205_v40 = vrot.slane %v11428_v6, 1  ;;  %v3419_v12 = vor.u32 %v3418_v43, %v3417_v37  ;;  %v11429_v43 = vshll.u32 %v9915_v29, 16  ;;  %v3055_v3 = vrot.slane %v11428_v6, 2 }
 0x379   : > { %v3550_v13 = vpop.permute.xlu0 %3549  ;;  %6811 = vmatprep.mubr.msk.bf16.mxu1 %vm7521_vm1, %v11267_v2 }
 0x37a   : > { %2402 = vrot.lane.b32.xlu1 %v2325_v48, %s7524_s23  ;;  %v4184_v22 = vsel %vm3864_vm12, %v4104_v25, %v3550_v13  ;;  %v2532_v37 = vsel %vm2296_vm6, %v2529_v4, %v11205_v40  ;;  %v2021_v48 = vrot.slane %v11429_v43, 1  ;;  %v3420_v16 = vsel %vm3360_vm8, %v3415_v36, %v3419_v12  ;;  %v10070_v43 = vld [vmem:[#allocation2 + $0x94] sm:$0xf] }
 0x37b   : > { %3303 = vrot.lane.b32.xlu0 %v3226_v56, %s7524_s23  ;;  %4610 = vmatprep.mubr.bf16.mxu0 %v4184_v22  ;;  %v11203_v25 = vshll.u32 %v10030_v55, 16  ;;  %v11201_v13 = vshrl.u32 %v10030_v55, 16  ;;  %v3637_v56 = vsel %vm712_vm2, %v3634_v52, %v3636_v35  ;;  %v2017_v4 = vor.u32 %v11430_v39, %v2013_v46 }
 0x37c   : > { %4611 = vmatmul.mubr.bf16.gmra.mrb[180].mxu0 %v3872_v11  ;;  %v10036_v58 = vpop.permute.xlu1 %2223  ;;  %v2326_v22 = vrot.slane %v9915_v29, 1  ;;  %v3056_v52 = vsel %vm3027_vm9, %v3053_v38, %v3055_v3  ;;  %v3714_v38 = vsel %vm3706_vm10, %v9423_v26, %v9978_v59 }
 0x37d   : > { %v3114_v61 = vpop.permute.xlu0 %3113  ;;  %v2022_v47 = vsel %vm1898_vm7, %v2017_v4, %v2021_v48  ;;  %v3421_v46 = vrot.slane %v11201_v13, 2  ;;  %v3422_v11 = vrot.slane %v11203_v25, 3  ;;  %v2533_v25 = vrot.slane %v11432_v15, 1 }
 0x37e   : > { %2609 = vrot.lane.b32.xlu1 %v2532_v37, %s7526_s11  ;;  %v3638_v37 = vrot.slane %v9623_v51, 3  ;;  %v2327_v4 = vsel %vm2296_vm6, %v2324_v28, %v2326_v22  ;;  %v3793_v9 = vsel %vm3785_vm11, %v3714_v38, %v9999_v42  ;;  %v7410_v28 = vld [vmem:[#allocation2 + $0x90] sm:$0xf]  ;;  %v3640_v38 = vrot.slane %v9663_v53, 3 }
 0x37f   : > { %3569 = vrot.lane.b32.xlu0 %v3420_v16, %s7526_s11  ;;  %v11431_v16 = vld [vmem:[#allocation21_spill] sm:$0xff]  ;;  %v10088_v40 = vcombine.low %v7410_v28, %v10070_v43  ;;  %v3875_v26 = vsel %vm3864_vm12, %v3793_v9, %v10015_v5  ;;  %v3057_v5 = vrot.slane %v11432_v15, 2 }
 0x380   : > { %6812 = vmatmul.mubr.msk.bf16.gmra.mrb[88].mxu1 %vm3706_vm10, %v3637_v56  ;;  %v10055_v41 = vpop.permute.xlu1 %2384  ;;  %v3993_v56 = vsel %vm3706_vm10, %v11431_v16, %v3114_v61  ;;  %v3423_v16 = vor.u32 %v3422_v11, %v3421_v46  ;;  %v3639_v59 = vsel %vm712_vm2, %v3636_v35, %v3638_v37  ;;  %v11434_v46 = vshll.u32 %v9971_v19, 16 }
 0x381   : > { %v3286_v36 = vpop.permute.xlu0 %3285  ;;  %6815 = vmatprep.mubr.msk.bf16.mxu1 %vm7521_vm1, %v11267_v2  ;;  %v11209_v35 = vshll.u32 %v10088_v40, 16  ;;  %v3229_v15 = vrot.slane %v10088_v40, 2  ;;  %v3058_v28 = vsel %vm3027_vm9, %v3055_v3, %v3057_v5 }
 0x382   : > { %2243 = vrot.lane.b32.xlu1 %v2022_v47, %s7525_s26  ;;  %v4106_v47 = vsel %vm3785_vm11, %v3993_v56, %v3286_v36  ;;  %v2029_v11 = vrot.slane %v11434_v46, 1  ;;  %v3424_v9 = vsel %vm3360_vm8, %v3419_v12, %v3423_v16  ;;  %v11206_v56 = vshrl.u32 %v10088_v40, 16 }
 0x383   : > { %3133 = vrot.lane.b32.xlu0 %v3056_v52, %s7525_s26  ;;  %v3228_v52 = vsel %vm3027_vm9, %v3225_v20, %v3227_v17 }
 0x384   : > { %v10074_v39 = vpop.permute.xlu1 %2591 }
 0x385   : > { %v3552_v13 = vpop.permute.xlu0 %3551 }
 0x386   : > { %2404 = vrot.lane.b32.xlu1 %v2327_v4, %s7524_s23  ;;  %v4187_v61 = vsel %vm3864_vm12, %v4106_v47, %v3552_v13  ;;  %v11433_v13 = vrot.slane %v11428_v6, 1  ;;  %v11435_v6 = vshrl.u32 %v9915_v29, 16 }
 0x387   : > { %3305 = vrot.lane.b32.xlu0 %v3228_v52, %s7524_s23  ;;  %4618 = vmatprep.mubr.bf16.mxu0 %v4187_v61  ;;  %v2328_v52 = vrot.slane %v9971_v19, 1 }
 0x388   : > { %4619 = vmatmul.mubr.bf16.gmra.mrb[184].mxu0 %v3875_v26  ;;  %6816 = vmatmul.mubr.msk.bf16.gmra.mrb[92].mxu1 %vm3706_vm10, %v3639_v59  ;;  %v10095_v42 = vpop.permute.xlu1 %2225  ;;  %v2534_v36 = vsel %vm2296_vm6, %v11433_v13, %v2533_v25  ;;  %v2025_v4 = vor.u32 %v11435_v6, %v2021_v48  ;;  %v3425_v26 = vrot.slane %v11206_v56, 2  ;;  %v3426_v48 = vrot.slane %v11209_v35, 3  ;;  %v10126_v13 = vld [vmem:[#allocation2 + $0x9c] sm:$0xf] }
 0x389   : > { %v3116_v20 = vpop.permute.xlu0 %3115  ;;  %6819 = vmatprep.mubr.msk.bf16.mxu1 %vm7521_vm1, %v11267_v2  ;;  %v3641_v59 = vsel %vm712_vm2, %v3638_v37, %v3640_v38  ;;  %v2329_v3 = vsel %vm2296_vm6, %v2326_v22, %v2328_v52  ;;  %v3716_v6 = vsel %vm3706_vm10, %v9387_v60, %v10036_v58  ;;  %v3230_v37 = vsel %vm3027_vm9, %v3227_v17, %v3229_v15 }
 0x38a   : > { %2611 = vrot.lane.b32.xlu1 %v2534_v36, %s7526_s11  ;;  %v2030_v12 = vsel %vm1898_vm7, %v2025_v4, %v2029_v11  ;;  %v11436_v36 = vld [vmem:[#allocation23_spill] sm:$0xff]  ;;  %v3795_v22 = vsel %vm3785_vm11, %v3716_v6, %v10055_v41  ;;  %v3427_v58 = vor.u32 %v3426_v48, %v3425_v26  ;;  %v11438_v26 = vshll.u32 %v10030_v55, 16 }
 0x38b   : > { %3571 = vrot.lane.b32.xlu0 %v3424_v9, %s7526_s11  ;;  %v3996_v46 = vsel %vm3706_vm10, %v11436_v36, %v3116_v20  ;;  %v1644_v20 = vld [vmem:[#allocation2 + $0x98] sm:$0xf]  ;;  %v3878_v17 = vsel %vm3864_vm12, %v3795_v22, %v10074_v39 }
 0x38c   : > { %v10113_v47 = vpop.permute.xlu1 %2386  ;;  %v2037_v48 = vrot.slane %v11438_v26, 1  ;;  %v10180_v26 = vcombine.low %v10070_v43, %v1644_v20 }
 0x38d   : > { %v3288_v61 = vpop.permute.xlu0 %3287 }
 0x38e   : > { %2245 = vrot.lane.b32.xlu1 %v2030_v12, %s7525_s26  ;;  %v4108_v4 = vsel %vm3785_vm11, %v3996_v46, %v3288_v61  ;;  %v10149_v61 = vcombine.low %v1644_v20, %v10126_v13 }
 0x38f   : > { %3135 = vrot.lane.b32.xlu0 %v3058_v28, %s7525_s26  ;;  %v11437_v28 = vld [vmem:[#allocation43_spill] sm:$0xff] }
 0x390   : > { %6820 = vmatmul.mubr.msk.bf16.gmra.mrb[96].mxu1 %vm3706_vm10, %v3641_v59  ;;  %v10131_v9 = vpop.permute.xlu1 %2593  ;;  %v2535_v56 = vrot.slane %v11437_v28, 1  ;;  %v3642_v59 = vrot.slane %v9709_v63, 3  ;;  %v3059_v6 = vrot.slane %v11437_v28, 2  ;;  %v11208_v39 = vshll.u32 %v10149_v61, 16 }
 0x391   : > { %v3554_v12 = vpop.permute.xlu0 %3553  ;;  %6823 = vmatprep.mubr.msk.bf16.mxu1 %vm7521_vm1, %v11267_v2 }
 0x392   : > { %2406 = vrot.lane.b32.xlu1 %v2329_v3, %s7524_s23  ;;  %v4190_v60 = vsel %vm3864_vm12, %v4108_v4, %v3554_v12  ;;  %v2536_v46 = vsel %vm2296_vm6, %v2533_v25, %v2535_v56  ;;  %v3428_v3 = vsel %vm3360_vm8, %v3423_v16, %v3427_v58  ;;  %v11207_v4 = vshrl.u32 %v10149_v61, 16 }
 0x393   : > { %3307 = vrot.lane.b32.xlu0 %v3230_v37, %s7524_s23  ;;  %4626 = vmatprep.mubr.bf16.mxu0 %v4190_v60  ;;  %v3643_v12 = vsel %vm712_vm2, %v3640_v38, %v3642_v59  ;;  %v11439_v37 = vshrl.u32 %v9971_v19, 16  ;;  %v2330_v60 = vrot.slane %v10030_v55, 1 }
 0x394   : > { %4627 = vmatmul.mubr.bf16.gmra.mrb[188].mxu0 %v3878_v17  ;;  %v10155_v36 = vpop.permute.xlu1 %2227  ;;  %v3429_v38 = vrot.slane %v11207_v4, 2 }
 0x395   : > { %v3118_v41 = vpop.permute.xlu0 %3117  ;;  %v2033_v25 = vor.u32 %v11439_v37, %v2029_v11  ;;  %v3060_v11 = vsel %vm3027_vm9, %v3057_v5, %v3059_v6  ;;  %v10190_v37 = vld [vmem:[#allocation2 + $0xa4] sm:$0xf]  ;;  %v2331_v5 = vsel %vm2296_vm6, %v2328_v52, %v2330_v60 }
 0x396   : > { %2613 = vrot.lane.b32.xlu1 %v2536_v46, %s7526_s11  ;;  %v3231_v46 = vrot.slane %v10149_v61, 2 }
 0x397   : > { %3573 = vrot.lane.b32.xlu0 %v3428_v3, %s7526_s11  ;;  %v2038_v17 = vsel %vm1898_vm7, %v2033_v25, %v2037_v48  ;;  %v3430_v3 = vrot.slane %v11208_v39, 3  ;;  %v11440_v25 = vld [vmem:[#allocation25_spill] sm:$0xff] }
 0x398   : > { %6824 = vmatmul.mubr.msk.bf16.gmra.mrb[100].mxu1 %vm3706_vm10, %v3643_v12  ;;  %v10172_v22 = vpop.permute.xlu1 %2388  ;;  %v3644_v12 = vrot.slane %v9749_v21, 3  ;;  %v3999_v43 = vsel %vm3706_vm10, %v11440_v25, %v3118_v41  ;;  %v2537_v41 = vrot.slane %v10180_v26, 1  ;;  %v1646_v25 = vld [vmem:[#allocation2 + $0xa0] sm:$0xf] }
 0x399   : > { %v3290_v16 = vpop.permute.xlu0 %3289  ;;  %6827 = vmatprep.mubr.msk.bf16.mxu1 %vm7521_vm1, %v11267_v2 }
 0x39a   : > { %2247 = vrot.lane.b32.xlu1 %v2038_v17, %s7525_s26  ;;  %v3718_v17 = vsel %vm3706_vm10, %v9449_v27, %v10095_v42  ;;  %v4110_v4 = vsel %vm3785_vm11, %v3999_v43, %v3290_v16  ;;  %v3431_v27 = vor.u32 %v3430_v3, %v3429_v38  ;;  %v10212_v42 = vcombine.low %v1646_v25, %v10190_v37 }
 0x39b   : > { %3137 = vrot.lane.b32.xlu0 %v3060_v11, %s7525_s26  ;;  %v3232_v11 = vsel %vm3027_vm9, %v3229_v15, %v3231_v46  ;;  %v3797_v35 = vsel %vm3785_vm11, %v3718_v17, %v10113_v47  ;;  %v3645_v16 = vsel %vm712_vm2, %v3642_v59, %v3644_v12 }
 0x39c   : > { %v2596_v20 = vpop.permute.xlu1 %2595  ;;  %v3881_v15 = vsel %vm3864_vm12, %v3797_v35, %v10131_v9  ;;  %v3432_v35 = vsel %vm3360_vm8, %v3427_v58, %v3431_v27  ;;  %v3061_v9 = vrot.slane %v10180_v26, 2  ;;  %v2059_v59 = vshll.u32 %v10212_v42, 16 }
 0x39d   : > { %v3556_v39 = vpop.permute.xlu0 %3555  ;;  %v11210_v3 = vshrl.u32 %v10212_v42, 16  ;;  %v10240_v58 = vcombine.low %v10126_v13, %v1646_v25 }
 0x39e   : > { %2408 = vrot.lane.b32.xlu1 %v2331_v5, %s7524_s23  ;;  %v4193_v52 = vsel %vm3864_vm12, %v4110_v4, %v3556_v39  ;;  %v2538_v39 = vsel %vm2296_vm6, %v2535_v56, %v2537_v41  ;;  %v11441_v4 = vshll.u32 %v10088_v40, 16  ;;  %v11442_v56 = vshrl.u32 %v10030_v55, 16 }
 0x39f   : > { %3309 = vrot.lane.b32.xlu0 %v3232_v11, %s7524_s23  ;;  %4634 = vmatprep.mubr.bf16.mxu0 %v4193_v52  ;;  %v3646_v5 = vrot.slane %v9796_v1, 3 }
 0x3a0   : > { %4635 = vmatmul.mubr.bf16.gmra.mrb[192].mxu0 %v3881_v15  ;;  %6828 = vmatmul.mubr.msk.bf16.gmra.mrb[104].mxu1 %vm3706_vm10, %v3645_v16  ;;  %v10219_v47 = vpop.permute.xlu1 %2229  ;;  %v2045_v38 = vrot.slane %v11441_v4, 1  ;;  %v2041_v28 = vor.u32 %v11442_v56, %v2037_v48  ;;  %v2332_v15 = vrot.slane %v10088_v40, 1  ;;  %v3062_v16 = vsel %vm3027_vm9, %v3059_v6, %v3061_v9  ;;  %v11443_v56 = vld [vmem:[#allocation27_spill] sm:$0xff] }
 0x3a1   : > { %v3120_v43 = vpop.permute.xlu0 %3119  ;;  %6831 = vmatprep.mubr.msk.bf16.mxu1 %vm7521_vm1, %v11267_v2  ;;  %v3433_v48 = vrot.slane %v11210_v3, 2  ;;  %v3434_v4 = vrot.slane %v2059_v59, 3  ;;  %v3720_v6 = vsel %vm3706_vm10, %v9494_v32, %v10155_v36 }
 0x3a2   : > { %2615 = vrot.lane.b32.xlu1 %v2538_v39, %s7526_s11  ;;  %v2046_v52 = vsel %vm1898_vm7, %v2041_v28, %v2045_v38  ;;  %v3233_v39 = vrot.slane %v10212_v42, 2  ;;  %v4002_v13 = vsel %vm3706_vm10, %v11443_v56, %v3120_v43  ;;  %v2333_v3 = vsel %vm2296_vm6, %v2330_v60, %v2332_v15 }
 0x3a3   : > { %3575 = vrot.lane.b32.xlu0 %v3432_v35, %s7526_s11  ;;  %v3647_v35 = vsel %vm712_vm2, %v3644_v12, %v3646_v5  ;;  %v3799_v12 = vsel %vm3785_vm11, %v3720_v6, %v10172_v22  ;;  %v3435_v43 = vor.u32 %v3434_v4, %v3433_v48  ;;  %v11444_v56 = vshll.u32 %v10149_v61, 16 }
 0x3a4   : > { %v2391_v17 = vpop.permute.xlu1 %2390  ;;  %v3234_v32 = vsel %vm3027_vm9, %v3231_v46, %v3233_v39  ;;  %v3884_v60 = vsel %vm3864_vm12, %v3799_v12, %v2596_v20  ;;  %v3063_v48 = vrot.slane %v10240_v58, 2  ;;  %v11445_v4 = vshrl.u32 %v10088_v40, 16 }
 0x3a5   : > { %v3292_v11 = vpop.permute.xlu0 %3291  ;;  %v3436_v46 = vsel %vm3360_vm8, %v3431_v27, %v3435_v43  ;;  %v2334_v12 = vrot.slane %v10149_v61, 1  ;;  %v7411_v27 = vld [vmem:[#allocation2 + $0xa8] sm:$0xf] }
 0x3a6   : > { %2249 = vrot.lane.b32.xlu1 %v2046_v52, %s7525_s26  ;;  %v4112_v28 = vsel %vm3785_vm11, %v4002_v13, %v3292_v11  ;;  %v3648_v11 = vrot.slane %v9855_v0, 3  ;;  %v2053_v13 = vrot.slane %v11444_v56, 1  ;;  %v2049_v6 = vor.u32 %v11445_v4, %v2045_v38  ;;  %v11446_v38 = vld [vmem:[#allocation42_spill] sm:$0xff] }
 0x3a7   : > { %3139 = vrot.lane.b32.xlu0 %v3062_v16, %s7525_s26  ;;  %v2539_v16 = vrot.slane %v10240_v58, 1 }
 0x3a8   : > { %6832 = vmatmul.mubr.msk.bf16.gmra.mrb[108].mxu1 %vm3706_vm10, %v3647_v35  ;;  %v2598_v25 = vpop.permute.xlu1 %2597  ;;  %v3649_v20 = vsel %vm712_vm2, %v3646_v5, %v3648_v11  ;;  %v3064_v5 = vsel %vm3027_vm9, %v3061_v9, %v3063_v48 }
 0x3a9   : > { %v3558_v52 = vpop.permute.xlu0 %3557  ;;  %6835 = vmatprep.mubr.msk.bf16.mxu1 %vm7521_vm1, %v11267_v2 }
 0x3aa   : > { %2410 = vrot.lane.b32.xlu1 %v2333_v3, %s7524_s23  ;;  %v4196_v36 = vsel %vm3864_vm12, %v4112_v28, %v3558_v52  ;;  %v2540_v3 = vsel %vm2296_vm6, %v2537_v41, %v2539_v16  ;;  %v2054_v52 = vsel %vm1898_vm7, %v2049_v6, %v2053_v13  ;;  %v2335_v6 = vsel %vm2296_vm6, %v2332_v15, %v2334_v12 }
 0x3ab   : > { %3311 = vrot.lane.b32.xlu0 %v3234_v32, %s7524_s23  ;;  %4642 = vmatprep.mubr.bf16.mxu0 %v4196_v36  ;;  %v10292_v32 = vcombine.low %v10190_v37, %v7411_v27  ;;  %v3235_v36 = vrot.slane %v11446_v38, 2 }
 0x3ac   : > { %4643 = vmatmul.mubr.bf16.gmra.mrb[196].mxu0 %v3884_v60  ;;  %v10274_v35 = vpop.permute.xlu1 %2231  ;;  %v3650_v60 = vrot.slane %v9915_v29, 3 }
 0x3ad   : > { %v3122_v22 = vpop.permute.xlu0 %3121  ;;  %v2541_v9 = vrot.slane %v10292_v32, 1  ;;  %v3236_v27 = vsel %vm3027_vm9, %v3233_v39, %v3235_v36  ;;  %v11448_v39 = vld [vmem:[#allocation46_spill] sm:$0xff] }
 0x3ae   : > { %2617 = vrot.lane.b32.xlu1 %v2540_v3, %s7526_s11  ;;  %v11447_v3 = vld [vmem:[#allocation29_spill] sm:$0xff] }
 0x3af   : > { %3577 = vrot.lane.b32.xlu0 %v3436_v46, %s7526_s11  ;;  %v4005_v56 = vsel %vm3706_vm10, %v11447_v3, %v3122_v22  ;;  %v11449_v3 = vshrl.u32 %v10149_v61, 16 }
 0x3b0   : > { %6836 = vmatmul.mubr.msk.bf16.gmra.mrb[112].mxu1 %vm3706_vm10, %v3649_v20  ;;  %v2393_v28 = vpop.permute.xlu1 %2392  ;;  %v3722_v20 = vsel %vm3706_vm10, %v9538_v62, %v10219_v47  ;;  %v3651_v47 = vsel %vm712_vm2, %v3648_v11, %v3650_v60  ;;  %v3065_v11 = vrot.slane %v10292_v32, 2 }
 0x3b1   : > { %v3294_v41 = vpop.permute.xlu0 %3293  ;;  %6839 = vmatprep.mubr.msk.bf16.mxu1 %vm7521_vm1, %v11267_v2 }
 0x3b2   : > { %2251 = vrot.lane.b32.xlu1 %v2054_v52, %s7525_s26  ;;  %v4114_v37 = vsel %vm3785_vm11, %v4005_v56, %v3294_v41  ;;  %v3801_v52 = vsel %vm3785_vm11, %v3722_v20, %v2391_v17  ;;  %v2542_v17 = vsel %vm2296_vm6, %v2539_v16, %v2541_v9  ;;  %v2057_v56 = vor.u32 %v11449_v3, %v2053_v13 }
 0x3b3   : > { %3141 = vrot.lane.b32.xlu0 %v3064_v5, %s7525_s26  ;;  %v3887_v62 = vsel %vm3864_vm12, %v3801_v52, %v2598_v25  ;;  %v2061_v5 = vrot.slane %v2059_v59, 1  ;;  %v3440_v25 = vsel %vm3360_vm8, %v3435_v43, %v11448_v39  ;;  %v3652_v16 = vrot.slane %v9971_v19, 3  ;;  %v11451_v39 = vld [vmem:[#allocation44_spill] sm:$0xff] }
 0x3b4   : > { %v2600_v46 = vpop.permute.xlu1 %2599  ;;  %v3237_v43 = vrot.slane %v8123_v50, 2 }
 0x3b5   : > { %v3560_v4 = vpop.permute.xlu0 %3559  ;;  %v2062_v59 = vsel %vm1898_vm7, %v2057_v56, %v2061_v5  ;;  %v3653_v52 = vsel %vm712_vm2, %v3650_v60, %v3652_v16 }
 0x3b6   : > { %2412 = vrot.lane.b32.xlu1 %v2335_v6, %s7524_s23  ;;  %v4199_v22 = vsel %vm3864_vm12, %v4114_v37, %v3560_v4  ;;  %v2336_v4 = vrot.slane %v10212_v42, 1  ;;  %v3066_v6 = vsel %vm3027_vm9, %v3063_v48, %v3065_v11 }
 0x3b7   : > { %3313 = vrot.lane.b32.xlu0 %v3236_v27, %s7524_s23  ;;  %4650 = vmatprep.mubr.bf16.mxu0 %v4199_v22  ;;  %v11450_v27 = vld [vmem:[#allocation32_spill] sm:$0xff] }
 0x3b8   : > { %4651 = vmatmul.mubr.bf16.gmra.mrb[200].mxu0 %v3887_v62  ;;  %6840 = vmatmul.mubr.msk.bf16.gmra.mrb[116].mxu1 %vm3706_vm10, %v3651_v47  ;;  %v2234_v15 = vpop.permute.xlu1 %2233  ;;  %v3724_v62 = vsel %vm3706_vm10, %v9579_v24, %v10274_v35  ;;  %v2337_v48 = vsel %vm2296_vm6, %v2334_v12, %v2336_v4  ;;  %v3654_v35 = vrot.slane %v10030_v55, 3 }
 0x3b9   : > { %v3124_v41 = vpop.permute.xlu0 %3123  ;;  %6843 = vmatprep.mubr.msk.bf16.mxu1 %vm7521_vm1, %v11267_v2  ;;  %v3803_v60 = vsel %vm3785_vm11, %v3724_v62, %v2393_v28  ;;  %v3067_v28 = vrot.slane %v11451_v39, 2 }
 0x3ba   : > { %2619 = vrot.lane.b32.xlu1 %v2542_v17, %s7526_s11  ;;  %v4008_v13 = vsel %vm3706_vm10, %v11450_v27, %v3124_v41  ;;  %v3238_v41 = vsel %vm3027_vm9, %v3235_v36, %v3237_v43  ;;  %v3890_v24 = vsel %vm3864_vm12, %v3803_v60, %v2600_v46  ;;  %v11452_v36 = vld [vmem:[#allocation49_spill] sm:$0xff]  ;;  %v3726_v60 = vsel %vm3706_vm10, %v9623_v51, %v2234_v15 }
 0x3bb   : > { %3579 = vrot.lane.b32.xlu0 %v3440_v25, %s7526_s11  ;;  %v2543_v25 = vrot.slane %v11451_v39, 1 }
 0x3bc   : > { %v2395_v20 = vpop.permute.xlu1 %2394 }
 0x3bd   : > { %v3296_v37 = vpop.permute.xlu0 %3295 }
 0x3be   : > { %2253 = vrot.lane.b32.xlu1 %v2062_v59, %s7525_s26  ;;  %v4116_v47 = vsel %vm3785_vm11, %v4008_v13, %v3296_v37  ;;  %v2544_v37 = vsel %vm2296_vm6, %v2541_v9, %v2543_v25  ;;  %v3655_v59 = vsel %vm712_vm2, %v3652_v16, %v3654_v35  ;;  %v11454_v13 = vld [vmem:[#allocation45_spill] sm:$0xff]  ;;  %v3068_v9 = vsel %vm3027_vm9, %v3065_v11, %v3067_v28 }
 0x3bf   : > { %3143 = vrot.lane.b32.xlu0 %v3066_v6, %s7525_s26  ;;  %v11453_v6 = vshrl.u32 %v10212_v42, 16  ;;  %v11455_v16 = vld [vmem:[#allocation33_spill] sm:$0xff] }
 0x3c0   : > { %6844 = vmatmul.mubr.msk.bf16.gmra.mrb[120].mxu1 %vm3706_vm10, %v3653_v52  ;;  %v2602_v22 = vpop.permute.xlu1 %2601 }
 0x3c1   : > { %v3562_v17 = vpop.permute.xlu0 %3561  ;;  %6847 = vmatprep.mubr.msk.bf16.mxu1 %vm7521_vm1, %v11267_v2  ;;  %v2065_v52 = vor.u32 %v11453_v6, %v2061_v5  ;;  %v3656_v5 = vrot.slane %v10088_v40, 3  ;;  %v11457_v6 = vld [vmem:[#allocation51_spill] sm:$0xff] }
 0x3c2   : > { %2414 = vrot.lane.b32.xlu1 %v2337_v48, %s7524_s23  ;;  %v4202_v3 = vsel %vm3864_vm12, %v4116_v47, %v3562_v17  ;;  %v3239_v47 = vrot.slane %v8157_v23, 2 }
 0x3c3   : > { %3315 = vrot.lane.b32.xlu0 %v3238_v41, %s7524_s23  ;;  %4658 = vmatprep.mubr.bf16.mxu0 %v4202_v3  ;;  %v2070_v62 = vsel %vm1898_vm7, %v2065_v52, %v11454_v13  ;;  %v3657_v15 = vsel %vm712_vm2, %v3654_v35, %v3656_v5  ;;  %v11460_v13 = vrot.slane %v11457_v6, 2 }
 0x3c4   : > { %4659 = vmatmul.mubr.bf16.gmra.mrb[204].mxu0 %v3890_v24  ;;  %v2236_v12 = vpop.permute.xlu1 %2235  ;;  %v11456_v24 = vrot.slane %v11446_v38, 1 }
 0x3c5   : > { %v3126_v56 = vpop.permute.xlu0 %3125 }
 0x3c6   : > { %2621 = vrot.lane.b32.xlu1 %v2544_v37, %s7526_s11  ;;  %v4011_v17 = vsel %vm3706_vm10, %v11455_v16, %v3126_v56  ;;  %v2339_v11 = vsel %vm2296_vm6, %v2336_v4, %v11456_v24  ;;  %v3805_v37 = vsel %vm3785_vm11, %v3726_v60, %v2395_v20  ;;  %v11458_v20 = vrot.slane %v11457_v6, 1 }
 0x3c7   : > { %3581 = vrot.lane.b32.xlu0 %v11452_v36, %s7526_s11  ;;  %v3240_v36 = vsel %vm3027_vm9, %v3237_v43, %v3239_v47  ;;  %v3893_v51 = vsel %vm3864_vm12, %v3805_v37, %v2602_v22  ;;  %v11459_v43 = vld [vmem:[#allocation52_spill] sm:$0xff]  ;;  %v3658_v22 = vrot.slane %v10149_v61, 3  ;;  %v3728_v60 = vsel %vm3706_vm10, %v9663_v53, %v2236_v12 }
 0x3c8   : > { %6848 = vmatmul.mubr.msk.bf16.gmra.mrb[124].mxu1 %vm3706_vm10, %v3655_v59  ;;  %v2397_v46 = vpop.permute.xlu1 %2396  ;;  %v2546_v52 = vsel %vm2296_vm6, %v2543_v25, %v11458_v20  ;;  %v11462_v24 = vrot.slane %v8196_v8, 2  ;;  %v3660_v53 = vrot.slane %v10212_v42, 3 }
 0x3c9   : > { %v3298_v27 = vpop.permute.xlu0 %3297  ;;  %6851 = vmatprep.mubr.msk.bf16.mxu1 %vm7521_vm1, %v11267_v2  ;;  %v3659_v25 = vsel %vm712_vm2, %v3656_v5, %v3658_v22 }
 0x3ca   : > { %2255 = vrot.lane.b32.xlu1 %v2070_v62, %s7525_s26  ;;  %v4118_v41 = vsel %vm3785_vm11, %v4011_v17, %v3298_v27  ;;  %v3070_v62 = vsel %vm3027_vm9, %v3067_v28, %v11460_v13  ;;  %v3807_v28 = vsel %vm3785_vm11, %v3728_v60, %v2397_v46  ;;  %v3242_v5 = vsel %vm3027_vm9, %v3239_v47, %v11462_v24 }
 0x3cb   : > { %3145 = vrot.lane.b32.xlu0 %v3068_v9, %s7525_s26  ;;  %v11461_v9 = vld [vmem:[#allocation35_spill] sm:$0xff]  ;;  %v3661_v46 = vsel %vm712_vm2, %v3658_v22, %v3660_v53 }
 0x3cc   : > { %v2604_v48 = vpop.permute.xlu1 %2603 }
 0x3cd   : > { %v3564_v3 = vpop.permute.xlu0 %3563  ;;  %v3896_v37 = vsel %vm3864_vm12, %v3807_v28, %v2604_v48  ;;  %v11464_v48 = vld [vmem:[#allocation37_spill] sm:$0xff] }
 0x3ce   : > { %2416 = vrot.lane.b32.xlu1 %v2339_v11, %s7524_s23  ;;  %v4205_v59 = vsel %vm3864_vm12, %v4118_v41, %v3564_v3 }
 0x3cf   : > { %3317 = vrot.lane.b32.xlu0 %v3240_v36, %s7524_s23  ;;  %4666 = vmatprep.mubr.bf16.mxu0 %v4205_v59  ;;  %v11463_v59 = vld [vmem:[#allocation53_spill] sm:$0xff] }
 0x3d0   : > { %4667 = vmatmul.mubr.bf16.gmra.mrb[208].mxu0 %v3893_v51  ;;  %6852 = vmatmul.mubr.msk.bf16.gmra.mrb[128].mxu1 %vm3706_vm10, %v3657_v15  ;;  %v2238_v56 = vpop.permute.xlu1 %2237  ;;  %v3662_v15 = vrot.slane %v11446_v38, 3 }
 0x3d1   : > { %v3128_v4 = vpop.permute.xlu0 %3127  ;;  %6855 = vmatprep.mubr.msk.bf16.mxu1 %vm7521_vm1, %v11267_v2  ;;  %v3730_v20 = vsel %vm3706_vm10, %v9709_v63, %v2238_v56  ;;  %v3664_v63 = vrot.slane %v8123_v50, 3 }
 0x3d2   : > { %2623 = vrot.lane.b32.xlu1 %v2546_v52, %s7526_s11  ;;  %v4014_v16 = vsel %vm3706_vm10, %v11461_v9, %v3128_v4 }
 0x3d3   : > { %3583 = vrot.lane.b32.xlu0 %v11459_v43, %s7526_s11 }
 0x3d4   : > { %v2399_v35 = vpop.permute.xlu1 %2398 }
 0x3d5   : > { %v3300_v27 = vpop.permute.xlu0 %3299  ;;  %v3809_v22 = vsel %vm3785_vm11, %v3730_v20, %v2399_v35  ;;  %v3665_v35 = vsel %vm712_vm2, %v3662_v15, %v3664_v63 }
 0x3d6   : > { %v4120_v41 = vsel %vm3785_vm11, %v4014_v16, %v3300_v27  ;;  %v11465_v16 = vld [vmem:[#allocation39_spill] sm:$0xff] }
 0x3d7   : > { %3147 = vrot.lane.b32.xlu0 %v3070_v62, %s7525_s26  ;;  %v3663_v62 = vsel %vm712_vm2, %v3660_v53, %v3662_v15 }
 0x3d8   : > { %6856 = vmatmul.mubr.msk.bf16.gmra.mrb[132].mxu1 %vm3706_vm10, %v3659_v25  ;;  %v2606_v17 = vpop.permute.xlu1 %2605 }
 0x3d9   : > { %v3566_v3 = vpop.permute.xlu0 %3565  ;;  %6859 = vmatprep.mubr.msk.bf16.mxu1 %vm7521_vm1, %v11267_v2  ;;  %v3899_v13 = vsel %vm3864_vm12, %v3809_v22, %v2606_v17 }
 0x3da   : > { %v4208_v11 = vsel %vm3864_vm12, %v4120_v41, %v3566_v3 }
 0x3db   : > { %3319 = vrot.lane.b32.xlu0 %v3242_v5, %s7524_s23  ;;  %4674 = vmatprep.mubr.bf16.mxu0 %v4208_v11  ;;  %v3666_v11 = vrot.slane %v8157_v23, 3 }
 0x3dc   : > { %4675 = vmatmul.mubr.bf16.gmra.mrb[212].mxu0 %v3896_v37  ;;  %v2240_v12 = vpop.permute.xlu1 %2239 }
 0x3dd   : > { %v3130_v36 = vpop.permute.xlu0 %3129  ;;  %v3732_v41 = vsel %vm3706_vm10, %v9749_v21, %v2240_v12  ;;  %v3667_v21 = vsel %vm712_vm2, %v3664_v63, %v3666_v11 }
 0x3de   : > { %v4017_v4 = vsel %vm3706_vm10, %v11464_v48, %v3130_v36 }
 0x3df   : > { %3585 = vrot.lane.b32.xlu0 %v11463_v59, %s7526_s11  ;;  %v3668_v59 = vrot.slane %v8196_v8, 3 }
 0x3e0   : > { %6860 = vmatmul.mubr.msk.bf16.gmra.mrb[136].mxu1 %vm3706_vm10, %v3661_v46  ;;  %v2401_v47 = vpop.permute.xlu1 %2400  ;;  %v11466_v46 = vld [vmem:[#allocation41_spill] sm:$0xff] }
 0x3e1   : > { %v3302_v51 = vpop.permute.xlu0 %3301  ;;  %6863 = vmatprep.mubr.msk.bf16.mxu1 %vm7521_vm1, %v11267_v2  ;;  %v3811_v50 = vsel %vm3785_vm11, %v3732_v41, %v2401_v47 }
 0x3e2   : > { %v4122_v52 = vsel %vm3785_vm11, %v4017_v4, %v3302_v51 }
 0x3e4   : > { %v2608_v6 = vpop.permute.xlu1 %2607 }
 0x3e5   : > { %v3568_v43 = vpop.permute.xlu0 %3567  ;;  %v3902_v5 = vsel %vm3864_vm12, %v3811_v50, %v2608_v6  ;;  %v3674_v50 = vrot.slane %v8350_v7, 3 }
 0x3e6   : > { %v4211_v27 = vsel %vm3864_vm12, %v4122_v52, %v3568_v43  ;;  %v3669_v52 = vsel %vm712_vm2, %v3666_v11, %v3668_v59  ;;  %v11468_v11 = vld [vmem:[#allocation50_spill] sm:$0xff] }
 0x3e7   : > { %4682 = vmatprep.mubr.bf16.mxu0 %v4211_v27 }
 0x3e8   : > { %4683 = vmatmul.mubr.bf16.gmra.mrb[216].mxu0 %v3899_v13  ;;  %6864 = vmatmul.mubr.msk.bf16.gmra.mrb[140].mxu1 %vm3706_vm10, %v3663_v62  ;;  %v2242_v38 = vpop.permute.xlu1 %2241  ;;  %v11467_v62 = vld [vmem:[#allocation47_spill] sm:$0xff] }
 0x3e9   : > { %v3132_v25 = vpop.permute.xlu0 %3131  ;;  %6867 = vmatprep.mubr.msk.bf16.mxu1 %vm7521_vm1, %v11267_v2  ;;  %v3734_v23 = vsel %vm3706_vm10, %v9796_v1, %v2242_v38  ;;  %v3670_v1 = vrot.slane %v8250_v30, 3 }
 0x3ea   : > { %v4020_v60 = vsel %vm3706_vm10, %v11465_v16, %v3132_v25 }
 0x3eb   : > { %v3671_v13 = vsel %vm712_vm2, %v3668_v59, %v3670_v1 }
 0x3ec   : > { %v2403_v56 = vpop.permute.xlu1 %2402 }
 0x3ed   : > { %v3304_v9 = vpop.permute.xlu0 %3303  ;;  %v3813_v4 = vsel %vm3785_vm11, %v3734_v23, %v2403_v56 }
 0x3ee   : > { %v4124_v3 = vsel %vm3785_vm11, %v4020_v60, %v3304_v9  ;;  %v3672_v60 = vrot.slane %v8295_v10, 3 }
 0x3f0   : > { %6868 = vmatmul.mubr.msk.bf16.gmra.mrb[144].mxu1 %vm3706_vm10, %v3665_v35  ;;  %v2610_v17 = vpop.permute.xlu1 %2609 }
 0x3f1   : > { %v3570_v28 = vpop.permute.xlu0 %3569  ;;  %6871 = vmatprep.mubr.msk.bf16.mxu1 %vm7521_vm1, %v11267_v2  ;;  %v3905_v20 = vsel %vm3864_vm12, %v3813_v4, %v2610_v17 }
 0x3f2   : > { %v4214_v24 = vsel %vm3864_vm12, %v4124_v3, %v3570_v28 }
 0x3f3   : > { %4690 = vmatprep.mubr.bf16.mxu0 %v4214_v24  ;;  %v2818_v24 = vshrl.u32 %v10180_v26, 16 }
 0x3f4   : > { %4691 = vmatmul.mubr.bf16.gmra.mrb[220].mxu0 %v3902_v5  ;;  %v2244_v37 = vpop.permute.xlu1 %2243  ;;  %v2821_v5 = vshll.u32 %v10180_v26, 16 }
 0x3f5   : > { %v3134_v53 = vpop.permute.xlu0 %3133  ;;  %v3736_v63 = vsel %vm3706_vm10, %v9855_v0, %v2244_v37  ;;  %v3673_v0 = vsel %vm712_vm2, %v3670_v1, %v3672_v60  ;;  %v2820_v26 = vrot.slane %v2818_v24, 1 }
 0x3f6   : > { %v4023_v47 = vsel %vm3706_vm10, %v11466_v46, %v3134_v53  ;;  %v3675_v46 = vsel %vm712_vm2, %v3672_v60, %v3674_v50 }
 0x3f8   : > { %6872 = vmatmul.mubr.msk.bf16.gmra.mrb[148].mxu1 %vm3706_vm10, %v3667_v21  ;;  %v2405_v12 = vpop.permute.xlu1 %2404 }
 0x3f9   : > { %v3306_v36 = vpop.permute.xlu0 %3305  ;;  %6875 = vmatprep.mubr.msk.bf16.mxu1 %vm7521_vm1, %v11267_v2  ;;  %v3815_v30 = vsel %vm3785_vm11, %v3736_v63, %v2405_v12 }
 0x3fa   : > { %v4126_v15 = vsel %vm3785_vm11, %v4023_v47, %v3306_v36  ;;  %v2823_v47 = vrot.slane %v2821_v5, 2 }
 0x3fc   : > { %v2612_v51 = vpop.permute.xlu1 %2611 }
 0x3fd   : > { %v3572_v48 = vpop.permute.xlu0 %3571  ;;  %v3908_v16 = vsel %vm3864_vm12, %v3815_v30, %v2612_v51 }
 0x3fe   : > { %v4217_v6 = vsel %vm3864_vm12, %v4126_v15, %v3572_v48  ;;  %v3676_v15 = vrot.slane %v11385_v34, 3 }
 0x3ff   : > { %4698 = vmatprep.mubr.bf16.mxu0 %v4217_v6  ;;  %v11469_v6 = vld [vmem:[#allocation48_spill] sm:$0xff] }
 0x400   : > { %4699 = vmatmul.mubr.bf16.gmra.mrb[224].mxu0 %v3905_v20  ;;  %6876 = vmatmul.mubr.msk.bf16.gmra.mrb[152].mxu1 %vm3706_vm10, %v3669_v52  ;;  %v2246_v8 = vpop.permute.xlu1 %2245  ;;  %v3677_v52 = vsel %vm712_vm2, %v3674_v50, %v3676_v15 }
 0x401   : > { %v3136_v43 = vpop.permute.xlu0 %3135  ;;  %6879 = vmatprep.mubr.msk.bf16.mxu1 %vm7521_vm1, %v11267_v2  ;;  %v3738_v53 = vsel %vm3706_vm10, %v9915_v29, %v2246_v8  ;;  %v2824_v29 = vor.u32 %v2823_v47, %v2820_v26  ;;  %v2827_v8 = vshrl.u32 %v10240_v58, 16  ;;  %v10537_v47 = vld [vmem:[#allocation9] ss:$0 sm:$0xff] }
 0x402   : > { %v4026_v38 = vsel %vm3706_vm10, %v11467_v62, %v3136_v43  ;;  %v2830_v43 = vshll.u32 %v10240_v58, 16 }
 0x403   : > { %v2825_v20 = vsel %vm2664_vm5, %v11469_v6, %v2824_v29 }
 0x404   : > { %v2407_v22 = vpop.permute.xlu1 %2406  ;;  %v2832_v63 = vrot.slane %v2830_v43, 2 }
 0x405   : > { %v3308_v27 = vpop.permute.xlu0 %3307  ;;  %v3817_v36 = vsel %vm3785_vm11, %v3738_v53, %v2407_v22 }
 0x406   : > { %v4128_v56 = vsel %vm3785_vm11, %v4026_v38, %v3308_v27 }
 0x408   : > { %6880 = vmatmul.mubr.msk.bf16.gmra.mrb[0].mxu1 %vm3706_vm10, %v3671_v13  ;;  %v2614_v25 = vpop.permute.xlu1 %2613 }
 0x409   : > { %v3574_v9 = vpop.permute.xlu0 %3573  ;;  %6883 = vmatprep.mubr.msk.bf16.mxu1 %vm7521_vm1, %v11267_v2  ;;  %v3911_v7 = vsel %vm3864_vm12, %v3817_v36, %v2614_v25  ;;  %v2829_v25 = vrot.slane %v2827_v8, 1 }
 0x40a   : > { %v4220_v35 = vsel %vm3864_vm12, %v4128_v56, %v3574_v9  ;;  %v3678_v56 = vrot.slane %v11389_v18, 3  ;;  %v2839_v18 = vshll.u32 %v10292_v32, 16 }
 0x40b   : > { %4706 = vmatprep.mubr.bf16.mxu0 %v4220_v35  ;;  %v2833_v30 = vor.u32 %v2832_v63, %v2829_v25 }
 0x40c   : > { %4707 = vmatmul.mubr.bf16.gmra.mrb[228].mxu0 %v3908_v16  ;;  %v2248_v17 = vpop.permute.xlu1 %2247  ;;  %v3679_v35 = vsel %vm712_vm2, %v3676_v15, %v3678_v56 }
 0x40d   : > { %v3138_v41 = vpop.permute.xlu0 %3137  ;;  %v3740_v27 = vsel %vm3706_vm10, %v9971_v19, %v2248_v17  ;;  %v2834_v17 = vsel %vm2664_vm5, %v2824_v29, %v2833_v30 }
 0x40e   : > { %v4029_v10 = vsel %vm3706_vm10, %v11468_v11, %v3138_v41  ;;  %v3680_v41 = vrot.slane %v11392_v31, 3 }
 0x410   : > { %6884 = vmatmul.mubr.msk.bf16.gmra.mrb[4].mxu1 %vm3706_vm10, %v3673_v0  ;;  %v2409_v3 = vpop.permute.xlu1 %2408  ;;  %v2836_v0 = vshrl.u32 %v10292_v32, 16  ;;  %v2841_v32 = vrot.slane %v2839_v18, 2 }
 0x411   : > { %v3310_v28 = vpop.permute.xlu0 %3309  ;;  %6887 = vmatprep.mubr.msk.bf16.mxu1 %vm7521_vm1, %v11267_v2  ;;  %v3819_v62 = vsel %vm3785_vm11, %v3740_v27, %v2409_v3 }
 0x412   : > { %v4130_v21 = vsel %vm3785_vm11, %v4029_v10, %v3310_v28  ;;  %v2838_v53 = vrot.slane %v2836_v0, 1 }
 0x414   : > { %v2616_v37 = vpop.permute.xlu1 %2615 }
 0x415   : > { %v3576_v12 = vpop.permute.xlu0 %3575  ;;  %v3914_v58 = vsel %vm3864_vm12, %v3819_v62, %v2616_v37  ;;  %v3681_v37 = vsel %vm712_vm2, %v3678_v56, %v3680_v41 }
 0x416   : > { %v4223_v59 = vsel %vm3864_vm12, %v4130_v21, %v3576_v12  ;;  %v2842_v12 = vor.u32 %v2841_v32, %v2838_v53 }
 0x417   : > { %4714 = vmatprep.mubr.bf16.mxu0 %v4223_v59  ;;  %v3682_v59 = vrot.slane %v11395_v33, 3  ;;  %v2845_v33 = vshrl.u32 %v11451_v39, 16 }
 0x418   : > { %4715 = vmatmul.mubr.bf16.gmra.mrb[232].mxu0 %v3911_v7  ;;  %6888 = vmatmul.mubr.msk.bf16.gmra.mrb[8].mxu1 %vm3706_vm10, %v3675_v46  ;;  %v2250_v51 = vpop.permute.xlu1 %2249 }
 0x419   : > { %v3140_v23 = vpop.permute.xlu0 %3139  ;;  %6891 = vmatprep.mubr.msk.bf16.mxu1 %vm7521_vm1, %v11267_v2  ;;  %v3742_v50 = vsel %vm3706_vm10, %v10030_v55, %v2250_v51  ;;  %v3683_v15 = vsel %vm712_vm2, %v3680_v41, %v3682_v59 }
 0x41a   : > { %v4032_v1 = vsel %vm3706_vm10, %v2825_v20, %v3140_v23  ;;  %v2843_v23 = vsel %vm2664_vm5, %v2833_v30, %v2842_v12 }
 0x41c   : > { %v2411_v48 = vpop.permute.xlu1 %2410 }
 0x41d   : > { %v3312_v4 = vpop.permute.xlu0 %3311  ;;  %v3821_v11 = vsel %vm3785_vm11, %v3742_v50, %v2411_v48 }
 0x41e   : > { %v4132_v34 = vsel %vm3785_vm11, %v4032_v1, %v3312_v4 }
 0x420   : > { %6892 = vmatmul.mubr.msk.bf16.gmra.mrb[12].mxu1 %vm3706_vm10, %v3677_v52  ;;  %v2618_v22 = vpop.permute.xlu1 %2617  ;;  %v2848_v52 = vshll.u32 %v11451_v39, 16 }
 0x421   : > { %v3578_v13 = vpop.permute.xlu0 %3577  ;;  %6895 = vmatprep.mubr.msk.bf16.mxu1 %vm7521_vm1, %v11267_v2  ;;  %v3917_v31 = vsel %vm3864_vm12, %v3821_v11, %v2618_v22 }
 0x422   : > { %v4226_v38 = vsel %vm3864_vm12, %v4132_v34, %v3578_v13 }
 0x423   : > { %4722 = vmatprep.mubr.bf16.mxu0 %v4226_v38 }
 0x424   : > { %4723 = vmatmul.mubr.bf16.gmra.mrb[236].mxu0 %v3914_v58  ;;  %v2252_v9 = vpop.permute.xlu1 %2251 }
 0x425   : > { %v3142_v19 = vpop.permute.xlu0 %3141  ;;  %v3744_v8 = vsel %vm3706_vm10, %v10088_v40, %v2252_v9  ;;  %v3684_v40 = vrot.slane %v11398_v57, 3  ;;  %v2847_v9 = vrot.slane %v2845_v33, 1 }
 0x426   : > { %v4035_v3 = vsel %vm3706_vm10, %v2834_v17, %v3142_v19  ;;  %v2850_v19 = vrot.slane %v2848_v52, 2 }
 0x427   : > { %v3685_v41 = vsel %vm712_vm2, %v3682_v59, %v3684_v40 }
 0x428   : > { %6896 = vmatmul.mubr.msk.bf16.gmra.mrb[16].mxu1 %vm3706_vm10, %v3679_v35  ;;  %v2413_v16 = vpop.permute.xlu1 %2412  ;;  %v2851_v0 = vor.u32 %v2850_v19, %v2847_v9 }
 0x429   : > { %v3314_v60 = vpop.permute.xlu0 %3313  ;;  %6899 = vmatprep.mubr.msk.bf16.mxu1 %vm7521_vm1, %v11267_v2  ;;  %v3823_v27 = vsel %vm3785_vm11, %v3744_v8, %v2413_v16 }
 0x42a   : > { %v4134_v24 = vsel %vm3785_vm11, %v4035_v3, %v3314_v60  ;;  %v2852_v50 = vsel %vm2664_vm5, %v2842_v12, %v2851_v0 }
 0x42c   : > { %v2620_v28 = vpop.permute.xlu1 %2619 }
 0x42d   : > { %v3580_v5 = vpop.permute.xlu0 %3579  ;;  %v3920_v58 = vsel %vm3864_vm12, %v3823_v27, %v2620_v28  ;;  %v3686_v28 = vrot.slane %v11401_v45, 3 }
 0x42e   : > { %v4229_v10 = vsel %vm3864_vm12, %v4134_v24, %v3580_v5 }
 0x42f   : > { %4730 = vmatprep.mubr.bf16.mxu0 %v4229_v10 }
 0x430   : > { %4731 = vmatmul.mubr.bf16.gmra.mrb[240].mxu0 %v3917_v31  ;;  %6900 = vmatmul.mubr.msk.bf16.gmra.mrb[20].mxu1 %vm3706_vm10, %v3681_v37  ;;  %v2254_v55 = vpop.permute.xlu1 %2253 }
 0x431   : > { %v3144_v21 = vpop.permute.xlu0 %3143  ;;  %6903 = vmatprep.mubr.msk.bf16.mxu1 %vm7521_vm1, %v11267_v2  ;;  %v3746_v53 = vsel %vm3706_vm10, %v10149_v61, %v2254_v55 }
 0x432   : > { %v4038_v48 = vsel %vm3706_vm10, %v2843_v23, %v3144_v21 }
 0x433   : > { %v4941_v36 = vpop.f32.mrb[72].mxu1 }
 0x434   : > { %v6797_v7 = vpop.f32.mrb[73].mxu1  ;;  %v2415_v4 = vpop.permute.xlu1 %2414 }
 0x435   : > { %v4944_v46 = vpop.f32.mrb[74].mxu1  ;;  %v3316_v26 = vpop.permute.xlu0 %3315  ;;  %v3825_v45 = vsel %vm3785_vm11, %v3746_v53, %v2415_v4 }
 0x436   : > { %v6798_v51 = vpop.f32.mrb[75].mxu1  ;;  %v4136_v43 = vsel %vm3785_vm11, %v4038_v48, %v3316_v26 }
 0x437   : > { %v4596_v29 = vpop.f32.mrb[172].mxu0  ;;  %v3687_v51 = vsel %vm712_vm2, %v3684_v40, %v3686_v28 }
 0x438   : > { %v4597_v6 = vadd.f32 %v10537_v47, %v4596_v29  ;;  %v4598_v20 = vpop.f32.mrb[173].mxu0  ;;  %6904 = vmatmul.mubr.msk.bf16.gmra.mrb[24].mxu1 %vm3706_vm10, %v3683_v15  ;;  %v2622_v17 = vpop.permute.xlu1 %2621 }
 0x439   : > { %v3582_v1 = vpop.permute.xlu0 %3581  ;;  %v4599_v22 = vpop.f32.mrb[174].mxu0  ;;  %6907 = vmatprep.mubr.msk.bf16.mxu1 %vm7521_vm1, %v11267_v2  ;;  %v3923_v29 = vsel %vm3864_vm12, %v3825_v45, %v2622_v17 }
 0x43a   : > { %v4942_v34 = vadd.f32 %v4941_v36, %v4597_v6  ;;  %v4600_v13 = vadd.f32 %v10537_v47, %v4599_v22  ;;  %v4601_v62 = vpop.f32.mrb[175].mxu0  ;;  %v4232_v38 = vsel %vm3864_vm12, %v4136_v43, %v3582_v1  ;;  %v3688_v6 = vrot.slane %v8857_v14, 3  ;;  %v11470_v22 = vld [vmem:[#allocation68_spill] sm:$0xff] }
 0x43b   : > { %4738 = vmatprep.mubr.bf16.mxu0 %v4232_v38  ;;  %v4949_v39 = vpop.f32.mrb[76].mxu1  ;;  %v2861_v27 = vsel %vm2664_vm5, %v2851_v0, %v11470_v22 }
 0x43c   : > { %v5252_v25 = vmax.f32 %v4942_v34, 0.0  ;;  %v4945_v63 = vadd.f32 %v4944_v46, %v4600_v13  ;;  %4739 = vmatmul.mubr.bf16.gmra.mrb[244].mxu0 %v3920_v58  ;;  %v6801_v56 = vpop.f32.mrb[77].mxu1  ;;  %v2256_v10 = vpop.permute.xlu1 %2255  ;;  %v3689_v1 = vsel %vm712_vm2, %v3686_v28, %v3688_v6  ;;  %v3692_v28 = vrot.slane %v9041_v49, 3 }
 0x43d   : > { %v4952_v30 = vpop.f32.mrb[78].mxu1  ;;  %v3146_v35 = vpop.permute.xlu0 %3145 }
 0x43e   : > { %5330 = vst.msk [vmem:[#allocation3] sm:$0xff] %vm3785_vm11, %v5252_v25  ;;  %v5253_v16 = vmax.f32 %v4945_v63, 0.0  ;;  %v6802_v60 = vpop.f32.mrb[79].mxu1  ;;  %v4041_v31 = vsel %vm3706_vm10, %v2852_v50, %v3146_v35  ;;  %v11471_v35 = vld [vmem:[#allocation66_spill] sm:$0xff] }
 0x440   : > { %5331 = vst.msk [vmem:[#allocation3 + $0x8] sm:$0xff] %vm3785_vm11, %v5253_v16  ;;  %6908 = vmatmul.mubr.msk.bf16.gmra.mrb[28].mxu1 %vm3706_vm10, %v3685_v41  ;;  %v2417_v15 = vpop.permute.xlu1 %2416  ;;  %v3690_v16 = vrot.slane %v11471_v35, 3 }
 0x441   : > { %v3318_v57 = vpop.permute.xlu0 %3317  ;;  %6911 = vmatprep.mubr.msk.bf16.mxu1 %vm7521_vm1, %v11267_v2 }
 0x442   : > { %v4138_v32 = vsel %vm3785_vm11, %v4041_v31, %v3318_v57 }
 0x443   : > { %v4604_v18 = vpop.f32.mrb[176].mxu0  ;;  %v4957_v3 = vpop.f32.mrb[80].mxu1 }
 0x444   : > { %v4605_v24 = vadd.f32 %v10537_v47, %v4604_v18  ;;  %v4606_v5 = vpop.f32.mrb[177].mxu0  ;;  %v6805_v11 = vpop.f32.mrb[81].mxu1 }
 0x445   : > { %v4960_v37 = vpop.f32.mrb[82].mxu1  ;;  %v3584_v36 = vpop.permute.xlu0 %3583 }
 0x446   : > { %v4950_v21 = vadd.f32 %v4949_v39, %v4605_v24  ;;  %v4607_v59 = vpop.f32.mrb[178].mxu0  ;;  %v6806_v46 = vpop.f32.mrb[83].mxu1  ;;  %v4235_v26 = vsel %vm3864_vm12, %v4138_v32, %v3584_v36  ;;  %v3748_v39 = vsel %vm3706_vm10, %v10212_v42, %v2256_v10 }
 0x447   : > { %v4608_v12 = vadd.f32 %v10537_v47, %v4607_v59  ;;  %v4609_v7 = vpop.f32.mrb[179].mxu0  ;;  %4746 = vmatprep.mubr.bf16.mxu0 %v4235_v26  ;;  %v2624_v62 = vpop.permute.xlu1 %2623  ;;  %v3827_v9 = vsel %vm3785_vm11, %v3748_v39, %v2417_v15  ;;  %v3693_v46 = vsel %vm712_vm2, %v3690_v16, %v3692_v28  ;;  %v5408_v26 = vld [vmem:[#allocation3] ss:$2 sm:$0xff] }
 0x448   : > { %v5254_v23 = vmax.f32 %v4950_v21, 0.0  ;;  %6912 = vmatmul.mubr.msk.bf16.gmra.mrb[32].mxu1 %vm3706_vm10, %v3687_v51  ;;  %4747 = vmatmul.mubr.bf16.gmra.mrb[248].mxu0 %v3923_v29  ;;  %v3926_v42 = vsel %vm3864_vm12, %v3827_v9, %v2624_v62  ;;  %v5486_v51 = vld [vmem:[#allocation3 + $0x1] ss:$2 sm:$0xff] }
 0x449   : > { %v4953_v61 = vadd.f32 %v4952_v30, %v4608_v12  ;;  %6915 = vmatprep.mubr.msk.bf16.mxu1 %vm7521_vm1, %v11267_v2  ;;  %v3148_v55 = vpop.permute.xlu0 %3147 }
 0x44a   : > { %5332 = vst.msk [vmem:[#allocation3 + $0x10] sm:$0xff] %vm3785_vm11, %v5254_v23  ;;  %v4044_v14 = vsel %vm3706_vm10, %v2861_v27, %v3148_v55 }
 0x44b   : > { %v5255_v48 = vmax.f32 %v4953_v61, 0.0  ;;  %v4965_v4 = vpop.f32.mrb[84].mxu1 }
 0x44c   : > { %v6809_v20 = vpop.f32.mrb[85].mxu1 }
 0x44d   : > { %5333 = vst.msk [vmem:[#allocation3 + $0x18] sm:$0xff] %vm3785_vm11, %v5255_v48  ;;  %v4968_v33 = vpop.f32.mrb[86].mxu1  ;;  %v3320_v52 = vpop.permute.xlu0 %3319  ;;  %v3694_v20 = vrot.slane %v9140_v44, 3 }
 0x44e   : > { %v6810_v8 = vpop.f32.mrb[87].mxu1  ;;  %v4140_v58 = vsel %vm3785_vm11, %v4044_v14, %v3320_v52 }
 0x44f   : > { %v4612_v43 = vpop.f32.mrb[180].mxu0  ;;  %v3695_v27 = vsel %vm712_vm2, %v3692_v28, %v3694_v20 }
 0x450   : > { %v4613_v34 = vadd.f32 %v10537_v47, %v4612_v43  ;;  %v4614_v13 = vpop.f32.mrb[181].mxu0  ;;  %6916 = vmatmul.mubr.msk.bf16.gmra.mrb[36].mxu1 %vm3706_vm10, %v3689_v1 }
 0x451   : > { %v4615_v38 = vpop.f32.mrb[182].mxu0  ;;  %6919 = vmatprep.mubr.msk.bf16.mxu1 %vm7521_vm1, %v11267_v2  ;;  %v3586_v25 = vpop.permute.xlu0 %3585 }
 0x452   : > { %v4958_v40 = vadd.f32 %v4957_v3, %v4613_v34  ;;  %v4616_v63 = vadd.f32 %v10537_v47, %v4615_v38  ;;  %v4617_v56 = vpop.f32.mrb[183].mxu0  ;;  %v4238_v19 = vsel %vm3864_vm12, %v4140_v58, %v3586_v25  ;;  %v3691_v3 = vsel %vm712_vm2, %v3688_v6, %v3690_v16  ;;  %v11472_v16 = vld [vmem:[#allocation70_spill] sm:$0xff] }
 0x453   : > { %v10594_v30 = vpop.f32.mrb[88].mxu1  ;;  %4754 = vmatprep.mubr.bf16.mxu0 %v4238_v19  ;;  %v3696_v58 = vrot.slane %v9189_v54, 3 }
 0x454   : > { %v5256_v60 = vmax.f32 %v4958_v40, 0.0  ;;  %v4961_v17 = vadd.f32 %v4960_v37, %v4616_v63  ;;  %v6813_v41 = vpop.f32.mrb[89].mxu1  ;;  %4755 = vmatmul.mubr.bf16.gmra.mrb[252].mxu0 %v3926_v42  ;;  %v5410_v50 = vld [vmem:[#allocation3 + $0x10] ss:$2 sm:$0xff]  ;;  %v5488_v24 = vld [vmem:[#allocation3 + $0x11] ss:$2 sm:$0xff] }
 0x455   : > { %v4976_v0 = vpop.f32.mrb[90].mxu1  ;;  %v10610_v21 = vmax.f32 %v5410_v50, %v5488_v24  ;;  %v3697_v35 = vsel %vm712_vm2, %v3694_v20, %v3696_v58 }
 0x456   : > { %5334 = vst.msk [vmem:[#allocation3 + $0x20] sm:$0xff] %vm3785_vm11, %v5256_v60  ;;  %v5257_v57 = vmax.f32 %v4961_v17, 0.0  ;;  %v6814_v18 = vpop.f32.mrb[91].mxu1  ;;  %v3698_v60 = vrot.slane %v11472_v16, 3 }
 0x457   : > { %v5641_v55 = vrot.slane %v10610_v21, 5  ;;  %v7413_v16 = vld [vmem:[#allocation2 + $0x150] ss:$0 sps:$4 sm:$0x77]  }
 0x458   : > { %5335 = vst.msk [vmem:[#allocation3 + $0x28] sm:$0xff] %vm3785_vm11, %v5257_v57  ;;  %6920 = vmatmul.mubr.msk.bf16.gmra.mrb[40].mxu1 %vm3706_vm10, %v3691_v3  ;;  %v3699_v24 = vsel %vm712_vm2, %v3696_v58, %v3698_v60 }
 0x459   : > { %6923 = vmatprep.mubr.msk.bf16.mxu1 %vm7521_vm1, %v11267_v2 }
 0x45b   : > { %v4620_v5 = vpop.f32.mrb[184].mxu0  ;;  %v10605_v11 = vpop.f32.mrb[92].mxu1 }
 0x45c   : > { %v4621_v10 = vadd.f32 %v10537_v47, %v4620_v5  ;;  %v4622_v31 = vpop.f32.mrb[185].mxu0  ;;  %v6817_v37 = vpop.f32.mrb[93].mxu1 }
 0x45d   : > { %v4623_v53 = vpop.f32.mrb[186].mxu0  ;;  %v10608_v32 = vpop.f32.mrb[94].mxu1 }
 0x45e   : > { %v4966_v36 = vadd.f32 %v4965_v4, %v4621_v10  ;;  %v4624_v59 = vadd.f32 %v10537_v47, %v4623_v53  ;;  %v4625_v45 = vpop.f32.mrb[187].mxu0  ;;  %v6818_v12 = vpop.f32.mrb[95].mxu1  ;;  %v5563_v4 = vmax.f32 %v5408_v26, %v5486_v51 }
 0x45f   : > { %v5412_v49 = vld [vmem:[#allocation3 + $0x20] ss:$2 sm:$0xff]  ;;  %v5490_v7 = vld [vmem:[#allocation3 + $0x21] ss:$2 sm:$0xff] }
 0x460   : > { %v5565_v23 = vmax.f32 %v5412_v49, %v5490_v7  ;;  %v5258_v29 = vmax.f32 %v4966_v36, 0.0  ;;  %v4969_v61 = vadd.f32 %v4968_v33, %v4624_v59  ;;  %6924 = vmatmul.mubr.msk.bf16.gmra.mrb[44].mxu1 %vm3706_vm10, %v3693_v46 }
 0x461   : > { %6927 = vmatprep.mubr.msk.bf16.mxu1 %vm7521_vm1, %v11267_v2 }
 0x462   : > { %v10618_v15 = vrot.slane %v5565_v23, 5  ;;  %5336 = vst.msk [vmem:[#allocation3 + $0x30] sm:$0xff] %vm3785_vm11, %v5258_v29  ;;  %v5259_v48 = vmax.f32 %v4969_v61, 0.0 }
 0x463   : > { %v10621_v6 = vpop.f32.mrb[96].mxu1 }
 0x464   : > { %v5643_v33 = vsel %vm5640_vm13, %v5641_v55, %v10618_v15  ;;  %5337 = vst.msk [vmem:[#allocation3 + $0x38] sm:$0xff] %vm3785_vm11, %v5259_v48  ;;  %v6821_v52 = vpop.f32.mrb[97].mxu1 }
 0x465   : > { %v10627_v8 = vpop.f32.mrb[98].mxu1  ;;  %v5732_v43 = vmax.f32 %v5563_v4, %v5643_v33 }
 0x466   : > { %v6822_v1 = vpop.f32.mrb[99].mxu1 }
 0x467   : > { %v4628_v22 = vpop.f32.mrb[188].mxu0  ;;  %5839 = vst.msk [vmem:[#allocation4] sm:$0xff] %vm3785_vm11, %v5732_v43  ;;  %v7412_v1 = vld [vmem:[#allocation2 + $0x148] sm:$0xff]  }
 0x468   : > { %v4629_v34 = vadd.f32 %v10537_v47, %v4628_v22  ;;  %v4630_v13 = vpop.f32.mrb[189].mxu0  ;;  %6928 = vmatmul.mubr.msk.bf16.gmra.mrb[48].mxu1 %vm3706_vm10, %v3695_v27  ;;  %v3702_v22 = vrot.slane %v7412_v1, 3 }
 0x469   : > { %v4631_v44 = vpop.f32.mrb[190].mxu0  ;;  %6931 = vmatprep.mubr.msk.bf16.mxu1 %vm7521_vm1, %v11267_v2 }
 0x46a   : > { %v4974_v62 = vadd.f32 %v10594_v30, %v4629_v34  ;;  %v4632_v14 = vadd.f32 %v10537_v47, %v4631_v44  ;;  %v4633_v38 = vpop.f32.mrb[191].mxu0 }
 0x46b   : > { %v10637_v39 = vpop.f32.mrb[100].mxu1  ;;  %v5414_v59 = vld [vmem:[#allocation3 + $0x30] ss:$2 sm:$0xff]  ;;  %v5492_v45 = vld [vmem:[#allocation3 + $0x31] ss:$2 sm:$0xff] }
 0x46c   : > { %v5260_v40 = vmax.f32 %v4974_v62, 0.0  ;;  %v4977_v25 = vadd.f32 %v4976_v0, %v4632_v14  ;;  %v6825_v63 = vpop.f32.mrb[101].mxu1  ;;  %v5566_v51 = vmax.f32 %v5414_v59, %v5492_v45 }
 0x46d   : > { %v10640_v56 = vpop.f32.mrb[102].mxu1 }
 0x46e   : > { %5338 = vst.msk [vmem:[#allocation3 + $0x40] sm:$0xff] %vm3785_vm11, %v5260_v40  ;;  %v5261_v9 = vmax.f32 %v4977_v25, 0.0  ;;  %v6826_v19 = vpop.f32.mrb[103].mxu1  ;;  %v5644_v27 = vrot.slane %v5566_v51, 5 }
 0x470   : > { %5339 = vst.msk [vmem:[#allocation3 + $0x48] sm:$0xff] %vm3785_vm11, %v5261_v9  ;;  %6932 = vmatmul.mubr.msk.bf16.gmra.mrb[52].mxu1 %vm3706_vm10, %v3697_v35  ;;  %v5645_v63 = vsel %vm5640_vm13, %v10618_v15, %v5644_v27 }
 0x471   : > { %6935 = vmatprep.mubr.msk.bf16.mxu1 %vm7521_vm1, %v11267_v2 }
 0x473   : > { %v4636_v30 = vpop.f32.mrb[192].mxu0  ;;  %v10648_v54 = vpop.f32.mrb[104].mxu1 }
 0x474   : > { %v4637_v17 = vadd.f32 %v10537_v47, %v4636_v30  ;;  %v4638_v42 = vpop.f32.mrb[193].mxu0  ;;  %v6829_v41 = vpop.f32.mrb[105].mxu1 }
 0x475   : > { %v4639_v0 = vpop.f32.mrb[194].mxu0  ;;  %v10652_v57 = vpop.f32.mrb[106].mxu1 }
 0x476   : > { %v4982_v18 = vadd.f32 %v10605_v11, %v4637_v17  ;;  %v4640_v3 = vadd.f32 %v10537_v47, %v4639_v0  ;;  %v4641_v28 = vpop.f32.mrb[195].mxu0  ;;  %v6830_v50 = vpop.f32.mrb[107].mxu1  ;;  %v11473_v11 = vld [vmem:[#allocation71_spill] sm:$0xff]  ;;  %v5733_v17 = vmax.f32 %v10610_v21, %v5645_v63 }
 0x477   : > { %v3700_v53 = vrot.slane %v11473_v11, 3  ;;  %v5416_v49 = vld [vmem:[#allocation3 + $0x40] ss:$2 sm:$0xff]  ;;  %v5494_v7 = vld [vmem:[#allocation3 + $0x41] ss:$2 sm:$0xff] }
 0x478   : > { %v5262_v5 = vmax.f32 %v4982_v18, 0.0  ;;  %v4985_v10 = vadd.f32 %v10608_v32, %v4640_v3  ;;  %6936 = vmatmul.mubr.msk.bf16.gmra.mrb[56].mxu1 %vm3706_vm10, %v3699_v24  ;;  %v10673_v55 = vmax.f32 %v5416_v49, %v5494_v7 }
 0x479   : > { %6939 = vmatprep.mubr.msk.bf16.mxu1 %vm7521_vm1, %v11267_v2  ;;  %v3701_v26 = vsel %vm712_vm2, %v3698_v60, %v3700_v53  ;;  %v3703_v25 = vsel %vm712_vm2, %v3700_v53, %v3702_v22  ;;  %v3704_v60 = vrot.slane %v7413_v16, 3 }
 0x47a   : > { %5340 = vst.msk [vmem:[#allocation3 + $0x50] sm:$0xff] %vm3785_vm11, %v5262_v5  ;;  %v5263_v31 = vmax.f32 %v4985_v10, 0.0  ;;  %v5646_v38 = vrot.slane %v10673_v55, 5 }
 0x47b   : > { %v10662_v37 = vpop.f32.mrb[108].mxu1  ;;  %v3705_v21 = vsel %vm712_vm2, %v3702_v22, %v3704_v60 }
 0x47c   : > { %5341 = vst.msk [vmem:[#allocation3 + $0x58] sm:$0xff] %vm3785_vm11, %v5263_v31  ;;  %v6833_v36 = vpop.f32.mrb[109].mxu1 }
 0x47d   : > { %v10666_v12 = vpop.f32.mrb[110].mxu1 }
 0x47e   : > { %v6834_v32 = vpop.f32.mrb[111].mxu1 }
 0x47f   : > { %v4644_v46 = vpop.f32.mrb[196].mxu0 }
 0x480   : > { %v4645_v23 = vadd.f32 %v10537_v47, %v4644_v46  ;;  %v4646_v29 = vpop.f32.mrb[197].mxu0  ;;  %6940 = vmatmul.mubr.msk.bf16.gmra.mrb[60].mxu1 %vm3706_vm10, %v3701_v26 }
 0x481   : > { %v4647_v61 = vpop.f32.mrb[198].mxu0  ;;  %6943 = vmatprep.mubr.msk.bf16.mxu1 %vm7521_vm1, %v11267_v2 }
 0x482   : > { %v4990_v48 = vadd.f32 %v10621_v6, %v4645_v23  ;;  %v4648_v4 = vadd.f32 %v10537_v47, %v4647_v61  ;;  %v4649_v20 = vpop.f32.mrb[199].mxu0 }
 0x483   : > { %v5418_v33 = vld [vmem:[#allocation3 + $0x50] ss:$2 sm:$0xff]  ;;  %v5496_v52 = vld [vmem:[#allocation3 + $0x51] ss:$2 sm:$0xff]  ;;  %v10677_v43 = vpop.f32.mrb[112].mxu1 }
 0x484   : > { %v5568_v34 = vmax.f32 %v5418_v33, %v5496_v52  ;;  %v5264_v13 = vmax.f32 %v4990_v48, 0.0  ;;  %v4993_v44 = vadd.f32 %v10627_v8, %v4648_v4  ;;  %v6837_v62 = vpop.f32.mrb[113].mxu1 }
 0x485   : > { %v10680_v14 = vpop.f32.mrb[114].mxu1 }
 0x486   : > { %v5647_v6 = vrot.slane %v5568_v34, 5  ;;  %5342 = vst.msk [vmem:[#allocation3 + $0x60] sm:$0xff] %vm3785_vm11, %v5264_v13  ;;  %v5265_v58 = vmax.f32 %v4993_v44, 0.0  ;;  %v6838_v40 = vpop.f32.mrb[115].mxu1 }
 0x488   : > { %v5648_v9 = vsel %vm5640_vm13, %v5646_v38, %v5647_v6  ;;  %5343 = vst.msk [vmem:[#allocation3 + $0x68] sm:$0xff] %vm3785_vm11, %v5265_v58  ;;  %6944 = vmatmul.mubr.msk.bf16.gmra.mrb[64].mxu1 %vm3706_vm10, %v3703_v25 }
 0x489   : > { %v5734_v8 = vmax.f32 %v5566_v51, %v5648_v9  ;;  %6947 = vmatprep.mubr.msk.bf16.mxu1 %vm7521_vm1, %v11267_v2 }
 0x48b   : > { %v5762_v19 = vrot.slane %v5734_v8, 6  ;;  %v4652_v35 = vpop.f32.mrb[200].mxu0  ;;  %v10692_v30 = vpop.f32.mrb[116].mxu1 }
 0x48c   : > { %v4653_v15 = vadd.f32 %v10537_v47, %v4652_v35  ;;  %v4654_v42 = vpop.f32.mrb[201].mxu0  ;;  %v6841_v41 = vpop.f32.mrb[117].mxu1 }
 0x48d   : > { %v4655_v0 = vpop.f32.mrb[202].mxu0  ;;  %v10696_v18 = vpop.f32.mrb[118].mxu1  ;;  %v5833_v3 = vsel %vm711_vm0, %v5733_v17, %v5762_v19 }
 0x48e   : > { %v4998_v28 = vadd.f32 %v10637_v39, %v4653_v15  ;;  %v4656_v2 = vadd.f32 %v10537_v47, %v4655_v0  ;;  %v4657_v50 = vpop.f32.mrb[203].mxu0  ;;  %v6842_v24 = vpop.f32.mrb[119].mxu1  ;;  %5840 = vst.msk [vmem:[#allocation4 + $0x8] sm:$0xff] %vm3785_vm11, %v5833_v3 }
 0x48f   : > { %v5420_v5 = vld [vmem:[#allocation3 + $0x60] ss:$2 sm:$0xff]  ;;  %v5498_v10 = vld [vmem:[#allocation3 + $0x61] ss:$2 sm:$0xff] }
 0x490   : > { %v10703_v31 = vmax.f32 %v5420_v5, %v5498_v10  ;;  %v5266_v11 = vmax.f32 %v4998_v28, 0.0  ;;  %v5001_v53 = vadd.f32 %v10640_v56, %v4656_v2  ;;  %6948 = vmatmul.mubr.msk.bf16.gmra.mrb[68].mxu1 %vm3706_vm10, %v3705_v21 }
 0x492   : > { %v5649_v36 = vrot.slane %v10703_v31, 5  ;;  %5344 = vst.msk [vmem:[#allocation3 + $0x70] sm:$0xff] %vm3785_vm11, %v5266_v11  ;;  %v5267_v39 = vmax.f32 %v5001_v53, 0.0 }
 0x493   : > { %v10709_v59 = vpop.f32.mrb[120].mxu1 }
 0x494   : > { %v5650_v45 = vsel %vm5640_vm13, %v5647_v6, %v5649_v36  ;;  %5345 = vst.msk [vmem:[#allocation3 + $0x78] sm:$0xff] %vm3785_vm11, %v5267_v39  ;;  %v6845_v32 = vpop.f32.mrb[121].mxu1 }
 0x495   : > { %v10713_v49 = vpop.f32.mrb[122].mxu1  ;;  %v5735_v7 = vmax.f32 %v10673_v55, %v5650_v45 }
 0x496   : > { %v6846_v46 = vpop.f32.mrb[123].mxu1 }
 0x497   : > { %v4660_v56 = vpop.f32.mrb[204].mxu0  ;;  %v5763_v26 = vrot.slane %v5735_v7, 6 }
 0x498   : > { %v4661_v51 = vadd.f32 %v10537_v47, %v4660_v56  ;;  %v4662_v23 = vpop.f32.mrb[205].mxu0 }
 0x499   : > { %v4663_v29 = vpop.f32.mrb[206].mxu0  ;;  %v5764_v61 = vsel %vm5761_vm14, %v5762_v19, %v5763_v26 }
 0x49a   : > { %v5006_v48 = vadd.f32 %v10648_v54, %v4661_v51  ;;  %v4664_v4 = vadd.f32 %v10537_v47, %v4663_v29  ;;  %v4665_v20 = vpop.f32.mrb[207].mxu0  ;;  %5841 = vst.msk [vmem:[#allocation4 + $0x10] sm:$0xff] %vm3785_vm11, %v5764_v61 }
 0x49b   : > { %v10721_v33 = vpop.f32.mrb[124].mxu1  ;;  %v5422_v60 = vld [vmem:[#allocation3 + $0x70] ss:$2 sm:$0xff]  ;;  %v5500_v17 = vld [vmem:[#allocation3 + $0x71] ss:$2 sm:$0xff] }
 0x49c   : > { %v5268_v55 = vmax.f32 %v5006_v48, 0.0  ;;  %v5009_v52 = vadd.f32 %v10652_v57, %v4664_v4  ;;  %v6849_v1 = vpop.f32.mrb[125].mxu1  ;;  %v5570_v0 = vmax.f32 %v5422_v60, %v5500_v17 }
 0x49d   : > { %v10724_v22 = vpop.f32.mrb[126].mxu1 }
 0x49e   : > { %5346 = vst.msk [vmem:[#allocation3 + $0x80] sm:$0xff] %vm3785_vm11, %v5268_v55  ;;  %v5269_v27 = vmax.f32 %v5009_v52, 0.0  ;;  %v6850_v34 = vpop.f32.mrb[127].mxu1  ;;  %v5651_v5 = vrot.slane %v5570_v0, 5 }
 0x4a0   : > { %5347 = vst.msk [vmem:[#allocation3 + $0x88] sm:$0xff] %vm3785_vm11, %v5269_v27 }
 0x4a3   : > { %v4668_v54 = vpop.f32.mrb[208].mxu0  ;;  %v10728_v13 = vpop.f32.mrb[128].mxu1 }
 0x4a4   : > { %v4669_v44 = vadd.f32 %v10537_v47, %v4668_v54  ;;  %v4670_v62 = vpop.f32.mrb[209].mxu0  ;;  %v6853_v38 = vpop.f32.mrb[129].mxu1 }
 0x4a5   : > { %v4671_v6 = vpop.f32.mrb[210].mxu0  ;;  %v10731_v58 = vpop.f32.mrb[130].mxu1 }
 0x4a6   : > { %v5014_v57 = vadd.f32 %v10662_v37, %v4669_v44  ;;  %v4672_v40 = vadd.f32 %v10537_v47, %v4671_v6  ;;  %v4673_v25 = vpop.f32.mrb[211].mxu0  ;;  %v6854_v63 = vpop.f32.mrb[131].mxu1 }
 0x4a7   : > { %v5424_v19 = vld [vmem:[#allocation3 + $0x80] ss:$2 sm:$0xff]  ;;  %v5502_v35 = vld [vmem:[#allocation3 + $0x81] ss:$2 sm:$0xff] }
 0x4a8   : > { %v5270_v9 = vmax.f32 %v5014_v57, 0.0  ;;  %v5017_v8 = vadd.f32 %v10666_v12, %v4672_v40  ;;  %v5571_v42 = vmax.f32 %v5424_v19, %v5502_v35 }
 0x4aa   : > { %5348 = vst.msk [vmem:[#allocation3 + $0x90] sm:$0xff] %vm3785_vm11, %v5270_v9  ;;  %v5271_v16 = vmax.f32 %v5017_v8, 0.0  ;;  %v5652_v2 = vrot.slane %v5571_v42, 5 }
 0x4ab   : > { %v10737_v15 = vpop.f32.mrb[132].mxu1 }
 0x4ac   : > { %5349 = vst.msk [vmem:[#allocation3 + $0x98] sm:$0xff] %vm3785_vm11, %v5271_v16  ;;  %v6857_v37 = vpop.f32.mrb[133].mxu1  ;;  %v5653_v45 = vsel %vm5640_vm13, %v5651_v5, %v5652_v2 }
 0x4ad   : > { %v10740_v41 = vpop.f32.mrb[134].mxu1  ;;  %v5736_v29 = vmax.f32 %v10703_v31, %v5653_v45 }
 0x4ae   : > { %v6858_v3 = vpop.f32.mrb[135].mxu1 }
 0x4af   : > { %v4676_v28 = vpop.f32.mrb[212].mxu0  ;;  %v5769_v4 = vrot.slane %v5736_v29, 4 }
 0x4b0   : > { %v4677_v12 = vadd.f32 %v10537_v47, %v4676_v28  ;;  %v4678_v50 = vpop.f32.mrb[213].mxu0 }
 0x4b1   : > { %v4679_v24 = vpop.f32.mrb[214].mxu0 }
 0x4b2   : > { %v5022_v10 = vadd.f32 %v10677_v43, %v4677_v12  ;;  %v4680_v21 = vadd.f32 %v10537_v47, %v4679_v24  ;;  %v4681_v11 = vpop.f32.mrb[215].mxu0 }
 0x4b3   : > { %v5426_v53 = vld [vmem:[#allocation3 + $0x90] ss:$2 sm:$0xff]  ;;  %v5504_v36 = vld [vmem:[#allocation3 + $0x91] ss:$2 sm:$0xff]  ;;  %v10745_v39 = vpop.f32.mrb[136].mxu1 }
 0x4b4   : > { %v10748_v32 = vmax.f32 %v5426_v53, %v5504_v36  ;;  %v5272_v7 = vmax.f32 %v5022_v10, 0.0  ;;  %v5025_v46 = vadd.f32 %v10680_v14, %v4680_v21  ;;  %v6861_v56 = vpop.f32.mrb[137].mxu1 }
 0x4b5   : > { %v10751_v26 = vpop.f32.mrb[138].mxu1 }
 0x4b6   : > { %v5654_v51 = vrot.slane %v10748_v32, 5  ;;  %5350 = vst.msk [vmem:[#allocation3 + $0xa0] sm:$0xff] %vm3785_vm11, %v5272_v7  ;;  %v5273_v43 = vmax.f32 %v5025_v46, 0.0  ;;  %v6862_v23 = vpop.f32.mrb[139].mxu1 }
 0x4b8   : > { %v5655_v61 = vsel %vm5640_vm13, %v5652_v2, %v5654_v51  ;;  %5351 = vst.msk [vmem:[#allocation3 + $0xa8] sm:$0xff] %vm3785_vm11, %v5273_v43 }
 0x4b9   : > { %v5737_v48 = vmax.f32 %v5570_v0, %v5655_v61 }
 0x4bb   : > { %v4684_v20 = vpop.f32.mrb[216].mxu0  ;;  %v10758_v55 = vpop.f32.mrb[140].mxu1  ;;  %v10760_v14 = vrot.slane %v5737_v48, 4 }
 0x4bc   : > { %v4685_v52 = vadd.f32 %v10537_v47, %v4684_v20  ;;  %v4686_v1 = vpop.f32.mrb[217].mxu0  ;;  %v6865_v27 = vpop.f32.mrb[141].mxu1 }
 0x4bd   : > { %v4687_v34 = vpop.f32.mrb[218].mxu0  ;;  %v10763_v54 = vpop.f32.mrb[142].mxu1  ;;  %v5771_v31 = vsel %vm711_vm0, %v5769_v4, %v10760_v14 }
 0x4be   : > { %v5030_v44 = vadd.f32 %v10692_v30, %v4685_v52  ;;  %v4688_v62 = vadd.f32 %v10537_v47, %v4687_v34  ;;  %v4689_v38 = vpop.f32.mrb[219].mxu0  ;;  %v6866_v6 = vpop.f32.mrb[143].mxu1  ;;  %5842 = vst.msk [vmem:[#allocation4 + $0x18] sm:$0xff] %vm3785_vm11, %v5771_v31  ;;  %v5875_v30 = vld [vmem:[#allocation4 + $0x1] ss:$2 sm:$0xff] }
 0x4bf   : > { %v5428_v53 = vld [vmem:[#allocation3 + $0xa0] ss:$2 sm:$0xff]  ;;  %v5506_v36 = vld [vmem:[#allocation3 + $0xa1] ss:$2 sm:$0xff] }
 0x4c0   : > { %v5274_v57 = vmax.f32 %v5030_v44, 0.0  ;;  %v5033_v40 = vadd.f32 %v10696_v18, %v4688_v62  ;;  %v5573_v45 = vmax.f32 %v5428_v53, %v5506_v36 }
 0x4c2   : > { %5352 = vst.msk [vmem:[#allocation3 + $0xb0] sm:$0xff] %vm3785_vm11, %v5274_v57  ;;  %v5275_v25 = vmax.f32 %v5033_v40, 0.0  ;;  %v5656_v61 = vrot.slane %v5573_v45, 5 }
 0x4c3   : > { %v10772_v63 = vpop.f32.mrb[144].mxu1 }
 0x4c4   : > { %5353 = vst.msk [vmem:[#allocation3 + $0xb8] sm:$0xff] %vm3785_vm11, %v5275_v25  ;;  %v6869_v9 = vpop.f32.mrb[145].mxu1 }
 0x4c5   : > { %v10775_v8 = vpop.f32.mrb[146].mxu1  ;;  %v5877_v19 = vld [vmem:[#allocation4 + $0x11] ss:$2 sm:$0xff] }
 0x4c6   : > { %v6870_v35 = vpop.f32.mrb[147].mxu1  ;;  %v7223_v16 = vpack.i.bf16 %v5877_v19, %v5875_v30 }
 0x4c7   : > { %v4692_v60 = vpop.f32.mrb[220].mxu0 }
 0x4c8   : > { %v4693_v17 = vadd.f32 %v10537_v47, %v4692_v60  ;;  %v4694_v42 = vpop.f32.mrb[221].mxu0  ;;  %7224 = vrot.lane.b32.xlu0 %v7223_v16, %s7524_s23 }
 0x4c9   : > { %v4695_v18 = vpop.f32.mrb[222].mxu0 }
 0x4ca   : > { %v5038_v37 = vadd.f32 %v10709_v59, %v4693_v17  ;;  %v4696_v0 = vadd.f32 %v10537_v47, %v4695_v18  ;;  %v4697_v3 = vpop.f32.mrb[223].mxu0 }
 0x4cb   : > { %v10781_v28 = vpop.f32.mrb[148].mxu1  ;;  %v5430_v24 = vld [vmem:[#allocation3 + $0xb0] ss:$2 sm:$0xff]  ;;  %v5508_v5 = vld [vmem:[#allocation3 + $0xb1] ss:$2 sm:$0xff] }
 0x4cc   : > { %v5276_v2 = vmax.f32 %v5038_v37, 0.0  ;;  %v5041_v12 = vadd.f32 %v10713_v49, %v4696_v0  ;;  %v6873_v50 = vpop.f32.mrb[149].mxu1  ;;  %v10787_v59 = vmax.f32 %v5430_v24, %v5508_v5 }
 0x4cd   : > { %v10784_v10 = vpop.f32.mrb[150].mxu1 }
 0x4ce   : > { %5354 = vst.msk [vmem:[#allocation3 + $0xc0] sm:$0xff] %vm3785_vm11, %v5276_v2  ;;  %v5277_v21 = vmax.f32 %v5041_v12, 0.0  ;;  %v6874_v11 = vpop.f32.mrb[151].mxu1  ;;  %v5657_v49 = vrot.slane %v10787_v59, 5 }
 0x4d0   : > { %5355 = vst.msk [vmem:[#allocation3 + $0xc8] sm:$0xff] %vm3785_vm11, %v5277_v21  ;;  %v5658_v34 = vsel %vm5640_vm13, %v5656_v61, %v5657_v49 }
 0x4d1   : > { %v5738_v57 = vmax.f32 %v10748_v32, %v5658_v34 }
 0x4d3   : > { %v4700_v7 = vpop.f32.mrb[224].mxu0  ;;  %v10790_v46 = vpop.f32.mrb[152].mxu1  ;;  %v5778_v60 = vrot.slane %v5738_v57, 2 }
 0x4d4   : > { %v4701_v56 = vadd.f32 %v10537_v47, %v4700_v7  ;;  %v4702_v51 = vpop.f32.mrb[225].mxu0  ;;  %v6877_v43 = vpop.f32.mrb[153].mxu1 }
 0x4d5   : > { %v4703_v23 = vpop.f32.mrb[226].mxu0  ;;  %v10794_v29 = vpop.f32.mrb[154].mxu1 }
 0x4d6   : > { %v5046_v48 = vadd.f32 %v10721_v33, %v4701_v56  ;;  %v4704_v4 = vadd.f32 %v10537_v47, %v4703_v23  ;;  %v4705_v20 = vpop.f32.mrb[227].mxu0  ;;  %v6878_v52 = vpop.f32.mrb[155].mxu1 }
 0x4d7   : > { %v5432_v1 = vld [vmem:[#allocation3 + $0xc0] ss:$2 sm:$0xff]  ;;  %v5510_v27 = vld [vmem:[#allocation3 + $0xc1] ss:$2 sm:$0xff] }
 0x4d8   : > { %v5575_v31 = vmax.f32 %v5432_v1, %v5510_v27  ;;  %v5278_v44 = vmax.f32 %v5046_v48, 0.0  ;;  %v5049_v62 = vadd.f32 %v10724_v22, %v4704_v4 }
 0x4da   : > { %v5659_v38 = vrot.slane %v5575_v31, 5  ;;  %5356 = vst.msk [vmem:[#allocation3 + $0xd0] sm:$0xff] %vm3785_vm11, %v5278_v44  ;;  %v5279_v6 = vmax.f32 %v5049_v62, 0.0 }
 0x4db   : > { %v5109_v40 = vpop.f32.mrb[0].mxu1 }
 0x4dc   : > { %v5660_v33 = vsel %vm5640_vm13, %v5657_v49, %v5659_v38  ;;  %5357 = vst.msk [vmem:[#allocation3 + $0xd8] sm:$0xff] %vm3785_vm11, %v5279_v6  ;;  %v7067_v25 = vadd.f32 %v10537_v47, %v5109_v40  ;;  %v6881_v9 = vpop.f32.mrb[1].mxu1 }
 0x4dd   : > { %v5739_v30 = vmax.f32 %v5573_v45, %v5660_v33  ;;  %v5112_v19 = vpop.f32.mrb[2].mxu1 }
 0x4de   : > { %v5294_v35 = vmax.f32 %v7067_v25, 0.0  ;;  %v7068_v16 = vadd.f32 %v10537_v47, %v5112_v19  ;;  %v6882_v22 = vpop.f32.mrb[3].mxu1 }
 0x4df   : > { %v5779_v17 = vrot.slane %v5739_v30, 2  ;;  %v4708_v42 = vpop.f32.mrb[228].mxu0 }
 0x4e0   : > { %5372 = vst.msk [vmem:[#allocation3 + $0x150] sm:$0xff] %vm3785_vm11, %v5294_v35  ;;  %v5295_v32 = vmax.f32 %v7068_v16, 0.0  ;;  %v4709_v18 = vadd.f32 %v10537_v47, %v4708_v42  ;;  %v4710_v37 = vpop.f32.mrb[229].mxu0 }
 0x4e1   : > { %v4711_v0 = vpop.f32.mrb[230].mxu0  ;;  %v5780_v3 = vsel %vm3027_vm9, %v5778_v60, %v5779_v17 }
 0x4e2   : > { %5373 = vst.msk [vmem:[#allocation3 + $0x158] sm:$0xff] %vm3785_vm11, %v5295_v32  ;;  %v5054_v2 = vadd.f32 %v10728_v13, %v4709_v18  ;;  %v4712_v12 = vadd.f32 %v10537_v47, %v4711_v0  ;;  %v4713_v50 = vpop.f32.mrb[231].mxu0  ;;  %v5834_v24 = vsel %vm711_vm0, %v10760_v14, %v5780_v3 }
 0x4e3   : > { %v5434_v5 = vld [vmem:[#allocation3 + $0xd0] ss:$2 sm:$0xff]  ;;  %v5512_v21 = vld [vmem:[#allocation3 + $0xd1] ss:$2 sm:$0xff]  ;;  %v5117_v11 = vpop.f32.mrb[4].mxu1  ;;  %5843 = vst.msk [vmem:[#allocation4 + $0x20] sm:$0xff] %vm3785_vm11, %v5834_v24 }
 0x4e4   : > { %v10815_v53 = vmax.f32 %v5434_v5, %v5512_v21  ;;  %v5280_v36 = vmax.f32 %v5054_v2, 0.0  ;;  %v5057_v45 = vadd.f32 %v10731_v58, %v4712_v12  ;;  %v7069_v7 = vadd.f32 %v10537_v47, %v5117_v11  ;;  %v6885_v49 = vpop.f32.mrb[5].mxu1 }
 0x4e5   : > { %v5120_v13 = vpop.f32.mrb[6].mxu1 }
 0x4e6   : > { %v5661_v56 = vrot.slane %v10815_v53, 5  ;;  %5358 = vst.msk [vmem:[#allocation3 + $0xe0] sm:$0xff] %vm3785_vm11, %v5280_v36  ;;  %v5281_v51 = vmax.f32 %v5057_v45, 0.0  ;;  %v5296_v14 = vmax.f32 %v7069_v7, 0.0  ;;  %v7070_v43 = vadd.f32 %v10537_v47, %v5120_v13  ;;  %v6886_v23 = vpop.f32.mrb[7].mxu1 }
 0x4e8   : > { %v5662_v61 = vsel %vm5640_vm13, %v5659_v38, %v5661_v56  ;;  %5359 = vst.msk [vmem:[#allocation3 + $0xe8] sm:$0xff] %vm3785_vm11, %v5281_v51  ;;  %5374 = vst.msk [vmem:[#allocation3 + $0x160] sm:$0xff] %vm3785_vm11, %v5296_v14  ;;  %v5297_v58 = vmax.f32 %v7070_v43, 0.0  ;;  %v10849_v51 = vld [vmem:[#allocation9] ss:$0 sm:$0xff] }
 0x4e9   : > { %v5740_v48 = vmax.f32 %v10787_v59, %v5662_v61 }
 0x4ea   : > { %5375 = vst.msk [vmem:[#allocation3 + $0x168] sm:$0xff] %vm3785_vm11, %v5297_v58 }
 0x4eb   : > { %v4716_v4 = vpop.f32.mrb[232].mxu0  ;;  %v5125_v20 = vpop.f32.mrb[8].mxu1  ;;  %v5781_v52 = vrot.slane %v5740_v48, 2 }
 0x4ec   : > { %v4717_v1 = vadd.f32 %v10537_v47, %v4716_v4  ;;  %v7071_v27 = vadd.f32 %v10537_v47, %v5125_v20  ;;  %v4718_v34 = vpop.f32.mrb[233].mxu0  ;;  %v6889_v31 = vpop.f32.mrb[9].mxu1 }
 0x4ed   : > { %v4719_v44 = vpop.f32.mrb[234].mxu0  ;;  %v5128_v62 = vpop.f32.mrb[10].mxu1  ;;  %v5782_v38 = vsel %vm3027_vm9, %v5779_v17, %v5781_v52 }
 0x4ee   : > { %v5062_v6 = vadd.f32 %v10737_v15, %v4717_v1  ;;  %v5298_v57 = vmax.f32 %v7071_v27, 0.0  ;;  %v4720_v59 = vadd.f32 %v10537_v47, %v4719_v44  ;;  %v7072_v40 = vadd.f32 %v10537_v47, %v5128_v62  ;;  %v4721_v33 = vpop.f32.mrb[235].mxu0  ;;  %v6890_v25 = vpop.f32.mrb[11].mxu1  ;;  %5844 = vst.msk [vmem:[#allocation4 + $0x28] sm:$0xff] %vm3785_vm11, %v5782_v38 }
 0x4ef   : > { %v5436_v18 = vld [vmem:[#allocation3 + $0xe0] ss:$2 sm:$0xff]  ;;  %v5514_v37 = vld [vmem:[#allocation3 + $0xe1] ss:$2 sm:$0xff] }
 0x4f0   : > { %v5282_v9 = vmax.f32 %v5062_v6, 0.0  ;;  %5376 = vst.msk [vmem:[#allocation3 + $0x170] sm:$0xff] %vm3785_vm11, %v5298_v57  ;;  %v5065_v30 = vadd.f32 %v10740_v41, %v4720_v59  ;;  %v5299_v19 = vmax.f32 %v7072_v40, 0.0  ;;  %v10843_v50 = vmax.f32 %v5436_v18, %v5514_v37 }
 0x4f2   : > { %5360 = vst.msk [vmem:[#allocation3 + $0xf0] sm:$0xff] %vm3785_vm11, %v5282_v9  ;;  %v5283_v35 = vmax.f32 %v5065_v30, 0.0  ;;  %5377 = vst.msk [vmem:[#allocation3 + $0x178] sm:$0xff] %vm3785_vm11, %v5299_v19  ;;  %v5663_v23 = vrot.slane %v10843_v50, 5 }
 0x4f3   : > { %v5133_v15 = vpop.f32.mrb[12].mxu1 }
 0x4f4   : > { %5361 = vst.msk [vmem:[#allocation3 + $0xf8] sm:$0xff] %vm3785_vm11, %v5283_v35  ;;  %v7073_v16 = vadd.f32 %v10537_v47, %v5133_v15  ;;  %v6893_v22 = vpop.f32.mrb[13].mxu1 }
 0x4f5   : > { %v5136_v60 = vpop.f32.mrb[14].mxu1 }
 0x4f6   : > { %v5300_v17 = vmax.f32 %v7073_v16, 0.0  ;;  %v7074_v42 = vadd.f32 %v10537_v47, %v5136_v60  ;;  %v6894_v32 = vpop.f32.mrb[15].mxu1 }
 0x4f7   : > { %v4724_v41 = vpop.f32.mrb[236].mxu0 }
 0x4f8   : > { %5378 = vst.msk [vmem:[#allocation3 + $0x180] sm:$0xff] %vm3785_vm11, %v5300_v17  ;;  %v5301_v0 = vmax.f32 %v7074_v42, 0.0  ;;  %v4725_v3 = vadd.f32 %v10537_v47, %v4724_v41  ;;  %v4726_v2 = vpop.f32.mrb[237].mxu0 }
 0x4f9   : > { %v4727_v12 = vpop.f32.mrb[238].mxu0 }
 0x4fa   : > { %5379 = vst.msk [vmem:[#allocation3 + $0x188] sm:$0xff] %vm3785_vm11, %v5301_v0  ;;  %v5070_v24 = vadd.f32 %v10745_v39, %v4725_v3  ;;  %v4728_v5 = vadd.f32 %v10537_v47, %v4727_v12  ;;  %v4729_v21 = vpop.f32.mrb[239].mxu0 }
 0x4fb   : > { %v5438_v11 = vld [vmem:[#allocation3 + $0xf0] ss:$2 sm:$0xff]  ;;  %v5516_v36 = vld [vmem:[#allocation3 + $0xf1] ss:$2 sm:$0xff]  ;;  %v5141_v45 = vpop.f32.mrb[16].mxu1 }
 0x4fc   : > { %v5578_v7 = vmax.f32 %v5438_v11, %v5516_v36  ;;  %v5284_v49 = vmax.f32 %v5070_v24, 0.0  ;;  %v5073_v13 = vadd.f32 %v10751_v26, %v4728_v5  ;;  %v6897_v56 = vpop.f32.mrb[17].mxu1  ;;  %v7075_v14 = vadd.f32 %v10849_v51, %v5141_v45  ;;  %v5454_v5 = vld [vmem:[#allocation3 + $0x170] ss:$2 sm:$0xff]  ;;  %v5532_v21 = vld [vmem:[#allocation3 + $0x171] ss:$2 sm:$0xff] }
 0x4fd   : > { %v5144_v43 = vpop.f32.mrb[18].mxu1 }
 0x4fe   : > { %v10853_v61 = vrot.slane %v5578_v7, 5  ;;  %5362 = vst.msk [vmem:[#allocation3 + $0x100] sm:$0xff] %vm3785_vm11, %v5284_v49  ;;  %v5285_v47 = vmax.f32 %v5073_v13, 0.0  ;;  %v7076_v39 = vadd.f32 %v10849_v51, %v5144_v43  ;;  %v6898_v58 = vpop.f32.mrb[19].mxu1  ;;  %v5302_v48 = vmax.f32 %v7075_v14, 0.0 }
 0x500   : > { %v5665_v26 = vsel %vm5640_vm13, %v5663_v23, %v10853_v61  ;;  %5363 = vst.msk [vmem:[#allocation3 + $0x108] sm:$0xff] %vm3785_vm11, %v5285_v47  ;;  %v5303_v4 = vmax.f32 %v7076_v39, 0.0  ;;  %5380 = vst.msk [vmem:[#allocation3 + $0x190] sm:$0xff] %vm3785_vm11, %v5302_v48  ;;  %v10889_v47 = vmax.f32 %v5454_v5, %v5532_v21 }
 0x501   : > { %v5741_v20 = vmax.f32 %v10815_v53, %v5665_v26  ;;  %v5456_v15 = vld [vmem:[#allocation3 + $0x180] ss:$2 sm:$0xff]  ;;  %v5534_v16 = vld [vmem:[#allocation3 + $0x181] ss:$2 sm:$0xff] }
 0x502   : > { %5381 = vst.msk [vmem:[#allocation3 + $0x198] sm:$0xff] %vm3785_vm11, %v5303_v4  ;;  %v10875_v32 = vmax.f32 %v5456_v15, %v5534_v16 }
 0x503   : > { %v4732_v52 = vpop.f32.mrb[240].mxu0  ;;  %v5149_v1 = vpop.f32.mrb[20].mxu1  ;;  %5845 = vst.msk [vmem:[#allocation4 + $0x30] sm:$0xff] %vm3785_vm11, %v5741_v20 }
 0x504   : > { %v4733_v27 = vadd.f32 %v10849_v51, %v4732_v52  ;;  %v7077_v34 = vadd.f32 %v10849_v51, %v5149_v1  ;;  %v4734_v31 = vpop.f32.mrb[241].mxu0  ;;  %v6901_v44 = vpop.f32.mrb[21].mxu1  ;;  %v5679_v11 = vrot.slane %v10875_v32, 5 }
 0x505   : > { %v4735_v62 = vpop.f32.mrb[242].mxu0  ;;  %v5152_v38 = vpop.f32.mrb[22].mxu1 }
 0x506   : > { %v5078_v6 = vadd.f32 %v10758_v55, %v4733_v27  ;;  %v5304_v57 = vmax.f32 %v7077_v34, 0.0  ;;  %v4736_v59 = vadd.f32 %v10849_v51, %v4735_v62  ;;  %v4737_v53 = vpop.f32.mrb[243].mxu0  ;;  %v6902_v40 = vpop.f32.mrb[23].mxu1  ;;  %v7078_v33 = vadd.f32 %v10849_v51, %v5152_v38 }
 0x507   : > { %v5440_v44 = vld [vmem:[#allocation3 + $0x100] ss:$2 sm:$0xff]  ;;  %v5518_v62 = vld [vmem:[#allocation3 + $0x101] ss:$2 sm:$0xff] }
 0x508   : > { %v5286_v25 = vmax.f32 %v5078_v6, 0.0  ;;  %5382 = vst.msk [vmem:[#allocation3 + $0x1a0] sm:$0xff] %vm3785_vm11, %v5304_v57  ;;  %v5081_v9 = vadd.f32 %v10763_v54, %v4736_v59  ;;  %v5305_v35 = vmax.f32 %v7078_v33, 0.0  ;;  %v5579_v59 = vmax.f32 %v5440_v44, %v5518_v62 }
 0x509   : > { %v5458_v30 = vld [vmem:[#allocation3 + $0x190] ss:$2 sm:$0xff]  ;;  %v5536_v19 = vld [vmem:[#allocation3 + $0x191] ss:$2 sm:$0xff] }
 0x50a   : > { %5364 = vst.msk [vmem:[#allocation3 + $0x110] sm:$0xff] %vm3785_vm11, %v5286_v25  ;;  %v5287_v55 = vmax.f32 %v5081_v9, 0.0  ;;  %v5588_v22 = vmax.f32 %v5458_v30, %v5536_v19  ;;  %5383 = vst.msk [vmem:[#allocation3 + $0x1a8] sm:$0xff] %vm3785_vm11, %v5305_v35 }
 0x50b   : > { %v5157_v60 = vpop.f32.mrb[24].mxu1 }
 0x50c   : > { %5365 = vst.msk [vmem:[#allocation3 + $0x118] sm:$0xff] %vm3785_vm11, %v5287_v55  ;;  %v7079_v17 = vadd.f32 %v10849_v51, %v5157_v60  ;;  %v6905_v42 = vpop.f32.mrb[25].mxu1  ;;  %v5681_v0 = vrot.slane %v5588_v22, 5 }
 0x50d   : > { %v5160_v54 = vpop.f32.mrb[26].mxu1 }
 0x50e   : > { %v5306_v18 = vmax.f32 %v7079_v17, 0.0  ;;  %v7080_v37 = vadd.f32 %v10849_v51, %v5160_v54  ;;  %v6906_v41 = vpop.f32.mrb[27].mxu1  ;;  %v5682_v14 = vsel %vm5640_vm13, %v5679_v11, %v5681_v0 }
 0x50f   : > { %v4740_v3 = vpop.f32.mrb[244].mxu0  ;;  %v5748_v20 = vmax.f32 %v10889_v47, %v5682_v14 }
 0x510   : > { %5384 = vst.msk [vmem:[#allocation3 + $0x1b0] sm:$0xff] %vm3785_vm11, %v5306_v18  ;;  %v5307_v2 = vmax.f32 %v7080_v37, 0.0  ;;  %v4741_v12 = vadd.f32 %v10849_v51, %v4740_v3  ;;  %v4742_v24 = vpop.f32.mrb[245].mxu0  ;;  %v5666_v37 = vrot.slane %v5579_v59, 5 }
 0x511   : > { %v4743_v36 = vpop.f32.mrb[246].mxu0  ;;  %v5460_v45 = vld [vmem:[#allocation3 + $0x1a0] ss:$2 sm:$0xff]  ;;  %v5538_v7 = vld [vmem:[#allocation3 + $0x1a1] ss:$2 sm:$0xff]  ;;  %v10901_v6 = vrot.slane %v5748_v20, 2 }
 0x512   : > { %5385 = vst.msk [vmem:[#allocation3 + $0x1b8] sm:$0xff] %vm3785_vm11, %v5307_v2  ;;  %v5086_v49 = vadd.f32 %v10772_v63, %v4741_v12  ;;  %v4744_v13 = vadd.f32 %v10849_v51, %v4743_v36  ;;  %v4745_v56 = vpop.f32.mrb[247].mxu0  ;;  %v10887_v43 = vmax.f32 %v5460_v45, %v5538_v7 }
 0x513   : > { %v5165_v23 = vpop.f32.mrb[28].mxu1  ;;  %v5442_v53 = vld [vmem:[#allocation3 + $0x110] ss:$2 sm:$0xff]  ;;  %v5520_v40 = vld [vmem:[#allocation3 + $0x111] ss:$2 sm:$0xff] }
 0x514   : > { %v5288_v39 = vmax.f32 %v5086_v49, 0.0  ;;  %v5089_v58 = vadd.f32 %v10775_v8, %v4744_v13  ;;  %v7081_v48 = vadd.f32 %v10849_v51, %v5165_v23  ;;  %v6909_v26 = vpop.f32.mrb[29].mxu1  ;;  %v5683_v63 = vrot.slane %v10887_v43, 5 }
 0x515   : > { %v5168_v4 = vpop.f32.mrb[30].mxu1  ;;  %v10909_v60 = vmax.f32 %v5442_v53, %v5520_v40 }
 0x516   : > { %5366 = vst.msk [vmem:[#allocation3 + $0x120] sm:$0xff] %vm3785_vm11, %v5288_v39  ;;  %v5289_v52 = vmax.f32 %v5089_v58, 0.0  ;;  %v5308_v1 = vmax.f32 %v7081_v48, 0.0  ;;  %v7082_v27 = vadd.f32 %v10849_v51, %v5168_v4  ;;  %v6910_v34 = vpop.f32.mrb[31].mxu1  ;;  %v5684_v31 = vsel %vm5640_vm13, %v5681_v0, %v5683_v63 }
 0x517   : > { %v5749_v8 = vmax.f32 %v10875_v32, %v5684_v31  ;;  %v5668_v13 = vrot.slane %v10909_v60, 5 }
 0x518   : > { %5367 = vst.msk [vmem:[#allocation3 + $0x128] sm:$0xff] %vm3785_vm11, %v5289_v52  ;;  %5386 = vst.msk [vmem:[#allocation3 + $0x1c0] sm:$0xff] %vm3785_vm11, %v5308_v1  ;;  %v5309_v38 = vmax.f32 %v7082_v27, 0.0 }
 0x519   : > { %v5805_v57 = vrot.slane %v5749_v8, 2  ;;  %v5462_v35 = vld [vmem:[#allocation3 + $0x1b0] ss:$2 sm:$0xff]  ;;  %v5540_v15 = vld [vmem:[#allocation3 + $0x1b1] ss:$2 sm:$0xff] }
 0x51a   : > { %5387 = vst.msk [vmem:[#allocation3 + $0x1c8] sm:$0xff] %vm3785_vm11, %v5309_v38  ;;  %v10914_v24 = vmax.f32 %v5462_v35, %v5540_v15  ;;  %v5452_v35 = vld [vmem:[#allocation3 + $0x160] ss:$2 sm:$0xff] }
 0x51b   : > { %v5173_v33 = vpop.f32.mrb[32].mxu1  ;;  %v4748_v25 = vpop.f32.mrb[248].mxu0  ;;  %v5806_v19 = vsel %vm3027_vm9, %v10901_v6, %v5805_v57 }
 0x51c   : > { %v7083_v9 = vadd.f32 %v10849_v51, %v5173_v33  ;;  %v6913_v30 = vpop.f32.mrb[33].mxu1  ;;  %v4749_v16 = vadd.f32 %v10849_v51, %v4748_v25  ;;  %v4750_v55 = vpop.f32.mrb[249].mxu0  ;;  %5850 = vst.msk [vmem:[#allocation4 + $0x58] sm:$0xff] %vm3785_vm11, %v5806_v19  ;;  %v5685_v58 = vrot.slane %v10914_v24, 5 }
 0x51d   : > { %v5176_v22 = vpop.f32.mrb[34].mxu1  ;;  %v4751_v42 = vpop.f32.mrb[250].mxu0 }
 0x51e   : > { %v5310_v17 = vmax.f32 %v7083_v9, 0.0  ;;  %v7084_v54 = vadd.f32 %v10849_v51, %v5176_v22  ;;  %v6914_v18 = vpop.f32.mrb[35].mxu1  ;;  %v5094_v3 = vadd.f32 %v10781_v28, %v4749_v16  ;;  %v4752_v2 = vadd.f32 %v10849_v51, %v4751_v42  ;;  %v4753_v12 = vpop.f32.mrb[251].mxu0 }
 0x51f   : > { %v5444_v41 = vld [vmem:[#allocation3 + $0x120] ss:$2 sm:$0xff]  ;;  %v5522_v0 = vld [vmem:[#allocation3 + $0x121] ss:$2 sm:$0xff]  ;;  %v5667_v28 = vsel %vm5640_vm13, %v10853_v61, %v5666_v37  ;;  %v5450_v37 = vld [vmem:[#allocation3 + $0x150] ss:$2 sm:$0xff] }
 0x520   : > { %v5581_v5 = vmax.f32 %v5444_v41, %v5522_v0  ;;  %5388 = vst.msk [vmem:[#allocation3 + $0x1d0] sm:$0xff] %vm3785_vm11, %v5310_v17  ;;  %v5311_v21 = vmax.f32 %v7084_v54, 0.0  ;;  %v5290_v7 = vmax.f32 %v5094_v3, 0.0  ;;  %v5097_v49 = vadd.f32 %v10784_v10, %v4752_v2  ;;  %v5530_v17 = vld [vmem:[#allocation3 + $0x161] ss:$2 sm:$0xff] }
 0x521   : > { %v5464_v36 = vld [vmem:[#allocation3 + $0x1c0] ss:$2 sm:$0xff]  ;;  %v5542_v45 = vld [vmem:[#allocation3 + $0x1c1] ss:$2 sm:$0xff]  ;;  %v5742_v44 = vmax.f32 %v10843_v50, %v5667_v28  ;;  %v5528_v3 = vld [vmem:[#allocation3 + $0x151] ss:$2 sm:$0xff]  ;;  %v5585_v12 = vmax.f32 %v5452_v35, %v5530_v17 }
 0x522   : > { %v5669_v56 = vrot.slane %v5581_v5, 5  ;;  %v5591_v14 = vmax.f32 %v5464_v36, %v5542_v45  ;;  %5389 = vst.msk [vmem:[#allocation3 + $0x1d8] sm:$0xff] %vm3785_vm11, %v5311_v21  ;;  %5368 = vst.msk [vmem:[#allocation3 + $0x130] sm:$0xff] %vm3785_vm11, %v5290_v7  ;;  %v5291_v23 = vmax.f32 %v5097_v49, 0.0  ;;  %v5879_v2 = vld [vmem:[#allocation4 + $0x21] ss:$2 sm:$0xff] }
 0x523   : > { %v5181_v39 = vpop.f32.mrb[36].mxu1 }
 0x524   : > { %v5670_v48 = vsel %vm5640_vm13, %v5668_v13, %v5669_v56  ;;  %v10925_v26 = vrot.slane %v5591_v14, 5  ;;  %v7085_v10 = vadd.f32 %v10849_v51, %v5181_v39  ;;  %v6917_v63 = vpop.f32.mrb[37].mxu1  ;;  %5369 = vst.msk [vmem:[#allocation3 + $0x138] sm:$0xff] %vm3785_vm11, %v5291_v23 }
 0x525   : > { %v5743_v4 = vmax.f32 %v5579_v59, %v5670_v48  ;;  %v5184_v20 = vpop.f32.mrb[38].mxu1 }
 0x526   : > { %v5687_v61 = vsel %vm5640_vm13, %v5685_v58, %v10925_v26  ;;  %v5312_v52 = vmax.f32 %v7085_v10, 0.0  ;;  %v7086_v1 = vadd.f32 %v10849_v51, %v5184_v20  ;;  %v6918_v27 = vpop.f32.mrb[39].mxu1  ;;  %v5676_v10 = vrot.slane %v5585_v12, 5 }
 0x527   : > { %v10932_v34 = vrot.slane %v5743_v4, 6  ;;  %v5750_v31 = vmax.f32 %v10887_v43, %v5687_v61  ;;  %v4756_v8 = vpop.f32.mrb[252].mxu0 }
 0x528   : > { %5390 = vst.msk [vmem:[#allocation3 + $0x1e0] sm:$0xff] %vm3785_vm11, %v5312_v52  ;;  %v5313_v62 = vmax.f32 %v7086_v1, 0.0  ;;  %v4757_v38 = vadd.f32 %v10849_v51, %v4756_v8  ;;  %v4758_v57 = vpop.f32.mrb[253].mxu0 }
 0x529   : > { %5851 = vst.msk [vmem:[#allocation4 + $0x60] sm:$0xff] %vm3785_vm11, %v5750_v31  ;;  %v5835_v59 = vsel %vm711_vm0, %v5742_v44, %v10932_v34  ;;  %v4759_v53 = vpop.f32.mrb[254].mxu0  ;;  %v5466_v21 = vld [vmem:[#allocation3 + $0x1d0] ss:$2 sm:$0xff]  ;;  %v5544_v36 = vld [vmem:[#allocation3 + $0x1d1] ss:$2 sm:$0xff] }
 0x52a   : > { %5391 = vst.msk [vmem:[#allocation3 + $0x1e8] sm:$0xff] %vm3785_vm11, %v5313_v62  ;;  %5846 = vst.msk [vmem:[#allocation4 + $0x38] sm:$0xff] %vm3785_vm11, %v5835_v59  ;;  %v5102_v43 = vadd.f32 %v10790_v46, %v4757_v38  ;;  %v4760_v50 = vadd.f32 %v10849_v51, %v4759_v53  ;;  %v4761_v40 = vpop.f32.mrb[255].mxu0  ;;  %v5678_v46 = vrot.slane %v10889_v47, 5 }
 0x52b   : > { %v5189_v33 = vpop.f32.mrb[40].mxu1  ;;  %v5446_v25 = vld [vmem:[#allocation3 + $0x130] ss:$2 sm:$0xff]  ;;  %v5524_v9 = vld [vmem:[#allocation3 + $0x131] ss:$2 sm:$0xff] }
 0x52c   : > { %v7087_v30 = vadd.f32 %v10849_v51, %v5189_v33  ;;  %v6921_v19 = vpop.f32.mrb[41].mxu1  ;;  %v10946_v15 = vmax.f32 %v5446_v25, %v5524_v9  ;;  %v5292_v16 = vmax.f32 %v5102_v43, 0.0  ;;  %v5105_v55 = vadd.f32 %v10794_v29, %v4760_v50  ;;  %v5857_v9 = vld [vmem:[#allocation4] ss:$2 sm:$0xff] }
 0x52d   : > { %v5192_v22 = vpop.f32.mrb[42].mxu1  ;;  %v5680_v29 = vsel %vm5640_vm13, %v5678_v46, %v5679_v11  ;;  %v5584_v11 = vmax.f32 %v5450_v37, %v5528_v3 }
 0x52e   : > { %v5314_v42 = vmax.f32 %v7087_v30, 0.0  ;;  %v7088_v54 = vadd.f32 %v10849_v51, %v5192_v22  ;;  %v6922_v18 = vpop.f32.mrb[43].mxu1  ;;  %v5671_v41 = vrot.slane %v10946_v15, 5  ;;  %5370 = vst.msk [vmem:[#allocation3 + $0x140] sm:$0xff] %vm3785_vm11, %v5292_v16  ;;  %v5293_v0 = vmax.f32 %v5105_v55, 0.0 }
 0x52f   : > { %v5747_v49 = vmax.f32 %v5585_v12, %v5680_v29  ;;  %v5674_v61 = vrot.slane %v5584_v11, 5  ;;  %v5859_v55 = vld [vmem:[#allocation4 + $0x10] ss:$2 sm:$0xff] }
 0x530   : > { %5392 = vst.msk [vmem:[#allocation3 + $0x1f0] sm:$0xff] %vm3785_vm11, %v5314_v42  ;;  %v5315_v47 = vmax.f32 %v7088_v54, 0.0  ;;  %v5672_v5 = vsel %vm5640_vm13, %v5669_v56, %v5671_v41  ;;  %5371 = vst.msk [vmem:[#allocation3 + $0x148] sm:$0xff] %vm3785_vm11, %v5293_v0  ;;  %v10968_v56 = vmax.f32 %v5466_v21, %v5544_v36 }
 0x531   : > { %v5881_v45 = vld [vmem:[#allocation4 + $0x31] ss:$2 sm:$0xff]  ;;  %v5744_v32 = vmax.f32 %v10909_v60, %v5672_v5  ;;  %v5468_v39 = vld [vmem:[#allocation3 + $0x1e0] ss:$2 sm:$0xff]  ;;  %v5802_v52 = vrot.slane %v5747_v49, 2  ;;  %v5677_v59 = vsel %vm5640_vm13, %v5674_v61, %v5676_v10 }
 0x532   : > { %5393 = vst.msk [vmem:[#allocation3 + $0x1f8] sm:$0xff] %vm3785_vm11, %v5315_v47  ;;  %v7228_v7 = vpack.i.bf16 %v5881_v45, %v5879_v2  ;;  %v5546_v58 = vld [vmem:[#allocation3 + $0x1e1] ss:$2 sm:$0xff]  ;;  %v5688_v1 = vrot.slane %v10968_v56, 5 }
 0x533   : > { %v5197_v13 = vpop.f32.mrb[44].mxu1  ;;  %v5788_v23 = vrot.slane %v5744_v32, 6  ;;  %v10983_v27 = vmax.f32 %v5468_v39, %v5546_v58  ;;  %v5804_v43 = vsel %vm3027_vm9, %v5802_v52, %v10901_v6 }
 0x534   : > { %v7089_v14 = vadd.f32 %v10849_v51, %v5197_v13  ;;  %v6925_v28 = vpop.f32.mrb[45].mxu1  ;;  %7229 = vrot.lane.b32.xlu1 %v7228_v7, %s7524_s23  ;;  %v5689_v19 = vsel %vm5640_vm13, %v10925_v26, %v5688_v1 }
 0x535   : > { %v5200_v48 = vpop.f32.mrb[46].mxu1  ;;  %v5789_v20 = vsel %vm5761_vm14, %v10932_v34, %v5788_v23  ;;  %v5690_v35 = vrot.slane %v10983_v27, 5  ;;  %v5751_v5 = vmax.f32 %v10914_v24, %v5689_v19 }
 0x536   : > { %v5316_v63 = vmax.f32 %v7089_v14, 0.0  ;;  %v7090_v60 = vadd.f32 %v10849_v51, %v5200_v48  ;;  %v6926_v4 = vpop.f32.mrb[47].mxu1  ;;  %5847 = vst.msk [vmem:[#allocation4 + $0x40] sm:$0xff] %vm3785_vm11, %v5789_v20 }
 0x537   : > { %v5448_v31 = vld [vmem:[#allocation3 + $0x140] ss:$2 sm:$0xff]  ;;  %v5526_v44 = vld [vmem:[#allocation3 + $0x141] ss:$2 sm:$0xff] }
 0x538   : > { %5394 = vst.msk [vmem:[#allocation3 + $0x200] sm:$0xff] %vm3785_vm11, %v5316_v63  ;;  %v5317_v62 = vmax.f32 %v7090_v60, 0.0  ;;  %v5583_v8 = vmax.f32 %v5448_v31, %v5526_v44 }
 0x539   : > { %v5470_v38 = vld [vmem:[#allocation3 + $0x1f0] ss:$2 sm:$0xff]  ;;  %v5548_v57 = vld [vmem:[#allocation3 + $0x1f1] ss:$2 sm:$0xff] }
 0x53a   : > { %v5594_v34 = vmax.f32 %v5470_v38, %v5548_v57  ;;  %5395 = vst.msk [vmem:[#allocation3 + $0x208] sm:$0xff] %vm3785_vm11, %v5317_v62  ;;  %v7225_v53 = vpop.permute.xlu0 %7224  ;;  %v5673_v50 = vrot.slane %v5583_v8, 5  ;;  %v5746_v40 = vmax.f32 %v5583_v8, %v5677_v59 }
 0x53b   : > { %v7227_v33 = vunpack.i.h.bf16 %v7225_v53  ;;  %v7226_v25 = vunpack.i.l.bf16 %v7225_v53  ;;  %v5205_v30 = vpop.f32.mrb[48].mxu1 }
 0x53c   : > { %v5691_v16 = vrot.slane %v5594_v34, 5  ;;  %v7091_v22 = vadd.f32 %v10849_v51, %v5205_v30  ;;  %v6929_v17 = vpop.f32.mrb[49].mxu1  ;;  %v5675_v46 = vsel %vm5640_vm13, %v5673_v50, %v5674_v61  ;;  %v5795_v42 = vrot.slane %v5746_v40, 4 }
 0x53d   : > { %v5929_v6 = vsel %vm3785_vm11, %v5859_v55, %v7227_v33  ;;  %v5928_v26 = vsel %vm3785_vm11, %v5857_v9, %v7226_v25  ;;  %v5208_v54 = vpop.f32.mrb[50].mxu1  ;;  %v5745_v47 = vmax.f32 %v10946_v15, %v5675_v46 }
 0x53e   : > { %v5692_v18 = vsel %vm5640_vm13, %v5690_v35, %v5691_v16  ;;  %v6512_v37 = vpack.c.bf16 %v5929_v6, %v5928_v26  ;;  %v5318_v41 = vmax.f32 %v7091_v22, 0.0  ;;  %v7092_v0 = vadd.f32 %v10849_v51, %v5208_v54  ;;  %v6930_v3 = vpop.f32.mrb[51].mxu1 }
 0x53f   : > { %v5752_v29 = vmax.f32 %v10968_v56, %v5692_v18  ;;  %v5836_v2 = vsel %vm711_vm0, %v5795_v42, %v5804_v43  ;;  %v5794_v7 = vrot.slane %v5745_v47, 4 }
 0x540   : > { %6513 = vst [vmem:[%s10999_s27] sm:$0xff] %v6512_v37   ;;  %5396 = vst.msk [vmem:[#allocation3 + $0x210] sm:$0xff] %vm3785_vm11, %v5318_v41  ;;  %v5319_v12 = vmax.f32 %v7092_v0, 0.0 }
 0x541   : > { %5849 = vst.msk [vmem:[#allocation4 + $0x50] sm:$0xff] %vm3785_vm11, %v5836_v2  ;;  %v5811_v21 = vrot.slane %v5752_v29, 6  ;;  %v5472_v36 = vld [vmem:[#allocation3 + $0x200] ss:$2 sm:$0xff]  ;;  %v5550_v45 = vld [vmem:[#allocation3 + $0x201] ss:$2 sm:$0xff]  ;;  %v5796_v15 = vsel %vm711_vm0, %v5794_v7, %v5795_v42 }
 0x542   : > { %v11012_v32 = vmax.f32 %v5472_v36, %v5550_v45  ;;  %5397 = vst.msk [vmem:[#allocation3 + $0x218] sm:$0xff] %vm3785_vm11, %v5319_v12  ;;  %5848 = vst.msk [vmem:[#allocation4 + $0x48] sm:$0xff] %vm3785_vm11, %v5796_v15 }
 0x543   : > { %v5213_v11 = vpop.f32.mrb[52].mxu1  ;;  %v5837_v49 = vsel %vm711_vm0, %v5751_v5, %v5811_v21 }
 0x544   : > { %v5693_v13 = vrot.slane %v11012_v32, 5  ;;  %v7093_v56 = vadd.f32 %v10849_v51, %v5213_v11  ;;  %v6933_v14 = vpop.f32.mrb[53].mxu1  ;;  %5852 = vst.msk [vmem:[#allocation4 + $0x68] sm:$0xff] %vm3785_vm11, %v5837_v49 }
 0x545   : > { %v5216_v24 = vpop.f32.mrb[54].mxu1 }
 0x546   : > { %v5694_v28 = vsel %vm5640_vm13, %v5691_v16, %v5693_v13  ;;  %v5320_v23 = vmax.f32 %v7093_v56, 0.0  ;;  %v7094_v39 = vadd.f32 %v10849_v51, %v5216_v24  ;;  %v6934_v58 = vpop.f32.mrb[55].mxu1 }
 0x547   : > { %v5753_v48 = vmax.f32 %v10983_v27, %v5694_v28 }
 0x548   : > { %5398 = vst.msk [vmem:[#allocation3 + $0x220] sm:$0xff] %vm3785_vm11, %v5320_v23  ;;  %v5321_v10 = vmax.f32 %v7094_v39, 0.0  ;;  %v5885_v20 = vld [vmem:[#allocation4 + $0x51] ss:$2 sm:$0xff] }
 0x549   : > { %v5812_v63 = vrot.slane %v5753_v48, 6  ;;  %v5883_v4 = vld [vmem:[#allocation4 + $0x41] ss:$2 sm:$0xff]  ;;  %v5474_v38 = vld [vmem:[#allocation3 + $0x210] ss:$2 sm:$0xff] }
 0x54a   : > { %5399 = vst.msk [vmem:[#allocation3 + $0x228] sm:$0xff] %vm3785_vm11, %v5321_v10  ;;  %v7233_v31 = vpack.i.bf16 %v5885_v20, %v5883_v4  ;;  %v5552_v59 = vld [vmem:[#allocation3 + $0x211] ss:$2 sm:$0xff] }
 0x54b   : > { %v5221_v60 = vpop.f32.mrb[56].mxu1  ;;  %v5813_v61 = vsel %vm5761_vm14, %v5811_v21, %v5812_v63  ;;  %v5596_v40 = vmax.f32 %v5474_v38, %v5552_v59  ;;  %v5887_v48 = vld [vmem:[#allocation4 + $0x61] ss:$2 sm:$0xff] }
 0x54c   : > { %v7095_v52 = vadd.f32 %v10849_v51, %v5221_v60  ;;  %v6937_v1 = vpop.f32.mrb[57].mxu1  ;;  %5853 = vst.msk [vmem:[#allocation4 + $0x70] sm:$0xff] %vm3785_vm11, %v5813_v61  ;;  %7234 = vrot.lane.b32.xlu0 %v7233_v31, %s7524_s23 }
 0x54d   : > { %v5224_v44 = vpop.f32.mrb[58].mxu1  ;;  %v5695_v55 = vrot.slane %v5596_v40, 5 }
 0x54e   : > { %v5322_v62 = vmax.f32 %v7095_v52, 0.0  ;;  %v7096_v27 = vadd.f32 %v10849_v51, %v5224_v44  ;;  %v6938_v8 = vpop.f32.mrb[59].mxu1 }
 0x550   : > { %5400 = vst.msk [vmem:[#allocation3 + $0x230] sm:$0xff] %vm3785_vm11, %v5322_v62  ;;  %v5323_v57 = vmax.f32 %v7096_v27, 0.0 }
 0x551   : > { %v5476_v34 = vld [vmem:[#allocation3 + $0x220] ss:$2 sm:$0xff]  ;;  %v5554_v53 = vld [vmem:[#allocation3 + $0x221] ss:$2 sm:$0xff] }
 0x552   : > { %v5597_v43 = vmax.f32 %v5476_v34, %v5554_v53  ;;  %5401 = vst.msk [vmem:[#allocation3 + $0x238] sm:$0xff] %vm3785_vm11, %v5323_v57 }
 0x553   : > { %v5229_v50 = vpop.f32.mrb[60].mxu1 }
 0x554   : > { %v7097_v33 = vadd.f32 %v10849_v51, %v5229_v50  ;;  %v6941_v25 = vpop.f32.mrb[61].mxu1  ;;  %v5696_v30 = vrot.slane %v5597_v43, 5 }
 0x555   : > { %v5232_v9 = vpop.f32.mrb[62].mxu1 }
 0x556   : > { %v5324_v19 = vmax.f32 %v7097_v33, 0.0  ;;  %v7098_v35 = vadd.f32 %v10849_v51, %v5232_v9  ;;  %v6942_v16 = vpop.f32.mrb[63].mxu1  ;;  %v5697_v42 = vsel %vm5640_vm13, %v5695_v55, %v5696_v30  ;;  %v5863_v9 = vld [vmem:[#allocation4 + $0x30] ss:$2 sm:$0xff] }
 0x557   : > { %v5754_v41 = vmax.f32 %v11012_v32, %v5697_v42  ;;  %v5867_v42 = vld [vmem:[#allocation4 + $0x50] ss:$2 sm:$0xff] }
 0x558   : > { %5402 = vst.msk [vmem:[#allocation3 + $0x240] sm:$0xff] %vm3785_vm11, %v5324_v19  ;;  %v5325_v22 = vmax.f32 %v7098_v35, 0.0 }
 0x559   : > { %v5478_v17 = vld [vmem:[#allocation3 + $0x230] ss:$2 sm:$0xff]  ;;  %v5556_v46 = vld [vmem:[#allocation3 + $0x231] ss:$2 sm:$0xff]  ;;  %v5818_v21 = vrot.slane %v5754_v41, 4 }
 0x55a   : > { %v5598_v6 = vmax.f32 %v5478_v17, %v5556_v46  ;;  %5403 = vst.msk [vmem:[#allocation3 + $0x248] sm:$0xff] %vm3785_vm11, %v5325_v22  ;;  %v5865_v46 = vld [vmem:[#allocation4 + $0x40] ss:$2 sm:$0xff] }
 0x55b   : > { %v5237_v26 = vpop.f32.mrb[64].mxu1 }
 0x55c   : > { %v5698_v54 = vrot.slane %v5598_v6, 5  ;;  %v7099_v18 = vadd.f32 %v10849_v51, %v5237_v26  ;;  %v6945_v37 = vpop.f32.mrb[65].mxu1 }
 0x55d   : > { %v5240_v0 = vpop.f32.mrb[66].mxu1 }
 0x55e   : > { %v5699_v3 = vsel %vm5640_vm13, %v5696_v30, %v5698_v54  ;;  %v5326_v29 = vmax.f32 %v7099_v18, 0.0  ;;  %v7100_v47 = vadd.f32 %v10849_v51, %v5240_v0  ;;  %v6946_v2 = vpop.f32.mrb[67].mxu1  ;;  %v5861_v30 = vld [vmem:[#allocation4 + $0x20] ss:$2 sm:$0xff] }
 0x55f   : > { %v5755_v12 = vmax.f32 %v5596_v40, %v5699_v3  ;;  %v5869_v0 = vld [vmem:[#allocation4 + $0x60] ss:$2 sm:$0xff] }
 0x560   : > { %5404 = vst.msk [vmem:[#allocation3 + $0x250] sm:$0xff] %vm3785_vm11, %v5326_v29  ;;  %v5327_v5 = vmax.f32 %v7100_v47, 0.0 }
 0x561   : > { %v5819_v36 = vrot.slane %v5755_v12, 4  ;;  %v5480_v14 = vld [vmem:[#allocation3 + $0x240] ss:$2 sm:$0xff]  ;;  %v5558_v28 = vld [vmem:[#allocation3 + $0x241] ss:$2 sm:$0xff] }
 0x562   : > { %5405 = vst.msk [vmem:[#allocation3 + $0x258] sm:$0xff] %vm3785_vm11, %v5327_v5  ;;  %v5599_v63 = vmax.f32 %v5480_v14, %v5558_v28 }
 0x563   : > { %v5245_v45 = vpop.f32.mrb[68].mxu1  ;;  %v5820_v7 = vsel %vm711_vm0, %v5818_v21, %v5819_v36 }
 0x564   : > { %v7101_v32 = vadd.f32 %v10849_v51, %v5245_v45  ;;  %v6949_v11 = vpop.f32.mrb[69].mxu1  ;;  %5854 = vst.msk [vmem:[#allocation4 + $0x78] sm:$0xff] %vm3785_vm11, %v5820_v7  ;;  %v5700_v20 = vrot.slane %v5599_v63, 5 }
 0x565   : > { %v5248_v15 = vpop.f32.mrb[70].mxu1 }
 0x566   : > { %v5328_v49 = vmax.f32 %v7101_v32, 0.0  ;;  %v7102_v13 = vadd.f32 %v10849_v51, %v5248_v15  ;;  %v6950_v56 = vpop.f32.mrb[71].mxu1 }
 0x568   : > { %5406 = vst.msk [vmem:[#allocation3 + $0x260] sm:$0xff] %vm3785_vm11, %v5328_v49  ;;  %v5329_v24 = vmax.f32 %v7102_v13, 0.0 }
 0x569   : > { %v5482_v23 = vld [vmem:[#allocation3 + $0x250] ss:$2 sm:$0xff]  ;;  %v5560_v39 = vld [vmem:[#allocation3 + $0x251] ss:$2 sm:$0xff] }
 0x56a   : > { %v5600_v58 = vmax.f32 %v5482_v23, %v5560_v39  ;;  %5407 = vst.msk [vmem:[#allocation3 + $0x268] sm:$0xff] %vm3785_vm11, %v5329_v24 }
 0x56b   : > { %v5889_v10 = vld [vmem:[#allocation4 + $0x71] ss:$2 sm:$0xff]  ;;  %v5871_v3 = vld [vmem:[#allocation4 + $0x70] ss:$2 sm:$0xff] }
 0x56c   : > { %v7238_v60 = vpack.i.bf16 %v5889_v10, %v5887_v48  ;;  %v5701_v4 = vrot.slane %v5600_v58, 5 }
 0x56e   : > { %7239 = vrot.lane.b32.xlu1 %v7238_v60, %s7524_s23  ;;  %v5702_v52 = vsel %vm5640_vm13, %v5700_v20, %v5701_v4 }
 0x56f   : > { %v5756_v44 = vmax.f32 %v5598_v6, %v5702_v52 }
 0x571   : > { %v5484_v51 = vld [vmem:[#allocation3 + $0x260] ss:$2 sm:$0xff]  ;;  %v5562_v61 = vld [vmem:[#allocation3 + $0x261] ss:$2 sm:$0xff]  ;;  %v5826_v57 = vrot.slane %v5756_v44, 2 }
 0x572   : > { %v5601_v1 = vmax.f32 %v5484_v51, %v5562_v61 }
 0x574   : > { %v5703_v31 = vrot.slane %v5601_v1, 5 }
 0x576   : > { %v5704_v62 = vsel %vm5640_vm13, %v5701_v4, %v5703_v31  ;;  %v5758_v27 = vmax.f32 %v5600_v58, %v5703_v31 }
 0x577   : > { %v5757_v8 = vmax.f32 %v5599_v63, %v5704_v62 }
 0x578   : > { %v5829_v38 = vrot.slane %v5758_v27, 2 }
 0x579   : > { %v5827_v59 = vrot.slane %v5757_v8, 2 }
 0x57b   : > { %v5828_v34 = vsel %vm3027_vm9, %v5826_v57, %v5827_v59  ;;  %v5830_v53 = vsel %vm3027_vm9, %v5827_v59, %v5829_v38 }
 0x57c   : > { %v5838_v43 = vsel %vm711_vm0, %v5819_v36, %v5828_v34  ;;  %5856 = vst.msk [vmem:[#allocation4 + $0x88] sm:$0xff] %vm3785_vm11, %v5830_v53 }
 0x57d   : > { %5855 = vst.msk [vmem:[#allocation4 + $0x80] sm:$0xff] %vm3785_vm11, %v5838_v43 }
 0x584   : > { %v5891_v50 = vld [vmem:[#allocation4 + $0x81] ss:$2 sm:$0xff]  ;;  %v5873_v12 = vld [vmem:[#allocation4 + $0x80] ss:$2 sm:$0xff] }
 0x585   : > { %5917 = vrot.lane.b32.xlu0 %v5891_v50, %s7524_s23 }
 0x5a6   : > { %v7230_v40 = vpop.permute.xlu1 %7229 }
 0x5a7   : > { %v7232_v33 = vunpack.i.h.bf16 %v7230_v40  ;;  %v7231_v25 = vunpack.i.l.bf16 %v7230_v40 }
 0x5a9   : > { %v5931_v19 = vsel %vm3785_vm11, %v5863_v9, %v7232_v33  ;;  %v5930_v35 = vsel %vm3785_vm11, %v5861_v30, %v7231_v25 }
 0x5aa   : > { %v6517_v16 = vpack.c.bf16 %v5931_v19, %v5930_v35 }
 0x5ac   : > { %6529 = vst [vmem:[%s10999_s27 + $0x8] sm:$0xff] %v6517_v16  }
 0x5be   : > { %v7235_v55 = vpop.permute.xlu0 %7234 }
 0x5bf   : > { %v7237_v22 = vunpack.i.h.bf16 %v7235_v55  ;;  %v7236_v17 = vunpack.i.l.bf16 %v7235_v55 }
 0x5c1   : > { %v5933_v6 = vsel %vm3785_vm11, %v5867_v42, %v7237_v22  ;;  %v5932_v26 = vsel %vm3785_vm11, %v5865_v46, %v7236_v17 }
 0x5c2   : > { %v6522_v54 = vpack.c.bf16 %v5933_v6, %v5932_v26 }
 0x5c4   : > { %6530 = vst [vmem:[%s10999_s27 + $0x10] sm:$0xff] %v6522_v54  }
 0x5e0   : > { %v7240_v18 = vpop.permute.xlu1 %7239 }
 0x5e1   : > { %v7242_v37 = vunpack.i.h.bf16 %v7240_v18  ;;  %v7241_v41 = vunpack.i.l.bf16 %v7240_v18 }
 0x5e3   : > { %v5935_v29 = vsel %vm3785_vm11, %v5871_v3, %v7242_v37  ;;  %v5934_v47 = vsel %vm3785_vm11, %v5869_v0, %v7241_v41 }
 0x5e4   : > { %v6527_v2 = vpack.c.bf16 %v5935_v29, %v5934_v47 }
 0x5e6   : > { %6531 = vst [vmem:[%s10999_s27 + $0x18] sm:$0xff] %v6527_v2  }
 0x5f7   : > { %v5918_v5 = vpop.permute.xlu0 %5917 }
 0x5f8   : > { %v5936_v21 = vsel %vm3785_vm11, %v5873_v12, %v5918_v5 }
 0x5f9   : > { %v6508_v36 = vpack.c.bf16 %v5936_v21, %v5936_v21 }
 0x5fb   : > { %5982 = vst [vmem:[%s10999_s27 + $0x20] sm:$0xf] %v6508_v36 }
 0x5fc PF: > { %s17_s18 = sadd.s32 1, %s7513_s18  }
 0x5fd   : > { %p14_p10 = scmp.ge.s32.totalorder %s17_s18, 4  }
 0x5ff   :  { %16 = sbr.rel (!%p14_p10) target bundleno = 2 (0x2), region = 177 }
 0x606   :  { %6005 = vsyncpa [#allocation6], 1 }
 0x607   :  { %6007 = vsyncpa [#allocation6 + $0x1], 1 }
 0x608   :  { %6008 = vsyncpa [#allocation8], 1 }

</bundles_post_ra>
